<compile_context>
chip_gen: v7x
topology: tpu7x:2x2x1
jax: 0.10.0
libtpu: 0.0.40
codegen_flags: <defaults>
</compile_context>

<pallas_src>
import math

import jax
import jax.numpy as jnp
from jax import lax
from jax.experimental import pallas as pl
from jax.experimental.pallas import tpu as pltpu


# Gate order used in all packed weights / kernel slices: [i, f, o, g].
# PyTorch stores LSTM row blocks as [i, f, g, o]; this permutation maps
# new-position -> pytorch-block.
_GATE_PERM = (0, 1, 3, 2)


# ----------------------------------------------------------------------------
# Fused Pallas kernel
# ----------------------------------------------------------------------------
def _make_textrnn_kernel(T, B, H):
    """Builds the fused TextRNN kernel for static (T, B, H).

    Chain order everywhere: [q_fwd, a_fwd, q_bwd, a_bwd]
      (chain n: encoder e = n % 2 (0=q, 1=a); direction d = n // 2 (0=fwd)).
    Gate order everywhere:  [i, f, o, g].
    """
    NC = 4                      # chains
    G4 = 4 * H                  # fused gate width per chain
    f32 = jnp.float32

    def kernel(xq_ref, xa_ref,
               w1x_ref, b1x_ref, w1h_ref,
               w2x_ref, b2x_ref, w2h_ref,
               cos_ref,
               gx_scr, out1_scr):
        # xq_ref/xa_ref : (T*B, D)     time-major flattened embeddings (row t*B+b)
        # w1x_ref       : (2, D, 8H)   layer-1 input weights  [fwd ifog | bwd ifog]
        # w2x_ref       : (2, 2H, 8H)  layer-2 input weights  (rows = [fwd H | bwd H])
        # b1x/b2x_ref   : (2, 1, 8H)   b_ih + b_hh, same column layout
        # w1h/w2h_ref   : (4, H, 4H)   recurrent weights per chain, gate-fused
        # cos_ref       : (B, 1)
        # gx_scr        : (4, T*B, 4H) hoisted input projections (reused per layer)
        # out1_scr      : (2, T*B, 2H) layer-1 hidden states at true positions

        # -------- hoisted input projection: one 8H-wide matmul per encoder ---
        def project(x_by_encoder, wx_ref, bx_ref):
            for e in range(2):
                proj = (jnp.dot(x_by_encoder[e], wx_ref[e],
                                preferred_element_type=f32)
                        + bx_ref[e])                      # (T*B, 8H) lane-dense
                # split once (outside the recurrence) into per-chain slabs so
                # every in-loop read is lane-aligned at offset 0.
                gx_scr[e] = proj[:, :G4]                  # fwd chain of encoder e
                gx_scr[2 + e] = proj[:, G4:]              # bwd chain of encoder e

        # -------- gate-fused LSTM cell ---------------------------------------
        def cell(pre, c_prev):
            # pre: (B, 4H) pre-activation, columns [i | f | o | g]
            sig = jax.nn.sigmoid(pre[:, :3 * H])          # i, f, o in one pass
            g_g = jnp.tanh(pre[:, 3 * H:])
            i_g = sig[:, :H]
            f_g = sig[:, H:2 * H]
            o_g = sig[:, 2 * H:]
            c_new = f_g * c_prev + i_g * g_g
            h_new = o_g * jnp.tanh(c_new)
            return h_new, c_new

        # -------- interleaved recurrence over the 4 chains --------------------
        # Static Python time loop (T is small): all scratch offsets are static,
        # so the recurrence contains no dynamic sublane slices.  Switch to a
        # partially-unrolled lax.fori_loop if T grows beyond ~32.
        def run_layer(whh_ref, sink):
            h = [jnp.zeros((B, H), f32) for _ in range(NC)]
            c = [jnp.zeros((B, H), f32) for _ in range(NC)]
            for t in range(T):
                for n in range(NC):
                    pos = t if n < 2 else T - 1 - t       # bwd chains reversed
                    row = pos * B
                    pre = (gx_scr[n, row:row + B, :]
                           + jnp.dot(h[n], whh_ref[n],
                                     preferred_element_type=f32))  # (B, 4H)
                    h[n], c[n] = cell(pre, c[n])
                    sink(n, row, h[n])

        # ===== layer 1 =========================================================
        project((xq_ref[...], xa_ref[...]), w1x_ref, b1x_ref)

        def store_out1(n, row, h_n):
            e, d = n % 2, n // 2
            # store hidden at its true sequence position (in-kernel "reversal")
            out1_scr[e, row:row + B, d * H:(d + 1) * H] = h_n

        run_layer(w1h_ref, store_out1)

        # ===== layer 2 =========================================================
        project((out1_scr[0], out1_scr[1]), w2x_ref, b2x_ref)

        # fused max-over-time pooling, kept entirely in vregs
        mp = [jnp.full((B, H), -jnp.inf, f32) for _ in range(NC)]

        def pool(n, row, h_n):
            mp[n] = jnp.maximum(mp[n], h_n)               # order-independent max

        run_layer(w2h_ref, pool)

        # -------- cosine similarity (F.cosine_similarity semantics) ----------
        q_f, a_f, q_b, a_b = mp               # each (B, H); q_vec = [q_f | q_b]
        dot_qa = jnp.sum(q_f * a_f + q_b * a_b, axis=-1, keepdims=True)  # (B,1)
        ssq_q = jnp.sum(q_f * q_f + q_b * q_b, axis=-1, keepdims=True)
        ssq_a = jnp.sum(a_f * a_f + a_b * a_b, axis=-1, keepdims=True)
        eps = jnp.float32(1e-8)
        # clamp each norm separately: max(||v||, eps) == sqrt(max(||v||^2, eps^2))
        inv_q = lax.rsqrt(jnp.maximum(ssq_q, eps * eps))
        inv_a = lax.rsqrt(jnp.maximum(ssq_a, eps * eps))
        cos_ref[...] = dot_qa * inv_q * inv_a

    return kernel


# ----------------------------------------------------------------------------
# Weight packing (done ONCE at parameter-load time, outside the jitted path)
# ----------------------------------------------------------------------------
def _gate_cols(w, H):
    """(4H, in) PyTorch weight -> (in, 4H) with columns ordered [i, f, o, g]."""
    return jnp.concatenate([w[g * H:(g + 1) * H, :].T for g in _GATE_PERM],
                           axis=1)


def _gate_bias(b_ih, b_hh, H):
    b = b_ih + b_hh
    return jnp.concatenate([b[g * H:(g + 1) * H] for g in _GATE_PERM], axis=0)


def pack_textrnn_params(lstm_q_params, lstm_a_params):
    """Pack PyTorch-format LSTM params into the kernel's fused layouts."""
    H = lstm_q_params[0]["fwd"][1].shape[1]          # w_hh: (4H, H)
    encs = (lstm_q_params, lstm_a_params)            # encoder order [q, a]

    def layer_x(layer):
        wx, bx = [], []
        for ep in encs:
            wf, _, bif, bhf = ep[layer]["fwd"]
            wb, _, bib, bhb = ep[layer]["bwd"]
            wx.append(jnp.concatenate([_gate_cols(wf, H), _gate_cols(wb, H)],
                                      axis=1))                       # (in, 8H)
            bx.append(jnp.concatenate([_gate_bias(bif, bhf, H),
                                       _gate_bias(bib, bhb, H)])[None, :])
        return jnp.stack(wx), jnp.stack(bx)          # (2, in, 8H), (2, 1, 8H)

    def layer_h(layer):
        wh = []
        for d in ("fwd", "bwd"):                     # chain order [q_f,a_f,q_b,a_b]
            for ep in encs:
                wh.append(_gate_cols(ep[layer][d][1], H))
        return jnp.stack(wh)                         # (4, H, 4H)

    w1x, b1x = layer_x(0)
    w2x, b2x = layer_x(1)
    return dict(w1x=w1x, b1x=b1x, w1h=layer_h(0),
                w2x=w2x, b2x=b2x, w2h=layer_h(1))


# ----------------------------------------------------------------------------
# Wrapper: embedding lookup + pallas_call
# ----------------------------------------------------------------------------
@jax.jit
def textrnn_forward(q_ids, a1_ids, emb_table, packed):
    """Equivalent of TextRNN.forward(q, a1) (a2=None branch). Returns (B,)."""
    B, T = q_ids.shape
    D = emb_table.shape[1]
    H = packed["w1h"].shape[1]

    # Embedding lookup + batch-first -> time-major flatten (XLA glue).
    q_emb = jnp.take(emb_table, q_ids, axis=0)                 # (B, T, D)
    a_emb = jnp.take(emb_table, a1_ids, axis=0)
    xq = jnp.transpose(q_emb, (1, 0, 2)).reshape(T * B, D)     # row = t*B + b
    xa = jnp.transpose(a_emb, (1, 0, 2)).reshape(T * B, D)

    def full_spec(a):
        return pl.BlockSpec(a.shape, lambda i, nd=a.ndim: (0,) * nd)

    args = (xq, xa, packed["w1x"], packed["b1x"], packed["w1h"],
            packed["w2x"], packed["b2x"], packed["w2h"])

    cos = pl.pallas_call(
        _make_textrnn_kernel(T, B, H),
        out_shape=jax.ShapeDtypeStruct((B, 1), jnp.float32),
        grid=(1,),
        in_specs=[full_spec(a) for a in args],
        out_specs=pl.BlockSpec((B, 1), lambda i: (0, 0)),
        scratch_shapes=[
            pltpu.VMEM((4, T * B, 4 * H), jnp.float32),   # fused input projections
            pltpu.VMEM((2, T * B, 2 * H), jnp.float32),   # layer-1 hidden states
        ],
        compiler_params=pltpu.CompilerParams(
            dimension_semantics=("arbitrary",)),
    )(*args)
    return cos[:, 0]


# ----------------------------------------------------------------------------
# Pure-JAX reference (mirrors PyTorch eval-mode semantics) for validation
# ----------------------------------------------------------------------------
def _lstm_dir_ref(x, w_ih, w_hh, b_ih, b_hh, reverse):
    T, B, _ = x.shape
    H = w_hh.shape[1]
    b = b_ih + b_hh

    def step(carry, x_t):
        h, c = carry
        gates = x_t @ w_ih.T + h @ w_hh.T + b
        i, f, g, o = jnp.split(gates, 4, axis=-1)
        i, f, o = jax.nn.sigmoid(i), jax.nn.sigmoid(f), jax.nn.sigmoid(o)
        g = jnp.tanh(g)
        c = f * c + i * g
        h = o * jnp.tanh(c)
        return (h, c), h

    xs = x[::-1] if reverse else x
    _, hs = lax.scan(step, (jnp.zeros((B, H)), jnp.zeros((B, H))), xs)
    return hs[::-1] if reverse else hs


def _bilstm_ref(x, layer_params):
    out = x
    for lp in layer_params:
        f = _lstm_dir_ref(out, *lp["fwd"], reverse=False)
        b = _lstm_dir_ref(out, *lp["bwd"], reverse=True)
        out = jnp.concatenate([f, b], axis=-1)
    return out


def textrnn_reference(q_ids, a1_ids, emb_table, lstm_q_params, lstm_a_params):
    xq = jnp.transpose(jnp.take(emb_table, q_ids, axis=0), (1, 0, 2))
    xa = jnp.transpose(jnp.take(emb_table, a1_ids, axis=0), (1, 0, 2))
    q = jnp.max(_bilstm_ref(xq, lstm_q_params), axis=0)        # (B, 2H)
    a = jnp.max(_bilstm_ref(xa, lstm_a_params), axis=0)
    eps = 1e-8
    nq = jnp.maximum(jnp.sqrt(jnp.sum(q * q, axis=-1)), eps)
    na = jnp.maximum(jnp.sqrt(jnp.sum(a * a, axis=-1)), eps)
    return jnp.sum(q * a, axis=-1) / (nq * na)


# ----------------------------------------------------------------------------
# Deterministic parameter construction (PyTorch-style init, synthetic weights)
# ----------------------------------------------------------------------------
def make_lstm_params(key, input_size, hidden_size, num_layers):
    bound = 1.0 / math.sqrt(hidden_size)
    params = []
    for layer in range(num_layers):
        in_sz = input_size if layer == 0 else 2 * hidden_size
        lp = {}
        for direction in ("fwd", "bwd"):
            key, k1, k2, k3, k4 = jax.random.split(key, 5)
            w_ih = jax.random.uniform(k1, (4 * hidden_size, in_sz),
                                      jnp.float32, -bound, bound)
            w_hh = jax.random.uniform(k2, (4 * hidden_size, hidden_size),
                                      jnp.float32, -bound, bound)
            b_ih = jax.random.uniform(k3, (4 * hidden_size,),
                                      jnp.float32, -bound, bound)
            b_hh = jax.random.uniform(k4, (4 * hidden_size,),
                                      jnp.float32, -bound, bound)
            lp[direction] = (w_ih, w_hh, b_ih, b_hh)
        params.append(lp)
    return params, key


if __name__ == "__main__":
    # Small, module-consistent shapes.
    B, T = 2, 8                 # batch, max_len
    D = 32                      # embedding_dim
    H = 16                      # hidden_size
    NUM_LAYERS = 2
    WORD_SIZE = 50

    root = jax.random.PRNGKey(0)
    k_emb, k_q, k_a, k_qids, k_aids = jax.random.split(root, 5)

    # nn.Embedding(word_size, D, padding_idx=0): row 0 is zeros.
    emb_table = jax.random.normal(k_emb, (WORD_SIZE, D), jnp.float32)
    emb_table = emb_table.at[0].set(0.0)

    lstm_q_params, _ = make_lstm_params(k_q, D, H, NUM_LAYERS)
    lstm_a_params, _ = make_lstm_params(k_a, D, H, NUM_LAYERS)

    # Pack weights ONCE (parameter-load time), outside the jitted forward.
    packed = pack_textrnn_params(lstm_q_params, lstm_a_params)
    packed = jax.tree_util.tree_map(jax.block_until_ready, packed)

    q_ids = jax.random.randint(k_qids, (B, T), 0, WORD_SIZE, dtype=jnp.int32)
    a1_ids = jax.random.randint(k_aids, (B, T), 0, WORD_SIZE, dtype=jnp.int32)

    cos = textrnn_forward(q_ids, a1_ids, emb_table, packed)
    cos = jax.block_until_ready(cos)

    ref = textrnn_reference(q_ids, a1_ids, emb_table,
                            lstm_q_params, lstm_a_params)
    ref = jax.block_until_ready(ref)

    assert cos.shape == (B,)
    assert bool(jnp.all(jnp.isfinite(cos)))
    assert bool(jnp.allclose(cos, ref, atol=1e-3, rtol=1e-3)), (cos, ref)
    print("KERNEL_OK")
</pallas_src>

<mosaic_0001>
module attributes {stable_mosaic.version = 11 : i64} {
  func.func @kernel(%arg0: i32, %arg1: memref<16x32xf32, #tpu.memory_space<vmem>>, %arg2: memref<16x32xf32, #tpu.memory_space<vmem>>, %arg3: memref<2x32x128xf32, #tpu.memory_space<vmem>>, %arg4: memref<2x1x128xf32, #tpu.memory_space<vmem>>, %arg5: memref<4x16x64xf32, #tpu.memory_space<vmem>>, %arg6: memref<2x32x128xf32, #tpu.memory_space<vmem>>, %arg7: memref<2x1x128xf32, #tpu.memory_space<vmem>>, %arg8: memref<4x16x64xf32, #tpu.memory_space<vmem>>, %arg9: memref<2x1xf32, #tpu.memory_space<vmem>>, %arg10: memref<4x16x64xf32, #tpu.memory_space<vmem>>, %arg11: memref<2x16x32xf32, #tpu.memory_space<vmem>>) attributes {dimension_semantics = [#tpu.dimension_semantics<arbitrary>], iteration_bounds = array<i64: 1>, scalar_prefetch = 0 : i64, scratch_operands = 2 : i64, tpu.core_type = #tpu.core_type<tc>, window_params = [{pipeline_mode = #tpu.pipeline_mode<synchronous>, transform_indices = @transform_0, window_bounds = array<i64: 16, 32>}, {pipeline_mode = #tpu.pipeline_mode<synchronous>, transform_indices = @transform_1, window_bounds = array<i64: 16, 32>}, {pipeline_mode = #tpu.pipeline_mode<synchronous>, transform_indices = @transform_2, window_bounds = array<i64: 2, 32, 128>}, {pipeline_mode = #tpu.pipeline_mode<synchronous>, transform_indices = @transform_3, window_bounds = array<i64: 2, 1, 128>}, {pipeline_mode = #tpu.pipeline_mode<synchronous>, transform_indices = @transform_4, window_bounds = array<i64: 4, 16, 64>}, {pipeline_mode = #tpu.pipeline_mode<synchronous>, transform_indices = @transform_5, window_bounds = array<i64: 2, 32, 128>}, {pipeline_mode = #tpu.pipeline_mode<synchronous>, transform_indices = @transform_6, window_bounds = array<i64: 2, 1, 128>}, {pipeline_mode = #tpu.pipeline_mode<synchronous>, transform_indices = @transform_7, window_bounds = array<i64: 4, 16, 64>}, {pipeline_mode = #tpu.pipeline_mode<synchronous>, transform_indices = @transform_8, window_bounds = array<i64: 2, 1>}]} {
    %c0 = arith.constant 0 : index
    %c0_0 = arith.constant 0 : index
    %0 = vector.load %arg1[%c0, %c0_0] : memref<16x32xf32, #tpu.memory_space<vmem>>, vector<16x32xf32>
    %c0_1 = arith.constant 0 : index
    %c0_2 = arith.constant 0 : index
    %1 = vector.load %arg2[%c0_1, %c0_2] : memref<16x32xf32, #tpu.memory_space<vmem>>, vector<16x32xf32>
    %c0_3 = arith.constant 0 : index
    %c0_4 = arith.constant 0 : index
    %c0_5 = arith.constant 0 : index
    %2 = vector.load %arg3[%c0_3, %c0_4, %c0_5] : memref<2x32x128xf32, #tpu.memory_space<vmem>>, vector<1x32x128xf32>
    %3 = vector.shape_cast %2 : vector<1x32x128xf32> to vector<32x128xf32>
    %cst = arith.constant dense<0.000000e+00> : vector<16x128xf32>
    %4 = tpu.matmul %0, %3, %cst {dimension_numbers = #tpu.dot_dimension_numbers<[1], [0], [0], [1], [0, 0, 1, 1], [], []>} : vector<16x32xf32>, vector<32x128xf32>, vector<16x128xf32> -> vector<16x128xf32>
    %c0_6 = arith.constant 0 : index
    %c0_7 = arith.constant 0 : index
    %c0_8 = arith.constant 0 : index
    %5 = vector.load %arg4[%c0_6, %c0_7, %c0_8] : memref<2x1x128xf32, #tpu.memory_space<vmem>>, vector<1x1x128xf32>
    %6 = vector.shape_cast %5 : vector<1x1x128xf32> to vector<1x128xf32>
    %7 = vector.broadcast %6 : vector<1x128xf32> to vector<16x128xf32>
    %8 = arith.addf %4, %7 : vector<16x128xf32>
    %9 = vector.extract_strided_slice %8 {offsets = [0, 0], sizes = [16, 64], strides = [1, 1]} : vector<16x128xf32> to vector<16x64xf32>
    %c0_9 = arith.constant 0 : index
    %c0_10 = arith.constant 0 : index
    %c0_11 = arith.constant 0 : index
    %10 = vector.load %arg10[%c0_9, %c0_10, %c0_11] : memref<4x16x64xf32, #tpu.memory_space<vmem>>, vector<1x16x64xf32>
    %11 = vector.shape_cast %10 : vector<1x16x64xf32> to vector<16x64xf32>
    %12 = vector.shape_cast %9 : vector<16x64xf32> to vector<1x16x64xf32>
    tpu.vector_store %arg10[%c0_9, %c0_10, %c0_11], %12 {strides = array<i32>} : memref<4x16x64xf32, #tpu.memory_space<vmem>>, vector<1x16x64xf32>,
    %13 = vector.extract_strided_slice %8 {offsets = [0, 64], sizes = [16, 64], strides = [1, 1]} : vector<16x128xf32> to vector<16x64xf32>
    %c2 = arith.constant 2 : index
    %c0_12 = arith.constant 0 : index
    %c0_13 = arith.constant 0 : index
    %14 = vector.load %arg10[%c2, %c0_12, %c0_13] : memref<4x16x64xf32, #tpu.memory_space<vmem>>, vector<1x16x64xf32>
    %15 = vector.shape_cast %14 : vector<1x16x64xf32> to vector<16x64xf32>
    %16 = vector.shape_cast %13 : vector<16x64xf32> to vector<1x16x64xf32>
    tpu.vector_store %arg10[%c2, %c0_12, %c0_13], %16 {strides = array<i32>} : memref<4x16x64xf32, #tpu.memory_space<vmem>>, vector<1x16x64xf32>,
    %c1 = arith.constant 1 : index
    %c0_14 = arith.constant 0 : index
    %c0_15 = arith.constant 0 : index
    %17 = vector.load %arg3[%c1, %c0_14, %c0_15] : memref<2x32x128xf32, #tpu.memory_space<vmem>>, vector<1x32x128xf32>
    %18 = vector.shape_cast %17 : vector<1x32x128xf32> to vector<32x128xf32>
    %cst_16 = arith.constant dense<0.000000e+00> : vector<16x128xf32>
    %19 = tpu.matmul %1, %18, %cst_16 {dimension_numbers = #tpu.dot_dimension_numbers<[1], [0], [0], [1], [0, 0, 1, 1], [], []>} : vector<16x32xf32>, vector<32x128xf32>, vector<16x128xf32> -> vector<16x128xf32>
    %c1_17 = arith.constant 1 : index
    %c0_18 = arith.constant 0 : index
    %c0_19 = arith.constant 0 : index
    %20 = vector.load %arg4[%c1_17, %c0_18, %c0_19] : memref<2x1x128xf32, #tpu.memory_space<vmem>>, vector<1x1x128xf32>
    %21 = vector.shape_cast %20 : vector<1x1x128xf32> to vector<1x128xf32>
    %22 = vector.broadcast %21 : vector<1x128xf32> to vector<16x128xf32>
    %23 = arith.addf %19, %22 : vector<16x128xf32>
    %24 = vector.extract_strided_slice %23 {offsets = [0, 0], sizes = [16, 64], strides = [1, 1]} : vector<16x128xf32> to vector<16x64xf32>
    %c1_20 = arith.constant 1 : index
    %c0_21 = arith.constant 0 : index
    %c0_22 = arith.constant 0 : index
    %25 = vector.load %arg10[%c1_20, %c0_21, %c0_22] : memref<4x16x64xf32, #tpu.memory_space<vmem>>, vector<1x16x64xf32>
    %26 = vector.shape_cast %25 : vector<1x16x64xf32> to vector<16x64xf32>
    %27 = vector.shape_cast %24 : vector<16x64xf32> to vector<1x16x64xf32>
    tpu.vector_store %arg10[%c1_20, %c0_21, %c0_22], %27 {strides = array<i32>} : memref<4x16x64xf32, #tpu.memory_space<vmem>>, vector<1x16x64xf32>,
    %28 = vector.extract_strided_slice %23 {offsets = [0, 64], sizes = [16, 64], strides = [1, 1]} : vector<16x128xf32> to vector<16x64xf32>
    %c3 = arith.constant 3 : index
    %c0_23 = arith.constant 0 : index
    %c0_24 = arith.constant 0 : index
    %29 = vector.load %arg10[%c3, %c0_23, %c0_24] : memref<4x16x64xf32, #tpu.memory_space<vmem>>, vector<1x16x64xf32>
    %30 = vector.shape_cast %29 : vector<1x16x64xf32> to vector<16x64xf32>
    %31 = vector.shape_cast %28 : vector<16x64xf32> to vector<1x16x64xf32>
    tpu.vector_store %arg10[%c3, %c0_23, %c0_24], %31 {strides = array<i32>} : memref<4x16x64xf32, #tpu.memory_space<vmem>>, vector<1x16x64xf32>,
    %cst_25 = arith.constant 0.000000e+00 : f32
    %32 = vector.broadcast %cst_25 : f32 to vector<2x16xf32>
    %cst_26 = arith.constant 0.000000e+00 : f32
    %33 = vector.broadcast %cst_26 : f32 to vector<2x16xf32>
    %cst_27 = arith.constant 0.000000e+00 : f32
    %34 = vector.broadcast %cst_27 : f32 to vector<2x16xf32>
    %cst_28 = arith.constant 0.000000e+00 : f32
    %35 = vector.broadcast %cst_28 : f32 to vector<2x16xf32>
    %cst_29 = arith.constant 0.000000e+00 : f32
    %36 = vector.broadcast %cst_29 : f32 to vector<2x16xf32>
    %cst_30 = arith.constant 0.000000e+00 : f32
    %37 = vector.broadcast %cst_30 : f32 to vector<2x16xf32>
    %cst_31 = arith.constant 0.000000e+00 : f32
    %38 = vector.broadcast %cst_31 : f32 to vector<2x16xf32>
    %cst_32 = arith.constant 0.000000e+00 : f32
    %39 = vector.broadcast %cst_32 : f32 to vector<2x16xf32>
    %c0_33 = arith.constant 0 : index
    %c0_34 = arith.constant 0 : index
    %c0_35 = arith.constant 0 : index
    %40 = vector.load %arg10[%c0_33, %c0_34, %c0_35] : memref<4x16x64xf32, #tpu.memory_space<vmem>>, vector<1x2x64xf32>
    %41 = vector.shape_cast %40 : vector<1x2x64xf32> to vector<2x64xf32>
    %c0_36 = arith.constant 0 : index
    %c0_37 = arith.constant 0 : index
    %c0_38 = arith.constant 0 : index
    %42 = vector.load %arg5[%c0_36, %c0_37, %c0_38] : memref<4x16x64xf32, #tpu.memory_space<vmem>>, vector<1x16x64xf32>
    %43 = vector.shape_cast %42 : vector<1x16x64xf32> to vector<16x64xf32>
    %cst_39 = arith.constant dense<0.000000e+00> : vector<2x64xf32>
    %44 = tpu.matmul %32, %43, %cst_39 {dimension_numbers = #tpu.dot_dimension_numbers<[1], [0], [0], [1], [0, 0, 1, 1], [], []>} : vector<2x16xf32>, vector<16x64xf32>, vector<2x64xf32> -> vector<2x64xf32>
    %45 = arith.addf %41, %44 : vector<2x64xf32>
    %46 = vector.extract_strided_slice %45 {offsets = [0, 0], sizes = [2, 48], strides = [1, 1]} : vector<2x64xf32> to vector<2x48xf32>
    %47 = arith.negf %46 : vector<2x48xf32>
    %48 = math.exp %47 : vector<2x48xf32>
    %cst_40 = arith.constant 1.000000e+00 : f32
    %49 = vector.broadcast %cst_40 : f32 to vector<2x48xf32>
    %50 = arith.addf %49, %48 : vector<2x48xf32>
    %51 = arith.divf %49, %50 : vector<2x48xf32>
    %52 = vector.extract_strided_slice %45 {offsets = [0, 48], sizes = [2, 16], strides = [1, 1]} : vector<2x64xf32> to vector<2x16xf32>
    %53 = math.tanh %52 : vector<2x16xf32>
    %54 = vector.extract_strided_slice %51 {offsets = [0, 0], sizes = [2, 16], strides = [1, 1]} : vector<2x48xf32> to vector<2x16xf32>
    %55 = vector.extract_strided_slice %51 {offsets = [0, 16], sizes = [2, 16], strides = [1, 1]} : vector<2x48xf32> to vector<2x16xf32>
    %56 = vector.extract_strided_slice %51 {offsets = [0, 32], sizes = [2, 16], strides = [1, 1]} : vector<2x48xf32> to vector<2x16xf32>
    %57 = arith.mulf %55, %36 : vector<2x16xf32>
    %58 = arith.mulf %54, %53 : vector<2x16xf32>
    %59 = arith.addf %57, %58 : vector<2x16xf32>
    %60 = math.tanh %59 : vector<2x16xf32>
    %61 = arith.mulf %56, %60 : vector<2x16xf32>
    %c0_41 = arith.constant 0 : index
    %c0_42 = arith.constant 0 : index
    %c0_43 = arith.constant 0 : index
    %62 = vector.load %arg11[%c0_41, %c0_42, %c0_43] : memref<2x16x32xf32, #tpu.memory_space<vmem>>, vector<1x2x16xf32>
    %63 = vector.shape_cast %62 : vector<1x2x16xf32> to vector<2x16xf32>
    %64 = vector.shape_cast %61 : vector<2x16xf32> to vector<1x2x16xf32>
    tpu.vector_store %arg11[%c0_41, %c0_42, %c0_43], %64 {strides = array<i32>} : memref<2x16x32xf32, #tpu.memory_space<vmem>>, vector<1x2x16xf32>,
    %c1_44 = arith.constant 1 : index
    %c0_45 = arith.constant 0 : index
    %c0_46 = arith.constant 0 : index
    %65 = vector.load %arg10[%c1_44, %c0_45, %c0_46] : memref<4x16x64xf32, #tpu.memory_space<vmem>>, vector<1x2x64xf32>
    %66 = vector.shape_cast %65 : vector<1x2x64xf32> to vector<2x64xf32>
    %c1_47 = arith.constant 1 : index
    %c0_48 = arith.constant 0 : index
    %c0_49 = arith.constant 0 : index
    %67 = vector.load %arg5[%c1_47, %c0_48, %c0_49] : memref<4x16x64xf32, #tpu.memory_space<vmem>>, vector<1x16x64xf32>
    %68 = vector.shape_cast %67 : vector<1x16x64xf32> to vector<16x64xf32>
    %cst_50 = arith.constant dense<0.000000e+00> : vector<2x64xf32>
    %69 = tpu.matmul %33, %68, %cst_50 {dimension_numbers = #tpu.dot_dimension_numbers<[1], [0], [0], [1], [0, 0, 1, 1], [], []>} : vector<2x16xf32>, vector<16x64xf32>, vector<2x64xf32> -> vector<2x64xf32>
    %70 = arith.addf %66, %69 : vector<2x64xf32>
    %71 = vector.extract_strided_slice %70 {offsets = [0, 0], sizes = [2, 48], strides = [1, 1]} : vector<2x64xf32> to vector<2x48xf32>
    %72 = arith.negf %71 : vector<2x48xf32>
    %73 = math.exp %72 : vector<2x48xf32>
    %cst_51 = arith.constant 1.000000e+00 : f32
    %74 = vector.broadcast %cst_51 : f32 to vector<2x48xf32>
    %75 = arith.addf %74, %73 : vector<2x48xf32>
    %76 = arith.divf %74, %75 : vector<2x48xf32>
    %77 = vector.extract_strided_slice %70 {offsets = [0, 48], sizes = [2, 16], strides = [1, 1]} : vector<2x64xf32> to vector<2x16xf32>
    %78 = math.tanh %77 : vector<2x16xf32>
    %79 = vector.extract_strided_slice %76 {offsets = [0, 0], sizes = [2, 16], strides = [1, 1]} : vector<2x48xf32> to vector<2x16xf32>
    %80 = vector.extract_strided_slice %76 {offsets = [0, 16], sizes = [2, 16], strides = [1, 1]} : vector<2x48xf32> to vector<2x16xf32>
    %81 = vector.extract_strided_slice %76 {offsets = [0, 32], sizes = [2, 16], strides = [1, 1]} : vector<2x48xf32> to vector<2x16xf32>
    %82 = arith.mulf %80, %37 : vector<2x16xf32>
    %83 = arith.mulf %79, %78 : vector<2x16xf32>
    %84 = arith.addf %82, %83 : vector<2x16xf32>
    %85 = math.tanh %84 : vector<2x16xf32>
    %86 = arith.mulf %81, %85 : vector<2x16xf32>
    %c1_52 = arith.constant 1 : index
    %c0_53 = arith.constant 0 : index
    %c0_54 = arith.constant 0 : index
    %87 = vector.load %arg11[%c1_52, %c0_53, %c0_54] : memref<2x16x32xf32, #tpu.memory_space<vmem>>, vector<1x2x16xf32>
    %88 = vector.shape_cast %87 : vector<1x2x16xf32> to vector<2x16xf32>
    %89 = vector.shape_cast %86 : vector<2x16xf32> to vector<1x2x16xf32>
    tpu.vector_store %arg11[%c1_52, %c0_53, %c0_54], %89 {strides = array<i32>} : memref<2x16x32xf32, #tpu.memory_space<vmem>>, vector<1x2x16xf32>,
    %c2_55 = arith.constant 2 : index
    %c14 = arith.constant 14 : index
    %c0_56 = arith.constant 0 : index
    %90 = vector.load %arg10[%c2_55, %c14, %c0_56] : memref<4x16x64xf32, #tpu.memory_space<vmem>>, vector<1x2x64xf32>
    %91 = vector.shape_cast %90 : vector<1x2x64xf32> to vector<2x64xf32>
    %c2_57 = arith.constant 2 : index
    %c0_58 = arith.constant 0 : index
    %c0_59 = arith.constant 0 : index
    %92 = vector.load %arg5[%c2_57, %c0_58, %c0_59] : memref<4x16x64xf32, #tpu.memory_space<vmem>>, vector<1x16x64xf32>
    %93 = vector.shape_cast %92 : vector<1x16x64xf32> to vector<16x64xf32>
    %cst_60 = arith.constant dense<0.000000e+00> : vector<2x64xf32>
    %94 = tpu.matmul %34, %93, %cst_60 {dimension_numbers = #tpu.dot_dimension_numbers<[1], [0], [0], [1], [0, 0, 1, 1], [], []>} : vector<2x16xf32>, vector<16x64xf32>, vector<2x64xf32> -> vector<2x64xf32>
    %95 = arith.addf %91, %94 : vector<2x64xf32>
    %96 = vector.extract_strided_slice %95 {offsets = [0, 0], sizes = [2, 48], strides = [1, 1]} : vector<2x64xf32> to vector<2x48xf32>
    %97 = arith.negf %96 : vector<2x48xf32>
    %98 = math.exp %97 : vector<2x48xf32>
    %cst_61 = arith.constant 1.000000e+00 : f32
    %99 = vector.broadcast %cst_61 : f32 to vector<2x48xf32>
    %100 = arith.addf %99, %98 : vector<2x48xf32>
    %101 = arith.divf %99, %100 : vector<2x48xf32>
    %102 = vector.extract_strided_slice %95 {offsets = [0, 48], sizes = [2, 16], strides = [1, 1]} : vector<2x64xf32> to vector<2x16xf32>
    %103 = math.tanh %102 : vector<2x16xf32>
    %104 = vector.extract_strided_slice %101 {offsets = [0, 0], sizes = [2, 16], strides = [1, 1]} : vector<2x48xf32> to vector<2x16xf32>
    %105 = vector.extract_strided_slice %101 {offsets = [0, 16], sizes = [2, 16], strides = [1, 1]} : vector<2x48xf32> to vector<2x16xf32>
    %106 = vector.extract_strided_slice %101 {offsets = [0, 32], sizes = [2, 16], strides = [1, 1]} : vector<2x48xf32> to vector<2x16xf32>
    %107 = arith.mulf %105, %38 : vector<2x16xf32>
    %108 = arith.mulf %104, %103 : vector<2x16xf32>
    %109 = arith.addf %107, %108 : vector<2x16xf32>
    %110 = math.tanh %109 : vector<2x16xf32>
    %111 = arith.mulf %106, %110 : vector<2x16xf32>
    %c0_62 = arith.constant 0 : index
    %c14_63 = arith.constant 14 : index
    %c16 = arith.constant 16 : index
    %112 = vector.load %arg11[%c0_62, %c14_63, %c16] : memref<2x16x32xf32, #tpu.memory_space<vmem>>, vector<1x2x16xf32>
    %113 = vector.shape_cast %112 : vector<1x2x16xf32> to vector<2x16xf32>
    %114 = vector.shape_cast %111 : vector<2x16xf32> to vector<1x2x16xf32>
    tpu.vector_store %arg11[%c0_62, %c14_63, %c16], %114 {strides = array<i32>} : memref<2x16x32xf32, #tpu.memory_space<vmem>>, vector<1x2x16xf32>,
    %c3_64 = arith.constant 3 : index
    %c14_65 = arith.constant 14 : index
    %c0_66 = arith.constant 0 : index
    %115 = vector.load %arg10[%c3_64, %c14_65, %c0_66] : memref<4x16x64xf32, #tpu.memory_space<vmem>>, vector<1x2x64xf32>
    %116 = vector.shape_cast %115 : vector<1x2x64xf32> to vector<2x64xf32>
    %c3_67 = arith.constant 3 : index
    %c0_68 = arith.constant 0 : index
    %c0_69 = arith.constant 0 : index
    %117 = vector.load %arg5[%c3_67, %c0_68, %c0_69] : memref<4x16x64xf32, #tpu.memory_space<vmem>>, vector<1x16x64xf32>
    %118 = vector.shape_cast %117 : vector<1x16x64xf32> to vector<16x64xf32>
    %cst_70 = arith.constant dense<0.000000e+00> : vector<2x64xf32>
    %119 = tpu.matmul %35, %118, %cst_70 {dimension_numbers = #tpu.dot_dimension_numbers<[1], [0], [0], [1], [0, 0, 1, 1], [], []>} : vector<2x16xf32>, vector<16x64xf32>, vector<2x64xf32> -> vector<2x64xf32>
    %120 = arith.addf %116, %119 : vector<2x64xf32>
    %121 = vector.extract_strided_slice %120 {offsets = [0, 0], sizes = [2, 48], strides = [1, 1]} : vector<2x64xf32> to vector<2x48xf32>
    %122 = arith.negf %121 : vector<2x48xf32>
    %123 = math.exp %122 : vector<2x48xf32>
    %cst_71 = arith.constant 1.000000e+00 : f32
    %124 = vector.broadcast %cst_71 : f32 to vector<2x48xf32>
    %125 = arith.addf %124, %123 : vector<2x48xf32>
    %126 = arith.divf %124, %125 : vector<2x48xf32>
    %127 = vector.extract_strided_slice %120 {offsets = [0, 48], sizes = [2, 16], strides = [1, 1]} : vector<2x64xf32> to vector<2x16xf32>
    %128 = math.tanh %127 : vector<2x16xf32>
    %129 = vector.extract_strided_slice %126 {offsets = [0, 0], sizes = [2, 16], strides = [1, 1]} : vector<2x48xf32> to vector<2x16xf32>
    %130 = vector.extract_strided_slice %126 {offsets = [0, 16], sizes = [2, 16], strides = [1, 1]} : vector<2x48xf32> to vector<2x16xf32>
    %131 = vector.extract_strided_slice %126 {offsets = [0, 32], sizes = [2, 16], strides = [1, 1]} : vector<2x48xf32> to vector<2x16xf32>
    %132 = arith.mulf %130, %39 : vector<2x16xf32>
    %133 = arith.mulf %129, %128 : vector<2x16xf32>
    %134 = arith.addf %132, %133 : vector<2x16xf32>
    %135 = math.tanh %134 : vector<2x16xf32>
    %136 = arith.mulf %131, %135 : vector<2x16xf32>
    %c1_72 = arith.constant 1 : index
    %c14_73 = arith.constant 14 : index
    %c16_74 = arith.constant 16 : index
    %137 = vector.load %arg11[%c1_72, %c14_73, %c16_74] : memref<2x16x32xf32, #tpu.memory_space<vmem>>, vector<1x2x16xf32>
    %138 = vector.shape_cast %137 : vector<1x2x16xf32> to vector<2x16xf32>
    %139 = vector.shape_cast %136 : vector<2x16xf32> to vector<1x2x16xf32>
    tpu.vector_store %arg11[%c1_72, %c14_73, %c16_74], %139 {strides = array<i32>} : memref<2x16x32xf32, #tpu.memory_space<vmem>>, vector<1x2x16xf32>,
    %c0_75 = arith.constant 0 : index
    %c2_76 = arith.constant 2 : index
    %c0_77 = arith.constant 0 : index
    %140 = vector.load %arg10[%c0_75, %c2_76, %c0_77] : memref<4x16x64xf32, #tpu.memory_space<vmem>>, vector<1x2x64xf32>
    %141 = vector.shape_cast %140 : vector<1x2x64xf32> to vector<2x64xf32>
    %c0_78 = arith.constant 0 : index
    %c0_79 = arith.constant 0 : index
    %c0_80 = arith.constant 0 : index
    %142 = vector.load %arg5[%c0_78, %c0_79, %c0_80] : memref<4x16x64xf32, #tpu.memory_space<vmem>>, vector<1x16x64xf32>
    %143 = vector.shape_cast %142 : vector<1x16x64xf32> to vector<16x64xf32>
    %cst_81 = arith.constant dense<0.000000e+00> : vector<2x64xf32>
    %144 = tpu.matmul %61, %143, %cst_81 {dimension_numbers = #tpu.dot_dimension_numbers<[1], [0], [0], [1], [0, 0, 1, 1], [], []>} : vector<2x16xf32>, vector<16x64xf32>, vector<2x64xf32> -> vector<2x64xf32>
    %145 = arith.addf %141, %144 : vector<2x64xf32>
    %146 = vector.extract_strided_slice %145 {offsets = [0, 0], sizes = [2, 48], strides = [1, 1]} : vector<2x64xf32> to vector<2x48xf32>
    %147 = arith.negf %146 : vector<2x48xf32>
    %148 = math.exp %147 : vector<2x48xf32>
    %cst_82 = arith.constant 1.000000e+00 : f32
    %149 = vector.broadcast %cst_82 : f32 to vector<2x48xf32>
    %150 = arith.addf %149, %148 : vector<2x48xf32>
    %151 = arith.divf %149, %150 : vector<2x48xf32>
    %152 = vector.extract_strided_slice %145 {offsets = [0, 48], sizes = [2, 16], strides = [1, 1]} : vector<2x64xf32> to vector<2x16xf32>
    %153 = math.tanh %152 : vector<2x16xf32>
    %154 = vector.extract_strided_slice %151 {offsets = [0, 0], sizes = [2, 16], strides = [1, 1]} : vector<2x48xf32> to vector<2x16xf32>
    %155 = vector.extract_strided_slice %151 {offsets = [0, 16], sizes = [2, 16], strides = [1, 1]} : vector<2x48xf32> to vector<2x16xf32>
    %156 = vector.extract_strided_slice %151 {offsets = [0, 32], sizes = [2, 16], strides = [1, 1]} : vector<2x48xf32> to vector<2x16xf32>
    %157 = arith.mulf %155, %59 : vector<2x16xf32>
    %158 = arith.mulf %154, %153 : vector<2x16xf32>
    %159 = arith.addf %157, %158 : vector<2x16xf32>
    %160 = math.tanh %159 : vector<2x16xf32>
    %161 = arith.mulf %156, %160 : vector<2x16xf32>
    %c0_83 = arith.constant 0 : index
    %c2_84 = arith.constant 2 : index
    %c0_85 = arith.constant 0 : index
    %162 = vector.load %arg11[%c0_83, %c2_84, %c0_85] : memref<2x16x32xf32, #tpu.memory_space<vmem>>, vector<1x2x16xf32>
    %163 = vector.shape_cast %162 : vector<1x2x16xf32> to vector<2x16xf32>
    %164 = vector.shape_cast %161 : vector<2x16xf32> to vector<1x2x16xf32>
    tpu.vector_store %arg11[%c0_83, %c2_84, %c0_85], %164 {strides = array<i32>} : memref<2x16x32xf32, #tpu.memory_space<vmem>>, vector<1x2x16xf32>,
    %c1_86 = arith.constant 1 : index
    %c2_87 = arith.constant 2 : index
    %c0_88 = arith.constant 0 : index
    %165 = vector.load %arg10[%c1_86, %c2_87, %c0_88] : memref<4x16x64xf32, #tpu.memory_space<vmem>>, vector<1x2x64xf32>
    %166 = vector.shape_cast %165 : vector<1x2x64xf32> to vector<2x64xf32>
    %c1_89 = arith.constant 1 : index
    %c0_90 = arith.constant 0 : index
    %c0_91 = arith.constant 0 : index
    %167 = vector.load %arg5[%c1_89, %c0_90, %c0_91] : memref<4x16x64xf32, #tpu.memory_space<vmem>>, vector<1x16x64xf32>
    %168 = vector.shape_cast %167 : vector<1x16x64xf32> to vector<16x64xf32>
    %cst_92 = arith.constant dense<0.000000e+00> : vector<2x64xf32>
    %169 = tpu.matmul %86, %168, %cst_92 {dimension_numbers = #tpu.dot_dimension_numbers<[1], [0], [0], [1], [0, 0, 1, 1], [], []>} : vector<2x16xf32>, vector<16x64xf32>, vector<2x64xf32> -> vector<2x64xf32>
    %170 = arith.addf %166, %169 : vector<2x64xf32>
    %171 = vector.extract_strided_slice %170 {offsets = [0, 0], sizes = [2, 48], strides = [1, 1]} : vector<2x64xf32> to vector<2x48xf32>
    %172 = arith.negf %171 : vector<2x48xf32>
    %173 = math.exp %172 : vector<2x48xf32>
    %cst_93 = arith.constant 1.000000e+00 : f32
    %174 = vector.broadcast %cst_93 : f32 to vector<2x48xf32>
    %175 = arith.addf %174, %173 : vector<2x48xf32>
    %176 = arith.divf %174, %175 : vector<2x48xf32>
    %177 = vector.extract_strided_slice %170 {offsets = [0, 48], sizes = [2, 16], strides = [1, 1]} : vector<2x64xf32> to vector<2x16xf32>
    %178 = math.tanh %177 : vector<2x16xf32>
    %179 = vector.extract_strided_slice %176 {offsets = [0, 0], sizes = [2, 16], strides = [1, 1]} : vector<2x48xf32> to vector<2x16xf32>
    %180 = vector.extract_strided_slice %176 {offsets = [0, 16], sizes = [2, 16], strides = [1, 1]} : vector<2x48xf32> to vector<2x16xf32>
    %181 = vector.extract_strided_slice %176 {offsets = [0, 32], sizes = [2, 16], strides = [1, 1]} : vector<2x48xf32> to vector<2x16xf32>
    %182 = arith.mulf %180, %84 : vector<2x16xf32>
    %183 = arith.mulf %179, %178 : vector<2x16xf32>
    %184 = arith.addf %182, %183 : vector<2x16xf32>
    %185 = math.tanh %184 : vector<2x16xf32>
    %186 = arith.mulf %181, %185 : vector<2x16xf32>
    %c1_94 = arith.constant 1 : index
    %c2_95 = arith.constant 2 : index
    %c0_96 = arith.constant 0 : index
    %187 = vector.load %arg11[%c1_94, %c2_95, %c0_96] : memref<2x16x32xf32, #tpu.memory_space<vmem>>, vector<1x2x16xf32>
    %188 = vector.shape_cast %187 : vector<1x2x16xf32> to vector<2x16xf32>
    %189 = vector.shape_cast %186 : vector<2x16xf32> to vector<1x2x16xf32>
    tpu.vector_store %arg11[%c1_94, %c2_95, %c0_96], %189 {strides = array<i32>} : memref<2x16x32xf32, #tpu.memory_space<vmem>>, vector<1x2x16xf32>,
    %c2_97 = arith.constant 2 : index
    %c12 = arith.constant 12 : index
    %c0_98 = arith.constant 0 : index
    %190 = vector.load %arg10[%c2_97, %c12, %c0_98] : memref<4x16x64xf32, #tpu.memory_space<vmem>>, vector<1x2x64xf32>
    %191 = vector.shape_cast %190 : vector<1x2x64xf32> to vector<2x64xf32>
    %c2_99 = arith.constant 2 : index
    %c0_100 = arith.constant 0 : index
    %c0_101 = arith.constant 0 : index
    %192 = vector.load %arg5[%c2_99, %c0_100, %c0_101] : memref<4x16x64xf32, #tpu.memory_space<vmem>>, vector<1x16x64xf32>
    %193 = vector.shape_cast %192 : vector<1x16x64xf32> to vector<16x64xf32>
    %cst_102 = arith.constant dense<0.000000e+00> : vector<2x64xf32>
    %194 = tpu.matmul %111, %193, %cst_102 {dimension_numbers = #tpu.dot_dimension_numbers<[1], [0], [0], [1], [0, 0, 1, 1], [], []>} : vector<2x16xf32>, vector<16x64xf32>, vector<2x64xf32> -> vector<2x64xf32>
    %195 = arith.addf %191, %194 : vector<2x64xf32>
    %196 = vector.extract_strided_slice %195 {offsets = [0, 0], sizes = [2, 48], strides = [1, 1]} : vector<2x64xf32> to vector<2x48xf32>
    %197 = arith.negf %196 : vector<2x48xf32>
    %198 = math.exp %197 : vector<2x48xf32>
    %cst_103 = arith.constant 1.000000e+00 : f32
    %199 = vector.broadcast %cst_103 : f32 to vector<2x48xf32>
    %200 = arith.addf %199, %198 : vector<2x48xf32>
    %201 = arith.divf %199, %200 : vector<2x48xf32>
    %202 = vector.extract_strided_slice %195 {offsets = [0, 48], sizes = [2, 16], strides = [1, 1]} : vector<2x64xf32> to vector<2x16xf32>
    %203 = math.tanh %202 : vector<2x16xf32>
    %204 = vector.extract_strided_slice %201 {offsets = [0, 0], sizes = [2, 16], strides = [1, 1]} : vector<2x48xf32> to vector<2x16xf32>
    %205 = vector.extract_strided_slice %201 {offsets = [0, 16], sizes = [2, 16], strides = [1, 1]} : vector<2x48xf32> to vector<2x16xf32>
    %206 = vector.extract_strided_slice %201 {offsets = [0, 32], sizes = [2, 16], strides = [1, 1]} : vector<2x48xf32> to vector<2x16xf32>
    %207 = arith.mulf %205, %109 : vector<2x16xf32>
    %208 = arith.mulf %204, %203 : vector<2x16xf32>
    %209 = arith.addf %207, %208 : vector<2x16xf32>
    %210 = math.tanh %209 : vector<2x16xf32>
    %211 = arith.mulf %206, %210 : vector<2x16xf32>
    %c0_104 = arith.constant 0 : index
    %c12_105 = arith.constant 12 : index
    %c16_106 = arith.constant 16 : index
    %212 = vector.load %arg11[%c0_104, %c12_105, %c16_106] : memref<2x16x32xf32, #tpu.memory_space<vmem>>, vector<1x2x16xf32>
    %213 = vector.shape_cast %212 : vector<1x2x16xf32> to vector<2x16xf32>
    %214 = vector.shape_cast %211 : vector<2x16xf32> to vector<1x2x16xf32>
    tpu.vector_store %arg11[%c0_104, %c12_105, %c16_106], %214 {strides = array<i32>} : memref<2x16x32xf32, #tpu.memory_space<vmem>>, vector<1x2x16xf32>,
    %c3_107 = arith.constant 3 : index
    %c12_108 = arith.constant 12 : index
    %c0_109 = arith.constant 0 : index
    %215 = vector.load %arg10[%c3_107, %c12_108, %c0_109] : memref<4x16x64xf32, #tpu.memory_space<vmem>>, vector<1x2x64xf32>
    %216 = vector.shape_cast %215 : vector<1x2x64xf32> to vector<2x64xf32>
    %c3_110 = arith.constant 3 : index
    %c0_111 = arith.constant 0 : index
    %c0_112 = arith.constant 0 : index
    %217 = vector.load %arg5[%c3_110, %c0_111, %c0_112] : memref<4x16x64xf32, #tpu.memory_space<vmem>>, vector<1x16x64xf32>
    %218 = vector.shape_cast %217 : vector<1x16x64xf32> to vector<16x64xf32>
    %cst_113 = arith.constant dense<0.000000e+00> : vector<2x64xf32>
    %219 = tpu.matmul %136, %218, %cst_113 {dimension_numbers = #tpu.dot_dimension_numbers<[1], [0], [0], [1], [0, 0, 1, 1], [], []>} : vector<2x16xf32>, vector<16x64xf32>, vector<2x64xf32> -> vector<2x64xf32>
    %220 = arith.addf %216, %219 : vector<2x64xf32>
    %221 = vector.extract_strided_slice %220 {offsets = [0, 0], sizes = [2, 48], strides = [1, 1]} : vector<2x64xf32> to vector<2x48xf32>
    %222 = arith.negf %221 : vector<2x48xf32>
    %223 = math.exp %222 : vector<2x48xf32>
    %cst_114 = arith.constant 1.000000e+00 : f32
    %224 = vector.broadcast %cst_114 : f32 to vector<2x48xf32>
    %225 = arith.addf %224, %223 : vector<2x48xf32>
    %226 = arith.divf %224, %225 : vector<2x48xf32>
    %227 = vector.extract_strided_slice %220 {offsets = [0, 48], sizes = [2, 16], strides = [1, 1]} : vector<2x64xf32> to vector<2x16xf32>
    %228 = math.tanh %227 : vector<2x16xf32>
    %229 = vector.extract_strided_slice %226 {offsets = [0, 0], sizes = [2, 16], strides = [1, 1]} : vector<2x48xf32> to vector<2x16xf32>
    %230 = vector.extract_strided_slice %226 {offsets = [0, 16], sizes = [2, 16], strides = [1, 1]} : vector<2x48xf32> to vector<2x16xf32>
    %231 = vector.extract_strided_slice %226 {offsets = [0, 32], sizes = [2, 16], strides = [1, 1]} : vector<2x48xf32> to vector<2x16xf32>
    %232 = arith.mulf %230, %134 : vector<2x16xf32>
    %233 = arith.mulf %229, %228 : vector<2x16xf32>
    %234 = arith.addf %232, %233 : vector<2x16xf32>
    %235 = math.tanh %234 : vector<2x16xf32>
    %236 = arith.mulf %231, %235 : vector<2x16xf32>
    %c1_115 = arith.constant 1 : index
    %c12_116 = arith.constant 12 : index
    %c16_117 = arith.constant 16 : index
    %237 = vector.load %arg11[%c1_115, %c12_116, %c16_117] : memref<2x16x32xf32, #tpu.memory_space<vmem>>, vector<1x2x16xf32>
    %238 = vector.shape_cast %237 : vector<1x2x16xf32> to vector<2x16xf32>
    %239 = vector.shape_cast %236 : vector<2x16xf32> to vector<1x2x16xf32>
    tpu.vector_store %arg11[%c1_115, %c12_116, %c16_117], %239 {strides = array<i32>} : memref<2x16x32xf32, #tpu.memory_space<vmem>>, vector<1x2x16xf32>,
    %c0_118 = arith.constant 0 : index
    %c4 = arith.constant 4 : index
    %c0_119 = arith.constant 0 : index
    %240 = vector.load %arg10[%c0_118, %c4, %c0_119] : memref<4x16x64xf32, #tpu.memory_space<vmem>>, vector<1x2x64xf32>
    %241 = vector.shape_cast %240 : vector<1x2x64xf32> to vector<2x64xf32>
    %c0_120 = arith.constant 0 : index
    %c0_121 = arith.constant 0 : index
    %c0_122 = arith.constant 0 : index
    %242 = vector.load %arg5[%c0_120, %c0_121, %c0_122] : memref<4x16x64xf32, #tpu.memory_space<vmem>>, vector<1x16x64xf32>
    %243 = vector.shape_cast %242 : vector<1x16x64xf32> to vector<16x64xf32>
    %cst_123 = arith.constant dense<0.000000e+00> : vector<2x64xf32>
    %244 = tpu.matmul %161, %243, %cst_123 {dimension_numbers = #tpu.dot_dimension_numbers<[1], [0], [0], [1], [0, 0, 1, 1], [], []>} : vector<2x16xf32>, vector<16x64xf32>, vector<2x64xf32> -> vector<2x64xf32>
    %245 = arith.addf %241, %244 : vector<2x64xf32>
    %246 = vector.extract_strided_slice %245 {offsets = [0, 0], sizes = [2, 48], strides = [1, 1]} : vector<2x64xf32> to vector<2x48xf32>
    %247 = arith.negf %246 : vector<2x48xf32>
    %248 = math.exp %247 : vector<2x48xf32>
    %cst_124 = arith.constant 1.000000e+00 : f32
    %249 = vector.broadcast %cst_124 : f32 to vector<2x48xf32>
    %250 = arith.addf %249, %248 : vector<2x48xf32>
    %251 = arith.divf %249, %250 : vector<2x48xf32>
    %252 = vector.extract_strided_slice %245 {offsets = [0, 48], sizes = [2, 16], strides = [1, 1]} : vector<2x64xf32> to vector<2x16xf32>
    %253 = math.tanh %252 : vector<2x16xf32>
    %254 = vector.extract_strided_slice %251 {offsets = [0, 0], sizes = [2, 16], strides = [1, 1]} : vector<2x48xf32> to vector<2x16xf32>
    %255 = vector.extract_strided_slice %251 {offsets = [0, 16], sizes = [2, 16], strides = [1, 1]} : vector<2x48xf32> to vector<2x16xf32>
    %256 = vector.extract_strided_slice %251 {offsets = [0, 32], sizes = [2, 16], strides = [1, 1]} : vector<2x48xf32> to vector<2x16xf32>
    %257 = arith.mulf %255, %159 : vector<2x16xf32>
    %258 = arith.mulf %254, %253 : vector<2x16xf32>
    %259 = arith.addf %257, %258 : vector<2x16xf32>
    %260 = math.tanh %259 : vector<2x16xf32>
    %261 = arith.mulf %256, %260 : vector<2x16xf32>
    %c0_125 = arith.constant 0 : index
    %c4_126 = arith.constant 4 : index
    %c0_127 = arith.constant 0 : index
    %262 = vector.load %arg11[%c0_125, %c4_126, %c0_127] : memref<2x16x32xf32, #tpu.memory_space<vmem>>, vector<1x2x16xf32>
    %263 = vector.shape_cast %262 : vector<1x2x16xf32> to vector<2x16xf32>
    %264 = vector.shape_cast %261 : vector<2x16xf32> to vector<1x2x16xf32>
    tpu.vector_store %arg11[%c0_125, %c4_126, %c0_127], %264 {strides = array<i32>} : memref<2x16x32xf32, #tpu.memory_space<vmem>>, vector<1x2x16xf32>,
    %c1_128 = arith.constant 1 : index
    %c4_129 = arith.constant 4 : index
    %c0_130 = arith.constant 0 : index
    %265 = vector.load %arg10[%c1_128, %c4_129, %c0_130] : memref<4x16x64xf32, #tpu.memory_space<vmem>>, vector<1x2x64xf32>
    %266 = vector.shape_cast %265 : vector<1x2x64xf32> to vector<2x64xf32>
    %c1_131 = arith.constant 1 : index
    %c0_132 = arith.constant 0 : index
    %c0_133 = arith.constant 0 : index
    %267 = vector.load %arg5[%c1_131, %c0_132, %c0_133] : memref<4x16x64xf32, #tpu.memory_space<vmem>>, vector<1x16x64xf32>
    %268 = vector.shape_cast %267 : vector<1x16x64xf32> to vector<16x64xf32>
    %cst_134 = arith.constant dense<0.000000e+00> : vector<2x64xf32>
    %269 = tpu.matmul %186, %268, %cst_134 {dimension_numbers = #tpu.dot_dimension_numbers<[1], [0], [0], [1], [0, 0, 1, 1], [], []>} : vector<2x16xf32>, vector<16x64xf32>, vector<2x64xf32> -> vector<2x64xf32>
    %270 = arith.addf %266, %269 : vector<2x64xf32>
    %271 = vector.extract_strided_slice %270 {offsets = [0, 0], sizes = [2, 48], strides = [1, 1]} : vector<2x64xf32> to vector<2x48xf32>
    %272 = arith.negf %271 : vector<2x48xf32>
    %273 = math.exp %272 : vector<2x48xf32>
    %cst_135 = arith.constant 1.000000e+00 : f32
    %274 = vector.broadcast %cst_135 : f32 to vector<2x48xf32>
    %275 = arith.addf %274, %273 : vector<2x48xf32>
    %276 = arith.divf %274, %275 : vector<2x48xf32>
    %277 = vector.extract_strided_slice %270 {offsets = [0, 48], sizes = [2, 16], strides = [1, 1]} : vector<2x64xf32> to vector<2x16xf32>
    %278 = math.tanh %277 : vector<2x16xf32>
    %279 = vector.extract_strided_slice %276 {offsets = [0, 0], sizes = [2, 16], strides = [1, 1]} : vector<2x48xf32> to vector<2x16xf32>
    %280 = vector.extract_strided_slice %276 {offsets = [0, 16], sizes = [2, 16], strides = [1, 1]} : vector<2x48xf32> to vector<2x16xf32>
    %281 = vector.extract_strided_slice %276 {offsets = [0, 32], sizes = [2, 16], strides = [1, 1]} : vector<2x48xf32> to vector<2x16xf32>
    %282 = arith.mulf %280, %184 : vector<2x16xf32>
    %283 = arith.mulf %279, %278 : vector<2x16xf32>
    %284 = arith.addf %282, %283 : vector<2x16xf32>
    %285 = math.tanh %284 : vector<2x16xf32>
    %286 = arith.mulf %281, %285 : vector<2x16xf32>
    %c1_136 = arith.constant 1 : index
    %c4_137 = arith.constant 4 : index
    %c0_138 = arith.constant 0 : index
    %287 = vector.load %arg11[%c1_136, %c4_137, %c0_138] : memref<2x16x32xf32, #tpu.memory_space<vmem>>, vector<1x2x16xf32>
    %288 = vector.shape_cast %287 : vector<1x2x16xf32> to vector<2x16xf32>
    %289 = vector.shape_cast %286 : vector<2x16xf32> to vector<1x2x16xf32>
    tpu.vector_store %arg11[%c1_136, %c4_137, %c0_138], %289 {strides = array<i32>} : memref<2x16x32xf32, #tpu.memory_space<vmem>>, vector<1x2x16xf32>,
    %c2_139 = arith.constant 2 : index
    %c10 = arith.constant 10 : index
    %c0_140 = arith.constant 0 : index
    %290 = vector.load %arg10[%c2_139, %c10, %c0_140] : memref<4x16x64xf32, #tpu.memory_space<vmem>>, vector<1x2x64xf32>
    %291 = vector.shape_cast %290 : vector<1x2x64xf32> to vector<2x64xf32>
    %c2_141 = arith.constant 2 : index
    %c0_142 = arith.constant 0 : index
    %c0_143 = arith.constant 0 : index
    %292 = vector.load %arg5[%c2_141, %c0_142, %c0_143] : memref<4x16x64xf32, #tpu.memory_space<vmem>>, vector<1x16x64xf32>
    %293 = vector.shape_cast %292 : vector<1x16x64xf32> to vector<16x64xf32>
    %cst_144 = arith.constant dense<0.000000e+00> : vector<2x64xf32>
    %294 = tpu.matmul %211, %293, %cst_144 {dimension_numbers = #tpu.dot_dimension_numbers<[1], [0], [0], [1], [0, 0, 1, 1], [], []>} : vector<2x16xf32>, vector<16x64xf32>, vector<2x64xf32> -> vector<2x64xf32>
    %295 = arith.addf %291, %294 : vector<2x64xf32>
    %296 = vector.extract_strided_slice %295 {offsets = [0, 0], sizes = [2, 48], strides = [1, 1]} : vector<2x64xf32> to vector<2x48xf32>
    %297 = arith.negf %296 : vector<2x48xf32>
    %298 = math.exp %297 : vector<2x48xf32>
    %cst_145 = arith.constant 1.000000e+00 : f32
    %299 = vector.broadcast %cst_145 : f32 to vector<2x48xf32>
    %300 = arith.addf %299, %298 : vector<2x48xf32>
    %301 = arith.divf %299, %300 : vector<2x48xf32>
    %302 = vector.extract_strided_slice %295 {offsets = [0, 48], sizes = [2, 16], strides = [1, 1]} : vector<2x64xf32> to vector<2x16xf32>
    %303 = math.tanh %302 : vector<2x16xf32>
    %304 = vector.extract_strided_slice %301 {offsets = [0, 0], sizes = [2, 16], strides = [1, 1]} : vector<2x48xf32> to vector<2x16xf32>
    %305 = vector.extract_strided_slice %301 {offsets = [0, 16], sizes = [2, 16], strides = [1, 1]} : vector<2x48xf32> to vector<2x16xf32>
    %306 = vector.extract_strided_slice %301 {offsets = [0, 32], sizes = [2, 16], strides = [1, 1]} : vector<2x48xf32> to vector<2x16xf32>
    %307 = arith.mulf %305, %209 : vector<2x16xf32>
    %308 = arith.mulf %304, %303 : vector<2x16xf32>
    %309 = arith.addf %307, %308 : vector<2x16xf32>
    %310 = math.tanh %309 : vector<2x16xf32>
    %311 = arith.mulf %306, %310 : vector<2x16xf32>
    %c0_146 = arith.constant 0 : index
    %c10_147 = arith.constant 10 : index
    %c16_148 = arith.constant 16 : index
    %312 = vector.load %arg11[%c0_146, %c10_147, %c16_148] : memref<2x16x32xf32, #tpu.memory_space<vmem>>, vector<1x2x16xf32>
    %313 = vector.shape_cast %312 : vector<1x2x16xf32> to vector<2x16xf32>
    %314 = vector.shape_cast %311 : vector<2x16xf32> to vector<1x2x16xf32>
    tpu.vector_store %arg11[%c0_146, %c10_147, %c16_148], %314 {strides = array<i32>} : memref<2x16x32xf32, #tpu.memory_space<vmem>>, vector<1x2x16xf32>,
    %c3_149 = arith.constant 3 : index
    %c10_150 = arith.constant 10 : index
    %c0_151 = arith.constant 0 : index
    %315 = vector.load %arg10[%c3_149, %c10_150, %c0_151] : memref<4x16x64xf32, #tpu.memory_space<vmem>>, vector<1x2x64xf32>
    %316 = vector.shape_cast %315 : vector<1x2x64xf32> to vector<2x64xf32>
    %c3_152 = arith.constant 3 : index
    %c0_153 = arith.constant 0 : index
    %c0_154 = arith.constant 0 : index
    %317 = vector.load %arg5[%c3_152, %c0_153, %c0_154] : memref<4x16x64xf32, #tpu.memory_space<vmem>>, vector<1x16x64xf32>
    %318 = vector.shape_cast %317 : vector<1x16x64xf32> to vector<16x64xf32>
    %cst_155 = arith.constant dense<0.000000e+00> : vector<2x64xf32>
    %319 = tpu.matmul %236, %318, %cst_155 {dimension_numbers = #tpu.dot_dimension_numbers<[1], [0], [0], [1], [0, 0, 1, 1], [], []>} : vector<2x16xf32>, vector<16x64xf32>, vector<2x64xf32> -> vector<2x64xf32>
    %320 = arith.addf %316, %319 : vector<2x64xf32>
    %321 = vector.extract_strided_slice %320 {offsets = [0, 0], sizes = [2, 48], strides = [1, 1]} : vector<2x64xf32> to vector<2x48xf32>
    %322 = arith.negf %321 : vector<2x48xf32>
    %323 = math.exp %322 : vector<2x48xf32>
    %cst_156 = arith.constant 1.000000e+00 : f32
    %324 = vector.broadcast %cst_156 : f32 to vector<2x48xf32>
    %325 = arith.addf %324, %323 : vector<2x48xf32>
    %326 = arith.divf %324, %325 : vector<2x48xf32>
    %327 = vector.extract_strided_slice %320 {offsets = [0, 48], sizes = [2, 16], strides = [1, 1]} : vector<2x64xf32> to vector<2x16xf32>
    %328 = math.tanh %327 : vector<2x16xf32>
    %329 = vector.extract_strided_slice %326 {offsets = [0, 0], sizes = [2, 16], strides = [1, 1]} : vector<2x48xf32> to vector<2x16xf32>
    %330 = vector.extract_strided_slice %326 {offsets = [0, 16], sizes = [2, 16], strides = [1, 1]} : vector<2x48xf32> to vector<2x16xf32>
    %331 = vector.extract_strided_slice %326 {offsets = [0, 32], sizes = [2, 16], strides = [1, 1]} : vector<2x48xf32> to vector<2x16xf32>
    %332 = arith.mulf %330, %234 : vector<2x16xf32>
    %333 = arith.mulf %329, %328 : vector<2x16xf32>
    %334 = arith.addf %332, %333 : vector<2x16xf32>
    %335 = math.tanh %334 : vector<2x16xf32>
    %336 = arith.mulf %331, %335 : vector<2x16xf32>
    %c1_157 = arith.constant 1 : index
    %c10_158 = arith.constant 10 : index
    %c16_159 = arith.constant 16 : index
    %337 = vector.load %arg11[%c1_157, %c10_158, %c16_159] : memref<2x16x32xf32, #tpu.memory_space<vmem>>, vector<1x2x16xf32>
    %338 = vector.shape_cast %337 : vector<1x2x16xf32> to vector<2x16xf32>
    %339 = vector.shape_cast %336 : vector<2x16xf32> to vector<1x2x16xf32>
    tpu.vector_store %arg11[%c1_157, %c10_158, %c16_159], %339 {strides = array<i32>} : memref<2x16x32xf32, #tpu.memory_space<vmem>>, vector<1x2x16xf32>,
    %c0_160 = arith.constant 0 : index
    %c6 = arith.constant 6 : index
    %c0_161 = arith.constant 0 : index
    %340 = vector.load %arg10[%c0_160, %c6, %c0_161] : memref<4x16x64xf32, #tpu.memory_space<vmem>>, vector<1x2x64xf32>
    %341 = vector.shape_cast %340 : vector<1x2x64xf32> to vector<2x64xf32>
    %c0_162 = arith.constant 0 : index
    %c0_163 = arith.constant 0 : index
    %c0_164 = arith.constant 0 : index
    %342 = vector.load %arg5[%c0_162, %c0_163, %c0_164] : memref<4x16x64xf32, #tpu.memory_space<vmem>>, vector<1x16x64xf32>
    %343 = vector.shape_cast %342 : vector<1x16x64xf32> to vector<16x64xf32>
    %cst_165 = arith.constant dense<0.000000e+00> : vector<2x64xf32>
    %344 = tpu.matmul %261, %343, %cst_165 {dimension_numbers = #tpu.dot_dimension_numbers<[1], [0], [0], [1], [0, 0, 1, 1], [], []>} : vector<2x16xf32>, vector<16x64xf32>, vector<2x64xf32> -> vector<2x64xf32>
    %345 = arith.addf %341, %344 : vector<2x64xf32>
    %346 = vector.extract_strided_slice %345 {offsets = [0, 0], sizes = [2, 48], strides = [1, 1]} : vector<2x64xf32> to vector<2x48xf32>
    %347 = arith.negf %346 : vector<2x48xf32>
    %348 = math.exp %347 : vector<2x48xf32>
    %cst_166 = arith.constant 1.000000e+00 : f32
    %349 = vector.broadcast %cst_166 : f32 to vector<2x48xf32>
    %350 = arith.addf %349, %348 : vector<2x48xf32>
    %351 = arith.divf %349, %350 : vector<2x48xf32>
    %352 = vector.extract_strided_slice %345 {offsets = [0, 48], sizes = [2, 16], strides = [1, 1]} : vector<2x64xf32> to vector<2x16xf32>
    %353 = math.tanh %352 : vector<2x16xf32>
    %354 = vector.extract_strided_slice %351 {offsets = [0, 0], sizes = [2, 16], strides = [1, 1]} : vector<2x48xf32> to vector<2x16xf32>
    %355 = vector.extract_strided_slice %351 {offsets = [0, 16], sizes = [2, 16], strides = [1, 1]} : vector<2x48xf32> to vector<2x16xf32>
    %356 = vector.extract_strided_slice %351 {offsets = [0, 32], sizes = [2, 16], strides = [1, 1]} : vector<2x48xf32> to vector<2x16xf32>
    %357 = arith.mulf %355, %259 : vector<2x16xf32>
    %358 = arith.mulf %354, %353 : vector<2x16xf32>
    %359 = arith.addf %357, %358 : vector<2x16xf32>
    %360 = math.tanh %359 : vector<2x16xf32>
    %361 = arith.mulf %356, %360 : vector<2x16xf32>
    %c0_167 = arith.constant 0 : index
    %c6_168 = arith.constant 6 : index
    %c0_169 = arith.constant 0 : index
    %362 = vector.load %arg11[%c0_167, %c6_168, %c0_169] : memref<2x16x32xf32, #tpu.memory_space<vmem>>, vector<1x2x16xf32>
    %363 = vector.shape_cast %362 : vector<1x2x16xf32> to vector<2x16xf32>
    %364 = vector.shape_cast %361 : vector<2x16xf32> to vector<1x2x16xf32>
    tpu.vector_store %arg11[%c0_167, %c6_168, %c0_169], %364 {strides = array<i32>} : memref<2x16x32xf32, #tpu.memory_space<vmem>>, vector<1x2x16xf32>,
    %c1_170 = arith.constant 1 : index
    %c6_171 = arith.constant 6 : index
    %c0_172 = arith.constant 0 : index
    %365 = vector.load %arg10[%c1_170, %c6_171, %c0_172] : memref<4x16x64xf32, #tpu.memory_space<vmem>>, vector<1x2x64xf32>
    %366 = vector.shape_cast %365 : vector<1x2x64xf32> to vector<2x64xf32>
    %c1_173 = arith.constant 1 : index
    %c0_174 = arith.constant 0 : index
    %c0_175 = arith.constant 0 : index
    %367 = vector.load %arg5[%c1_173, %c0_174, %c0_175] : memref<4x16x64xf32, #tpu.memory_space<vmem>>, vector<1x16x64xf32>
    %368 = vector.shape_cast %367 : vector<1x16x64xf32> to vector<16x64xf32>
    %cst_176 = arith.constant dense<0.000000e+00> : vector<2x64xf32>
    %369 = tpu.matmul %286, %368, %cst_176 {dimension_numbers = #tpu.dot_dimension_numbers<[1], [0], [0], [1], [0, 0, 1, 1], [], []>} : vector<2x16xf32>, vector<16x64xf32>, vector<2x64xf32> -> vector<2x64xf32>
    %370 = arith.addf %366, %369 : vector<2x64xf32>
    %371 = vector.extract_strided_slice %370 {offsets = [0, 0], sizes = [2, 48], strides = [1, 1]} : vector<2x64xf32> to vector<2x48xf32>
    %372 = arith.negf %371 : vector<2x48xf32>
    %373 = math.exp %372 : vector<2x48xf32>
    %cst_177 = arith.constant 1.000000e+00 : f32
    %374 = vector.broadcast %cst_177 : f32 to vector<2x48xf32>
    %375 = arith.addf %374, %373 : vector<2x48xf32>
    %376 = arith.divf %374, %375 : vector<2x48xf32>
    %377 = vector.extract_strided_slice %370 {offsets = [0, 48], sizes = [2, 16], strides = [1, 1]} : vector<2x64xf32> to vector<2x16xf32>
    %378 = math.tanh %377 : vector<2x16xf32>
    %379 = vector.extract_strided_slice %376 {offsets = [0, 0], sizes = [2, 16], strides = [1, 1]} : vector<2x48xf32> to vector<2x16xf32>
    %380 = vector.extract_strided_slice %376 {offsets = [0, 16], sizes = [2, 16], strides = [1, 1]} : vector<2x48xf32> to vector<2x16xf32>
    %381 = vector.extract_strided_slice %376 {offsets = [0, 32], sizes = [2, 16], strides = [1, 1]} : vector<2x48xf32> to vector<2x16xf32>
    %382 = arith.mulf %380, %284 : vector<2x16xf32>
    %383 = arith.mulf %379, %378 : vector<2x16xf32>
    %384 = arith.addf %382, %383 : vector<2x16xf32>
    %385 = math.tanh %384 : vector<2x16xf32>
    %386 = arith.mulf %381, %385 : vector<2x16xf32>
    %c1_178 = arith.constant 1 : index
    %c6_179 = arith.constant 6 : index
    %c0_180 = arith.constant 0 : index
    %387 = vector.load %arg11[%c1_178, %c6_179, %c0_180] : memref<2x16x32xf32, #tpu.memory_space<vmem>>, vector<1x2x16xf32>
    %388 = vector.shape_cast %387 : vector<1x2x16xf32> to vector<2x16xf32>
    %389 = vector.shape_cast %386 : vector<2x16xf32> to vector<1x2x16xf32>
    tpu.vector_store %arg11[%c1_178, %c6_179, %c0_180], %389 {strides = array<i32>} : memref<2x16x32xf32, #tpu.memory_space<vmem>>, vector<1x2x16xf32>,
    %c2_181 = arith.constant 2 : index
    %c8 = arith.constant 8 : index
    %c0_182 = arith.constant 0 : index
    %390 = vector.load %arg10[%c2_181, %c8, %c0_182] : memref<4x16x64xf32, #tpu.memory_space<vmem>>, vector<1x2x64xf32>
    %391 = vector.shape_cast %390 : vector<1x2x64xf32> to vector<2x64xf32>
    %c2_183 = arith.constant 2 : index
    %c0_184 = arith.constant 0 : index
    %c0_185 = arith.constant 0 : index
    %392 = vector.load %arg5[%c2_183, %c0_184, %c0_185] : memref<4x16x64xf32, #tpu.memory_space<vmem>>, vector<1x16x64xf32>
    %393 = vector.shape_cast %392 : vector<1x16x64xf32> to vector<16x64xf32>
    %cst_186 = arith.constant dense<0.000000e+00> : vector<2x64xf32>
    %394 = tpu.matmul %311, %393, %cst_186 {dimension_numbers = #tpu.dot_dimension_numbers<[1], [0], [0], [1], [0, 0, 1, 1], [], []>} : vector<2x16xf32>, vector<16x64xf32>, vector<2x64xf32> -> vector<2x64xf32>
    %395 = arith.addf %391, %394 : vector<2x64xf32>
    %396 = vector.extract_strided_slice %395 {offsets = [0, 0], sizes = [2, 48], strides = [1, 1]} : vector<2x64xf32> to vector<2x48xf32>
    %397 = arith.negf %396 : vector<2x48xf32>
    %398 = math.exp %397 : vector<2x48xf32>
    %cst_187 = arith.constant 1.000000e+00 : f32
    %399 = vector.broadcast %cst_187 : f32 to vector<2x48xf32>
    %400 = arith.addf %399, %398 : vector<2x48xf32>
    %401 = arith.divf %399, %400 : vector<2x48xf32>
    %402 = vector.extract_strided_slice %395 {offsets = [0, 48], sizes = [2, 16], strides = [1, 1]} : vector<2x64xf32> to vector<2x16xf32>
    %403 = math.tanh %402 : vector<2x16xf32>
    %404 = vector.extract_strided_slice %401 {offsets = [0, 0], sizes = [2, 16], strides = [1, 1]} : vector<2x48xf32> to vector<2x16xf32>
    %405 = vector.extract_strided_slice %401 {offsets = [0, 16], sizes = [2, 16], strides = [1, 1]} : vector<2x48xf32> to vector<2x16xf32>
    %406 = vector.extract_strided_slice %401 {offsets = [0, 32], sizes = [2, 16], strides = [1, 1]} : vector<2x48xf32> to vector<2x16xf32>
    %407 = arith.mulf %405, %309 : vector<2x16xf32>
    %408 = arith.mulf %404, %403 : vector<2x16xf32>
    %409 = arith.addf %407, %408 : vector<2x16xf32>
    %410 = math.tanh %409 : vector<2x16xf32>
    %411 = arith.mulf %406, %410 : vector<2x16xf32>
    %c0_188 = arith.constant 0 : index
    %c8_189 = arith.constant 8 : index
    %c16_190 = arith.constant 16 : index
    %412 = vector.load %arg11[%c0_188, %c8_189, %c16_190] : memref<2x16x32xf32, #tpu.memory_space<vmem>>, vector<1x2x16xf32>
    %413 = vector.shape_cast %412 : vector<1x2x16xf32> to vector<2x16xf32>
    %414 = vector.shape_cast %411 : vector<2x16xf32> to vector<1x2x16xf32>
    tpu.vector_store %arg11[%c0_188, %c8_189, %c16_190], %414 {strides = array<i32>} : memref<2x16x32xf32, #tpu.memory_space<vmem>>, vector<1x2x16xf32>,
    %c3_191 = arith.constant 3 : index
    %c8_192 = arith.constant 8 : index
    %c0_193 = arith.constant 0 : index
    %415 = vector.load %arg10[%c3_191, %c8_192, %c0_193] : memref<4x16x64xf32, #tpu.memory_space<vmem>>, vector<1x2x64xf32>
    %416 = vector.shape_cast %415 : vector<1x2x64xf32> to vector<2x64xf32>
    %c3_194 = arith.constant 3 : index
    %c0_195 = arith.constant 0 : index
    %c0_196 = arith.constant 0 : index
    %417 = vector.load %arg5[%c3_194, %c0_195, %c0_196] : memref<4x16x64xf32, #tpu.memory_space<vmem>>, vector<1x16x64xf32>
    %418 = vector.shape_cast %417 : vector<1x16x64xf32> to vector<16x64xf32>
    %cst_197 = arith.constant dense<0.000000e+00> : vector<2x64xf32>
    %419 = tpu.matmul %336, %418, %cst_197 {dimension_numbers = #tpu.dot_dimension_numbers<[1], [0], [0], [1], [0, 0, 1, 1], [], []>} : vector<2x16xf32>, vector<16x64xf32>, vector<2x64xf32> -> vector<2x64xf32>
    %420 = arith.addf %416, %419 : vector<2x64xf32>
    %421 = vector.extract_strided_slice %420 {offsets = [0, 0], sizes = [2, 48], strides = [1, 1]} : vector<2x64xf32> to vector<2x48xf32>
    %422 = arith.negf %421 : vector<2x48xf32>
    %423 = math.exp %422 : vector<2x48xf32>
    %cst_198 = arith.constant 1.000000e+00 : f32
    %424 = vector.broadcast %cst_198 : f32 to vector<2x48xf32>
    %425 = arith.addf %424, %423 : vector<2x48xf32>
    %426 = arith.divf %424, %425 : vector<2x48xf32>
    %427 = vector.extract_strided_slice %420 {offsets = [0, 48], sizes = [2, 16], strides = [1, 1]} : vector<2x64xf32> to vector<2x16xf32>
    %428 = math.tanh %427 : vector<2x16xf32>
    %429 = vector.extract_strided_slice %426 {offsets = [0, 0], sizes = [2, 16], strides = [1, 1]} : vector<2x48xf32> to vector<2x16xf32>
    %430 = vector.extract_strided_slice %426 {offsets = [0, 16], sizes = [2, 16], strides = [1, 1]} : vector<2x48xf32> to vector<2x16xf32>
    %431 = vector.extract_strided_slice %426 {offsets = [0, 32], sizes = [2, 16], strides = [1, 1]} : vector<2x48xf32> to vector<2x16xf32>
    %432 = arith.mulf %430, %334 : vector<2x16xf32>
    %433 = arith.mulf %429, %428 : vector<2x16xf32>
    %434 = arith.addf %432, %433 : vector<2x16xf32>
    %435 = math.tanh %434 : vector<2x16xf32>
    %436 = arith.mulf %431, %435 : vector<2x16xf32>
    %c1_199 = arith.constant 1 : index
    %c8_200 = arith.constant 8 : index
    %c16_201 = arith.constant 16 : index
    %437 = vector.load %arg11[%c1_199, %c8_200, %c16_201] : memref<2x16x32xf32, #tpu.memory_space<vmem>>, vector<1x2x16xf32>
    %438 = vector.shape_cast %437 : vector<1x2x16xf32> to vector<2x16xf32>
    %439 = vector.shape_cast %436 : vector<2x16xf32> to vector<1x2x16xf32>
    tpu.vector_store %arg11[%c1_199, %c8_200, %c16_201], %439 {strides = array<i32>} : memref<2x16x32xf32, #tpu.memory_space<vmem>>, vector<1x2x16xf32>,
    %c0_202 = arith.constant 0 : index
    %c8_203 = arith.constant 8 : index
    %c0_204 = arith.constant 0 : index
    %440 = vector.load %arg10[%c0_202, %c8_203, %c0_204] : memref<4x16x64xf32, #tpu.memory_space<vmem>>, vector<1x2x64xf32>
    %441 = vector.shape_cast %440 : vector<1x2x64xf32> to vector<2x64xf32>
    %c0_205 = arith.constant 0 : index
    %c0_206 = arith.constant 0 : index
    %c0_207 = arith.constant 0 : index
    %442 = vector.load %arg5[%c0_205, %c0_206, %c0_207] : memref<4x16x64xf32, #tpu.memory_space<vmem>>, vector<1x16x64xf32>
    %443 = vector.shape_cast %442 : vector<1x16x64xf32> to vector<16x64xf32>
    %cst_208 = arith.constant dense<0.000000e+00> : vector<2x64xf32>
    %444 = tpu.matmul %361, %443, %cst_208 {dimension_numbers = #tpu.dot_dimension_numbers<[1], [0], [0], [1], [0, 0, 1, 1], [], []>} : vector<2x16xf32>, vector<16x64xf32>, vector<2x64xf32> -> vector<2x64xf32>
    %445 = arith.addf %441, %444 : vector<2x64xf32>
    %446 = vector.extract_strided_slice %445 {offsets = [0, 0], sizes = [2, 48], strides = [1, 1]} : vector<2x64xf32> to vector<2x48xf32>
    %447 = arith.negf %446 : vector<2x48xf32>
    %448 = math.exp %447 : vector<2x48xf32>
    %cst_209 = arith.constant 1.000000e+00 : f32
    %449 = vector.broadcast %cst_209 : f32 to vector<2x48xf32>
    %450 = arith.addf %449, %448 : vector<2x48xf32>
    %451 = arith.divf %449, %450 : vector<2x48xf32>
    %452 = vector.extract_strided_slice %445 {offsets = [0, 48], sizes = [2, 16], strides = [1, 1]} : vector<2x64xf32> to vector<2x16xf32>
    %453 = math.tanh %452 : vector<2x16xf32>
    %454 = vector.extract_strided_slice %451 {offsets = [0, 0], sizes = [2, 16], strides = [1, 1]} : vector<2x48xf32> to vector<2x16xf32>
    %455 = vector.extract_strided_slice %451 {offsets = [0, 16], sizes = [2, 16], strides = [1, 1]} : vector<2x48xf32> to vector<2x16xf32>
    %456 = vector.extract_strided_slice %451 {offsets = [0, 32], sizes = [2, 16], strides = [1, 1]} : vector<2x48xf32> to vector<2x16xf32>
    %457 = arith.mulf %455, %359 : vector<2x16xf32>
    %458 = arith.mulf %454, %453 : vector<2x16xf32>
    %459 = arith.addf %457, %458 : vector<2x16xf32>
    %460 = math.tanh %459 : vector<2x16xf32>
    %461 = arith.mulf %456, %460 : vector<2x16xf32>
    %c0_210 = arith.constant 0 : index
    %c8_211 = arith.constant 8 : index
    %c0_212 = arith.constant 0 : index
    %462 = vector.load %arg11[%c0_210, %c8_211, %c0_212] : memref<2x16x32xf32, #tpu.memory_space<vmem>>, vector<1x2x16xf32>
    %463 = vector.shape_cast %462 : vector<1x2x16xf32> to vector<2x16xf32>
    %464 = vector.shape_cast %461 : vector<2x16xf32> to vector<1x2x16xf32>
    tpu.vector_store %arg11[%c0_210, %c8_211, %c0_212], %464 {strides = array<i32>} : memref<2x16x32xf32, #tpu.memory_space<vmem>>, vector<1x2x16xf32>,
    %c1_213 = arith.constant 1 : index
    %c8_214 = arith.constant 8 : index
    %c0_215 = arith.constant 0 : index
    %465 = vector.load %arg10[%c1_213, %c8_214, %c0_215] : memref<4x16x64xf32, #tpu.memory_space<vmem>>, vector<1x2x64xf32>
    %466 = vector.shape_cast %465 : vector<1x2x64xf32> to vector<2x64xf32>
    %c1_216 = arith.constant 1 : index
    %c0_217 = arith.constant 0 : index
    %c0_218 = arith.constant 0 : index
    %467 = vector.load %arg5[%c1_216, %c0_217, %c0_218] : memref<4x16x64xf32, #tpu.memory_space<vmem>>, vector<1x16x64xf32>
    %468 = vector.shape_cast %467 : vector<1x16x64xf32> to vector<16x64xf32>
    %cst_219 = arith.constant dense<0.000000e+00> : vector<2x64xf32>
    %469 = tpu.matmul %386, %468, %cst_219 {dimension_numbers = #tpu.dot_dimension_numbers<[1], [0], [0], [1], [0, 0, 1, 1], [], []>} : vector<2x16xf32>, vector<16x64xf32>, vector<2x64xf32> -> vector<2x64xf32>
    %470 = arith.addf %466, %469 : vector<2x64xf32>
    %471 = vector.extract_strided_slice %470 {offsets = [0, 0], sizes = [2, 48], strides = [1, 1]} : vector<2x64xf32> to vector<2x48xf32>
    %472 = arith.negf %471 : vector<2x48xf32>
    %473 = math.exp %472 : vector<2x48xf32>
    %cst_220 = arith.constant 1.000000e+00 : f32
    %474 = vector.broadcast %cst_220 : f32 to vector<2x48xf32>
    %475 = arith.addf %474, %473 : vector<2x48xf32>
    %476 = arith.divf %474, %475 : vector<2x48xf32>
    %477 = vector.extract_strided_slice %470 {offsets = [0, 48], sizes = [2, 16], strides = [1, 1]} : vector<2x64xf32> to vector<2x16xf32>
    %478 = math.tanh %477 : vector<2x16xf32>
    %479 = vector.extract_strided_slice %476 {offsets = [0, 0], sizes = [2, 16], strides = [1, 1]} : vector<2x48xf32> to vector<2x16xf32>
    %480 = vector.extract_strided_slice %476 {offsets = [0, 16], sizes = [2, 16], strides = [1, 1]} : vector<2x48xf32> to vector<2x16xf32>
    %481 = vector.extract_strided_slice %476 {offsets = [0, 32], sizes = [2, 16], strides = [1, 1]} : vector<2x48xf32> to vector<2x16xf32>
    %482 = arith.mulf %480, %384 : vector<2x16xf32>
    %483 = arith.mulf %479, %478 : vector<2x16xf32>
    %484 = arith.addf %482, %483 : vector<2x16xf32>
    %485 = math.tanh %484 : vector<2x16xf32>
    %486 = arith.mulf %481, %485 : vector<2x16xf32>
    %c1_221 = arith.constant 1 : index
    %c8_222 = arith.constant 8 : index
    %c0_223 = arith.constant 0 : index
    %487 = vector.load %arg11[%c1_221, %c8_222, %c0_223] : memref<2x16x32xf32, #tpu.memory_space<vmem>>, vector<1x2x16xf32>
    %488 = vector.shape_cast %487 : vector<1x2x16xf32> to vector<2x16xf32>
    %489 = vector.shape_cast %486 : vector<2x16xf32> to vector<1x2x16xf32>
    tpu.vector_store %arg11[%c1_221, %c8_222, %c0_223], %489 {strides = array<i32>} : memref<2x16x32xf32, #tpu.memory_space<vmem>>, vector<1x2x16xf32>,
    %c2_224 = arith.constant 2 : index
    %c6_225 = arith.constant 6 : index
    %c0_226 = arith.constant 0 : index
    %490 = vector.load %arg10[%c2_224, %c6_225, %c0_226] : memref<4x16x64xf32, #tpu.memory_space<vmem>>, vector<1x2x64xf32>
    %491 = vector.shape_cast %490 : vector<1x2x64xf32> to vector<2x64xf32>
    %c2_227 = arith.constant 2 : index
    %c0_228 = arith.constant 0 : index
    %c0_229 = arith.constant 0 : index
    %492 = vector.load %arg5[%c2_227, %c0_228, %c0_229] : memref<4x16x64xf32, #tpu.memory_space<vmem>>, vector<1x16x64xf32>
    %493 = vector.shape_cast %492 : vector<1x16x64xf32> to vector<16x64xf32>
    %cst_230 = arith.constant dense<0.000000e+00> : vector<2x64xf32>
    %494 = tpu.matmul %411, %493, %cst_230 {dimension_numbers = #tpu.dot_dimension_numbers<[1], [0], [0], [1], [0, 0, 1, 1], [], []>} : vector<2x16xf32>, vector<16x64xf32>, vector<2x64xf32> -> vector<2x64xf32>
    %495 = arith.addf %491, %494 : vector<2x64xf32>
    %496 = vector.extract_strided_slice %495 {offsets = [0, 0], sizes = [2, 48], strides = [1, 1]} : vector<2x64xf32> to vector<2x48xf32>
    %497 = arith.negf %496 : vector<2x48xf32>
    %498 = math.exp %497 : vector<2x48xf32>
    %cst_231 = arith.constant 1.000000e+00 : f32
    %499 = vector.broadcast %cst_231 : f32 to vector<2x48xf32>
    %500 = arith.addf %499, %498 : vector<2x48xf32>
    %501 = arith.divf %499, %500 : vector<2x48xf32>
    %502 = vector.extract_strided_slice %495 {offsets = [0, 48], sizes = [2, 16], strides = [1, 1]} : vector<2x64xf32> to vector<2x16xf32>
    %503 = math.tanh %502 : vector<2x16xf32>
    %504 = vector.extract_strided_slice %501 {offsets = [0, 0], sizes = [2, 16], strides = [1, 1]} : vector<2x48xf32> to vector<2x16xf32>
    %505 = vector.extract_strided_slice %501 {offsets = [0, 16], sizes = [2, 16], strides = [1, 1]} : vector<2x48xf32> to vector<2x16xf32>
    %506 = vector.extract_strided_slice %501 {offsets = [0, 32], sizes = [2, 16], strides = [1, 1]} : vector<2x48xf32> to vector<2x16xf32>
    %507 = arith.mulf %505, %409 : vector<2x16xf32>
    %508 = arith.mulf %504, %503 : vector<2x16xf32>
    %509 = arith.addf %507, %508 : vector<2x16xf32>
    %510 = math.tanh %509 : vector<2x16xf32>
    %511 = arith.mulf %506, %510 : vector<2x16xf32>
    %c0_232 = arith.constant 0 : index
    %c6_233 = arith.constant 6 : index
    %c16_234 = arith.constant 16 : index
    %512 = vector.load %arg11[%c0_232, %c6_233, %c16_234] : memref<2x16x32xf32, #tpu.memory_space<vmem>>, vector<1x2x16xf32>
    %513 = vector.shape_cast %512 : vector<1x2x16xf32> to vector<2x16xf32>
    %514 = vector.shape_cast %511 : vector<2x16xf32> to vector<1x2x16xf32>
    tpu.vector_store %arg11[%c0_232, %c6_233, %c16_234], %514 {strides = array<i32>} : memref<2x16x32xf32, #tpu.memory_space<vmem>>, vector<1x2x16xf32>,
    %c3_235 = arith.constant 3 : index
    %c6_236 = arith.constant 6 : index
    %c0_237 = arith.constant 0 : index
    %515 = vector.load %arg10[%c3_235, %c6_236, %c0_237] : memref<4x16x64xf32, #tpu.memory_space<vmem>>, vector<1x2x64xf32>
    %516 = vector.shape_cast %515 : vector<1x2x64xf32> to vector<2x64xf32>
    %c3_238 = arith.constant 3 : index
    %c0_239 = arith.constant 0 : index
    %c0_240 = arith.constant 0 : index
    %517 = vector.load %arg5[%c3_238, %c0_239, %c0_240] : memref<4x16x64xf32, #tpu.memory_space<vmem>>, vector<1x16x64xf32>
    %518 = vector.shape_cast %517 : vector<1x16x64xf32> to vector<16x64xf32>
    %cst_241 = arith.constant dense<0.000000e+00> : vector<2x64xf32>
    %519 = tpu.matmul %436, %518, %cst_241 {dimension_numbers = #tpu.dot_dimension_numbers<[1], [0], [0], [1], [0, 0, 1, 1], [], []>} : vector<2x16xf32>, vector<16x64xf32>, vector<2x64xf32> -> vector<2x64xf32>
    %520 = arith.addf %516, %519 : vector<2x64xf32>
    %521 = vector.extract_strided_slice %520 {offsets = [0, 0], sizes = [2, 48], strides = [1, 1]} : vector<2x64xf32> to vector<2x48xf32>
    %522 = arith.negf %521 : vector<2x48xf32>
    %523 = math.exp %522 : vector<2x48xf32>
    %cst_242 = arith.constant 1.000000e+00 : f32
    %524 = vector.broadcast %cst_242 : f32 to vector<2x48xf32>
    %525 = arith.addf %524, %523 : vector<2x48xf32>
    %526 = arith.divf %524, %525 : vector<2x48xf32>
    %527 = vector.extract_strided_slice %520 {offsets = [0, 48], sizes = [2, 16], strides = [1, 1]} : vector<2x64xf32> to vector<2x16xf32>
    %528 = math.tanh %527 : vector<2x16xf32>
    %529 = vector.extract_strided_slice %526 {offsets = [0, 0], sizes = [2, 16], strides = [1, 1]} : vector<2x48xf32> to vector<2x16xf32>
    %530 = vector.extract_strided_slice %526 {offsets = [0, 16], sizes = [2, 16], strides = [1, 1]} : vector<2x48xf32> to vector<2x16xf32>
    %531 = vector.extract_strided_slice %526 {offsets = [0, 32], sizes = [2, 16], strides = [1, 1]} : vector<2x48xf32> to vector<2x16xf32>
    %532 = arith.mulf %530, %434 : vector<2x16xf32>
    %533 = arith.mulf %529, %528 : vector<2x16xf32>
    %534 = arith.addf %532, %533 : vector<2x16xf32>
    %535 = math.tanh %534 : vector<2x16xf32>
    %536 = arith.mulf %531, %535 : vector<2x16xf32>
    %c1_243 = arith.constant 1 : index
    %c6_244 = arith.constant 6 : index
    %c16_245 = arith.constant 16 : index
    %537 = vector.load %arg11[%c1_243, %c6_244, %c16_245] : memref<2x16x32xf32, #tpu.memory_space<vmem>>, vector<1x2x16xf32>
    %538 = vector.shape_cast %537 : vector<1x2x16xf32> to vector<2x16xf32>
    %539 = vector.shape_cast %536 : vector<2x16xf32> to vector<1x2x16xf32>
    tpu.vector_store %arg11[%c1_243, %c6_244, %c16_245], %539 {strides = array<i32>} : memref<2x16x32xf32, #tpu.memory_space<vmem>>, vector<1x2x16xf32>,
    %c0_246 = arith.constant 0 : index
    %c10_247 = arith.constant 10 : index
    %c0_248 = arith.constant 0 : index
    %540 = vector.load %arg10[%c0_246, %c10_247, %c0_248] : memref<4x16x64xf32, #tpu.memory_space<vmem>>, vector<1x2x64xf32>
    %541 = vector.shape_cast %540 : vector<1x2x64xf32> to vector<2x64xf32>
    %c0_249 = arith.constant 0 : index
    %c0_250 = arith.constant 0 : index
    %c0_251 = arith.constant 0 : index
    %542 = vector.load %arg5[%c0_249, %c0_250, %c0_251] : memref<4x16x64xf32, #tpu.memory_space<vmem>>, vector<1x16x64xf32>
    %543 = vector.shape_cast %542 : vector<1x16x64xf32> to vector<16x64xf32>
    %cst_252 = arith.constant dense<0.000000e+00> : vector<2x64xf32>
    %544 = tpu.matmul %461, %543, %cst_252 {dimension_numbers = #tpu.dot_dimension_numbers<[1], [0], [0], [1], [0, 0, 1, 1], [], []>} : vector<2x16xf32>, vector<16x64xf32>, vector<2x64xf32> -> vector<2x64xf32>
    %545 = arith.addf %541, %544 : vector<2x64xf32>
    %546 = vector.extract_strided_slice %545 {offsets = [0, 0], sizes = [2, 48], strides = [1, 1]} : vector<2x64xf32> to vector<2x48xf32>
    %547 = arith.negf %546 : vector<2x48xf32>
    %548 = math.exp %547 : vector<2x48xf32>
    %cst_253 = arith.constant 1.000000e+00 : f32
    %549 = vector.broadcast %cst_253 : f32 to vector<2x48xf32>
    %550 = arith.addf %549, %548 : vector<2x48xf32>
    %551 = arith.divf %549, %550 : vector<2x48xf32>
    %552 = vector.extract_strided_slice %545 {offsets = [0, 48], sizes = [2, 16], strides = [1, 1]} : vector<2x64xf32> to vector<2x16xf32>
    %553 = math.tanh %552 : vector<2x16xf32>
    %554 = vector.extract_strided_slice %551 {offsets = [0, 0], sizes = [2, 16], strides = [1, 1]} : vector<2x48xf32> to vector<2x16xf32>
    %555 = vector.extract_strided_slice %551 {offsets = [0, 16], sizes = [2, 16], strides = [1, 1]} : vector<2x48xf32> to vector<2x16xf32>
    %556 = vector.extract_strided_slice %551 {offsets = [0, 32], sizes = [2, 16], strides = [1, 1]} : vector<2x48xf32> to vector<2x16xf32>
    %557 = arith.mulf %555, %459 : vector<2x16xf32>
    %558 = arith.mulf %554, %553 : vector<2x16xf32>
    %559 = arith.addf %557, %558 : vector<2x16xf32>
    %560 = math.tanh %559 : vector<2x16xf32>
    %561 = arith.mulf %556, %560 : vector<2x16xf32>
    %c0_254 = arith.constant 0 : index
    %c10_255 = arith.constant 10 : index
    %c0_256 = arith.constant 0 : index
    %562 = vector.load %arg11[%c0_254, %c10_255, %c0_256] : memref<2x16x32xf32, #tpu.memory_space<vmem>>, vector<1x2x16xf32>
    %563 = vector.shape_cast %562 : vector<1x2x16xf32> to vector<2x16xf32>
    %564 = vector.shape_cast %561 : vector<2x16xf32> to vector<1x2x16xf32>
    tpu.vector_store %arg11[%c0_254, %c10_255, %c0_256], %564 {strides = array<i32>} : memref<2x16x32xf32, #tpu.memory_space<vmem>>, vector<1x2x16xf32>,
    %c1_257 = arith.constant 1 : index
    %c10_258 = arith.constant 10 : index
    %c0_259 = arith.constant 0 : index
    %565 = vector.load %arg10[%c1_257, %c10_258, %c0_259] : memref<4x16x64xf32, #tpu.memory_space<vmem>>, vector<1x2x64xf32>
    %566 = vector.shape_cast %565 : vector<1x2x64xf32> to vector<2x64xf32>
    %c1_260 = arith.constant 1 : index
    %c0_261 = arith.constant 0 : index
    %c0_262 = arith.constant 0 : index
    %567 = vector.load %arg5[%c1_260, %c0_261, %c0_262] : memref<4x16x64xf32, #tpu.memory_space<vmem>>, vector<1x16x64xf32>
    %568 = vector.shape_cast %567 : vector<1x16x64xf32> to vector<16x64xf32>
    %cst_263 = arith.constant dense<0.000000e+00> : vector<2x64xf32>
    %569 = tpu.matmul %486, %568, %cst_263 {dimension_numbers = #tpu.dot_dimension_numbers<[1], [0], [0], [1], [0, 0, 1, 1], [], []>} : vector<2x16xf32>, vector<16x64xf32>, vector<2x64xf32> -> vector<2x64xf32>
    %570 = arith.addf %566, %569 : vector<2x64xf32>
    %571 = vector.extract_strided_slice %570 {offsets = [0, 0], sizes = [2, 48], strides = [1, 1]} : vector<2x64xf32> to vector<2x48xf32>
    %572 = arith.negf %571 : vector<2x48xf32>
    %573 = math.exp %572 : vector<2x48xf32>
    %cst_264 = arith.constant 1.000000e+00 : f32
    %574 = vector.broadcast %cst_264 : f32 to vector<2x48xf32>
    %575 = arith.addf %574, %573 : vector<2x48xf32>
    %576 = arith.divf %574, %575 : vector<2x48xf32>
    %577 = vector.extract_strided_slice %570 {offsets = [0, 48], sizes = [2, 16], strides = [1, 1]} : vector<2x64xf32> to vector<2x16xf32>
    %578 = math.tanh %577 : vector<2x16xf32>
    %579 = vector.extract_strided_slice %576 {offsets = [0, 0], sizes = [2, 16], strides = [1, 1]} : vector<2x48xf32> to vector<2x16xf32>
    %580 = vector.extract_strided_slice %576 {offsets = [0, 16], sizes = [2, 16], strides = [1, 1]} : vector<2x48xf32> to vector<2x16xf32>
    %581 = vector.extract_strided_slice %576 {offsets = [0, 32], sizes = [2, 16], strides = [1, 1]} : vector<2x48xf32> to vector<2x16xf32>
    %582 = arith.mulf %580, %484 : vector<2x16xf32>
    %583 = arith.mulf %579, %578 : vector<2x16xf32>
    %584 = arith.addf %582, %583 : vector<2x16xf32>
    %585 = math.tanh %584 : vector<2x16xf32>
    %586 = arith.mulf %581, %585 : vector<2x16xf32>
    %c1_265 = arith.constant 1 : index
    %c10_266 = arith.constant 10 : index
    %c0_267 = arith.constant 0 : index
    %587 = vector.load %arg11[%c1_265, %c10_266, %c0_267] : memref<2x16x32xf32, #tpu.memory_space<vmem>>, vector<1x2x16xf32>
    %588 = vector.shape_cast %587 : vector<1x2x16xf32> to vector<2x16xf32>
    %589 = vector.shape_cast %586 : vector<2x16xf32> to vector<1x2x16xf32>
    tpu.vector_store %arg11[%c1_265, %c10_266, %c0_267], %589 {strides = array<i32>} : memref<2x16x32xf32, #tpu.memory_space<vmem>>, vector<1x2x16xf32>,
    %c2_268 = arith.constant 2 : index
    %c4_269 = arith.constant 4 : index
    %c0_270 = arith.constant 0 : index
    %590 = vector.load %arg10[%c2_268, %c4_269, %c0_270] : memref<4x16x64xf32, #tpu.memory_space<vmem>>, vector<1x2x64xf32>
    %591 = vector.shape_cast %590 : vector<1x2x64xf32> to vector<2x64xf32>
    %c2_271 = arith.constant 2 : index
    %c0_272 = arith.constant 0 : index
    %c0_273 = arith.constant 0 : index
    %592 = vector.load %arg5[%c2_271, %c0_272, %c0_273] : memref<4x16x64xf32, #tpu.memory_space<vmem>>, vector<1x16x64xf32>
    %593 = vector.shape_cast %592 : vector<1x16x64xf32> to vector<16x64xf32>
    %cst_274 = arith.constant dense<0.000000e+00> : vector<2x64xf32>
    %594 = tpu.matmul %511, %593, %cst_274 {dimension_numbers = #tpu.dot_dimension_numbers<[1], [0], [0], [1], [0, 0, 1, 1], [], []>} : vector<2x16xf32>, vector<16x64xf32>, vector<2x64xf32> -> vector<2x64xf32>
    %595 = arith.addf %591, %594 : vector<2x64xf32>
    %596 = vector.extract_strided_slice %595 {offsets = [0, 0], sizes = [2, 48], strides = [1, 1]} : vector<2x64xf32> to vector<2x48xf32>
    %597 = arith.negf %596 : vector<2x48xf32>
    %598 = math.exp %597 : vector<2x48xf32>
    %cst_275 = arith.constant 1.000000e+00 : f32
    %599 = vector.broadcast %cst_275 : f32 to vector<2x48xf32>
    %600 = arith.addf %599, %598 : vector<2x48xf32>
    %601 = arith.divf %599, %600 : vector<2x48xf32>
    %602 = vector.extract_strided_slice %595 {offsets = [0, 48], sizes = [2, 16], strides = [1, 1]} : vector<2x64xf32> to vector<2x16xf32>
    %603 = math.tanh %602 : vector<2x16xf32>
    %604 = vector.extract_strided_slice %601 {offsets = [0, 0], sizes = [2, 16], strides = [1, 1]} : vector<2x48xf32> to vector<2x16xf32>
    %605 = vector.extract_strided_slice %601 {offsets = [0, 16], sizes = [2, 16], strides = [1, 1]} : vector<2x48xf32> to vector<2x16xf32>
    %606 = vector.extract_strided_slice %601 {offsets = [0, 32], sizes = [2, 16], strides = [1, 1]} : vector<2x48xf32> to vector<2x16xf32>
    %607 = arith.mulf %605, %509 : vector<2x16xf32>
    %608 = arith.mulf %604, %603 : vector<2x16xf32>
    %609 = arith.addf %607, %608 : vector<2x16xf32>
    %610 = math.tanh %609 : vector<2x16xf32>
    %611 = arith.mulf %606, %610 : vector<2x16xf32>
    %c0_276 = arith.constant 0 : index
    %c4_277 = arith.constant 4 : index
    %c16_278 = arith.constant 16 : index
    %612 = vector.load %arg11[%c0_276, %c4_277, %c16_278] : memref<2x16x32xf32, #tpu.memory_space<vmem>>, vector<1x2x16xf32>
    %613 = vector.shape_cast %612 : vector<1x2x16xf32> to vector<2x16xf32>
    %614 = vector.shape_cast %611 : vector<2x16xf32> to vector<1x2x16xf32>
    tpu.vector_store %arg11[%c0_276, %c4_277, %c16_278], %614 {strides = array<i32>} : memref<2x16x32xf32, #tpu.memory_space<vmem>>, vector<1x2x16xf32>,
    %c3_279 = arith.constant 3 : index
    %c4_280 = arith.constant 4 : index
    %c0_281 = arith.constant 0 : index
    %615 = vector.load %arg10[%c3_279, %c4_280, %c0_281] : memref<4x16x64xf32, #tpu.memory_space<vmem>>, vector<1x2x64xf32>
    %616 = vector.shape_cast %615 : vector<1x2x64xf32> to vector<2x64xf32>
    %c3_282 = arith.constant 3 : index
    %c0_283 = arith.constant 0 : index
    %c0_284 = arith.constant 0 : index
    %617 = vector.load %arg5[%c3_282, %c0_283, %c0_284] : memref<4x16x64xf32, #tpu.memory_space<vmem>>, vector<1x16x64xf32>
    %618 = vector.shape_cast %617 : vector<1x16x64xf32> to vector<16x64xf32>
    %cst_285 = arith.constant dense<0.000000e+00> : vector<2x64xf32>
    %619 = tpu.matmul %536, %618, %cst_285 {dimension_numbers = #tpu.dot_dimension_numbers<[1], [0], [0], [1], [0, 0, 1, 1], [], []>} : vector<2x16xf32>, vector<16x64xf32>, vector<2x64xf32> -> vector<2x64xf32>
    %620 = arith.addf %616, %619 : vector<2x64xf32>
    %621 = vector.extract_strided_slice %620 {offsets = [0, 0], sizes = [2, 48], strides = [1, 1]} : vector<2x64xf32> to vector<2x48xf32>
    %622 = arith.negf %621 : vector<2x48xf32>
    %623 = math.exp %622 : vector<2x48xf32>
    %cst_286 = arith.constant 1.000000e+00 : f32
    %624 = vector.broadcast %cst_286 : f32 to vector<2x48xf32>
    %625 = arith.addf %624, %623 : vector<2x48xf32>
    %626 = arith.divf %624, %625 : vector<2x48xf32>
    %627 = vector.extract_strided_slice %620 {offsets = [0, 48], sizes = [2, 16], strides = [1, 1]} : vector<2x64xf32> to vector<2x16xf32>
    %628 = math.tanh %627 : vector<2x16xf32>
    %629 = vector.extract_strided_slice %626 {offsets = [0, 0], sizes = [2, 16], strides = [1, 1]} : vector<2x48xf32> to vector<2x16xf32>
    %630 = vector.extract_strided_slice %626 {offsets = [0, 16], sizes = [2, 16], strides = [1, 1]} : vector<2x48xf32> to vector<2x16xf32>
    %631 = vector.extract_strided_slice %626 {offsets = [0, 32], sizes = [2, 16], strides = [1, 1]} : vector<2x48xf32> to vector<2x16xf32>
    %632 = arith.mulf %630, %534 : vector<2x16xf32>
    %633 = arith.mulf %629, %628 : vector<2x16xf32>
    %634 = arith.addf %632, %633 : vector<2x16xf32>
    %635 = math.tanh %634 : vector<2x16xf32>
    %636 = arith.mulf %631, %635 : vector<2x16xf32>
    %c1_287 = arith.constant 1 : index
    %c4_288 = arith.constant 4 : index
    %c16_289 = arith.constant 16 : index
    %637 = vector.load %arg11[%c1_287, %c4_288, %c16_289] : memref<2x16x32xf32, #tpu.memory_space<vmem>>, vector<1x2x16xf32>
    %638 = vector.shape_cast %637 : vector<1x2x16xf32> to vector<2x16xf32>
    %639 = vector.shape_cast %636 : vector<2x16xf32> to vector<1x2x16xf32>
    tpu.vector_store %arg11[%c1_287, %c4_288, %c16_289], %639 {strides = array<i32>} : memref<2x16x32xf32, #tpu.memory_space<vmem>>, vector<1x2x16xf32>,
    %c0_290 = arith.constant 0 : index
    %c12_291 = arith.constant 12 : index
    %c0_292 = arith.constant 0 : index
    %640 = vector.load %arg10[%c0_290, %c12_291, %c0_292] : memref<4x16x64xf32, #tpu.memory_space<vmem>>, vector<1x2x64xf32>
    %641 = vector.shape_cast %640 : vector<1x2x64xf32> to vector<2x64xf32>
    %c0_293 = arith.constant 0 : index
    %c0_294 = arith.constant 0 : index
    %c0_295 = arith.constant 0 : index
    %642 = vector.load %arg5[%c0_293, %c0_294, %c0_295] : memref<4x16x64xf32, #tpu.memory_space<vmem>>, vector<1x16x64xf32>
    %643 = vector.shape_cast %642 : vector<1x16x64xf32> to vector<16x64xf32>
    %cst_296 = arith.constant dense<0.000000e+00> : vector<2x64xf32>
    %644 = tpu.matmul %561, %643, %cst_296 {dimension_numbers = #tpu.dot_dimension_numbers<[1], [0], [0], [1], [0, 0, 1, 1], [], []>} : vector<2x16xf32>, vector<16x64xf32>, vector<2x64xf32> -> vector<2x64xf32>
    %645 = arith.addf %641, %644 : vector<2x64xf32>
    %646 = vector.extract_strided_slice %645 {offsets = [0, 0], sizes = [2, 48], strides = [1, 1]} : vector<2x64xf32> to vector<2x48xf32>
    %647 = arith.negf %646 : vector<2x48xf32>
    %648 = math.exp %647 : vector<2x48xf32>
    %cst_297 = arith.constant 1.000000e+00 : f32
    %649 = vector.broadcast %cst_297 : f32 to vector<2x48xf32>
    %650 = arith.addf %649, %648 : vector<2x48xf32>
    %651 = arith.divf %649, %650 : vector<2x48xf32>
    %652 = vector.extract_strided_slice %645 {offsets = [0, 48], sizes = [2, 16], strides = [1, 1]} : vector<2x64xf32> to vector<2x16xf32>
    %653 = math.tanh %652 : vector<2x16xf32>
    %654 = vector.extract_strided_slice %651 {offsets = [0, 0], sizes = [2, 16], strides = [1, 1]} : vector<2x48xf32> to vector<2x16xf32>
    %655 = vector.extract_strided_slice %651 {offsets = [0, 16], sizes = [2, 16], strides = [1, 1]} : vector<2x48xf32> to vector<2x16xf32>
    %656 = vector.extract_strided_slice %651 {offsets = [0, 32], sizes = [2, 16], strides = [1, 1]} : vector<2x48xf32> to vector<2x16xf32>
    %657 = arith.mulf %655, %559 : vector<2x16xf32>
    %658 = arith.mulf %654, %653 : vector<2x16xf32>
    %659 = arith.addf %657, %658 : vector<2x16xf32>
    %660 = math.tanh %659 : vector<2x16xf32>
    %661 = arith.mulf %656, %660 : vector<2x16xf32>
    %c0_298 = arith.constant 0 : index
    %c12_299 = arith.constant 12 : index
    %c0_300 = arith.constant 0 : index
    %662 = vector.load %arg11[%c0_298, %c12_299, %c0_300] : memref<2x16x32xf32, #tpu.memory_space<vmem>>, vector<1x2x16xf32>
    %663 = vector.shape_cast %662 : vector<1x2x16xf32> to vector<2x16xf32>
    %664 = vector.shape_cast %661 : vector<2x16xf32> to vector<1x2x16xf32>
    tpu.vector_store %arg11[%c0_298, %c12_299, %c0_300], %664 {strides = array<i32>} : memref<2x16x32xf32, #tpu.memory_space<vmem>>, vector<1x2x16xf32>,
    %c1_301 = arith.constant 1 : index
    %c12_302 = arith.constant 12 : index
    %c0_303 = arith.constant 0 : index
    %665 = vector.load %arg10[%c1_301, %c12_302, %c0_303] : memref<4x16x64xf32, #tpu.memory_space<vmem>>, vector<1x2x64xf32>
    %666 = vector.shape_cast %665 : vector<1x2x64xf32> to vector<2x64xf32>
    %c1_304 = arith.constant 1 : index
    %c0_305 = arith.constant 0 : index
    %c0_306 = arith.constant 0 : index
    %667 = vector.load %arg5[%c1_304, %c0_305, %c0_306] : memref<4x16x64xf32, #tpu.memory_space<vmem>>, vector<1x16x64xf32>
    %668 = vector.shape_cast %667 : vector<1x16x64xf32> to vector<16x64xf32>
    %cst_307 = arith.constant dense<0.000000e+00> : vector<2x64xf32>
    %669 = tpu.matmul %586, %668, %cst_307 {dimension_numbers = #tpu.dot_dimension_numbers<[1], [0], [0], [1], [0, 0, 1, 1], [], []>} : vector<2x16xf32>, vector<16x64xf32>, vector<2x64xf32> -> vector<2x64xf32>
    %670 = arith.addf %666, %669 : vector<2x64xf32>
    %671 = vector.extract_strided_slice %670 {offsets = [0, 0], sizes = [2, 48], strides = [1, 1]} : vector<2x64xf32> to vector<2x48xf32>
    %672 = arith.negf %671 : vector<2x48xf32>
    %673 = math.exp %672 : vector<2x48xf32>
    %cst_308 = arith.constant 1.000000e+00 : f32
    %674 = vector.broadcast %cst_308 : f32 to vector<2x48xf32>
    %675 = arith.addf %674, %673 : vector<2x48xf32>
    %676 = arith.divf %674, %675 : vector<2x48xf32>
    %677 = vector.extract_strided_slice %670 {offsets = [0, 48], sizes = [2, 16], strides = [1, 1]} : vector<2x64xf32> to vector<2x16xf32>
    %678 = math.tanh %677 : vector<2x16xf32>
    %679 = vector.extract_strided_slice %676 {offsets = [0, 0], sizes = [2, 16], strides = [1, 1]} : vector<2x48xf32> to vector<2x16xf32>
    %680 = vector.extract_strided_slice %676 {offsets = [0, 16], sizes = [2, 16], strides = [1, 1]} : vector<2x48xf32> to vector<2x16xf32>
    %681 = vector.extract_strided_slice %676 {offsets = [0, 32], sizes = [2, 16], strides = [1, 1]} : vector<2x48xf32> to vector<2x16xf32>
    %682 = arith.mulf %680, %584 : vector<2x16xf32>
    %683 = arith.mulf %679, %678 : vector<2x16xf32>
    %684 = arith.addf %682, %683 : vector<2x16xf32>
    %685 = math.tanh %684 : vector<2x16xf32>
    %686 = arith.mulf %681, %685 : vector<2x16xf32>
    %c1_309 = arith.constant 1 : index
    %c12_310 = arith.constant 12 : index
    %c0_311 = arith.constant 0 : index
    %687 = vector.load %arg11[%c1_309, %c12_310, %c0_311] : memref<2x16x32xf32, #tpu.memory_space<vmem>>, vector<1x2x16xf32>
    %688 = vector.shape_cast %687 : vector<1x2x16xf32> to vector<2x16xf32>
    %689 = vector.shape_cast %686 : vector<2x16xf32> to vector<1x2x16xf32>
    tpu.vector_store %arg11[%c1_309, %c12_310, %c0_311], %689 {strides = array<i32>} : memref<2x16x32xf32, #tpu.memory_space<vmem>>, vector<1x2x16xf32>,
    %c2_312 = arith.constant 2 : index
    %c2_313 = arith.constant 2 : index
    %c0_314 = arith.constant 0 : index
    %690 = vector.load %arg10[%c2_312, %c2_313, %c0_314] : memref<4x16x64xf32, #tpu.memory_space<vmem>>, vector<1x2x64xf32>
    %691 = vector.shape_cast %690 : vector<1x2x64xf32> to vector<2x64xf32>
    %c2_315 = arith.constant 2 : index
    %c0_316 = arith.constant 0 : index
    %c0_317 = arith.constant 0 : index
    %692 = vector.load %arg5[%c2_315, %c0_316, %c0_317] : memref<4x16x64xf32, #tpu.memory_space<vmem>>, vector<1x16x64xf32>
    %693 = vector.shape_cast %692 : vector<1x16x64xf32> to vector<16x64xf32>
    %cst_318 = arith.constant dense<0.000000e+00> : vector<2x64xf32>
    %694 = tpu.matmul %611, %693, %cst_318 {dimension_numbers = #tpu.dot_dimension_numbers<[1], [0], [0], [1], [0, 0, 1, 1], [], []>} : vector<2x16xf32>, vector<16x64xf32>, vector<2x64xf32> -> vector<2x64xf32>
    %695 = arith.addf %691, %694 : vector<2x64xf32>
    %696 = vector.extract_strided_slice %695 {offsets = [0, 0], sizes = [2, 48], strides = [1, 1]} : vector<2x64xf32> to vector<2x48xf32>
    %697 = arith.negf %696 : vector<2x48xf32>
    %698 = math.exp %697 : vector<2x48xf32>
    %cst_319 = arith.constant 1.000000e+00 : f32
    %699 = vector.broadcast %cst_319 : f32 to vector<2x48xf32>
    %700 = arith.addf %699, %698 : vector<2x48xf32>
    %701 = arith.divf %699, %700 : vector<2x48xf32>
    %702 = vector.extract_strided_slice %695 {offsets = [0, 48], sizes = [2, 16], strides = [1, 1]} : vector<2x64xf32> to vector<2x16xf32>
    %703 = math.tanh %702 : vector<2x16xf32>
    %704 = vector.extract_strided_slice %701 {offsets = [0, 0], sizes = [2, 16], strides = [1, 1]} : vector<2x48xf32> to vector<2x16xf32>
    %705 = vector.extract_strided_slice %701 {offsets = [0, 16], sizes = [2, 16], strides = [1, 1]} : vector<2x48xf32> to vector<2x16xf32>
    %706 = vector.extract_strided_slice %701 {offsets = [0, 32], sizes = [2, 16], strides = [1, 1]} : vector<2x48xf32> to vector<2x16xf32>
    %707 = arith.mulf %705, %609 : vector<2x16xf32>
    %708 = arith.mulf %704, %703 : vector<2x16xf32>
    %709 = arith.addf %707, %708 : vector<2x16xf32>
    %710 = math.tanh %709 : vector<2x16xf32>
    %711 = arith.mulf %706, %710 : vector<2x16xf32>
    %c0_320 = arith.constant 0 : index
    %c2_321 = arith.constant 2 : index
    %c16_322 = arith.constant 16 : index
    %712 = vector.load %arg11[%c0_320, %c2_321, %c16_322] : memref<2x16x32xf32, #tpu.memory_space<vmem>>, vector<1x2x16xf32>
    %713 = vector.shape_cast %712 : vector<1x2x16xf32> to vector<2x16xf32>
    %714 = vector.shape_cast %711 : vector<2x16xf32> to vector<1x2x16xf32>
    tpu.vector_store %arg11[%c0_320, %c2_321, %c16_322], %714 {strides = array<i32>} : memref<2x16x32xf32, #tpu.memory_space<vmem>>, vector<1x2x16xf32>,
    %c3_323 = arith.constant 3 : index
    %c2_324 = arith.constant 2 : index
    %c0_325 = arith.constant 0 : index
    %715 = vector.load %arg10[%c3_323, %c2_324, %c0_325] : memref<4x16x64xf32, #tpu.memory_space<vmem>>, vector<1x2x64xf32>
    %716 = vector.shape_cast %715 : vector<1x2x64xf32> to vector<2x64xf32>
    %c3_326 = arith.constant 3 : index
    %c0_327 = arith.constant 0 : index
    %c0_328 = arith.constant 0 : index
    %717 = vector.load %arg5[%c3_326, %c0_327, %c0_328] : memref<4x16x64xf32, #tpu.memory_space<vmem>>, vector<1x16x64xf32>
    %718 = vector.shape_cast %717 : vector<1x16x64xf32> to vector<16x64xf32>
    %cst_329 = arith.constant dense<0.000000e+00> : vector<2x64xf32>
    %719 = tpu.matmul %636, %718, %cst_329 {dimension_numbers = #tpu.dot_dimension_numbers<[1], [0], [0], [1], [0, 0, 1, 1], [], []>} : vector<2x16xf32>, vector<16x64xf32>, vector<2x64xf32> -> vector<2x64xf32>
    %720 = arith.addf %716, %719 : vector<2x64xf32>
    %721 = vector.extract_strided_slice %720 {offsets = [0, 0], sizes = [2, 48], strides = [1, 1]} : vector<2x64xf32> to vector<2x48xf32>
    %722 = arith.negf %721 : vector<2x48xf32>
    %723 = math.exp %722 : vector<2x48xf32>
    %cst_330 = arith.constant 1.000000e+00 : f32
    %724 = vector.broadcast %cst_330 : f32 to vector<2x48xf32>
    %725 = arith.addf %724, %723 : vector<2x48xf32>
    %726 = arith.divf %724, %725 : vector<2x48xf32>
    %727 = vector.extract_strided_slice %720 {offsets = [0, 48], sizes = [2, 16], strides = [1, 1]} : vector<2x64xf32> to vector<2x16xf32>
    %728 = math.tanh %727 : vector<2x16xf32>
    %729 = vector.extract_strided_slice %726 {offsets = [0, 0], sizes = [2, 16], strides = [1, 1]} : vector<2x48xf32> to vector<2x16xf32>
    %730 = vector.extract_strided_slice %726 {offsets = [0, 16], sizes = [2, 16], strides = [1, 1]} : vector<2x48xf32> to vector<2x16xf32>
    %731 = vector.extract_strided_slice %726 {offsets = [0, 32], sizes = [2, 16], strides = [1, 1]} : vector<2x48xf32> to vector<2x16xf32>
    %732 = arith.mulf %730, %634 : vector<2x16xf32>
    %733 = arith.mulf %729, %728 : vector<2x16xf32>
    %734 = arith.addf %732, %733 : vector<2x16xf32>
    %735 = math.tanh %734 : vector<2x16xf32>
    %736 = arith.mulf %731, %735 : vector<2x16xf32>
    %c1_331 = arith.constant 1 : index
    %c2_332 = arith.constant 2 : index
    %c16_333 = arith.constant 16 : index
    %737 = vector.load %arg11[%c1_331, %c2_332, %c16_333] : memref<2x16x32xf32, #tpu.memory_space<vmem>>, vector<1x2x16xf32>
    %738 = vector.shape_cast %737 : vector<1x2x16xf32> to vector<2x16xf32>
    %739 = vector.shape_cast %736 : vector<2x16xf32> to vector<1x2x16xf32>
    tpu.vector_store %arg11[%c1_331, %c2_332, %c16_333], %739 {strides = array<i32>} : memref<2x16x32xf32, #tpu.memory_space<vmem>>, vector<1x2x16xf32>,
    %c0_334 = arith.constant 0 : index
    %c14_335 = arith.constant 14 : index
    %c0_336 = arith.constant 0 : index
    %740 = vector.load %arg10[%c0_334, %c14_335, %c0_336] : memref<4x16x64xf32, #tpu.memory_space<vmem>>, vector<1x2x64xf32>
    %741 = vector.shape_cast %740 : vector<1x2x64xf32> to vector<2x64xf32>
    %c0_337 = arith.constant 0 : index
    %c0_338 = arith.constant 0 : index
    %c0_339 = arith.constant 0 : index
    %742 = vector.load %arg5[%c0_337, %c0_338, %c0_339] : memref<4x16x64xf32, #tpu.memory_space<vmem>>, vector<1x16x64xf32>
    %743 = vector.shape_cast %742 : vector<1x16x64xf32> to vector<16x64xf32>
    %cst_340 = arith.constant dense<0.000000e+00> : vector<2x64xf32>
    %744 = tpu.matmul %661, %743, %cst_340 {dimension_numbers = #tpu.dot_dimension_numbers<[1], [0], [0], [1], [0, 0, 1, 1], [], []>} : vector<2x16xf32>, vector<16x64xf32>, vector<2x64xf32> -> vector<2x64xf32>
    %745 = arith.addf %741, %744 : vector<2x64xf32>
    %746 = vector.extract_strided_slice %745 {offsets = [0, 0], sizes = [2, 48], strides = [1, 1]} : vector<2x64xf32> to vector<2x48xf32>
    %747 = arith.negf %746 : vector<2x48xf32>
    %748 = math.exp %747 : vector<2x48xf32>
    %cst_341 = arith.constant 1.000000e+00 : f32
    %749 = vector.broadcast %cst_341 : f32 to vector<2x48xf32>
    %750 = arith.addf %749, %748 : vector<2x48xf32>
    %751 = arith.divf %749, %750 : vector<2x48xf32>
    %752 = vector.extract_strided_slice %745 {offsets = [0, 48], sizes = [2, 16], strides = [1, 1]} : vector<2x64xf32> to vector<2x16xf32>
    %753 = math.tanh %752 : vector<2x16xf32>
    %754 = vector.extract_strided_slice %751 {offsets = [0, 0], sizes = [2, 16], strides = [1, 1]} : vector<2x48xf32> to vector<2x16xf32>
    %755 = vector.extract_strided_slice %751 {offsets = [0, 16], sizes = [2, 16], strides = [1, 1]} : vector<2x48xf32> to vector<2x16xf32>
    %756 = vector.extract_strided_slice %751 {offsets = [0, 32], sizes = [2, 16], strides = [1, 1]} : vector<2x48xf32> to vector<2x16xf32>
    %757 = arith.mulf %755, %659 : vector<2x16xf32>
    %758 = arith.mulf %754, %753 : vector<2x16xf32>
    %759 = arith.addf %757, %758 : vector<2x16xf32>
    %760 = math.tanh %759 : vector<2x16xf32>
    %761 = arith.mulf %756, %760 : vector<2x16xf32>
    %c0_342 = arith.constant 0 : index
    %c14_343 = arith.constant 14 : index
    %c0_344 = arith.constant 0 : index
    %762 = vector.load %arg11[%c0_342, %c14_343, %c0_344] : memref<2x16x32xf32, #tpu.memory_space<vmem>>, vector<1x2x16xf32>
    %763 = vector.shape_cast %762 : vector<1x2x16xf32> to vector<2x16xf32>
    %764 = vector.shape_cast %761 : vector<2x16xf32> to vector<1x2x16xf32>
    tpu.vector_store %arg11[%c0_342, %c14_343, %c0_344], %764 {strides = array<i32>} : memref<2x16x32xf32, #tpu.memory_space<vmem>>, vector<1x2x16xf32>,
    %c1_345 = arith.constant 1 : index
    %c14_346 = arith.constant 14 : index
    %c0_347 = arith.constant 0 : index
    %765 = vector.load %arg10[%c1_345, %c14_346, %c0_347] : memref<4x16x64xf32, #tpu.memory_space<vmem>>, vector<1x2x64xf32>
    %766 = vector.shape_cast %765 : vector<1x2x64xf32> to vector<2x64xf32>
    %c1_348 = arith.constant 1 : index
    %c0_349 = arith.constant 0 : index
    %c0_350 = arith.constant 0 : index
    %767 = vector.load %arg5[%c1_348, %c0_349, %c0_350] : memref<4x16x64xf32, #tpu.memory_space<vmem>>, vector<1x16x64xf32>
    %768 = vector.shape_cast %767 : vector<1x16x64xf32> to vector<16x64xf32>
    %cst_351 = arith.constant dense<0.000000e+00> : vector<2x64xf32>
    %769 = tpu.matmul %686, %768, %cst_351 {dimension_numbers = #tpu.dot_dimension_numbers<[1], [0], [0], [1], [0, 0, 1, 1], [], []>} : vector<2x16xf32>, vector<16x64xf32>, vector<2x64xf32> -> vector<2x64xf32>
    %770 = arith.addf %766, %769 : vector<2x64xf32>
    %771 = vector.extract_strided_slice %770 {offsets = [0, 0], sizes = [2, 48], strides = [1, 1]} : vector<2x64xf32> to vector<2x48xf32>
    %772 = arith.negf %771 : vector<2x48xf32>
    %773 = math.exp %772 : vector<2x48xf32>
    %cst_352 = arith.constant 1.000000e+00 : f32
    %774 = vector.broadcast %cst_352 : f32 to vector<2x48xf32>
    %775 = arith.addf %774, %773 : vector<2x48xf32>
    %776 = arith.divf %774, %775 : vector<2x48xf32>
    %777 = vector.extract_strided_slice %770 {offsets = [0, 48], sizes = [2, 16], strides = [1, 1]} : vector<2x64xf32> to vector<2x16xf32>
    %778 = math.tanh %777 : vector<2x16xf32>
    %779 = vector.extract_strided_slice %776 {offsets = [0, 0], sizes = [2, 16], strides = [1, 1]} : vector<2x48xf32> to vector<2x16xf32>
    %780 = vector.extract_strided_slice %776 {offsets = [0, 16], sizes = [2, 16], strides = [1, 1]} : vector<2x48xf32> to vector<2x16xf32>
    %781 = vector.extract_strided_slice %776 {offsets = [0, 32], sizes = [2, 16], strides = [1, 1]} : vector<2x48xf32> to vector<2x16xf32>
    %782 = arith.mulf %780, %684 : vector<2x16xf32>
    %783 = arith.mulf %779, %778 : vector<2x16xf32>
    %784 = arith.addf %782, %783 : vector<2x16xf32>
    %785 = math.tanh %784 : vector<2x16xf32>
    %786 = arith.mulf %781, %785 : vector<2x16xf32>
    %c1_353 = arith.constant 1 : index
    %c14_354 = arith.constant 14 : index
    %c0_355 = arith.constant 0 : index
    %787 = vector.load %arg11[%c1_353, %c14_354, %c0_355] : memref<2x16x32xf32, #tpu.memory_space<vmem>>, vector<1x2x16xf32>
    %788 = vector.shape_cast %787 : vector<1x2x16xf32> to vector<2x16xf32>
    %789 = vector.shape_cast %786 : vector<2x16xf32> to vector<1x2x16xf32>
    tpu.vector_store %arg11[%c1_353, %c14_354, %c0_355], %789 {strides = array<i32>} : memref<2x16x32xf32, #tpu.memory_space<vmem>>, vector<1x2x16xf32>,
    %c2_356 = arith.constant 2 : index
    %c0_357 = arith.constant 0 : index
    %c0_358 = arith.constant 0 : index
    %790 = vector.load %arg10[%c2_356, %c0_357, %c0_358] : memref<4x16x64xf32, #tpu.memory_space<vmem>>, vector<1x2x64xf32>
    %791 = vector.shape_cast %790 : vector<1x2x64xf32> to vector<2x64xf32>
    %c2_359 = arith.constant 2 : index
    %c0_360 = arith.constant 0 : index
    %c0_361 = arith.constant 0 : index
    %792 = vector.load %arg5[%c2_359, %c0_360, %c0_361] : memref<4x16x64xf32, #tpu.memory_space<vmem>>, vector<1x16x64xf32>
    %793 = vector.shape_cast %792 : vector<1x16x64xf32> to vector<16x64xf32>
    %cst_362 = arith.constant dense<0.000000e+00> : vector<2x64xf32>
    %794 = tpu.matmul %711, %793, %cst_362 {dimension_numbers = #tpu.dot_dimension_numbers<[1], [0], [0], [1], [0, 0, 1, 1], [], []>} : vector<2x16xf32>, vector<16x64xf32>, vector<2x64xf32> -> vector<2x64xf32>
    %795 = arith.addf %791, %794 : vector<2x64xf32>
    %796 = vector.extract_strided_slice %795 {offsets = [0, 0], sizes = [2, 48], strides = [1, 1]} : vector<2x64xf32> to vector<2x48xf32>
    %797 = arith.negf %796 : vector<2x48xf32>
    %798 = math.exp %797 : vector<2x48xf32>
    %cst_363 = arith.constant 1.000000e+00 : f32
    %799 = vector.broadcast %cst_363 : f32 to vector<2x48xf32>
    %800 = arith.addf %799, %798 : vector<2x48xf32>
    %801 = arith.divf %799, %800 : vector<2x48xf32>
    %802 = vector.extract_strided_slice %795 {offsets = [0, 48], sizes = [2, 16], strides = [1, 1]} : vector<2x64xf32> to vector<2x16xf32>
    %803 = math.tanh %802 : vector<2x16xf32>
    %804 = vector.extract_strided_slice %801 {offsets = [0, 0], sizes = [2, 16], strides = [1, 1]} : vector<2x48xf32> to vector<2x16xf32>
    %805 = vector.extract_strided_slice %801 {offsets = [0, 16], sizes = [2, 16], strides = [1, 1]} : vector<2x48xf32> to vector<2x16xf32>
    %806 = vector.extract_strided_slice %801 {offsets = [0, 32], sizes = [2, 16], strides = [1, 1]} : vector<2x48xf32> to vector<2x16xf32>
    %807 = arith.mulf %805, %709 : vector<2x16xf32>
    %808 = arith.mulf %804, %803 : vector<2x16xf32>
    %809 = arith.addf %807, %808 : vector<2x16xf32>
    %810 = math.tanh %809 : vector<2x16xf32>
    %811 = arith.mulf %806, %810 : vector<2x16xf32>
    %c0_364 = arith.constant 0 : index
    %c0_365 = arith.constant 0 : index
    %c16_366 = arith.constant 16 : index
    %812 = vector.load %arg11[%c0_364, %c0_365, %c16_366] : memref<2x16x32xf32, #tpu.memory_space<vmem>>, vector<1x2x16xf32>
    %813 = vector.shape_cast %812 : vector<1x2x16xf32> to vector<2x16xf32>
    %814 = vector.shape_cast %811 : vector<2x16xf32> to vector<1x2x16xf32>
    tpu.vector_store %arg11[%c0_364, %c0_365, %c16_366], %814 {strides = array<i32>} : memref<2x16x32xf32, #tpu.memory_space<vmem>>, vector<1x2x16xf32>,
    %c3_367 = arith.constant 3 : index
    %c0_368 = arith.constant 0 : index
    %c0_369 = arith.constant 0 : index
    %815 = vector.load %arg10[%c3_367, %c0_368, %c0_369] : memref<4x16x64xf32, #tpu.memory_space<vmem>>, vector<1x2x64xf32>
    %816 = vector.shape_cast %815 : vector<1x2x64xf32> to vector<2x64xf32>
    %c3_370 = arith.constant 3 : index
    %c0_371 = arith.constant 0 : index
    %c0_372 = arith.constant 0 : index
    %817 = vector.load %arg5[%c3_370, %c0_371, %c0_372] : memref<4x16x64xf32, #tpu.memory_space<vmem>>, vector<1x16x64xf32>
    %818 = vector.shape_cast %817 : vector<1x16x64xf32> to vector<16x64xf32>
    %cst_373 = arith.constant dense<0.000000e+00> : vector<2x64xf32>
    %819 = tpu.matmul %736, %818, %cst_373 {dimension_numbers = #tpu.dot_dimension_numbers<[1], [0], [0], [1], [0, 0, 1, 1], [], []>} : vector<2x16xf32>, vector<16x64xf32>, vector<2x64xf32> -> vector<2x64xf32>
    %820 = arith.addf %816, %819 : vector<2x64xf32>
    %821 = vector.extract_strided_slice %820 {offsets = [0, 0], sizes = [2, 48], strides = [1, 1]} : vector<2x64xf32> to vector<2x48xf32>
    %822 = arith.negf %821 : vector<2x48xf32>
    %823 = math.exp %822 : vector<2x48xf32>
    %cst_374 = arith.constant 1.000000e+00 : f32
    %824 = vector.broadcast %cst_374 : f32 to vector<2x48xf32>
    %825 = arith.addf %824, %823 : vector<2x48xf32>
    %826 = arith.divf %824, %825 : vector<2x48xf32>
    %827 = vector.extract_strided_slice %820 {offsets = [0, 48], sizes = [2, 16], strides = [1, 1]} : vector<2x64xf32> to vector<2x16xf32>
    %828 = math.tanh %827 : vector<2x16xf32>
    %829 = vector.extract_strided_slice %826 {offsets = [0, 0], sizes = [2, 16], strides = [1, 1]} : vector<2x48xf32> to vector<2x16xf32>
    %830 = vector.extract_strided_slice %826 {offsets = [0, 16], sizes = [2, 16], strides = [1, 1]} : vector<2x48xf32> to vector<2x16xf32>
    %831 = vector.extract_strided_slice %826 {offsets = [0, 32], sizes = [2, 16], strides = [1, 1]} : vector<2x48xf32> to vector<2x16xf32>
    %832 = arith.mulf %830, %734 : vector<2x16xf32>
    %833 = arith.mulf %829, %828 : vector<2x16xf32>
    %834 = arith.addf %832, %833 : vector<2x16xf32>
    %835 = math.tanh %834 : vector<2x16xf32>
    %836 = arith.mulf %831, %835 : vector<2x16xf32>
    %c1_375 = arith.constant 1 : index
    %c0_376 = arith.constant 0 : index
    %c16_377 = arith.constant 16 : index
    %837 = vector.load %arg11[%c1_375, %c0_376, %c16_377] : memref<2x16x32xf32, #tpu.memory_space<vmem>>, vector<1x2x16xf32>
    %838 = vector.shape_cast %837 : vector<1x2x16xf32> to vector<2x16xf32>
    %839 = vector.shape_cast %836 : vector<2x16xf32> to vector<1x2x16xf32>
    tpu.vector_store %arg11[%c1_375, %c0_376, %c16_377], %839 {strides = array<i32>} : memref<2x16x32xf32, #tpu.memory_space<vmem>>, vector<1x2x16xf32>,
    %c0_378 = arith.constant 0 : index
    %c0_379 = arith.constant 0 : index
    %c0_380 = arith.constant 0 : index
    %840 = vector.load %arg11[%c0_378, %c0_379, %c0_380] : memref<2x16x32xf32, #tpu.memory_space<vmem>>, vector<1x16x32xf32>
    %841 = vector.shape_cast %840 : vector<1x16x32xf32> to vector<16x32xf32>
    %c1_381 = arith.constant 1 : index
    %c0_382 = arith.constant 0 : index
    %c0_383 = arith.constant 0 : index
    %842 = vector.load %arg11[%c1_381, %c0_382, %c0_383] : memref<2x16x32xf32, #tpu.memory_space<vmem>>, vector<1x16x32xf32>
    %843 = vector.shape_cast %842 : vector<1x16x32xf32> to vector<16x32xf32>
    %c0_384 = arith.constant 0 : index
    %c0_385 = arith.constant 0 : index
    %c0_386 = arith.constant 0 : index
    %844 = vector.load %arg6[%c0_384, %c0_385, %c0_386] : memref<2x32x128xf32, #tpu.memory_space<vmem>>, vector<1x32x128xf32>
    %845 = vector.shape_cast %844 : vector<1x32x128xf32> to vector<32x128xf32>
    %cst_387 = arith.constant dense<0.000000e+00> : vector<16x128xf32>
    %846 = tpu.matmul %841, %845, %cst_387 {dimension_numbers = #tpu.dot_dimension_numbers<[1], [0], [0], [1], [0, 0, 1, 1], [], []>} : vector<16x32xf32>, vector<32x128xf32>, vector<16x128xf32> -> vector<16x128xf32>
    %c0_388 = arith.constant 0 : index
    %c0_389 = arith.constant 0 : index
    %c0_390 = arith.constant 0 : index
    %847 = vector.load %arg7[%c0_388, %c0_389, %c0_390] : memref<2x1x128xf32, #tpu.memory_space<vmem>>, vector<1x1x128xf32>
    %848 = vector.shape_cast %847 : vector<1x1x128xf32> to vector<1x128xf32>
    %849 = vector.broadcast %848 : vector<1x128xf32> to vector<16x128xf32>
    %850 = arith.addf %846, %849 : vector<16x128xf32>
    %851 = vector.extract_strided_slice %850 {offsets = [0, 0], sizes = [16, 64], strides = [1, 1]} : vector<16x128xf32> to vector<16x64xf32>
    %c0_391 = arith.constant 0 : index
    %c0_392 = arith.constant 0 : index
    %c0_393 = arith.constant 0 : index
    %852 = vector.load %arg10[%c0_391, %c0_392, %c0_393] : memref<4x16x64xf32, #tpu.memory_space<vmem>>, vector<1x16x64xf32>
    %853 = vector.shape_cast %852 : vector<1x16x64xf32> to vector<16x64xf32>
    %854 = vector.shape_cast %851 : vector<16x64xf32> to vector<1x16x64xf32>
    tpu.vector_store %arg10[%c0_391, %c0_392, %c0_393], %854 {strides = array<i32>} : memref<4x16x64xf32, #tpu.memory_space<vmem>>, vector<1x16x64xf32>,
    %855 = vector.extract_strided_slice %850 {offsets = [0, 64], sizes = [16, 64], strides = [1, 1]} : vector<16x128xf32> to vector<16x64xf32>
    %c2_394 = arith.constant 2 : index
    %c0_395 = arith.constant 0 : index
    %c0_396 = arith.constant 0 : index
    %856 = vector.load %arg10[%c2_394, %c0_395, %c0_396] : memref<4x16x64xf32, #tpu.memory_space<vmem>>, vector<1x16x64xf32>
    %857 = vector.shape_cast %856 : vector<1x16x64xf32> to vector<16x64xf32>
    %858 = vector.shape_cast %855 : vector<16x64xf32> to vector<1x16x64xf32>
    tpu.vector_store %arg10[%c2_394, %c0_395, %c0_396], %858 {strides = array<i32>} : memref<4x16x64xf32, #tpu.memory_space<vmem>>, vector<1x16x64xf32>,
    %c1_397 = arith.constant 1 : index
    %c0_398 = arith.constant 0 : index
    %c0_399 = arith.constant 0 : index
    %859 = vector.load %arg6[%c1_397, %c0_398, %c0_399] : memref<2x32x128xf32, #tpu.memory_space<vmem>>, vector<1x32x128xf32>
    %860 = vector.shape_cast %859 : vector<1x32x128xf32> to vector<32x128xf32>
    %cst_400 = arith.constant dense<0.000000e+00> : vector<16x128xf32>
    %861 = tpu.matmul %843, %860, %cst_400 {dimension_numbers = #tpu.dot_dimension_numbers<[1], [0], [0], [1], [0, 0, 1, 1], [], []>} : vector<16x32xf32>, vector<32x128xf32>, vector<16x128xf32> -> vector<16x128xf32>
    %c1_401 = arith.constant 1 : index
    %c0_402 = arith.constant 0 : index
    %c0_403 = arith.constant 0 : index
    %862 = vector.load %arg7[%c1_401, %c0_402, %c0_403] : memref<2x1x128xf32, #tpu.memory_space<vmem>>, vector<1x1x128xf32>
    %863 = vector.shape_cast %862 : vector<1x1x128xf32> to vector<1x128xf32>
    %864 = vector.broadcast %863 : vector<1x128xf32> to vector<16x128xf32>
    %865 = arith.addf %861, %864 : vector<16x128xf32>
    %866 = vector.extract_strided_slice %865 {offsets = [0, 0], sizes = [16, 64], strides = [1, 1]} : vector<16x128xf32> to vector<16x64xf32>
    %c1_404 = arith.constant 1 : index
    %c0_405 = arith.constant 0 : index
    %c0_406 = arith.constant 0 : index
    %867 = vector.load %arg10[%c1_404, %c0_405, %c0_406] : memref<4x16x64xf32, #tpu.memory_space<vmem>>, vector<1x16x64xf32>
    %868 = vector.shape_cast %867 : vector<1x16x64xf32> to vector<16x64xf32>
    %869 = vector.shape_cast %866 : vector<16x64xf32> to vector<1x16x64xf32>
    tpu.vector_store %arg10[%c1_404, %c0_405, %c0_406], %869 {strides = array<i32>} : memref<4x16x64xf32, #tpu.memory_space<vmem>>, vector<1x16x64xf32>,
    %870 = vector.extract_strided_slice %865 {offsets = [0, 64], sizes = [16, 64], strides = [1, 1]} : vector<16x128xf32> to vector<16x64xf32>
    %c3_407 = arith.constant 3 : index
    %c0_408 = arith.constant 0 : index
    %c0_409 = arith.constant 0 : index
    %871 = vector.load %arg10[%c3_407, %c0_408, %c0_409] : memref<4x16x64xf32, #tpu.memory_space<vmem>>, vector<1x16x64xf32>
    %872 = vector.shape_cast %871 : vector<1x16x64xf32> to vector<16x64xf32>
    %873 = vector.shape_cast %870 : vector<16x64xf32> to vector<1x16x64xf32>
    tpu.vector_store %arg10[%c3_407, %c0_408, %c0_409], %873 {strides = array<i32>} : memref<4x16x64xf32, #tpu.memory_space<vmem>>, vector<1x16x64xf32>,
    %cst_410 = arith.constant 0xFF800000 : f32
    %874 = vector.broadcast %cst_410 : f32 to vector<2x16xf32>
    %cst_411 = arith.constant 0xFF800000 : f32
    %875 = vector.broadcast %cst_411 : f32 to vector<2x16xf32>
    %cst_412 = arith.constant 0xFF800000 : f32
    %876 = vector.broadcast %cst_412 : f32 to vector<2x16xf32>
    %cst_413 = arith.constant 0xFF800000 : f32
    %877 = vector.broadcast %cst_413 : f32 to vector<2x16xf32>
    %cst_414 = arith.constant 0.000000e+00 : f32
    %878 = vector.broadcast %cst_414 : f32 to vector<2x16xf32>
    %cst_415 = arith.constant 0.000000e+00 : f32
    %879 = vector.broadcast %cst_415 : f32 to vector<2x16xf32>
    %cst_416 = arith.constant 0.000000e+00 : f32
    %880 = vector.broadcast %cst_416 : f32 to vector<2x16xf32>
    %cst_417 = arith.constant 0.000000e+00 : f32
    %881 = vector.broadcast %cst_417 : f32 to vector<2x16xf32>
    %cst_418 = arith.constant 0.000000e+00 : f32
    %882 = vector.broadcast %cst_418 : f32 to vector<2x16xf32>
    %cst_419 = arith.constant 0.000000e+00 : f32
    %883 = vector.broadcast %cst_419 : f32 to vector<2x16xf32>
    %cst_420 = arith.constant 0.000000e+00 : f32
    %884 = vector.broadcast %cst_420 : f32 to vector<2x16xf32>
    %cst_421 = arith.constant 0.000000e+00 : f32
    %885 = vector.broadcast %cst_421 : f32 to vector<2x16xf32>
    %c0_422 = arith.constant 0 : index
    %c0_423 = arith.constant 0 : index
    %c0_424 = arith.constant 0 : index
    %886 = vector.load %arg10[%c0_422, %c0_423, %c0_424] : memref<4x16x64xf32, #tpu.memory_space<vmem>>, vector<1x2x64xf32>
    %887 = vector.shape_cast %886 : vector<1x2x64xf32> to vector<2x64xf32>
    %c0_425 = arith.constant 0 : index
    %c0_426 = arith.constant 0 : index
    %c0_427 = arith.constant 0 : index
    %888 = vector.load %arg8[%c0_425, %c0_426, %c0_427] : memref<4x16x64xf32, #tpu.memory_space<vmem>>, vector<1x16x64xf32>
    %889 = vector.shape_cast %888 : vector<1x16x64xf32> to vector<16x64xf32>
    %cst_428 = arith.constant dense<0.000000e+00> : vector<2x64xf32>
    %890 = tpu.matmul %878, %889, %cst_428 {dimension_numbers = #tpu.dot_dimension_numbers<[1], [0], [0], [1], [0, 0, 1, 1], [], []>} : vector<2x16xf32>, vector<16x64xf32>, vector<2x64xf32> -> vector<2x64xf32>
    %891 = arith.addf %887, %890 : vector<2x64xf32>
    %892 = vector.extract_strided_slice %891 {offsets = [0, 0], sizes = [2, 48], strides = [1, 1]} : vector<2x64xf32> to vector<2x48xf32>
    %893 = arith.negf %892 : vector<2x48xf32>
    %894 = math.exp %893 : vector<2x48xf32>
    %cst_429 = arith.constant 1.000000e+00 : f32
    %895 = vector.broadcast %cst_429 : f32 to vector<2x48xf32>
    %896 = arith.addf %895, %894 : vector<2x48xf32>
    %897 = arith.divf %895, %896 : vector<2x48xf32>
    %898 = vector.extract_strided_slice %891 {offsets = [0, 48], sizes = [2, 16], strides = [1, 1]} : vector<2x64xf32> to vector<2x16xf32>
    %899 = math.tanh %898 : vector<2x16xf32>
    %900 = vector.extract_strided_slice %897 {offsets = [0, 0], sizes = [2, 16], strides = [1, 1]} : vector<2x48xf32> to vector<2x16xf32>
    %901 = vector.extract_strided_slice %897 {offsets = [0, 16], sizes = [2, 16], strides = [1, 1]} : vector<2x48xf32> to vector<2x16xf32>
    %902 = vector.extract_strided_slice %897 {offsets = [0, 32], sizes = [2, 16], strides = [1, 1]} : vector<2x48xf32> to vector<2x16xf32>
    %903 = arith.mulf %901, %882 : vector<2x16xf32>
    %904 = arith.mulf %900, %899 : vector<2x16xf32>
    %905 = arith.addf %903, %904 : vector<2x16xf32>
    %906 = math.tanh %905 : vector<2x16xf32>
    %907 = arith.mulf %902, %906 : vector<2x16xf32>
    %908 = arith.maximumf %874, %907 : vector<2x16xf32>
    %c1_430 = arith.constant 1 : index
    %c0_431 = arith.constant 0 : index
    %c0_432 = arith.constant 0 : index
    %909 = vector.load %arg10[%c1_430, %c0_431, %c0_432] : memref<4x16x64xf32, #tpu.memory_space<vmem>>, vector<1x2x64xf32>
    %910 = vector.shape_cast %909 : vector<1x2x64xf32> to vector<2x64xf32>
    %c1_433 = arith.constant 1 : index
    %c0_434 = arith.constant 0 : index
    %c0_435 = arith.constant 0 : index
    %911 = vector.load %arg8[%c1_433, %c0_434, %c0_435] : memref<4x16x64xf32, #tpu.memory_space<vmem>>, vector<1x16x64xf32>
    %912 = vector.shape_cast %911 : vector<1x16x64xf32> to vector<16x64xf32>
    %cst_436 = arith.constant dense<0.000000e+00> : vector<2x64xf32>
    %913 = tpu.matmul %879, %912, %cst_436 {dimension_numbers = #tpu.dot_dimension_numbers<[1], [0], [0], [1], [0, 0, 1, 1], [], []>} : vector<2x16xf32>, vector<16x64xf32>, vector<2x64xf32> -> vector<2x64xf32>
    %914 = arith.addf %910, %913 : vector<2x64xf32>
    %915 = vector.extract_strided_slice %914 {offsets = [0, 0], sizes = [2, 48], strides = [1, 1]} : vector<2x64xf32> to vector<2x48xf32>
    %916 = arith.negf %915 : vector<2x48xf32>
    %917 = math.exp %916 : vector<2x48xf32>
    %cst_437 = arith.constant 1.000000e+00 : f32
    %918 = vector.broadcast %cst_437 : f32 to vector<2x48xf32>
    %919 = arith.addf %918, %917 : vector<2x48xf32>
    %920 = arith.divf %918, %919 : vector<2x48xf32>
    %921 = vector.extract_strided_slice %914 {offsets = [0, 48], sizes = [2, 16], strides = [1, 1]} : vector<2x64xf32> to vector<2x16xf32>
    %922 = math.tanh %921 : vector<2x16xf32>
    %923 = vector.extract_strided_slice %920 {offsets = [0, 0], sizes = [2, 16], strides = [1, 1]} : vector<2x48xf32> to vector<2x16xf32>
    %924 = vector.extract_strided_slice %920 {offsets = [0, 16], sizes = [2, 16], strides = [1, 1]} : vector<2x48xf32> to vector<2x16xf32>
    %925 = vector.extract_strided_slice %920 {offsets = [0, 32], sizes = [2, 16], strides = [1, 1]} : vector<2x48xf32> to vector<2x16xf32>
    %926 = arith.mulf %924, %883 : vector<2x16xf32>
    %927 = arith.mulf %923, %922 : vector<2x16xf32>
    %928 = arith.addf %926, %927 : vector<2x16xf32>
    %929 = math.tanh %928 : vector<2x16xf32>
    %930 = arith.mulf %925, %929 : vector<2x16xf32>
    %931 = arith.maximumf %875, %930 : vector<2x16xf32>
    %c2_438 = arith.constant 2 : index
    %c14_439 = arith.constant 14 : index
    %c0_440 = arith.constant 0 : index
    %932 = vector.load %arg10[%c2_438, %c14_439, %c0_440] : memref<4x16x64xf32, #tpu.memory_space<vmem>>, vector<1x2x64xf32>
    %933 = vector.shape_cast %932 : vector<1x2x64xf32> to vector<2x64xf32>
    %c2_441 = arith.constant 2 : index
    %c0_442 = arith.constant 0 : index
    %c0_443 = arith.constant 0 : index
    %934 = vector.load %arg8[%c2_441, %c0_442, %c0_443] : memref<4x16x64xf32, #tpu.memory_space<vmem>>, vector<1x16x64xf32>
    %935 = vector.shape_cast %934 : vector<1x16x64xf32> to vector<16x64xf32>
    %cst_444 = arith.constant dense<0.000000e+00> : vector<2x64xf32>
    %936 = tpu.matmul %880, %935, %cst_444 {dimension_numbers = #tpu.dot_dimension_numbers<[1], [0], [0], [1], [0, 0, 1, 1], [], []>} : vector<2x16xf32>, vector<16x64xf32>, vector<2x64xf32> -> vector<2x64xf32>
    %937 = arith.addf %933, %936 : vector<2x64xf32>
    %938 = vector.extract_strided_slice %937 {offsets = [0, 0], sizes = [2, 48], strides = [1, 1]} : vector<2x64xf32> to vector<2x48xf32>
    %939 = arith.negf %938 : vector<2x48xf32>
    %940 = math.exp %939 : vector<2x48xf32>
    %cst_445 = arith.constant 1.000000e+00 : f32
    %941 = vector.broadcast %cst_445 : f32 to vector<2x48xf32>
    %942 = arith.addf %941, %940 : vector<2x48xf32>
    %943 = arith.divf %941, %942 : vector<2x48xf32>
    %944 = vector.extract_strided_slice %937 {offsets = [0, 48], sizes = [2, 16], strides = [1, 1]} : vector<2x64xf32> to vector<2x16xf32>
    %945 = math.tanh %944 : vector<2x16xf32>
    %946 = vector.extract_strided_slice %943 {offsets = [0, 0], sizes = [2, 16], strides = [1, 1]} : vector<2x48xf32> to vector<2x16xf32>
    %947 = vector.extract_strided_slice %943 {offsets = [0, 16], sizes = [2, 16], strides = [1, 1]} : vector<2x48xf32> to vector<2x16xf32>
    %948 = vector.extract_strided_slice %943 {offsets = [0, 32], sizes = [2, 16], strides = [1, 1]} : vector<2x48xf32> to vector<2x16xf32>
    %949 = arith.mulf %947, %884 : vector<2x16xf32>
    %950 = arith.mulf %946, %945 : vector<2x16xf32>
    %951 = arith.addf %949, %950 : vector<2x16xf32>
    %952 = math.tanh %951 : vector<2x16xf32>
    %953 = arith.mulf %948, %952 : vector<2x16xf32>
    %954 = arith.maximumf %876, %953 : vector<2x16xf32>
    %c3_446 = arith.constant 3 : index
    %c14_447 = arith.constant 14 : index
    %c0_448 = arith.constant 0 : index
    %955 = vector.load %arg10[%c3_446, %c14_447, %c0_448] : memref<4x16x64xf32, #tpu.memory_space<vmem>>, vector<1x2x64xf32>
    %956 = vector.shape_cast %955 : vector<1x2x64xf32> to vector<2x64xf32>
    %c3_449 = arith.constant 3 : index
    %c0_450 = arith.constant 0 : index
    %c0_451 = arith.constant 0 : index
    %957 = vector.load %arg8[%c3_449, %c0_450, %c0_451] : memref<4x16x64xf32, #tpu.memory_space<vmem>>, vector<1x16x64xf32>
    %958 = vector.shape_cast %957 : vector<1x16x64xf32> to vector<16x64xf32>
    %cst_452 = arith.constant dense<0.000000e+00> : vector<2x64xf32>
    %959 = tpu.matmul %881, %958, %cst_452 {dimension_numbers = #tpu.dot_dimension_numbers<[1], [0], [0], [1], [0, 0, 1, 1], [], []>} : vector<2x16xf32>, vector<16x64xf32>, vector<2x64xf32> -> vector<2x64xf32>
    %960 = arith.addf %956, %959 : vector<2x64xf32>
    %961 = vector.extract_strided_slice %960 {offsets = [0, 0], sizes = [2, 48], strides = [1, 1]} : vector<2x64xf32> to vector<2x48xf32>
    %962 = arith.negf %961 : vector<2x48xf32>
    %963 = math.exp %962 : vector<2x48xf32>
    %cst_453 = arith.constant 1.000000e+00 : f32
    %964 = vector.broadcast %cst_453 : f32 to vector<2x48xf32>
    %965 = arith.addf %964, %963 : vector<2x48xf32>
    %966 = arith.divf %964, %965 : vector<2x48xf32>
    %967 = vector.extract_strided_slice %960 {offsets = [0, 48], sizes = [2, 16], strides = [1, 1]} : vector<2x64xf32> to vector<2x16xf32>
    %968 = math.tanh %967 : vector<2x16xf32>
    %969 = vector.extract_strided_slice %966 {offsets = [0, 0], sizes = [2, 16], strides = [1, 1]} : vector<2x48xf32> to vector<2x16xf32>
    %970 = vector.extract_strided_slice %966 {offsets = [0, 16], sizes = [2, 16], strides = [1, 1]} : vector<2x48xf32> to vector<2x16xf32>
    %971 = vector.extract_strided_slice %966 {offsets = [0, 32], sizes = [2, 16], strides = [1, 1]} : vector<2x48xf32> to vector<2x16xf32>
    %972 = arith.mulf %970, %885 : vector<2x16xf32>
    %973 = arith.mulf %969, %968 : vector<2x16xf32>
    %974 = arith.addf %972, %973 : vector<2x16xf32>
    %975 = math.tanh %974 : vector<2x16xf32>
    %976 = arith.mulf %971, %975 : vector<2x16xf32>
    %977 = arith.maximumf %877, %976 : vector<2x16xf32>
    %c0_454 = arith.constant 0 : index
    %c2_455 = arith.constant 2 : index
    %c0_456 = arith.constant 0 : index
    %978 = vector.load %arg10[%c0_454, %c2_455, %c0_456] : memref<4x16x64xf32, #tpu.memory_space<vmem>>, vector<1x2x64xf32>
    %979 = vector.shape_cast %978 : vector<1x2x64xf32> to vector<2x64xf32>
    %c0_457 = arith.constant 0 : index
    %c0_458 = arith.constant 0 : index
    %c0_459 = arith.constant 0 : index
    %980 = vector.load %arg8[%c0_457, %c0_458, %c0_459] : memref<4x16x64xf32, #tpu.memory_space<vmem>>, vector<1x16x64xf32>
    %981 = vector.shape_cast %980 : vector<1x16x64xf32> to vector<16x64xf32>
    %cst_460 = arith.constant dense<0.000000e+00> : vector<2x64xf32>
    %982 = tpu.matmul %907, %981, %cst_460 {dimension_numbers = #tpu.dot_dimension_numbers<[1], [0], [0], [1], [0, 0, 1, 1], [], []>} : vector<2x16xf32>, vector<16x64xf32>, vector<2x64xf32> -> vector<2x64xf32>
    %983 = arith.addf %979, %982 : vector<2x64xf32>
    %984 = vector.extract_strided_slice %983 {offsets = [0, 0], sizes = [2, 48], strides = [1, 1]} : vector<2x64xf32> to vector<2x48xf32>
    %985 = arith.negf %984 : vector<2x48xf32>
    %986 = math.exp %985 : vector<2x48xf32>
    %cst_461 = arith.constant 1.000000e+00 : f32
    %987 = vector.broadcast %cst_461 : f32 to vector<2x48xf32>
    %988 = arith.addf %987, %986 : vector<2x48xf32>
    %989 = arith.divf %987, %988 : vector<2x48xf32>
    %990 = vector.extract_strided_slice %983 {offsets = [0, 48], sizes = [2, 16], strides = [1, 1]} : vector<2x64xf32> to vector<2x16xf32>
    %991 = math.tanh %990 : vector<2x16xf32>
    %992 = vector.extract_strided_slice %989 {offsets = [0, 0], sizes = [2, 16], strides = [1, 1]} : vector<2x48xf32> to vector<2x16xf32>
    %993 = vector.extract_strided_slice %989 {offsets = [0, 16], sizes = [2, 16], strides = [1, 1]} : vector<2x48xf32> to vector<2x16xf32>
    %994 = vector.extract_strided_slice %989 {offsets = [0, 32], sizes = [2, 16], strides = [1, 1]} : vector<2x48xf32> to vector<2x16xf32>
    %995 = arith.mulf %993, %905 : vector<2x16xf32>
    %996 = arith.mulf %992, %991 : vector<2x16xf32>
    %997 = arith.addf %995, %996 : vector<2x16xf32>
    %998 = math.tanh %997 : vector<2x16xf32>
    %999 = arith.mulf %994, %998 : vector<2x16xf32>
    %1000 = arith.maximumf %908, %999 : vector<2x16xf32>
    %c1_462 = arith.constant 1 : index
    %c2_463 = arith.constant 2 : index
    %c0_464 = arith.constant 0 : index
    %1001 = vector.load %arg10[%c1_462, %c2_463, %c0_464] : memref<4x16x64xf32, #tpu.memory_space<vmem>>, vector<1x2x64xf32>
    %1002 = vector.shape_cast %1001 : vector<1x2x64xf32> to vector<2x64xf32>
    %c1_465 = arith.constant 1 : index
    %c0_466 = arith.constant 0 : index
    %c0_467 = arith.constant 0 : index
    %1003 = vector.load %arg8[%c1_465, %c0_466, %c0_467] : memref<4x16x64xf32, #tpu.memory_space<vmem>>, vector<1x16x64xf32>
    %1004 = vector.shape_cast %1003 : vector<1x16x64xf32> to vector<16x64xf32>
    %cst_468 = arith.constant dense<0.000000e+00> : vector<2x64xf32>
    %1005 = tpu.matmul %930, %1004, %cst_468 {dimension_numbers = #tpu.dot_dimension_numbers<[1], [0], [0], [1], [0, 0, 1, 1], [], []>} : vector<2x16xf32>, vector<16x64xf32>, vector<2x64xf32> -> vector<2x64xf32>
    %1006 = arith.addf %1002, %1005 : vector<2x64xf32>
    %1007 = vector.extract_strided_slice %1006 {offsets = [0, 0], sizes = [2, 48], strides = [1, 1]} : vector<2x64xf32> to vector<2x48xf32>
    %1008 = arith.negf %1007 : vector<2x48xf32>
    %1009 = math.exp %1008 : vector<2x48xf32>
    %cst_469 = arith.constant 1.000000e+00 : f32
    %1010 = vector.broadcast %cst_469 : f32 to vector<2x48xf32>
    %1011 = arith.addf %1010, %1009 : vector<2x48xf32>
    %1012 = arith.divf %1010, %1011 : vector<2x48xf32>
    %1013 = vector.extract_strided_slice %1006 {offsets = [0, 48], sizes = [2, 16], strides = [1, 1]} : vector<2x64xf32> to vector<2x16xf32>
    %1014 = math.tanh %1013 : vector<2x16xf32>
    %1015 = vector.extract_strided_slice %1012 {offsets = [0, 0], sizes = [2, 16], strides = [1, 1]} : vector<2x48xf32> to vector<2x16xf32>
    %1016 = vector.extract_strided_slice %1012 {offsets = [0, 16], sizes = [2, 16], strides = [1, 1]} : vector<2x48xf32> to vector<2x16xf32>
    %1017 = vector.extract_strided_slice %1012 {offsets = [0, 32], sizes = [2, 16], strides = [1, 1]} : vector<2x48xf32> to vector<2x16xf32>
    %1018 = arith.mulf %1016, %928 : vector<2x16xf32>
    %1019 = arith.mulf %1015, %1014 : vector<2x16xf32>
    %1020 = arith.addf %1018, %1019 : vector<2x16xf32>
    %1021 = math.tanh %1020 : vector<2x16xf32>
    %1022 = arith.mulf %1017, %1021 : vector<2x16xf32>
    %1023 = arith.maximumf %931, %1022 : vector<2x16xf32>
    %c2_470 = arith.constant 2 : index
    %c12_471 = arith.constant 12 : index
    %c0_472 = arith.constant 0 : index
    %1024 = vector.load %arg10[%c2_470, %c12_471, %c0_472] : memref<4x16x64xf32, #tpu.memory_space<vmem>>, vector<1x2x64xf32>
    %1025 = vector.shape_cast %1024 : vector<1x2x64xf32> to vector<2x64xf32>
    %c2_473 = arith.constant 2 : index
    %c0_474 = arith.constant 0 : index
    %c0_475 = arith.constant 0 : index
    %1026 = vector.load %arg8[%c2_473, %c0_474, %c0_475] : memref<4x16x64xf32, #tpu.memory_space<vmem>>, vector<1x16x64xf32>
    %1027 = vector.shape_cast %1026 : vector<1x16x64xf32> to vector<16x64xf32>
    %cst_476 = arith.constant dense<0.000000e+00> : vector<2x64xf32>
    %1028 = tpu.matmul %953, %1027, %cst_476 {dimension_numbers = #tpu.dot_dimension_numbers<[1], [0], [0], [1], [0, 0, 1, 1], [], []>} : vector<2x16xf32>, vector<16x64xf32>, vector<2x64xf32> -> vector<2x64xf32>
    %1029 = arith.addf %1025, %1028 : vector<2x64xf32>
    %1030 = vector.extract_strided_slice %1029 {offsets = [0, 0], sizes = [2, 48], strides = [1, 1]} : vector<2x64xf32> to vector<2x48xf32>
    %1031 = arith.negf %1030 : vector<2x48xf32>
    %1032 = math.exp %1031 : vector<2x48xf32>
    %cst_477 = arith.constant 1.000000e+00 : f32
    %1033 = vector.broadcast %cst_477 : f32 to vector<2x48xf32>
    %1034 = arith.addf %1033, %1032 : vector<2x48xf32>
    %1035 = arith.divf %1033, %1034 : vector<2x48xf32>
    %1036 = vector.extract_strided_slice %1029 {offsets = [0, 48], sizes = [2, 16], strides = [1, 1]} : vector<2x64xf32> to vector<2x16xf32>
    %1037 = math.tanh %1036 : vector<2x16xf32>
    %1038 = vector.extract_strided_slice %1035 {offsets = [0, 0], sizes = [2, 16], strides = [1, 1]} : vector<2x48xf32> to vector<2x16xf32>
    %1039 = vector.extract_strided_slice %1035 {offsets = [0, 16], sizes = [2, 16], strides = [1, 1]} : vector<2x48xf32> to vector<2x16xf32>
    %1040 = vector.extract_strided_slice %1035 {offsets = [0, 32], sizes = [2, 16], strides = [1, 1]} : vector<2x48xf32> to vector<2x16xf32>
    %1041 = arith.mulf %1039, %951 : vector<2x16xf32>
    %1042 = arith.mulf %1038, %1037 : vector<2x16xf32>
    %1043 = arith.addf %1041, %1042 : vector<2x16xf32>
    %1044 = math.tanh %1043 : vector<2x16xf32>
    %1045 = arith.mulf %1040, %1044 : vector<2x16xf32>
    %1046 = arith.maximumf %954, %1045 : vector<2x16xf32>
    %c3_478 = arith.constant 3 : index
    %c12_479 = arith.constant 12 : index
    %c0_480 = arith.constant 0 : index
    %1047 = vector.load %arg10[%c3_478, %c12_479, %c0_480] : memref<4x16x64xf32, #tpu.memory_space<vmem>>, vector<1x2x64xf32>
    %1048 = vector.shape_cast %1047 : vector<1x2x64xf32> to vector<2x64xf32>
    %c3_481 = arith.constant 3 : index
    %c0_482 = arith.constant 0 : index
    %c0_483 = arith.constant 0 : index
    %1049 = vector.load %arg8[%c3_481, %c0_482, %c0_483] : memref<4x16x64xf32, #tpu.memory_space<vmem>>, vector<1x16x64xf32>
    %1050 = vector.shape_cast %1049 : vector<1x16x64xf32> to vector<16x64xf32>
    %cst_484 = arith.constant dense<0.000000e+00> : vector<2x64xf32>
    %1051 = tpu.matmul %976, %1050, %cst_484 {dimension_numbers = #tpu.dot_dimension_numbers<[1], [0], [0], [1], [0, 0, 1, 1], [], []>} : vector<2x16xf32>, vector<16x64xf32>, vector<2x64xf32> -> vector<2x64xf32>
    %1052 = arith.addf %1048, %1051 : vector<2x64xf32>
    %1053 = vector.extract_strided_slice %1052 {offsets = [0, 0], sizes = [2, 48], strides = [1, 1]} : vector<2x64xf32> to vector<2x48xf32>
    %1054 = arith.negf %1053 : vector<2x48xf32>
    %1055 = math.exp %1054 : vector<2x48xf32>
    %cst_485 = arith.constant 1.000000e+00 : f32
    %1056 = vector.broadcast %cst_485 : f32 to vector<2x48xf32>
    %1057 = arith.addf %1056, %1055 : vector<2x48xf32>
    %1058 = arith.divf %1056, %1057 : vector<2x48xf32>
    %1059 = vector.extract_strided_slice %1052 {offsets = [0, 48], sizes = [2, 16], strides = [1, 1]} : vector<2x64xf32> to vector<2x16xf32>
    %1060 = math.tanh %1059 : vector<2x16xf32>
    %1061 = vector.extract_strided_slice %1058 {offsets = [0, 0], sizes = [2, 16], strides = [1, 1]} : vector<2x48xf32> to vector<2x16xf32>
    %1062 = vector.extract_strided_slice %1058 {offsets = [0, 16], sizes = [2, 16], strides = [1, 1]} : vector<2x48xf32> to vector<2x16xf32>
    %1063 = vector.extract_strided_slice %1058 {offsets = [0, 32], sizes = [2, 16], strides = [1, 1]} : vector<2x48xf32> to vector<2x16xf32>
    %1064 = arith.mulf %1062, %974 : vector<2x16xf32>
    %1065 = arith.mulf %1061, %1060 : vector<2x16xf32>
    %1066 = arith.addf %1064, %1065 : vector<2x16xf32>
    %1067 = math.tanh %1066 : vector<2x16xf32>
    %1068 = arith.mulf %1063, %1067 : vector<2x16xf32>
    %1069 = arith.maximumf %977, %1068 : vector<2x16xf32>
    %c0_486 = arith.constant 0 : index
    %c4_487 = arith.constant 4 : index
    %c0_488 = arith.constant 0 : index
    %1070 = vector.load %arg10[%c0_486, %c4_487, %c0_488] : memref<4x16x64xf32, #tpu.memory_space<vmem>>, vector<1x2x64xf32>
    %1071 = vector.shape_cast %1070 : vector<1x2x64xf32> to vector<2x64xf32>
    %c0_489 = arith.constant 0 : index
    %c0_490 = arith.constant 0 : index
    %c0_491 = arith.constant 0 : index
    %1072 = vector.load %arg8[%c0_489, %c0_490, %c0_491] : memref<4x16x64xf32, #tpu.memory_space<vmem>>, vector<1x16x64xf32>
    %1073 = vector.shape_cast %1072 : vector<1x16x64xf32> to vector<16x64xf32>
    %cst_492 = arith.constant dense<0.000000e+00> : vector<2x64xf32>
    %1074 = tpu.matmul %999, %1073, %cst_492 {dimension_numbers = #tpu.dot_dimension_numbers<[1], [0], [0], [1], [0, 0, 1, 1], [], []>} : vector<2x16xf32>, vector<16x64xf32>, vector<2x64xf32> -> vector<2x64xf32>
    %1075 = arith.addf %1071, %1074 : vector<2x64xf32>
    %1076 = vector.extract_strided_slice %1075 {offsets = [0, 0], sizes = [2, 48], strides = [1, 1]} : vector<2x64xf32> to vector<2x48xf32>
    %1077 = arith.negf %1076 : vector<2x48xf32>
    %1078 = math.exp %1077 : vector<2x48xf32>
    %cst_493 = arith.constant 1.000000e+00 : f32
    %1079 = vector.broadcast %cst_493 : f32 to vector<2x48xf32>
    %1080 = arith.addf %1079, %1078 : vector<2x48xf32>
    %1081 = arith.divf %1079, %1080 : vector<2x48xf32>
    %1082 = vector.extract_strided_slice %1075 {offsets = [0, 48], sizes = [2, 16], strides = [1, 1]} : vector<2x64xf32> to vector<2x16xf32>
    %1083 = math.tanh %1082 : vector<2x16xf32>
    %1084 = vector.extract_strided_slice %1081 {offsets = [0, 0], sizes = [2, 16], strides = [1, 1]} : vector<2x48xf32> to vector<2x16xf32>
    %1085 = vector.extract_strided_slice %1081 {offsets = [0, 16], sizes = [2, 16], strides = [1, 1]} : vector<2x48xf32> to vector<2x16xf32>
    %1086 = vector.extract_strided_slice %1081 {offsets = [0, 32], sizes = [2, 16], strides = [1, 1]} : vector<2x48xf32> to vector<2x16xf32>
    %1087 = arith.mulf %1085, %997 : vector<2x16xf32>
    %1088 = arith.mulf %1084, %1083 : vector<2x16xf32>
    %1089 = arith.addf %1087, %1088 : vector<2x16xf32>
    %1090 = math.tanh %1089 : vector<2x16xf32>
    %1091 = arith.mulf %1086, %1090 : vector<2x16xf32>
    %1092 = arith.maximumf %1000, %1091 : vector<2x16xf32>
    %c1_494 = arith.constant 1 : index
    %c4_495 = arith.constant 4 : index
    %c0_496 = arith.constant 0 : index
    %1093 = vector.load %arg10[%c1_494, %c4_495, %c0_496] : memref<4x16x64xf32, #tpu.memory_space<vmem>>, vector<1x2x64xf32>
    %1094 = vector.shape_cast %1093 : vector<1x2x64xf32> to vector<2x64xf32>
    %c1_497 = arith.constant 1 : index
    %c0_498 = arith.constant 0 : index
    %c0_499 = arith.constant 0 : index
    %1095 = vector.load %arg8[%c1_497, %c0_498, %c0_499] : memref<4x16x64xf32, #tpu.memory_space<vmem>>, vector<1x16x64xf32>
    %1096 = vector.shape_cast %1095 : vector<1x16x64xf32> to vector<16x64xf32>
    %cst_500 = arith.constant dense<0.000000e+00> : vector<2x64xf32>
    %1097 = tpu.matmul %1022, %1096, %cst_500 {dimension_numbers = #tpu.dot_dimension_numbers<[1], [0], [0], [1], [0, 0, 1, 1], [], []>} : vector<2x16xf32>, vector<16x64xf32>, vector<2x64xf32> -> vector<2x64xf32>
    %1098 = arith.addf %1094, %1097 : vector<2x64xf32>
    %1099 = vector.extract_strided_slice %1098 {offsets = [0, 0], sizes = [2, 48], strides = [1, 1]} : vector<2x64xf32> to vector<2x48xf32>
    %1100 = arith.negf %1099 : vector<2x48xf32>
    %1101 = math.exp %1100 : vector<2x48xf32>
    %cst_501 = arith.constant 1.000000e+00 : f32
    %1102 = vector.broadcast %cst_501 : f32 to vector<2x48xf32>
    %1103 = arith.addf %1102, %1101 : vector<2x48xf32>
    %1104 = arith.divf %1102, %1103 : vector<2x48xf32>
    %1105 = vector.extract_strided_slice %1098 {offsets = [0, 48], sizes = [2, 16], strides = [1, 1]} : vector<2x64xf32> to vector<2x16xf32>
    %1106 = math.tanh %1105 : vector<2x16xf32>
    %1107 = vector.extract_strided_slice %1104 {offsets = [0, 0], sizes = [2, 16], strides = [1, 1]} : vector<2x48xf32> to vector<2x16xf32>
    %1108 = vector.extract_strided_slice %1104 {offsets = [0, 16], sizes = [2, 16], strides = [1, 1]} : vector<2x48xf32> to vector<2x16xf32>
    %1109 = vector.extract_strided_slice %1104 {offsets = [0, 32], sizes = [2, 16], strides = [1, 1]} : vector<2x48xf32> to vector<2x16xf32>
    %1110 = arith.mulf %1108, %1020 : vector<2x16xf32>
    %1111 = arith.mulf %1107, %1106 : vector<2x16xf32>
    %1112 = arith.addf %1110, %1111 : vector<2x16xf32>
    %1113 = math.tanh %1112 : vector<2x16xf32>
    %1114 = arith.mulf %1109, %1113 : vector<2x16xf32>
    %1115 = arith.maximumf %1023, %1114 : vector<2x16xf32>
    %c2_502 = arith.constant 2 : index
    %c10_503 = arith.constant 10 : index
    %c0_504 = arith.constant 0 : index
    %1116 = vector.load %arg10[%c2_502, %c10_503, %c0_504] : memref<4x16x64xf32, #tpu.memory_space<vmem>>, vector<1x2x64xf32>
    %1117 = vector.shape_cast %1116 : vector<1x2x64xf32> to vector<2x64xf32>
    %c2_505 = arith.constant 2 : index
    %c0_506 = arith.constant 0 : index
    %c0_507 = arith.constant 0 : index
    %1118 = vector.load %arg8[%c2_505, %c0_506, %c0_507] : memref<4x16x64xf32, #tpu.memory_space<vmem>>, vector<1x16x64xf32>
    %1119 = vector.shape_cast %1118 : vector<1x16x64xf32> to vector<16x64xf32>
    %cst_508 = arith.constant dense<0.000000e+00> : vector<2x64xf32>
    %1120 = tpu.matmul %1045, %1119, %cst_508 {dimension_numbers = #tpu.dot_dimension_numbers<[1], [0], [0], [1], [0, 0, 1, 1], [], []>} : vector<2x16xf32>, vector<16x64xf32>, vector<2x64xf32> -> vector<2x64xf32>
    %1121 = arith.addf %1117, %1120 : vector<2x64xf32>
    %1122 = vector.extract_strided_slice %1121 {offsets = [0, 0], sizes = [2, 48], strides = [1, 1]} : vector<2x64xf32> to vector<2x48xf32>
    %1123 = arith.negf %1122 : vector<2x48xf32>
    %1124 = math.exp %1123 : vector<2x48xf32>
    %cst_509 = arith.constant 1.000000e+00 : f32
    %1125 = vector.broadcast %cst_509 : f32 to vector<2x48xf32>
    %1126 = arith.addf %1125, %1124 : vector<2x48xf32>
    %1127 = arith.divf %1125, %1126 : vector<2x48xf32>
    %1128 = vector.extract_strided_slice %1121 {offsets = [0, 48], sizes = [2, 16], strides = [1, 1]} : vector<2x64xf32> to vector<2x16xf32>
    %1129 = math.tanh %1128 : vector<2x16xf32>
    %1130 = vector.extract_strided_slice %1127 {offsets = [0, 0], sizes = [2, 16], strides = [1, 1]} : vector<2x48xf32> to vector<2x16xf32>
    %1131 = vector.extract_strided_slice %1127 {offsets = [0, 16], sizes = [2, 16], strides = [1, 1]} : vector<2x48xf32> to vector<2x16xf32>
    %1132 = vector.extract_strided_slice %1127 {offsets = [0, 32], sizes = [2, 16], strides = [1, 1]} : vector<2x48xf32> to vector<2x16xf32>
    %1133 = arith.mulf %1131, %1043 : vector<2x16xf32>
    %1134 = arith.mulf %1130, %1129 : vector<2x16xf32>
    %1135 = arith.addf %1133, %1134 : vector<2x16xf32>
    %1136 = math.tanh %1135 : vector<2x16xf32>
    %1137 = arith.mulf %1132, %1136 : vector<2x16xf32>
    %1138 = arith.maximumf %1046, %1137 : vector<2x16xf32>
    %c3_510 = arith.constant 3 : index
    %c10_511 = arith.constant 10 : index
    %c0_512 = arith.constant 0 : index
    %1139 = vector.load %arg10[%c3_510, %c10_511, %c0_512] : memref<4x16x64xf32, #tpu.memory_space<vmem>>, vector<1x2x64xf32>
    %1140 = vector.shape_cast %1139 : vector<1x2x64xf32> to vector<2x64xf32>
    %c3_513 = arith.constant 3 : index
    %c0_514 = arith.constant 0 : index
    %c0_515 = arith.constant 0 : index
    %1141 = vector.load %arg8[%c3_513, %c0_514, %c0_515] : memref<4x16x64xf32, #tpu.memory_space<vmem>>, vector<1x16x64xf32>
    %1142 = vector.shape_cast %1141 : vector<1x16x64xf32> to vector<16x64xf32>
    %cst_516 = arith.constant dense<0.000000e+00> : vector<2x64xf32>
    %1143 = tpu.matmul %1068, %1142, %cst_516 {dimension_numbers = #tpu.dot_dimension_numbers<[1], [0], [0], [1], [0, 0, 1, 1], [], []>} : vector<2x16xf32>, vector<16x64xf32>, vector<2x64xf32> -> vector<2x64xf32>
    %1144 = arith.addf %1140, %1143 : vector<2x64xf32>
    %1145 = vector.extract_strided_slice %1144 {offsets = [0, 0], sizes = [2, 48], strides = [1, 1]} : vector<2x64xf32> to vector<2x48xf32>
    %1146 = arith.negf %1145 : vector<2x48xf32>
    %1147 = math.exp %1146 : vector<2x48xf32>
    %cst_517 = arith.constant 1.000000e+00 : f32
    %1148 = vector.broadcast %cst_517 : f32 to vector<2x48xf32>
    %1149 = arith.addf %1148, %1147 : vector<2x48xf32>
    %1150 = arith.divf %1148, %1149 : vector<2x48xf32>
    %1151 = vector.extract_strided_slice %1144 {offsets = [0, 48], sizes = [2, 16], strides = [1, 1]} : vector<2x64xf32> to vector<2x16xf32>
    %1152 = math.tanh %1151 : vector<2x16xf32>
    %1153 = vector.extract_strided_slice %1150 {offsets = [0, 0], sizes = [2, 16], strides = [1, 1]} : vector<2x48xf32> to vector<2x16xf32>
    %1154 = vector.extract_strided_slice %1150 {offsets = [0, 16], sizes = [2, 16], strides = [1, 1]} : vector<2x48xf32> to vector<2x16xf32>
    %1155 = vector.extract_strided_slice %1150 {offsets = [0, 32], sizes = [2, 16], strides = [1, 1]} : vector<2x48xf32> to vector<2x16xf32>
    %1156 = arith.mulf %1154, %1066 : vector<2x16xf32>
    %1157 = arith.mulf %1153, %1152 : vector<2x16xf32>
    %1158 = arith.addf %1156, %1157 : vector<2x16xf32>
    %1159 = math.tanh %1158 : vector<2x16xf32>
    %1160 = arith.mulf %1155, %1159 : vector<2x16xf32>
    %1161 = arith.maximumf %1069, %1160 : vector<2x16xf32>
    %c0_518 = arith.constant 0 : index
    %c6_519 = arith.constant 6 : index
    %c0_520 = arith.constant 0 : index
    %1162 = vector.load %arg10[%c0_518, %c6_519, %c0_520] : memref<4x16x64xf32, #tpu.memory_space<vmem>>, vector<1x2x64xf32>
    %1163 = vector.shape_cast %1162 : vector<1x2x64xf32> to vector<2x64xf32>
    %c0_521 = arith.constant 0 : index
    %c0_522 = arith.constant 0 : index
    %c0_523 = arith.constant 0 : index
    %1164 = vector.load %arg8[%c0_521, %c0_522, %c0_523] : memref<4x16x64xf32, #tpu.memory_space<vmem>>, vector<1x16x64xf32>
    %1165 = vector.shape_cast %1164 : vector<1x16x64xf32> to vector<16x64xf32>
    %cst_524 = arith.constant dense<0.000000e+00> : vector<2x64xf32>
    %1166 = tpu.matmul %1091, %1165, %cst_524 {dimension_numbers = #tpu.dot_dimension_numbers<[1], [0], [0], [1], [0, 0, 1, 1], [], []>} : vector<2x16xf32>, vector<16x64xf32>, vector<2x64xf32> -> vector<2x64xf32>
    %1167 = arith.addf %1163, %1166 : vector<2x64xf32>
    %1168 = vector.extract_strided_slice %1167 {offsets = [0, 0], sizes = [2, 48], strides = [1, 1]} : vector<2x64xf32> to vector<2x48xf32>
    %1169 = arith.negf %1168 : vector<2x48xf32>
    %1170 = math.exp %1169 : vector<2x48xf32>
    %cst_525 = arith.constant 1.000000e+00 : f32
    %1171 = vector.broadcast %cst_525 : f32 to vector<2x48xf32>
    %1172 = arith.addf %1171, %1170 : vector<2x48xf32>
    %1173 = arith.divf %1171, %1172 : vector<2x48xf32>
    %1174 = vector.extract_strided_slice %1167 {offsets = [0, 48], sizes = [2, 16], strides = [1, 1]} : vector<2x64xf32> to vector<2x16xf32>
    %1175 = math.tanh %1174 : vector<2x16xf32>
    %1176 = vector.extract_strided_slice %1173 {offsets = [0, 0], sizes = [2, 16], strides = [1, 1]} : vector<2x48xf32> to vector<2x16xf32>
    %1177 = vector.extract_strided_slice %1173 {offsets = [0, 16], sizes = [2, 16], strides = [1, 1]} : vector<2x48xf32> to vector<2x16xf32>
    %1178 = vector.extract_strided_slice %1173 {offsets = [0, 32], sizes = [2, 16], strides = [1, 1]} : vector<2x48xf32> to vector<2x16xf32>
    %1179 = arith.mulf %1177, %1089 : vector<2x16xf32>
    %1180 = arith.mulf %1176, %1175 : vector<2x16xf32>
    %1181 = arith.addf %1179, %1180 : vector<2x16xf32>
    %1182 = math.tanh %1181 : vector<2x16xf32>
    %1183 = arith.mulf %1178, %1182 : vector<2x16xf32>
    %1184 = arith.maximumf %1092, %1183 : vector<2x16xf32>
    %c1_526 = arith.constant 1 : index
    %c6_527 = arith.constant 6 : index
    %c0_528 = arith.constant 0 : index
    %1185 = vector.load %arg10[%c1_526, %c6_527, %c0_528] : memref<4x16x64xf32, #tpu.memory_space<vmem>>, vector<1x2x64xf32>
    %1186 = vector.shape_cast %1185 : vector<1x2x64xf32> to vector<2x64xf32>
    %c1_529 = arith.constant 1 : index
    %c0_530 = arith.constant 0 : index
    %c0_531 = arith.constant 0 : index
    %1187 = vector.load %arg8[%c1_529, %c0_530, %c0_531] : memref<4x16x64xf32, #tpu.memory_space<vmem>>, vector<1x16x64xf32>
    %1188 = vector.shape_cast %1187 : vector<1x16x64xf32> to vector<16x64xf32>
    %cst_532 = arith.constant dense<0.000000e+00> : vector<2x64xf32>
    %1189 = tpu.matmul %1114, %1188, %cst_532 {dimension_numbers = #tpu.dot_dimension_numbers<[1], [0], [0], [1], [0, 0, 1, 1], [], []>} : vector<2x16xf32>, vector<16x64xf32>, vector<2x64xf32> -> vector<2x64xf32>
    %1190 = arith.addf %1186, %1189 : vector<2x64xf32>
    %1191 = vector.extract_strided_slice %1190 {offsets = [0, 0], sizes = [2, 48], strides = [1, 1]} : vector<2x64xf32> to vector<2x48xf32>
    %1192 = arith.negf %1191 : vector<2x48xf32>
    %1193 = math.exp %1192 : vector<2x48xf32>
    %cst_533 = arith.constant 1.000000e+00 : f32
    %1194 = vector.broadcast %cst_533 : f32 to vector<2x48xf32>
    %1195 = arith.addf %1194, %1193 : vector<2x48xf32>
    %1196 = arith.divf %1194, %1195 : vector<2x48xf32>
    %1197 = vector.extract_strided_slice %1190 {offsets = [0, 48], sizes = [2, 16], strides = [1, 1]} : vector<2x64xf32> to vector<2x16xf32>
    %1198 = math.tanh %1197 : vector<2x16xf32>
    %1199 = vector.extract_strided_slice %1196 {offsets = [0, 0], sizes = [2, 16], strides = [1, 1]} : vector<2x48xf32> to vector<2x16xf32>
    %1200 = vector.extract_strided_slice %1196 {offsets = [0, 16], sizes = [2, 16], strides = [1, 1]} : vector<2x48xf32> to vector<2x16xf32>
    %1201 = vector.extract_strided_slice %1196 {offsets = [0, 32], sizes = [2, 16], strides = [1, 1]} : vector<2x48xf32> to vector<2x16xf32>
    %1202 = arith.mulf %1200, %1112 : vector<2x16xf32>
    %1203 = arith.mulf %1199, %1198 : vector<2x16xf32>
    %1204 = arith.addf %1202, %1203 : vector<2x16xf32>
    %1205 = math.tanh %1204 : vector<2x16xf32>
    %1206 = arith.mulf %1201, %1205 : vector<2x16xf32>
    %1207 = arith.maximumf %1115, %1206 : vector<2x16xf32>
    %c2_534 = arith.constant 2 : index
    %c8_535 = arith.constant 8 : index
    %c0_536 = arith.constant 0 : index
    %1208 = vector.load %arg10[%c2_534, %c8_535, %c0_536] : memref<4x16x64xf32, #tpu.memory_space<vmem>>, vector<1x2x64xf32>
    %1209 = vector.shape_cast %1208 : vector<1x2x64xf32> to vector<2x64xf32>
    %c2_537 = arith.constant 2 : index
    %c0_538 = arith.constant 0 : index
    %c0_539 = arith.constant 0 : index
    %1210 = vector.load %arg8[%c2_537, %c0_538, %c0_539] : memref<4x16x64xf32, #tpu.memory_space<vmem>>, vector<1x16x64xf32>
    %1211 = vector.shape_cast %1210 : vector<1x16x64xf32> to vector<16x64xf32>
    %cst_540 = arith.constant dense<0.000000e+00> : vector<2x64xf32>
    %1212 = tpu.matmul %1137, %1211, %cst_540 {dimension_numbers = #tpu.dot_dimension_numbers<[1], [0], [0], [1], [0, 0, 1, 1], [], []>} : vector<2x16xf32>, vector<16x64xf32>, vector<2x64xf32> -> vector<2x64xf32>
    %1213 = arith.addf %1209, %1212 : vector<2x64xf32>
    %1214 = vector.extract_strided_slice %1213 {offsets = [0, 0], sizes = [2, 48], strides = [1, 1]} : vector<2x64xf32> to vector<2x48xf32>
    %1215 = arith.negf %1214 : vector<2x48xf32>
    %1216 = math.exp %1215 : vector<2x48xf32>
    %cst_541 = arith.constant 1.000000e+00 : f32
    %1217 = vector.broadcast %cst_541 : f32 to vector<2x48xf32>
    %1218 = arith.addf %1217, %1216 : vector<2x48xf32>
    %1219 = arith.divf %1217, %1218 : vector<2x48xf32>
    %1220 = vector.extract_strided_slice %1213 {offsets = [0, 48], sizes = [2, 16], strides = [1, 1]} : vector<2x64xf32> to vector<2x16xf32>
    %1221 = math.tanh %1220 : vector<2x16xf32>
    %1222 = vector.extract_strided_slice %1219 {offsets = [0, 0], sizes = [2, 16], strides = [1, 1]} : vector<2x48xf32> to vector<2x16xf32>
    %1223 = vector.extract_strided_slice %1219 {offsets = [0, 16], sizes = [2, 16], strides = [1, 1]} : vector<2x48xf32> to vector<2x16xf32>
    %1224 = vector.extract_strided_slice %1219 {offsets = [0, 32], sizes = [2, 16], strides = [1, 1]} : vector<2x48xf32> to vector<2x16xf32>
    %1225 = arith.mulf %1223, %1135 : vector<2x16xf32>
    %1226 = arith.mulf %1222, %1221 : vector<2x16xf32>
    %1227 = arith.addf %1225, %1226 : vector<2x16xf32>
    %1228 = math.tanh %1227 : vector<2x16xf32>
    %1229 = arith.mulf %1224, %1228 : vector<2x16xf32>
    %1230 = arith.maximumf %1138, %1229 : vector<2x16xf32>
    %c3_542 = arith.constant 3 : index
    %c8_543 = arith.constant 8 : index
    %c0_544 = arith.constant 0 : index
    %1231 = vector.load %arg10[%c3_542, %c8_543, %c0_544] : memref<4x16x64xf32, #tpu.memory_space<vmem>>, vector<1x2x64xf32>
    %1232 = vector.shape_cast %1231 : vector<1x2x64xf32> to vector<2x64xf32>
    %c3_545 = arith.constant 3 : index
    %c0_546 = arith.constant 0 : index
    %c0_547 = arith.constant 0 : index
    %1233 = vector.load %arg8[%c3_545, %c0_546, %c0_547] : memref<4x16x64xf32, #tpu.memory_space<vmem>>, vector<1x16x64xf32>
    %1234 = vector.shape_cast %1233 : vector<1x16x64xf32> to vector<16x64xf32>
    %cst_548 = arith.constant dense<0.000000e+00> : vector<2x64xf32>
    %1235 = tpu.matmul %1160, %1234, %cst_548 {dimension_numbers = #tpu.dot_dimension_numbers<[1], [0], [0], [1], [0, 0, 1, 1], [], []>} : vector<2x16xf32>, vector<16x64xf32>, vector<2x64xf32> -> vector<2x64xf32>
    %1236 = arith.addf %1232, %1235 : vector<2x64xf32>
    %1237 = vector.extract_strided_slice %1236 {offsets = [0, 0], sizes = [2, 48], strides = [1, 1]} : vector<2x64xf32> to vector<2x48xf32>
    %1238 = arith.negf %1237 : vector<2x48xf32>
    %1239 = math.exp %1238 : vector<2x48xf32>
    %cst_549 = arith.constant 1.000000e+00 : f32
    %1240 = vector.broadcast %cst_549 : f32 to vector<2x48xf32>
    %1241 = arith.addf %1240, %1239 : vector<2x48xf32>
    %1242 = arith.divf %1240, %1241 : vector<2x48xf32>
    %1243 = vector.extract_strided_slice %1236 {offsets = [0, 48], sizes = [2, 16], strides = [1, 1]} : vector<2x64xf32> to vector<2x16xf32>
    %1244 = math.tanh %1243 : vector<2x16xf32>
    %1245 = vector.extract_strided_slice %1242 {offsets = [0, 0], sizes = [2, 16], strides = [1, 1]} : vector<2x48xf32> to vector<2x16xf32>
    %1246 = vector.extract_strided_slice %1242 {offsets = [0, 16], sizes = [2, 16], strides = [1, 1]} : vector<2x48xf32> to vector<2x16xf32>
    %1247 = vector.extract_strided_slice %1242 {offsets = [0, 32], sizes = [2, 16], strides = [1, 1]} : vector<2x48xf32> to vector<2x16xf32>
    %1248 = arith.mulf %1246, %1158 : vector<2x16xf32>
    %1249 = arith.mulf %1245, %1244 : vector<2x16xf32>
    %1250 = arith.addf %1248, %1249 : vector<2x16xf32>
    %1251 = math.tanh %1250 : vector<2x16xf32>
    %1252 = arith.mulf %1247, %1251 : vector<2x16xf32>
    %1253 = arith.maximumf %1161, %1252 : vector<2x16xf32>
    %c0_550 = arith.constant 0 : index
    %c8_551 = arith.constant 8 : index
    %c0_552 = arith.constant 0 : index
    %1254 = vector.load %arg10[%c0_550, %c8_551, %c0_552] : memref<4x16x64xf32, #tpu.memory_space<vmem>>, vector<1x2x64xf32>
    %1255 = vector.shape_cast %1254 : vector<1x2x64xf32> to vector<2x64xf32>
    %c0_553 = arith.constant 0 : index
    %c0_554 = arith.constant 0 : index
    %c0_555 = arith.constant 0 : index
    %1256 = vector.load %arg8[%c0_553, %c0_554, %c0_555] : memref<4x16x64xf32, #tpu.memory_space<vmem>>, vector<1x16x64xf32>
    %1257 = vector.shape_cast %1256 : vector<1x16x64xf32> to vector<16x64xf32>
    %cst_556 = arith.constant dense<0.000000e+00> : vector<2x64xf32>
    %1258 = tpu.matmul %1183, %1257, %cst_556 {dimension_numbers = #tpu.dot_dimension_numbers<[1], [0], [0], [1], [0, 0, 1, 1], [], []>} : vector<2x16xf32>, vector<16x64xf32>, vector<2x64xf32> -> vector<2x64xf32>
    %1259 = arith.addf %1255, %1258 : vector<2x64xf32>
    %1260 = vector.extract_strided_slice %1259 {offsets = [0, 0], sizes = [2, 48], strides = [1, 1]} : vector<2x64xf32> to vector<2x48xf32>
    %1261 = arith.negf %1260 : vector<2x48xf32>
    %1262 = math.exp %1261 : vector<2x48xf32>
    %cst_557 = arith.constant 1.000000e+00 : f32
    %1263 = vector.broadcast %cst_557 : f32 to vector<2x48xf32>
    %1264 = arith.addf %1263, %1262 : vector<2x48xf32>
    %1265 = arith.divf %1263, %1264 : vector<2x48xf32>
    %1266 = vector.extract_strided_slice %1259 {offsets = [0, 48], sizes = [2, 16], strides = [1, 1]} : vector<2x64xf32> to vector<2x16xf32>
    %1267 = math.tanh %1266 : vector<2x16xf32>
    %1268 = vector.extract_strided_slice %1265 {offsets = [0, 0], sizes = [2, 16], strides = [1, 1]} : vector<2x48xf32> to vector<2x16xf32>
    %1269 = vector.extract_strided_slice %1265 {offsets = [0, 16], sizes = [2, 16], strides = [1, 1]} : vector<2x48xf32> to vector<2x16xf32>
    %1270 = vector.extract_strided_slice %1265 {offsets = [0, 32], sizes = [2, 16], strides = [1, 1]} : vector<2x48xf32> to vector<2x16xf32>
    %1271 = arith.mulf %1269, %1181 : vector<2x16xf32>
    %1272 = arith.mulf %1268, %1267 : vector<2x16xf32>
    %1273 = arith.addf %1271, %1272 : vector<2x16xf32>
    %1274 = math.tanh %1273 : vector<2x16xf32>
    %1275 = arith.mulf %1270, %1274 : vector<2x16xf32>
    %1276 = arith.maximumf %1184, %1275 : vector<2x16xf32>
    %c1_558 = arith.constant 1 : index
    %c8_559 = arith.constant 8 : index
    %c0_560 = arith.constant 0 : index
    %1277 = vector.load %arg10[%c1_558, %c8_559, %c0_560] : memref<4x16x64xf32, #tpu.memory_space<vmem>>, vector<1x2x64xf32>
    %1278 = vector.shape_cast %1277 : vector<1x2x64xf32> to vector<2x64xf32>
    %c1_561 = arith.constant 1 : index
    %c0_562 = arith.constant 0 : index
    %c0_563 = arith.constant 0 : index
    %1279 = vector.load %arg8[%c1_561, %c0_562, %c0_563] : memref<4x16x64xf32, #tpu.memory_space<vmem>>, vector<1x16x64xf32>
    %1280 = vector.shape_cast %1279 : vector<1x16x64xf32> to vector<16x64xf32>
    %cst_564 = arith.constant dense<0.000000e+00> : vector<2x64xf32>
    %1281 = tpu.matmul %1206, %1280, %cst_564 {dimension_numbers = #tpu.dot_dimension_numbers<[1], [0], [0], [1], [0, 0, 1, 1], [], []>} : vector<2x16xf32>, vector<16x64xf32>, vector<2x64xf32> -> vector<2x64xf32>
    %1282 = arith.addf %1278, %1281 : vector<2x64xf32>
    %1283 = vector.extract_strided_slice %1282 {offsets = [0, 0], sizes = [2, 48], strides = [1, 1]} : vector<2x64xf32> to vector<2x48xf32>
    %1284 = arith.negf %1283 : vector<2x48xf32>
    %1285 = math.exp %1284 : vector<2x48xf32>
    %cst_565 = arith.constant 1.000000e+00 : f32
    %1286 = vector.broadcast %cst_565 : f32 to vector<2x48xf32>
    %1287 = arith.addf %1286, %1285 : vector<2x48xf32>
    %1288 = arith.divf %1286, %1287 : vector<2x48xf32>
    %1289 = vector.extract_strided_slice %1282 {offsets = [0, 48], sizes = [2, 16], strides = [1, 1]} : vector<2x64xf32> to vector<2x16xf32>
    %1290 = math.tanh %1289 : vector<2x16xf32>
    %1291 = vector.extract_strided_slice %1288 {offsets = [0, 0], sizes = [2, 16], strides = [1, 1]} : vector<2x48xf32> to vector<2x16xf32>
    %1292 = vector.extract_strided_slice %1288 {offsets = [0, 16], sizes = [2, 16], strides = [1, 1]} : vector<2x48xf32> to vector<2x16xf32>
    %1293 = vector.extract_strided_slice %1288 {offsets = [0, 32], sizes = [2, 16], strides = [1, 1]} : vector<2x48xf32> to vector<2x16xf32>
    %1294 = arith.mulf %1292, %1204 : vector<2x16xf32>
    %1295 = arith.mulf %1291, %1290 : vector<2x16xf32>
    %1296 = arith.addf %1294, %1295 : vector<2x16xf32>
    %1297 = math.tanh %1296 : vector<2x16xf32>
    %1298 = arith.mulf %1293, %1297 : vector<2x16xf32>
    %1299 = arith.maximumf %1207, %1298 : vector<2x16xf32>
    %c2_566 = arith.constant 2 : index
    %c6_567 = arith.constant 6 : index
    %c0_568 = arith.constant 0 : index
    %1300 = vector.load %arg10[%c2_566, %c6_567, %c0_568] : memref<4x16x64xf32, #tpu.memory_space<vmem>>, vector<1x2x64xf32>
    %1301 = vector.shape_cast %1300 : vector<1x2x64xf32> to vector<2x64xf32>
    %c2_569 = arith.constant 2 : index
    %c0_570 = arith.constant 0 : index
    %c0_571 = arith.constant 0 : index
    %1302 = vector.load %arg8[%c2_569, %c0_570, %c0_571] : memref<4x16x64xf32, #tpu.memory_space<vmem>>, vector<1x16x64xf32>
    %1303 = vector.shape_cast %1302 : vector<1x16x64xf32> to vector<16x64xf32>
    %cst_572 = arith.constant dense<0.000000e+00> : vector<2x64xf32>
    %1304 = tpu.matmul %1229, %1303, %cst_572 {dimension_numbers = #tpu.dot_dimension_numbers<[1], [0], [0], [1], [0, 0, 1, 1], [], []>} : vector<2x16xf32>, vector<16x64xf32>, vector<2x64xf32> -> vector<2x64xf32>
    %1305 = arith.addf %1301, %1304 : vector<2x64xf32>
    %1306 = vector.extract_strided_slice %1305 {offsets = [0, 0], sizes = [2, 48], strides = [1, 1]} : vector<2x64xf32> to vector<2x48xf32>
    %1307 = arith.negf %1306 : vector<2x48xf32>
    %1308 = math.exp %1307 : vector<2x48xf32>
    %cst_573 = arith.constant 1.000000e+00 : f32
    %1309 = vector.broadcast %cst_573 : f32 to vector<2x48xf32>
    %1310 = arith.addf %1309, %1308 : vector<2x48xf32>
    %1311 = arith.divf %1309, %1310 : vector<2x48xf32>
    %1312 = vector.extract_strided_slice %1305 {offsets = [0, 48], sizes = [2, 16], strides = [1, 1]} : vector<2x64xf32> to vector<2x16xf32>
    %1313 = math.tanh %1312 : vector<2x16xf32>
    %1314 = vector.extract_strided_slice %1311 {offsets = [0, 0], sizes = [2, 16], strides = [1, 1]} : vector<2x48xf32> to vector<2x16xf32>
    %1315 = vector.extract_strided_slice %1311 {offsets = [0, 16], sizes = [2, 16], strides = [1, 1]} : vector<2x48xf32> to vector<2x16xf32>
    %1316 = vector.extract_strided_slice %1311 {offsets = [0, 32], sizes = [2, 16], strides = [1, 1]} : vector<2x48xf32> to vector<2x16xf32>
    %1317 = arith.mulf %1315, %1227 : vector<2x16xf32>
    %1318 = arith.mulf %1314, %1313 : vector<2x16xf32>
    %1319 = arith.addf %1317, %1318 : vector<2x16xf32>
    %1320 = math.tanh %1319 : vector<2x16xf32>
    %1321 = arith.mulf %1316, %1320 : vector<2x16xf32>
    %1322 = arith.maximumf %1230, %1321 : vector<2x16xf32>
    %c3_574 = arith.constant 3 : index
    %c6_575 = arith.constant 6 : index
    %c0_576 = arith.constant 0 : index
    %1323 = vector.load %arg10[%c3_574, %c6_575, %c0_576] : memref<4x16x64xf32, #tpu.memory_space<vmem>>, vector<1x2x64xf32>
    %1324 = vector.shape_cast %1323 : vector<1x2x64xf32> to vector<2x64xf32>
    %c3_577 = arith.constant 3 : index
    %c0_578 = arith.constant 0 : index
    %c0_579 = arith.constant 0 : index
    %1325 = vector.load %arg8[%c3_577, %c0_578, %c0_579] : memref<4x16x64xf32, #tpu.memory_space<vmem>>, vector<1x16x64xf32>
    %1326 = vector.shape_cast %1325 : vector<1x16x64xf32> to vector<16x64xf32>
    %cst_580 = arith.constant dense<0.000000e+00> : vector<2x64xf32>
    %1327 = tpu.matmul %1252, %1326, %cst_580 {dimension_numbers = #tpu.dot_dimension_numbers<[1], [0], [0], [1], [0, 0, 1, 1], [], []>} : vector<2x16xf32>, vector<16x64xf32>, vector<2x64xf32> -> vector<2x64xf32>
    %1328 = arith.addf %1324, %1327 : vector<2x64xf32>
    %1329 = vector.extract_strided_slice %1328 {offsets = [0, 0], sizes = [2, 48], strides = [1, 1]} : vector<2x64xf32> to vector<2x48xf32>
    %1330 = arith.negf %1329 : vector<2x48xf32>
    %1331 = math.exp %1330 : vector<2x48xf32>
    %cst_581 = arith.constant 1.000000e+00 : f32
    %1332 = vector.broadcast %cst_581 : f32 to vector<2x48xf32>
    %1333 = arith.addf %1332, %1331 : vector<2x48xf32>
    %1334 = arith.divf %1332, %1333 : vector<2x48xf32>
    %1335 = vector.extract_strided_slice %1328 {offsets = [0, 48], sizes = [2, 16], strides = [1, 1]} : vector<2x64xf32> to vector<2x16xf32>
    %1336 = math.tanh %1335 : vector<2x16xf32>
    %1337 = vector.extract_strided_slice %1334 {offsets = [0, 0], sizes = [2, 16], strides = [1, 1]} : vector<2x48xf32> to vector<2x16xf32>
    %1338 = vector.extract_strided_slice %1334 {offsets = [0, 16], sizes = [2, 16], strides = [1, 1]} : vector<2x48xf32> to vector<2x16xf32>
    %1339 = vector.extract_strided_slice %1334 {offsets = [0, 32], sizes = [2, 16], strides = [1, 1]} : vector<2x48xf32> to vector<2x16xf32>
    %1340 = arith.mulf %1338, %1250 : vector<2x16xf32>
    %1341 = arith.mulf %1337, %1336 : vector<2x16xf32>
    %1342 = arith.addf %1340, %1341 : vector<2x16xf32>
    %1343 = math.tanh %1342 : vector<2x16xf32>
    %1344 = arith.mulf %1339, %1343 : vector<2x16xf32>
    %1345 = arith.maximumf %1253, %1344 : vector<2x16xf32>
    %c0_582 = arith.constant 0 : index
    %c10_583 = arith.constant 10 : index
    %c0_584 = arith.constant 0 : index
    %1346 = vector.load %arg10[%c0_582, %c10_583, %c0_584] : memref<4x16x64xf32, #tpu.memory_space<vmem>>, vector<1x2x64xf32>
    %1347 = vector.shape_cast %1346 : vector<1x2x64xf32> to vector<2x64xf32>
    %c0_585 = arith.constant 0 : index
    %c0_586 = arith.constant 0 : index
    %c0_587 = arith.constant 0 : index
    %1348 = vector.load %arg8[%c0_585, %c0_586, %c0_587] : memref<4x16x64xf32, #tpu.memory_space<vmem>>, vector<1x16x64xf32>
    %1349 = vector.shape_cast %1348 : vector<1x16x64xf32> to vector<16x64xf32>
    %cst_588 = arith.constant dense<0.000000e+00> : vector<2x64xf32>
    %1350 = tpu.matmul %1275, %1349, %cst_588 {dimension_numbers = #tpu.dot_dimension_numbers<[1], [0], [0], [1], [0, 0, 1, 1], [], []>} : vector<2x16xf32>, vector<16x64xf32>, vector<2x64xf32> -> vector<2x64xf32>
    %1351 = arith.addf %1347, %1350 : vector<2x64xf32>
    %1352 = vector.extract_strided_slice %1351 {offsets = [0, 0], sizes = [2, 48], strides = [1, 1]} : vector<2x64xf32> to vector<2x48xf32>
    %1353 = arith.negf %1352 : vector<2x48xf32>
    %1354 = math.exp %1353 : vector<2x48xf32>
    %cst_589 = arith.constant 1.000000e+00 : f32
    %1355 = vector.broadcast %cst_589 : f32 to vector<2x48xf32>
    %1356 = arith.addf %1355, %1354 : vector<2x48xf32>
    %1357 = arith.divf %1355, %1356 : vector<2x48xf32>
    %1358 = vector.extract_strided_slice %1351 {offsets = [0, 48], sizes = [2, 16], strides = [1, 1]} : vector<2x64xf32> to vector<2x16xf32>
    %1359 = math.tanh %1358 : vector<2x16xf32>
    %1360 = vector.extract_strided_slice %1357 {offsets = [0, 0], sizes = [2, 16], strides = [1, 1]} : vector<2x48xf32> to vector<2x16xf32>
    %1361 = vector.extract_strided_slice %1357 {offsets = [0, 16], sizes = [2, 16], strides = [1, 1]} : vector<2x48xf32> to vector<2x16xf32>
    %1362 = vector.extract_strided_slice %1357 {offsets = [0, 32], sizes = [2, 16], strides = [1, 1]} : vector<2x48xf32> to vector<2x16xf32>
    %1363 = arith.mulf %1361, %1273 : vector<2x16xf32>
    %1364 = arith.mulf %1360, %1359 : vector<2x16xf32>
    %1365 = arith.addf %1363, %1364 : vector<2x16xf32>
    %1366 = math.tanh %1365 : vector<2x16xf32>
    %1367 = arith.mulf %1362, %1366 : vector<2x16xf32>
    %1368 = arith.maximumf %1276, %1367 : vector<2x16xf32>
    %c1_590 = arith.constant 1 : index
    %c10_591 = arith.constant 10 : index
    %c0_592 = arith.constant 0 : index
    %1369 = vector.load %arg10[%c1_590, %c10_591, %c0_592] : memref<4x16x64xf32, #tpu.memory_space<vmem>>, vector<1x2x64xf32>
    %1370 = vector.shape_cast %1369 : vector<1x2x64xf32> to vector<2x64xf32>
    %c1_593 = arith.constant 1 : index
    %c0_594 = arith.constant 0 : index
    %c0_595 = arith.constant 0 : index
    %1371 = vector.load %arg8[%c1_593, %c0_594, %c0_595] : memref<4x16x64xf32, #tpu.memory_space<vmem>>, vector<1x16x64xf32>
    %1372 = vector.shape_cast %1371 : vector<1x16x64xf32> to vector<16x64xf32>
    %cst_596 = arith.constant dense<0.000000e+00> : vector<2x64xf32>
    %1373 = tpu.matmul %1298, %1372, %cst_596 {dimension_numbers = #tpu.dot_dimension_numbers<[1], [0], [0], [1], [0, 0, 1, 1], [], []>} : vector<2x16xf32>, vector<16x64xf32>, vector<2x64xf32> -> vector<2x64xf32>
    %1374 = arith.addf %1370, %1373 : vector<2x64xf32>
    %1375 = vector.extract_strided_slice %1374 {offsets = [0, 0], sizes = [2, 48], strides = [1, 1]} : vector<2x64xf32> to vector<2x48xf32>
    %1376 = arith.negf %1375 : vector<2x48xf32>
    %1377 = math.exp %1376 : vector<2x48xf32>
    %cst_597 = arith.constant 1.000000e+00 : f32
    %1378 = vector.broadcast %cst_597 : f32 to vector<2x48xf32>
    %1379 = arith.addf %1378, %1377 : vector<2x48xf32>
    %1380 = arith.divf %1378, %1379 : vector<2x48xf32>
    %1381 = vector.extract_strided_slice %1374 {offsets = [0, 48], sizes = [2, 16], strides = [1, 1]} : vector<2x64xf32> to vector<2x16xf32>
    %1382 = math.tanh %1381 : vector<2x16xf32>
    %1383 = vector.extract_strided_slice %1380 {offsets = [0, 0], sizes = [2, 16], strides = [1, 1]} : vector<2x48xf32> to vector<2x16xf32>
    %1384 = vector.extract_strided_slice %1380 {offsets = [0, 16], sizes = [2, 16], strides = [1, 1]} : vector<2x48xf32> to vector<2x16xf32>
    %1385 = vector.extract_strided_slice %1380 {offsets = [0, 32], sizes = [2, 16], strides = [1, 1]} : vector<2x48xf32> to vector<2x16xf32>
    %1386 = arith.mulf %1384, %1296 : vector<2x16xf32>
    %1387 = arith.mulf %1383, %1382 : vector<2x16xf32>
    %1388 = arith.addf %1386, %1387 : vector<2x16xf32>
    %1389 = math.tanh %1388 : vector<2x16xf32>
    %1390 = arith.mulf %1385, %1389 : vector<2x16xf32>
    %1391 = arith.maximumf %1299, %1390 : vector<2x16xf32>
    %c2_598 = arith.constant 2 : index
    %c4_599 = arith.constant 4 : index
    %c0_600 = arith.constant 0 : index
    %1392 = vector.load %arg10[%c2_598, %c4_599, %c0_600] : memref<4x16x64xf32, #tpu.memory_space<vmem>>, vector<1x2x64xf32>
    %1393 = vector.shape_cast %1392 : vector<1x2x64xf32> to vector<2x64xf32>
    %c2_601 = arith.constant 2 : index
    %c0_602 = arith.constant 0 : index
    %c0_603 = arith.constant 0 : index
    %1394 = vector.load %arg8[%c2_601, %c0_602, %c0_603] : memref<4x16x64xf32, #tpu.memory_space<vmem>>, vector<1x16x64xf32>
    %1395 = vector.shape_cast %1394 : vector<1x16x64xf32> to vector<16x64xf32>
    %cst_604 = arith.constant dense<0.000000e+00> : vector<2x64xf32>
    %1396 = tpu.matmul %1321, %1395, %cst_604 {dimension_numbers = #tpu.dot_dimension_numbers<[1], [0], [0], [1], [0, 0, 1, 1], [], []>} : vector<2x16xf32>, vector<16x64xf32>, vector<2x64xf32> -> vector<2x64xf32>
    %1397 = arith.addf %1393, %1396 : vector<2x64xf32>
    %1398 = vector.extract_strided_slice %1397 {offsets = [0, 0], sizes = [2, 48], strides = [1, 1]} : vector<2x64xf32> to vector<2x48xf32>
    %1399 = arith.negf %1398 : vector<2x48xf32>
    %1400 = math.exp %1399 : vector<2x48xf32>
    %cst_605 = arith.constant 1.000000e+00 : f32
    %1401 = vector.broadcast %cst_605 : f32 to vector<2x48xf32>
    %1402 = arith.addf %1401, %1400 : vector<2x48xf32>
    %1403 = arith.divf %1401, %1402 : vector<2x48xf32>
    %1404 = vector.extract_strided_slice %1397 {offsets = [0, 48], sizes = [2, 16], strides = [1, 1]} : vector<2x64xf32> to vector<2x16xf32>
    %1405 = math.tanh %1404 : vector<2x16xf32>
    %1406 = vector.extract_strided_slice %1403 {offsets = [0, 0], sizes = [2, 16], strides = [1, 1]} : vector<2x48xf32> to vector<2x16xf32>
    %1407 = vector.extract_strided_slice %1403 {offsets = [0, 16], sizes = [2, 16], strides = [1, 1]} : vector<2x48xf32> to vector<2x16xf32>
    %1408 = vector.extract_strided_slice %1403 {offsets = [0, 32], sizes = [2, 16], strides = [1, 1]} : vector<2x48xf32> to vector<2x16xf32>
    %1409 = arith.mulf %1407, %1319 : vector<2x16xf32>
    %1410 = arith.mulf %1406, %1405 : vector<2x16xf32>
    %1411 = arith.addf %1409, %1410 : vector<2x16xf32>
    %1412 = math.tanh %1411 : vector<2x16xf32>
    %1413 = arith.mulf %1408, %1412 : vector<2x16xf32>
    %1414 = arith.maximumf %1322, %1413 : vector<2x16xf32>
    %c3_606 = arith.constant 3 : index
    %c4_607 = arith.constant 4 : index
    %c0_608 = arith.constant 0 : index
    %1415 = vector.load %arg10[%c3_606, %c4_607, %c0_608] : memref<4x16x64xf32, #tpu.memory_space<vmem>>, vector<1x2x64xf32>
    %1416 = vector.shape_cast %1415 : vector<1x2x64xf32> to vector<2x64xf32>
    %c3_609 = arith.constant 3 : index
    %c0_610 = arith.constant 0 : index
    %c0_611 = arith.constant 0 : index
    %1417 = vector.load %arg8[%c3_609, %c0_610, %c0_611] : memref<4x16x64xf32, #tpu.memory_space<vmem>>, vector<1x16x64xf32>
    %1418 = vector.shape_cast %1417 : vector<1x16x64xf32> to vector<16x64xf32>
    %cst_612 = arith.constant dense<0.000000e+00> : vector<2x64xf32>
    %1419 = tpu.matmul %1344, %1418, %cst_612 {dimension_numbers = #tpu.dot_dimension_numbers<[1], [0], [0], [1], [0, 0, 1, 1], [], []>} : vector<2x16xf32>, vector<16x64xf32>, vector<2x64xf32> -> vector<2x64xf32>
    %1420 = arith.addf %1416, %1419 : vector<2x64xf32>
    %1421 = vector.extract_strided_slice %1420 {offsets = [0, 0], sizes = [2, 48], strides = [1, 1]} : vector<2x64xf32> to vector<2x48xf32>
    %1422 = arith.negf %1421 : vector<2x48xf32>
    %1423 = math.exp %1422 : vector<2x48xf32>
    %cst_613 = arith.constant 1.000000e+00 : f32
    %1424 = vector.broadcast %cst_613 : f32 to vector<2x48xf32>
    %1425 = arith.addf %1424, %1423 : vector<2x48xf32>
    %1426 = arith.divf %1424, %1425 : vector<2x48xf32>
    %1427 = vector.extract_strided_slice %1420 {offsets = [0, 48], sizes = [2, 16], strides = [1, 1]} : vector<2x64xf32> to vector<2x16xf32>
    %1428 = math.tanh %1427 : vector<2x16xf32>
    %1429 = vector.extract_strided_slice %1426 {offsets = [0, 0], sizes = [2, 16], strides = [1, 1]} : vector<2x48xf32> to vector<2x16xf32>
    %1430 = vector.extract_strided_slice %1426 {offsets = [0, 16], sizes = [2, 16], strides = [1, 1]} : vector<2x48xf32> to vector<2x16xf32>
    %1431 = vector.extract_strided_slice %1426 {offsets = [0, 32], sizes = [2, 16], strides = [1, 1]} : vector<2x48xf32> to vector<2x16xf32>
    %1432 = arith.mulf %1430, %1342 : vector<2x16xf32>
    %1433 = arith.mulf %1429, %1428 : vector<2x16xf32>
    %1434 = arith.addf %1432, %1433 : vector<2x16xf32>
    %1435 = math.tanh %1434 : vector<2x16xf32>
    %1436 = arith.mulf %1431, %1435 : vector<2x16xf32>
    %1437 = arith.maximumf %1345, %1436 : vector<2x16xf32>
    %c0_614 = arith.constant 0 : index
    %c12_615 = arith.constant 12 : index
    %c0_616 = arith.constant 0 : index
    %1438 = vector.load %arg10[%c0_614, %c12_615, %c0_616] : memref<4x16x64xf32, #tpu.memory_space<vmem>>, vector<1x2x64xf32>
    %1439 = vector.shape_cast %1438 : vector<1x2x64xf32> to vector<2x64xf32>
    %c0_617 = arith.constant 0 : index
    %c0_618 = arith.constant 0 : index
    %c0_619 = arith.constant 0 : index
    %1440 = vector.load %arg8[%c0_617, %c0_618, %c0_619] : memref<4x16x64xf32, #tpu.memory_space<vmem>>, vector<1x16x64xf32>
    %1441 = vector.shape_cast %1440 : vector<1x16x64xf32> to vector<16x64xf32>
    %cst_620 = arith.constant dense<0.000000e+00> : vector<2x64xf32>
    %1442 = tpu.matmul %1367, %1441, %cst_620 {dimension_numbers = #tpu.dot_dimension_numbers<[1], [0], [0], [1], [0, 0, 1, 1], [], []>} : vector<2x16xf32>, vector<16x64xf32>, vector<2x64xf32> -> vector<2x64xf32>
    %1443 = arith.addf %1439, %1442 : vector<2x64xf32>
    %1444 = vector.extract_strided_slice %1443 {offsets = [0, 0], sizes = [2, 48], strides = [1, 1]} : vector<2x64xf32> to vector<2x48xf32>
    %1445 = arith.negf %1444 : vector<2x48xf32>
    %1446 = math.exp %1445 : vector<2x48xf32>
    %cst_621 = arith.constant 1.000000e+00 : f32
    %1447 = vector.broadcast %cst_621 : f32 to vector<2x48xf32>
    %1448 = arith.addf %1447, %1446 : vector<2x48xf32>
    %1449 = arith.divf %1447, %1448 : vector<2x48xf32>
    %1450 = vector.extract_strided_slice %1443 {offsets = [0, 48], sizes = [2, 16], strides = [1, 1]} : vector<2x64xf32> to vector<2x16xf32>
    %1451 = math.tanh %1450 : vector<2x16xf32>
    %1452 = vector.extract_strided_slice %1449 {offsets = [0, 0], sizes = [2, 16], strides = [1, 1]} : vector<2x48xf32> to vector<2x16xf32>
    %1453 = vector.extract_strided_slice %1449 {offsets = [0, 16], sizes = [2, 16], strides = [1, 1]} : vector<2x48xf32> to vector<2x16xf32>
    %1454 = vector.extract_strided_slice %1449 {offsets = [0, 32], sizes = [2, 16], strides = [1, 1]} : vector<2x48xf32> to vector<2x16xf32>
    %1455 = arith.mulf %1453, %1365 : vector<2x16xf32>
    %1456 = arith.mulf %1452, %1451 : vector<2x16xf32>
    %1457 = arith.addf %1455, %1456 : vector<2x16xf32>
    %1458 = math.tanh %1457 : vector<2x16xf32>
    %1459 = arith.mulf %1454, %1458 : vector<2x16xf32>
    %1460 = arith.maximumf %1368, %1459 : vector<2x16xf32>
    %c1_622 = arith.constant 1 : index
    %c12_623 = arith.constant 12 : index
    %c0_624 = arith.constant 0 : index
    %1461 = vector.load %arg10[%c1_622, %c12_623, %c0_624] : memref<4x16x64xf32, #tpu.memory_space<vmem>>, vector<1x2x64xf32>
    %1462 = vector.shape_cast %1461 : vector<1x2x64xf32> to vector<2x64xf32>
    %c1_625 = arith.constant 1 : index
    %c0_626 = arith.constant 0 : index
    %c0_627 = arith.constant 0 : index
    %1463 = vector.load %arg8[%c1_625, %c0_626, %c0_627] : memref<4x16x64xf32, #tpu.memory_space<vmem>>, vector<1x16x64xf32>
    %1464 = vector.shape_cast %1463 : vector<1x16x64xf32> to vector<16x64xf32>
    %cst_628 = arith.constant dense<0.000000e+00> : vector<2x64xf32>
    %1465 = tpu.matmul %1390, %1464, %cst_628 {dimension_numbers = #tpu.dot_dimension_numbers<[1], [0], [0], [1], [0, 0, 1, 1], [], []>} : vector<2x16xf32>, vector<16x64xf32>, vector<2x64xf32> -> vector<2x64xf32>
    %1466 = arith.addf %1462, %1465 : vector<2x64xf32>
    %1467 = vector.extract_strided_slice %1466 {offsets = [0, 0], sizes = [2, 48], strides = [1, 1]} : vector<2x64xf32> to vector<2x48xf32>
    %1468 = arith.negf %1467 : vector<2x48xf32>
    %1469 = math.exp %1468 : vector<2x48xf32>
    %cst_629 = arith.constant 1.000000e+00 : f32
    %1470 = vector.broadcast %cst_629 : f32 to vector<2x48xf32>
    %1471 = arith.addf %1470, %1469 : vector<2x48xf32>
    %1472 = arith.divf %1470, %1471 : vector<2x48xf32>
    %1473 = vector.extract_strided_slice %1466 {offsets = [0, 48], sizes = [2, 16], strides = [1, 1]} : vector<2x64xf32> to vector<2x16xf32>
    %1474 = math.tanh %1473 : vector<2x16xf32>
    %1475 = vector.extract_strided_slice %1472 {offsets = [0, 0], sizes = [2, 16], strides = [1, 1]} : vector<2x48xf32> to vector<2x16xf32>
    %1476 = vector.extract_strided_slice %1472 {offsets = [0, 16], sizes = [2, 16], strides = [1, 1]} : vector<2x48xf32> to vector<2x16xf32>
    %1477 = vector.extract_strided_slice %1472 {offsets = [0, 32], sizes = [2, 16], strides = [1, 1]} : vector<2x48xf32> to vector<2x16xf32>
    %1478 = arith.mulf %1476, %1388 : vector<2x16xf32>
    %1479 = arith.mulf %1475, %1474 : vector<2x16xf32>
    %1480 = arith.addf %1478, %1479 : vector<2x16xf32>
    %1481 = math.tanh %1480 : vector<2x16xf32>
    %1482 = arith.mulf %1477, %1481 : vector<2x16xf32>
    %1483 = arith.maximumf %1391, %1482 : vector<2x16xf32>
    %c2_630 = arith.constant 2 : index
    %c2_631 = arith.constant 2 : index
    %c0_632 = arith.constant 0 : index
    %1484 = vector.load %arg10[%c2_630, %c2_631, %c0_632] : memref<4x16x64xf32, #tpu.memory_space<vmem>>, vector<1x2x64xf32>
    %1485 = vector.shape_cast %1484 : vector<1x2x64xf32> to vector<2x64xf32>
    %c2_633 = arith.constant 2 : index
    %c0_634 = arith.constant 0 : index
    %c0_635 = arith.constant 0 : index
    %1486 = vector.load %arg8[%c2_633, %c0_634, %c0_635] : memref<4x16x64xf32, #tpu.memory_space<vmem>>, vector<1x16x64xf32>
    %1487 = vector.shape_cast %1486 : vector<1x16x64xf32> to vector<16x64xf32>
    %cst_636 = arith.constant dense<0.000000e+00> : vector<2x64xf32>
    %1488 = tpu.matmul %1413, %1487, %cst_636 {dimension_numbers = #tpu.dot_dimension_numbers<[1], [0], [0], [1], [0, 0, 1, 1], [], []>} : vector<2x16xf32>, vector<16x64xf32>, vector<2x64xf32> -> vector<2x64xf32>
    %1489 = arith.addf %1485, %1488 : vector<2x64xf32>
    %1490 = vector.extract_strided_slice %1489 {offsets = [0, 0], sizes = [2, 48], strides = [1, 1]} : vector<2x64xf32> to vector<2x48xf32>
    %1491 = arith.negf %1490 : vector<2x48xf32>
    %1492 = math.exp %1491 : vector<2x48xf32>
    %cst_637 = arith.constant 1.000000e+00 : f32
    %1493 = vector.broadcast %cst_637 : f32 to vector<2x48xf32>
    %1494 = arith.addf %1493, %1492 : vector<2x48xf32>
    %1495 = arith.divf %1493, %1494 : vector<2x48xf32>
    %1496 = vector.extract_strided_slice %1489 {offsets = [0, 48], sizes = [2, 16], strides = [1, 1]} : vector<2x64xf32> to vector<2x16xf32>
    %1497 = math.tanh %1496 : vector<2x16xf32>
    %1498 = vector.extract_strided_slice %1495 {offsets = [0, 0], sizes = [2, 16], strides = [1, 1]} : vector<2x48xf32> to vector<2x16xf32>
    %1499 = vector.extract_strided_slice %1495 {offsets = [0, 16], sizes = [2, 16], strides = [1, 1]} : vector<2x48xf32> to vector<2x16xf32>
    %1500 = vector.extract_strided_slice %1495 {offsets = [0, 32], sizes = [2, 16], strides = [1, 1]} : vector<2x48xf32> to vector<2x16xf32>
    %1501 = arith.mulf %1499, %1411 : vector<2x16xf32>
    %1502 = arith.mulf %1498, %1497 : vector<2x16xf32>
    %1503 = arith.addf %1501, %1502 : vector<2x16xf32>
    %1504 = math.tanh %1503 : vector<2x16xf32>
    %1505 = arith.mulf %1500, %1504 : vector<2x16xf32>
    %1506 = arith.maximumf %1414, %1505 : vector<2x16xf32>
    %c3_638 = arith.constant 3 : index
    %c2_639 = arith.constant 2 : index
    %c0_640 = arith.constant 0 : index
    %1507 = vector.load %arg10[%c3_638, %c2_639, %c0_640] : memref<4x16x64xf32, #tpu.memory_space<vmem>>, vector<1x2x64xf32>
    %1508 = vector.shape_cast %1507 : vector<1x2x64xf32> to vector<2x64xf32>
    %c3_641 = arith.constant 3 : index
    %c0_642 = arith.constant 0 : index
    %c0_643 = arith.constant 0 : index
    %1509 = vector.load %arg8[%c3_641, %c0_642, %c0_643] : memref<4x16x64xf32, #tpu.memory_space<vmem>>, vector<1x16x64xf32>
    %1510 = vector.shape_cast %1509 : vector<1x16x64xf32> to vector<16x64xf32>
    %cst_644 = arith.constant dense<0.000000e+00> : vector<2x64xf32>
    %1511 = tpu.matmul %1436, %1510, %cst_644 {dimension_numbers = #tpu.dot_dimension_numbers<[1], [0], [0], [1], [0, 0, 1, 1], [], []>} : vector<2x16xf32>, vector<16x64xf32>, vector<2x64xf32> -> vector<2x64xf32>
    %1512 = arith.addf %1508, %1511 : vector<2x64xf32>
    %1513 = vector.extract_strided_slice %1512 {offsets = [0, 0], sizes = [2, 48], strides = [1, 1]} : vector<2x64xf32> to vector<2x48xf32>
    %1514 = arith.negf %1513 : vector<2x48xf32>
    %1515 = math.exp %1514 : vector<2x48xf32>
    %cst_645 = arith.constant 1.000000e+00 : f32
    %1516 = vector.broadcast %cst_645 : f32 to vector<2x48xf32>
    %1517 = arith.addf %1516, %1515 : vector<2x48xf32>
    %1518 = arith.divf %1516, %1517 : vector<2x48xf32>
    %1519 = vector.extract_strided_slice %1512 {offsets = [0, 48], sizes = [2, 16], strides = [1, 1]} : vector<2x64xf32> to vector<2x16xf32>
    %1520 = math.tanh %1519 : vector<2x16xf32>
    %1521 = vector.extract_strided_slice %1518 {offsets = [0, 0], sizes = [2, 16], strides = [1, 1]} : vector<2x48xf32> to vector<2x16xf32>
    %1522 = vector.extract_strided_slice %1518 {offsets = [0, 16], sizes = [2, 16], strides = [1, 1]} : vector<2x48xf32> to vector<2x16xf32>
    %1523 = vector.extract_strided_slice %1518 {offsets = [0, 32], sizes = [2, 16], strides = [1, 1]} : vector<2x48xf32> to vector<2x16xf32>
    %1524 = arith.mulf %1522, %1434 : vector<2x16xf32>
    %1525 = arith.mulf %1521, %1520 : vector<2x16xf32>
    %1526 = arith.addf %1524, %1525 : vector<2x16xf32>
    %1527 = math.tanh %1526 : vector<2x16xf32>
    %1528 = arith.mulf %1523, %1527 : vector<2x16xf32>
    %1529 = arith.maximumf %1437, %1528 : vector<2x16xf32>
    %c0_646 = arith.constant 0 : index
    %c14_647 = arith.constant 14 : index
    %c0_648 = arith.constant 0 : index
    %1530 = vector.load %arg10[%c0_646, %c14_647, %c0_648] : memref<4x16x64xf32, #tpu.memory_space<vmem>>, vector<1x2x64xf32>
    %1531 = vector.shape_cast %1530 : vector<1x2x64xf32> to vector<2x64xf32>
    %c0_649 = arith.constant 0 : index
    %c0_650 = arith.constant 0 : index
    %c0_651 = arith.constant 0 : index
    %1532 = vector.load %arg8[%c0_649, %c0_650, %c0_651] : memref<4x16x64xf32, #tpu.memory_space<vmem>>, vector<1x16x64xf32>
    %1533 = vector.shape_cast %1532 : vector<1x16x64xf32> to vector<16x64xf32>
    %cst_652 = arith.constant dense<0.000000e+00> : vector<2x64xf32>
    %1534 = tpu.matmul %1459, %1533, %cst_652 {dimension_numbers = #tpu.dot_dimension_numbers<[1], [0], [0], [1], [0, 0, 1, 1], [], []>} : vector<2x16xf32>, vector<16x64xf32>, vector<2x64xf32> -> vector<2x64xf32>
    %1535 = arith.addf %1531, %1534 : vector<2x64xf32>
    %1536 = vector.extract_strided_slice %1535 {offsets = [0, 0], sizes = [2, 48], strides = [1, 1]} : vector<2x64xf32> to vector<2x48xf32>
    %1537 = arith.negf %1536 : vector<2x48xf32>
    %1538 = math.exp %1537 : vector<2x48xf32>
    %cst_653 = arith.constant 1.000000e+00 : f32
    %1539 = vector.broadcast %cst_653 : f32 to vector<2x48xf32>
    %1540 = arith.addf %1539, %1538 : vector<2x48xf32>
    %1541 = arith.divf %1539, %1540 : vector<2x48xf32>
    %1542 = vector.extract_strided_slice %1535 {offsets = [0, 48], sizes = [2, 16], strides = [1, 1]} : vector<2x64xf32> to vector<2x16xf32>
    %1543 = math.tanh %1542 : vector<2x16xf32>
    %1544 = vector.extract_strided_slice %1541 {offsets = [0, 0], sizes = [2, 16], strides = [1, 1]} : vector<2x48xf32> to vector<2x16xf32>
    %1545 = vector.extract_strided_slice %1541 {offsets = [0, 16], sizes = [2, 16], strides = [1, 1]} : vector<2x48xf32> to vector<2x16xf32>
    %1546 = vector.extract_strided_slice %1541 {offsets = [0, 32], sizes = [2, 16], strides = [1, 1]} : vector<2x48xf32> to vector<2x16xf32>
    %1547 = arith.mulf %1545, %1457 : vector<2x16xf32>
    %1548 = arith.mulf %1544, %1543 : vector<2x16xf32>
    %1549 = arith.addf %1547, %1548 : vector<2x16xf32>
    %1550 = math.tanh %1549 : vector<2x16xf32>
    %1551 = arith.mulf %1546, %1550 : vector<2x16xf32>
    %1552 = arith.maximumf %1460, %1551 : vector<2x16xf32>
    %c1_654 = arith.constant 1 : index
    %c14_655 = arith.constant 14 : index
    %c0_656 = arith.constant 0 : index
    %1553 = vector.load %arg10[%c1_654, %c14_655, %c0_656] : memref<4x16x64xf32, #tpu.memory_space<vmem>>, vector<1x2x64xf32>
    %1554 = vector.shape_cast %1553 : vector<1x2x64xf32> to vector<2x64xf32>
    %c1_657 = arith.constant 1 : index
    %c0_658 = arith.constant 0 : index
    %c0_659 = arith.constant 0 : index
    %1555 = vector.load %arg8[%c1_657, %c0_658, %c0_659] : memref<4x16x64xf32, #tpu.memory_space<vmem>>, vector<1x16x64xf32>
    %1556 = vector.shape_cast %1555 : vector<1x16x64xf32> to vector<16x64xf32>
    %cst_660 = arith.constant dense<0.000000e+00> : vector<2x64xf32>
    %1557 = tpu.matmul %1482, %1556, %cst_660 {dimension_numbers = #tpu.dot_dimension_numbers<[1], [0], [0], [1], [0, 0, 1, 1], [], []>} : vector<2x16xf32>, vector<16x64xf32>, vector<2x64xf32> -> vector<2x64xf32>
    %1558 = arith.addf %1554, %1557 : vector<2x64xf32>
    %1559 = vector.extract_strided_slice %1558 {offsets = [0, 0], sizes = [2, 48], strides = [1, 1]} : vector<2x64xf32> to vector<2x48xf32>
    %1560 = arith.negf %1559 : vector<2x48xf32>
    %1561 = math.exp %1560 : vector<2x48xf32>
    %cst_661 = arith.constant 1.000000e+00 : f32
    %1562 = vector.broadcast %cst_661 : f32 to vector<2x48xf32>
    %1563 = arith.addf %1562, %1561 : vector<2x48xf32>
    %1564 = arith.divf %1562, %1563 : vector<2x48xf32>
    %1565 = vector.extract_strided_slice %1558 {offsets = [0, 48], sizes = [2, 16], strides = [1, 1]} : vector<2x64xf32> to vector<2x16xf32>
    %1566 = math.tanh %1565 : vector<2x16xf32>
    %1567 = vector.extract_strided_slice %1564 {offsets = [0, 0], sizes = [2, 16], strides = [1, 1]} : vector<2x48xf32> to vector<2x16xf32>
    %1568 = vector.extract_strided_slice %1564 {offsets = [0, 16], sizes = [2, 16], strides = [1, 1]} : vector<2x48xf32> to vector<2x16xf32>
    %1569 = vector.extract_strided_slice %1564 {offsets = [0, 32], sizes = [2, 16], strides = [1, 1]} : vector<2x48xf32> to vector<2x16xf32>
    %1570 = arith.mulf %1568, %1480 : vector<2x16xf32>
    %1571 = arith.mulf %1567, %1566 : vector<2x16xf32>
    %1572 = arith.addf %1570, %1571 : vector<2x16xf32>
    %1573 = math.tanh %1572 : vector<2x16xf32>
    %1574 = arith.mulf %1569, %1573 : vector<2x16xf32>
    %1575 = arith.maximumf %1483, %1574 : vector<2x16xf32>
    %c2_662 = arith.constant 2 : index
    %c0_663 = arith.constant 0 : index
    %c0_664 = arith.constant 0 : index
    %1576 = vector.load %arg10[%c2_662, %c0_663, %c0_664] : memref<4x16x64xf32, #tpu.memory_space<vmem>>, vector<1x2x64xf32>
    %1577 = vector.shape_cast %1576 : vector<1x2x64xf32> to vector<2x64xf32>
    %c2_665 = arith.constant 2 : index
    %c0_666 = arith.constant 0 : index
    %c0_667 = arith.constant 0 : index
    %1578 = vector.load %arg8[%c2_665, %c0_666, %c0_667] : memref<4x16x64xf32, #tpu.memory_space<vmem>>, vector<1x16x64xf32>
    %1579 = vector.shape_cast %1578 : vector<1x16x64xf32> to vector<16x64xf32>
    %cst_668 = arith.constant dense<0.000000e+00> : vector<2x64xf32>
    %1580 = tpu.matmul %1505, %1579, %cst_668 {dimension_numbers = #tpu.dot_dimension_numbers<[1], [0], [0], [1], [0, 0, 1, 1], [], []>} : vector<2x16xf32>, vector<16x64xf32>, vector<2x64xf32> -> vector<2x64xf32>
    %1581 = arith.addf %1577, %1580 : vector<2x64xf32>
    %1582 = vector.extract_strided_slice %1581 {offsets = [0, 0], sizes = [2, 48], strides = [1, 1]} : vector<2x64xf32> to vector<2x48xf32>
    %1583 = arith.negf %1582 : vector<2x48xf32>
    %1584 = math.exp %1583 : vector<2x48xf32>
    %cst_669 = arith.constant 1.000000e+00 : f32
    %1585 = vector.broadcast %cst_669 : f32 to vector<2x48xf32>
    %1586 = arith.addf %1585, %1584 : vector<2x48xf32>
    %1587 = arith.divf %1585, %1586 : vector<2x48xf32>
    %1588 = vector.extract_strided_slice %1581 {offsets = [0, 48], sizes = [2, 16], strides = [1, 1]} : vector<2x64xf32> to vector<2x16xf32>
    %1589 = math.tanh %1588 : vector<2x16xf32>
    %1590 = vector.extract_strided_slice %1587 {offsets = [0, 0], sizes = [2, 16], strides = [1, 1]} : vector<2x48xf32> to vector<2x16xf32>
    %1591 = vector.extract_strided_slice %1587 {offsets = [0, 16], sizes = [2, 16], strides = [1, 1]} : vector<2x48xf32> to vector<2x16xf32>
    %1592 = vector.extract_strided_slice %1587 {offsets = [0, 32], sizes = [2, 16], strides = [1, 1]} : vector<2x48xf32> to vector<2x16xf32>
    %1593 = arith.mulf %1591, %1503 : vector<2x16xf32>
    %1594 = arith.mulf %1590, %1589 : vector<2x16xf32>
    %1595 = arith.addf %1593, %1594 : vector<2x16xf32>
    %1596 = math.tanh %1595 : vector<2x16xf32>
    %1597 = arith.mulf %1592, %1596 : vector<2x16xf32>
    %1598 = arith.maximumf %1506, %1597 : vector<2x16xf32>
    %c3_670 = arith.constant 3 : index
    %c0_671 = arith.constant 0 : index
    %c0_672 = arith.constant 0 : index
    %1599 = vector.load %arg10[%c3_670, %c0_671, %c0_672] : memref<4x16x64xf32, #tpu.memory_space<vmem>>, vector<1x2x64xf32>
    %1600 = vector.shape_cast %1599 : vector<1x2x64xf32> to vector<2x64xf32>
    %c3_673 = arith.constant 3 : index
    %c0_674 = arith.constant 0 : index
    %c0_675 = arith.constant 0 : index
    %1601 = vector.load %arg8[%c3_673, %c0_674, %c0_675] : memref<4x16x64xf32, #tpu.memory_space<vmem>>, vector<1x16x64xf32>
    %1602 = vector.shape_cast %1601 : vector<1x16x64xf32> to vector<16x64xf32>
    %cst_676 = arith.constant dense<0.000000e+00> : vector<2x64xf32>
    %1603 = tpu.matmul %1528, %1602, %cst_676 {dimension_numbers = #tpu.dot_dimension_numbers<[1], [0], [0], [1], [0, 0, 1, 1], [], []>} : vector<2x16xf32>, vector<16x64xf32>, vector<2x64xf32> -> vector<2x64xf32>
    %1604 = arith.addf %1600, %1603 : vector<2x64xf32>
    %1605 = vector.extract_strided_slice %1604 {offsets = [0, 0], sizes = [2, 48], strides = [1, 1]} : vector<2x64xf32> to vector<2x48xf32>
    %1606 = arith.negf %1605 : vector<2x48xf32>
    %1607 = math.exp %1606 : vector<2x48xf32>
    %cst_677 = arith.constant 1.000000e+00 : f32
    %1608 = vector.broadcast %cst_677 : f32 to vector<2x48xf32>
    %1609 = arith.addf %1608, %1607 : vector<2x48xf32>
    %1610 = arith.divf %1608, %1609 : vector<2x48xf32>
    %1611 = vector.extract_strided_slice %1604 {offsets = [0, 48], sizes = [2, 16], strides = [1, 1]} : vector<2x64xf32> to vector<2x16xf32>
    %1612 = math.tanh %1611 : vector<2x16xf32>
    %1613 = vector.extract_strided_slice %1610 {offsets = [0, 0], sizes = [2, 16], strides = [1, 1]} : vector<2x48xf32> to vector<2x16xf32>
    %1614 = vector.extract_strided_slice %1610 {offsets = [0, 16], sizes = [2, 16], strides = [1, 1]} : vector<2x48xf32> to vector<2x16xf32>
    %1615 = vector.extract_strided_slice %1610 {offsets = [0, 32], sizes = [2, 16], strides = [1, 1]} : vector<2x48xf32> to vector<2x16xf32>
    %1616 = arith.mulf %1614, %1526 : vector<2x16xf32>
    %1617 = arith.mulf %1613, %1612 : vector<2x16xf32>
    %1618 = arith.addf %1616, %1617 : vector<2x16xf32>
    %1619 = math.tanh %1618 : vector<2x16xf32>
    %1620 = arith.mulf %1615, %1619 : vector<2x16xf32>
    %1621 = arith.maximumf %1529, %1620 : vector<2x16xf32>
    %1622 = arith.mulf %1552, %1575 : vector<2x16xf32>
    %1623 = arith.mulf %1598, %1621 : vector<2x16xf32>
    %1624 = arith.addf %1622, %1623 : vector<2x16xf32>
    %cst_678 = arith.constant dense<0.000000e+00> : vector<2xf32>
    %1625 = vector.multi_reduction <add>, %1624, %cst_678 [1] : vector<2x16xf32> to vector<2xf32>
    %1626 = vector.shape_cast %1625 : vector<2xf32> to vector<2x1xf32>
    %1627 = arith.mulf %1552, %1552 : vector<2x16xf32>
    %1628 = arith.mulf %1598, %1598 : vector<2x16xf32>
    %1629 = arith.addf %1627, %1628 : vector<2x16xf32>
    %cst_679 = arith.constant dense<0.000000e+00> : vector<2xf32>
    %1630 = vector.multi_reduction <add>, %1629, %cst_679 [1] : vector<2x16xf32> to vector<2xf32>
    %1631 = vector.shape_cast %1630 : vector<2xf32> to vector<2x1xf32>
    %1632 = arith.mulf %1575, %1575 : vector<2x16xf32>
    %1633 = arith.mulf %1621, %1621 : vector<2x16xf32>
    %1634 = arith.addf %1632, %1633 : vector<2x16xf32>
    %cst_680 = arith.constant dense<0.000000e+00> : vector<2xf32>
    %1635 = vector.multi_reduction <add>, %1634, %cst_680 [1] : vector<2x16xf32> to vector<2xf32>
    %1636 = vector.shape_cast %1635 : vector<2xf32> to vector<2x1xf32>
    %cst_681 = arith.constant 9.99999993E-9 : f32
    %cst_682 = arith.constant 9.99999993E-9 : f32
    %1637 = arith.mulf %cst_681, %cst_682 : f32
    %1638 = vector.broadcast %1637 : f32 to vector<2x1xf32>
    %1639 = arith.maximumf %1631, %1638 : vector<2x1xf32>
    %1640 = math.rsqrt %1639 : vector<2x1xf32>
    %cst_683 = arith.constant 9.99999993E-9 : f32
    %cst_684 = arith.constant 9.99999993E-9 : f32
    %1641 = arith.mulf %cst_683, %cst_684 : f32
    %1642 = vector.broadcast %1641 : f32 to vector<2x1xf32>
    %1643 = arith.maximumf %1636, %1642 : vector<2x1xf32>
    %1644 = math.rsqrt %1643 : vector<2x1xf32>
    %1645 = arith.mulf %1626, %1640 : vector<2x1xf32>
    %1646 = arith.mulf %1645, %1644 : vector<2x1xf32>
    %c0_685 = arith.constant 0 : index
    %c0_686 = arith.constant 0 : index
    %1647 = vector.load %arg9[%c0_685, %c0_686] : memref<2x1xf32, #tpu.memory_space<vmem>>, vector<2x1xf32>
    tpu.vector_store %arg9[%c0_685, %c0_686], %1646 {strides = array<i32>} : memref<2x1xf32, #tpu.memory_space<vmem>>, vector<2x1xf32>,
    return
  }
  func.func @transform_0(%arg0: i32) -> (i32, i32) {
    %c0_i32 = arith.constant 0 : i32
    %c0_i32_0 = arith.constant 0 : i32
    %c0_i32_1 = arith.constant 0 : i32
    return %c0_i32, %c0_i32_0 : i32, i32
  }
  func.func @transform_1(%arg0: i32) -> (i32, i32) {
    %c0_i32 = arith.constant 0 : i32
    %c0_i32_0 = arith.constant 0 : i32
    %c0_i32_1 = arith.constant 0 : i32
    return %c0_i32, %c0_i32_0 : i32, i32
  }
  func.func @transform_2(%arg0: i32) -> (i32, i32, i32) {
    %c0_i32 = arith.constant 0 : i32
    %c0_i32_0 = arith.constant 0 : i32
    %c0_i32_1 = arith.constant 0 : i32
    %c0_i32_2 = arith.constant 0 : i32
    return %c0_i32, %c0_i32_0, %c0_i32_1 : i32, i32, i32
  }
  func.func @transform_3(%arg0: i32) -> (i32, i32, i32) {
    %c0_i32 = arith.constant 0 : i32
    %c0_i32_0 = arith.constant 0 : i32
    %c0_i32_1 = arith.constant 0 : i32
    %c0_i32_2 = arith.constant 0 : i32
    return %c0_i32, %c0_i32_0, %c0_i32_1 : i32, i32, i32
  }
  func.func @transform_4(%arg0: i32) -> (i32, i32, i32) {
    %c0_i32 = arith.constant 0 : i32
    %c0_i32_0 = arith.constant 0 : i32
    %c0_i32_1 = arith.constant 0 : i32
    %c0_i32_2 = arith.constant 0 : i32
    return %c0_i32, %c0_i32_0, %c0_i32_1 : i32, i32, i32
  }
  func.func @transform_5(%arg0: i32) -> (i32, i32, i32) {
    %c0_i32 = arith.constant 0 : i32
    %c0_i32_0 = arith.constant 0 : i32
    %c0_i32_1 = arith.constant 0 : i32
    %c0_i32_2 = arith.constant 0 : i32
    return %c0_i32, %c0_i32_0, %c0_i32_1 : i32, i32, i32
  }
  func.func @transform_6(%arg0: i32) -> (i32, i32, i32) {
    %c0_i32 = arith.constant 0 : i32
    %c0_i32_0 = arith.constant 0 : i32
    %c0_i32_1 = arith.constant 0 : i32
    %c0_i32_2 = arith.constant 0 : i32
    return %c0_i32, %c0_i32_0, %c0_i32_1 : i32, i32, i32
  }
  func.func @transform_7(%arg0: i32) -> (i32, i32, i32) {
    %c0_i32 = arith.constant 0 : i32
    %c0_i32_0 = arith.constant 0 : i32
    %c0_i32_1 = arith.constant 0 : i32
    %c0_i32_2 = arith.constant 0 : i32
    return %c0_i32, %c0_i32_0, %c0_i32_1 : i32, i32, i32
  }
  func.func @transform_8(%arg0: i32) -> (i32, i32) {
    %c0_i32 = arith.constant 0 : i32
    %c0_i32_0 = arith.constant 0 : i32
    %c0_i32_1 = arith.constant 0 : i32
    return %c0_i32, %c0_i32_0 : i32, i32
  }
}

</mosaic_0001>

<bundles_post_ra>
// kernel: textrnn_forward.1
= control target key start
LH: loop header
LB: loop body
LE: loop exit
PB: predicated region body
PF: predicated region fallthrough
CT: control target
= control target key end

     0   :  { %vm44_vm0 = vcmask 261120   ;;  %v8797_v21 = vmov 0.0|0.0   ;;  %vm8798_vm1 = vmmov 0   ;;  %v8799_v28 = vmov 0.0   ;;  %s8800_s24 = smov 64   ;;  %s8802_s25 = smov 16   ;;  %s10141_s2 = inlined_call_operand.vmem [shape: f32[2,32,128], index: 2, kind: input, shape index: {}]   ;;  %s10142_s0 = inlined_call_operand.vmem [shape: f32[16,32], index: 0, kind: input, shape index: {}]   ;;  %s10143_s1 = inlined_call_operand.vmem [shape: f32[16,32], index: 1, kind: input, shape index: {}]   ;;  %s10144_s4 = inlined_call_operand.vmem [shape: f32[4,16,64], index: 4, kind: input, shape index: {}]   ;;  %s10145_s3 = inlined_call_operand.vmem [shape: f32[2,1,128], index: 3, kind: input, shape index: {}]   ;;  %s10146_s5 = inlined_call_operand.vmem [shape: f32[2,32,128], index: 5, kind: input, shape index: {}]   ;;  %s10147_s7 = inlined_call_operand.vmem [shape: f32[4,16,64], index: 7, kind: input, shape index: {}]   ;;  %s10148_s6 = inlined_call_operand.vmem [shape: f32[2,1,128], index: 6, kind: input, shape index: {}]   ;;  %s10149_s8 = inlined_call_operand.vmem [shape: f32[2,1], index: 8, kind: output, shape index: {}]  }
   0x1   :  { %v33_v0 = vld [vmem:[%s10141_s2] sm:$0xff]  ;;  %v34_v1 = vld [vmem:[%s10141_s2 + $0x8] sm:$0xff]  ;;  %v35_v5 = vld [vmem:[%s10141_s2 + $0x10] sm:$0xff]  ;;  %vm126_vm2 = vcmask 523264   ;;  %s8803_s26 = smov 96   ;;  %vm354_vm3 = vcmask 123904  }
   0x2   :  { %v7148_v2 = vld [vmem:[%s10141_s2 + $0x20] sm:$0xff]  ;;  %v8049_v3 = vpack.c.bf16 %v34_v1, %v33_v0  ;;  %v7149_v4 = vld [vmem:[%s10141_s2 + $0x28] sm:$0xff]  ;;  %v36_v6 = vld [vmem:[%s10141_s2 + $0x18] sm:$0xff]  ;;  %vm251_vm4 = vcmask 130048   ;;  %vm564_vm5 = vcmask 255104   ;;  %vm7139_vm6 = vcmask 1024  }
   0x3   :  { %v8057_v7 = vpack.c.bf16 %v7149_v4, %v7148_v2  ;;  %v8053_v8 = vpack.c.bf16 %v36_v6, %v35_v5  ;;  %v29_v9 = vld [vmem:[%s10142_s0] sm:$0xff]  ;;  %v7150_v10 = vld [vmem:[%s10141_s2 + $0x30] sm:$0xff]  ;;  %v7151_v11 = vld [vmem:[%s10141_s2 + $0x38] sm:$0xff] }
   0x4   :  { %8050 = vmatprep.subr.bf16.mxu0 %v8049_v3  ;;  %7565 = vmatprep.mubr.msk.f32.mxu0 %vm44_vm0, %v29_v9  ;;  %v31_v12 = vld [vmem:[%s10143_s1] sm:$0xff]  ;;  %v8061_v13 = vpack.c.bf16 %v7151_v11, %v7150_v10  ;;  %v250_v15 = vld [vmem:[%s10144_s4 + $0x8] sm:$0xff]  ;;  %v7157_v16 = vld [vmem:[%s10144_s4 + $0x10] sm:$0xff] }
   0x5   :  { %8052 = vmatpush3.bf16.msra.mxu0 %v8049_v3  ;;  %8058 = vmatprep.subr.bf16.mxu1 %v8057_v7  ;;  %v249_v14 = vld [vmem:[%s10144_s4] sm:$0xff]  ;;  %v7158_v17 = vld [vmem:[%s10144_s4 + $0x18] sm:$0xff]  ;;  %v30_v18 = vld [vmem:[%s10142_s0 + $0x8] sm:$0xff] }
   0x6   :  { %8054 = vmatprep.subr.bf16.mxu0 %v8053_v8  ;;  %8060 = vmatpush3.bf16.msra.mxu1 %v8057_v7  ;;  %v8897_v19 = vpack.c.bf16 %v250_v15, %v249_v14  ;;  %v32_v20 = vld [vmem:[%s10143_s1 + $0x8] sm:$0xff]  ;;  %v8903_v22 = vpack.c.bf16 %v7158_v17, %v7157_v16  ;;  %v7160_v23 = vld [vmem:[%s10144_s4 + $0x20] sm:$0xff]  ;;  %v7163_v25 = vld [vmem:[%s10144_s4 + $0x30] sm:$0xff] }
   0x7   :  { %8062 = vmatprep.subr.bf16.mxu1 %v8061_v13  ;;  %7576 = vmatprep.mubr.msk.f32.mxu1 %vm44_vm0, %v31_v12  ;;  %v7161_v24 = vld [vmem:[%s10144_s4 + $0x28] sm:$0xff]  ;;  %v7164_v26 = vld [vmem:[%s10144_s4 + $0x38] sm:$0xff]  ;;  %v7145_v30 = vld [vmem:[%s10145_s3] ss:$0 sm:$0xff] }
   0x8   :  { %v8921_v27 = vpack.c.bf16 %v7161_v24, %v7160_v23  ;;  %v8926_v29 = vpack.c.bf16 %v7164_v26, %v7163_v25  ;;  %v7153_v31 = vld [vmem:[%s10145_s3 + $0x1] ss:$0 sm:$0xff]  ;;  %s8801_s3 = smov 80  }
   0x9   :  { %8056 = vmatpush3.bf16.msra.mxu0 %v8053_v8 }
   0xa   :  { %8064 = vmatpush3.bf16.msra.mxu1 %v8061_v13  ;;  %8065 = vmatprep.subr.bf16.mxu0 %v8797_v21 }
   0xb   :  { %8068 = vmatprep.subr.bf16.mxu1 %v8797_v21 }
   0xc   :  { %7566 = vmatmul.mubr.msk.f32.vlgmr.msra.gmra.mrb[0].mxu0 %vm44_vm0, %v30_v18 }
   0xd   :  { %7577 = vmatmul.mubr.msk.f32.vlgmr.msra.gmra.mrb[0].mxu1 %vm44_vm0, %v32_v20  ;;  %8067 = vmatpush3.bf16.msra.mxu0 %v8897_v19 }
   0xe   :  { %7583 = vmatprep.mubr.msk.f32.mxu0 %vm8798_vm1, %v8799_v28  ;;  %8070 = vmatpush3.bf16.msra.mxu1 %v8903_v22 }
   0xf   :  { %7590 = vmatprep.mubr.msk.f32.mxu1 %vm8798_vm1, %v8799_v28  ;;  %8071 = vmatprep.subr.bf16.mxu0 %v8797_v21 }
  0x10   :  { %7584 = vmatmul.mubr.f32.vlgmr.msra.gmra.mrb[2].mxu0 %v8799_v28  ;;  %8074 = vmatprep.subr.bf16.mxu1 %v8797_v21 }
  0x11   :  { %7591 = vmatmul.mubr.f32.vlgmr.msra.gmra.mrb[2].mxu1 %v8799_v28  ;;  %8073 = vmatpush3.bf16.msra.mxu0 %v8921_v27 }
  0x12   :  { %7597 = vmatprep.mubr.msk.f32.mxu0 %vm8798_vm1, %v8799_v28  ;;  %8076 = vmatpush3.bf16.msra.mxu1 %v8926_v29 }
  0x13   :  { %7604 = vmatprep.mubr.msk.f32.mxu1 %vm8798_vm1, %v8799_v28  ;;  %8077 = vmatprep.subr.bf16.mxu0 %v8797_v21 }
  0x14   :  { %7598 = vmatmul.mubr.f32.vlgmr.msra.gmra.mrb[4].mxu0 %v8799_v28  ;;  %8080 = vmatprep.subr.bf16.mxu1 %v8797_v21 }
  0x15   :  { %7605 = vmatmul.mubr.f32.vlgmr.msra.gmra.mrb[4].mxu1 %v8799_v28  ;;  %8079 = vmatpush3.bf16.msra.mxu0 %v8897_v19 }
  0x16   :  { %7611 = vmatprep.mubr.msk.f32.mxu0 %vm8798_vm1, %v8799_v28  ;;  %8082 = vmatpush3.bf16.msra.mxu1 %v8903_v22 }
  0x17   :  { %7618 = vmatprep.mubr.msk.f32.mxu1 %vm8798_vm1, %v8799_v28  ;;  %8083 = vmatprep.subr.bf16.mxu0 %v8797_v21 }
  0x18   :  { %8086 = vmatprep.subr.bf16.mxu1 %v8797_v21 }
  0xdf   :  { %v7567_v32 = vpop.f32.mrb[0].mxu0 }
  0xe0   :  { %v123_v33 = vadd.f32 %v7567_v32, %v7145_v30  ;;  %v117_v34 = vpop.f32.mrb[1].mxu0  ;;  %v7578_v35 = vpop.f32.mrb[0].mxu1 }
  0xe1   :  { %v8958_v36 = vadd.f32 %v7145_v30, %v117_v34  ;;  %v231_v37 = vadd.f32 %v7578_v35, %v7153_v31  ;;  %v225_v38 = vpop.f32.mrb[1].mxu1 }
  0xe2   :  { %128 = vst.msk [vmem:[#allocation2 + $0x8] sm:$0xff] %vm126_vm2, %v123_v33  ;;  %133 = vrot.lane.b32.xlu0 %v123_v33, %s8800_s24  ;;  %v8962_v39 = vadd.f32 %v7153_v31, %v225_v38 }
  0xe3   :  { %127 = vst.msk [vmem:[#allocation2] sm:$0xff] %vm126_vm2, %v8958_v36  ;;  %236 = vst.msk [vmem:[#allocation2 + $0x18] sm:$0xff] %vm126_vm2, %v231_v37  ;;  %v321_v40 = vpop.f32.mrb[2].mxu0 }
  0xe4   :  { %235 = vst.msk [vmem:[#allocation2 + $0x10] sm:$0xff] %vm126_vm2, %v8962_v39  ;;  %v426_v41 = vpop.f32.mrb[2].mxu1  ;;  %v7585_v42 = vpop.f32.mrb[3].mxu0 }
  0xe5   :  { %v7592_v43 = vpop.f32.mrb[3].mxu1 }
  0xe6   :  { %241 = vrot.lane.b32.xlu0 %v231_v37, %s8800_s24 }
  0xe7   :  { %v531_v44 = vpop.f32.mrb[4].mxu0 }
  0xe8   :  { %v7599_v45 = vpop.f32.mrb[5].mxu0  ;;  %v636_v46 = vpop.f32.mrb[4].mxu1 }
  0xe9   :  { %v7606_v47 = vpop.f32.mrb[5].mxu1 }
  0xea   :  { %v248_v48 = vld [vmem:[#allocation2] sm:$0x3] }
  0xeb   :  { %v325_v49 = vadd.f32 %v321_v40, %v248_v48  ;;  %v356_v50 = vld [vmem:[#allocation2 + $0x10] sm:$0x3] }
  0xec   :  { %v430_v51 = vadd.f32 %v426_v41, %v356_v50 }
  0xed   :  { %8281 = vtanh.f32 %v325_v49  ;;  %v7156_v54 = vmul.f32 -1.442695, %v325_v49 }
  0xee   :  { %8283 = vtanh.f32 %v430_v51  ;;  %v7159_v55 = vmul.f32 -1.442695, %v430_v51 }
  0xef   :  { %8285 = vpow2.f32 %v7156_v54 }
  0xf0   :  { %8287 = vpow2.f32 %v7159_v55 }
  0xf7   :  { %v8282_v52 = vpop.eup %8281 }
  0xf8   :  { %335 = vrot.lane.b32.xlu1 %v8282_v52, %s8801_s3  ;;  %v8284_v53 = vpop.eup %8283 }
  0xf9   :  { %v8286_v58 = vpop.eup %8285 }
  0xfa   :  { %v329_v59 = vadd.f32 1.0, %v8286_v58  ;;  %v8288_v61 = vpop.eup %8287  ;;  %v670_v58 = vld [vmem:[#allocation2 + $0x2] sm:$0x3] }
  0xfb   :  { %v434_v63 = vadd.f32 1.0, %v8288_v61 }
  0xfc   :  { %440 = vrot.lane.b32.xlu1 %v8284_v53, %s8801_s3 }
 0x154   :  { %v134_v56 = vpop.permute.xlu0 %133 }
 0x155   :  { %139 = vst.msk [vmem:[#allocation2 + $0x28] sm:$0xff] %vm126_vm2, %v134_v56 }
 0x158   :  { %v242_v57 = vpop.permute.xlu0 %241 }
 0x159   :  { %247 = vst.msk [vmem:[#allocation2 + $0x38] sm:$0xff] %vm126_vm2, %v242_v57 }
 0x15c   :  { %v461_v60 = vld [vmem:[#allocation2 + $0x2e] sm:$0x3] }
 0x15d   :  { %v535_v62 = vadd.f32 %v531_v44, %v461_v60 }
 0x15f   :  { %8289 = vtanh.f32 %v535_v62  ;;  %v7162_v10 = vmul.f32 -1.442695, %v535_v62  ;;  %v775_v62 = vld [vmem:[#allocation2 + $0x12] sm:$0x3] }
 0x160   :  { %8291 = vrcp.f32 %v329_v59  ;;  %v566_v0 = vld [vmem:[#allocation2 + $0x3e] sm:$0x3] }
 0x161   :  { %v640_v1 = vadd.f32 %v636_v46, %v566_v0 }
 0x163   :  { %8293 = vtanh.f32 %v640_v1  ;;  %v7165_v11 = vmul.f32 -1.442695, %v640_v1 }
 0x164   :  { %8295 = vrcp.f32 %v434_v63 }
 0x165   :  { %8297 = vpow2.f32 %v7162_v10 }
 0x166   :  { %8299 = vpow2.f32 %v7165_v11 }
 0x169   :  { %v8290_v2 = vpop.eup %8289 }
 0x16a   :  { %v8292_v3 = vpop.eup %8291  ;;  %545 = vrot.lane.b32.xlu0 %v8290_v2, %s8801_s3  ;;  %v336_v4 = vpop.permute.xlu1 %335 }
 0x16b   :  { %v338_v5 = vmul.f32 %v8292_v3, %v336_v4  ;;  %v333_v20 = vmul.f32 0.0, %v8292_v3 }
 0x16d   :  { %v8294_v6 = vpop.eup %8293 }
 0x16e   :  { %v8296_v7 = vpop.eup %8295  ;;  %650 = vrot.lane.b32.xlu1 %v8294_v6, %s8801_s3  ;;  %v441_v8 = vpop.permute.xlu1 %440  ;;  %340 = vrot.lane.b32.xlu0 %v338_v5, %s8802_s25 }
 0x16f   :  { %v443_v9 = vmul.f32 %v8296_v7, %v441_v8  ;;  %v8298_v12 = vpop.eup %8297  ;;  %v438_v31 = vmul.f32 0.0, %v8296_v7 }
 0x170   :  { %v539_v13 = vadd.f32 1.0, %v8298_v12  ;;  %v8300_v14 = vpop.eup %8299 }
 0x171   :  { %v644_v15 = vadd.f32 1.0, %v8300_v14 }
 0x172   :  { %445 = vrot.lane.b32.xlu1 %v443_v9, %s8802_s25  ;;  %8301 = vrcp.f32 %v539_v13  ;;  %v987_v13 = vld [vmem:[#allocation2 + $0x3c] sm:$0x3] }
 0x173   :  { %8303 = vrcp.f32 %v644_v15 }
 0x17c   :  { %v8302_v16 = vpop.eup %8301 }
 0x17d   :  { %v8304_v23 = vpop.eup %8303  ;;  %v543_v37 = vmul.f32 0.0, %v8302_v16 }
 0x17e   :  { %v648_v41 = vmul.f32 0.0, %v8304_v23 }
 0x1dc   :  { %v546_v17 = vpop.permute.xlu0 %545 }
 0x1dd   :  { %v548_v18 = vmul.f32 %v8302_v16, %v546_v17 }
 0x1df   :  { %550 = vrot.lane.b32.xlu0 %v548_v18, %s8802_s25 }
 0x1e0   :  { %v651_v24 = vpop.permute.xlu1 %650  ;;  %v341_v25 = vpop.permute.xlu0 %340 }
 0x1e1   :  { %v653_v26 = vmul.f32 %v8304_v23, %v651_v24  ;;  %v8979_v30 = vadd.f32 %v341_v25, %v333_v20 }
 0x1e3   :  { %8305 = vtanh.f32 %v8979_v30  ;;  %655 = vrot.lane.b32.xlu1 %v653_v26, %s8802_s25 }
 0x1e4   :  { %v446_v32 = vpop.permute.xlu1 %445 }
 0x1e5   :  { %v8983_v33 = vadd.f32 %v446_v32, %v438_v31 }
 0x1e7   :  { %8307 = vtanh.f32 %v8983_v33 }
 0x1ed   :  { %v8306_v34 = vpop.eup %8305 }
 0x1ee   :  { %346 = vrot.lane.b32.xlu0 %v8306_v34, %s8802_s25 }
 0x1f1   :  { %v8308_v35 = vpop.eup %8307 }
 0x1f2   :  { %451 = vrot.lane.b32.xlu1 %v8308_v35, %s8802_s25 }
 0x251   :  { %v551_v38 = vpop.permute.xlu0 %550 }
 0x252   :  { %v8988_v40 = vadd.f32 %v551_v38, %v543_v37 }
 0x254   :  { %8309 = vtanh.f32 %v8988_v40 }
 0x255   :  { %v656_v42 = vpop.permute.xlu1 %655 }
 0x256   :  { %v8991_v43 = vadd.f32 %v656_v42, %v648_v41 }
 0x258   :  { %8311 = vtanh.f32 %v8991_v43 }
 0x25e   :  { %v8310_v44 = vpop.eup %8309 }
 0x25f   :  { %556 = vrot.lane.b32.xlu0 %v8310_v44, %s8802_s25 }
 0x260   :  { %v347_v45 = vpop.permute.xlu0 %346 }
 0x261   :  { %v349_v46 = vmul.f32 %v8292_v3, %v347_v45 }
 0x262   :  { %v8312_v47 = vpop.eup %8311 }
 0x263   :  { %661 = vrot.lane.b32.xlu1 %v8312_v47, %s8802_s25  ;;  %351 = vrot.lane.b32.xlu0 %v349_v46, %s8803_s26 }
 0x264   :  { %v452_v48 = vpop.permute.xlu1 %451 }
 0x265   :  { %v454_v49 = vmul.f32 %v8296_v7, %v452_v48  ;;  %v880_v7 = vld [vmem:[#allocation2 + $0x2c] sm:$0x3] }
 0x267   :  { %456 = vrot.lane.b32.xlu1 %v454_v49, %s8803_s26 }
 0x2d1   :  { %v557_v50 = vpop.permute.xlu0 %556 }
 0x2d2   :  { %v8998_v51 = vmul.f32 %v8302_v16, %v557_v50 }
 0x2d4   :  { %883 = vrot.lane.b32.xlu0 %v8998_v51, %s8803_s26 }
 0x2d5   :  { %v662_v52 = vpop.permute.xlu1 %661  ;;  %v352_v53 = vpop.permute.xlu0 %351 }
 0x2d6   :  { %v9002_v54 = vmul.f32 %v8304_v23, %v662_v52  ;;  %355 = vst.msk [vmem:[#allocation3] sm:$0x3] %vm354_vm3, %v352_v53  ;;  %7612 = vmatmul.mubr.msk.f32.vlgmr.msra.gmra.mrb[6].mxu0 %vm251_vm4, %v352_v53 }
 0x2d7   :  { %8085 = vmatpush3.bf16.msra.mxu0 %v8921_v27  ;;  %7625 = vmatprep.mubr.msk.f32.mxu0 %vm8798_vm1, %v8799_v28 }
 0x2d8   :  { %990 = vrot.lane.b32.xlu1 %v9002_v54, %s8803_s26  ;;  %8089 = vmatprep.subr.bf16.mxu0 %v8797_v21 }
 0x2d9   :  { %v457_v55 = vpop.permute.xlu1 %456 }
 0x2da   :  { %460 = vst.msk [vmem:[#allocation3 + $0x10] sm:$0x3] %vm354_vm3, %v457_v55  ;;  %7619 = vmatmul.mubr.msk.f32.vlgmr.msra.gmra.mrb[6].mxu1 %vm251_vm4, %v457_v55 }
 0x2db   :  { %8088 = vmatpush3.bf16.msra.mxu1 %v8926_v29  ;;  %7632 = vmatprep.mubr.msk.f32.mxu1 %vm8798_vm1, %v8799_v28 }
 0x2dc   :  { %8092 = vmatprep.subr.bf16.mxu1 %v8797_v21 }
 0x346   :  { %v884_v56 = vpop.permute.xlu0 %883 }
 0x347   :  { %7626 = vmatmul.mubr.msk.f32.vlgmr.msra.gmra.mrb[8].mxu0 %vm251_vm4, %v884_v56 }
 0x348   :  { %8091 = vmatpush3.bf16.msra.mxu0 %v8897_v19  ;;  %7639 = vmatprep.mubr.msk.f32.mxu0 %vm8798_vm1, %v8799_v28 }
 0x349   :  { %8095 = vmatprep.subr.bf16.mxu0 %v8797_v21 }
 0x34a   :  { %v991_v57 = vpop.permute.xlu1 %990 }
 0x34b   :  { %7633 = vmatmul.mubr.msk.f32.vlgmr.msra.gmra.mrb[8].mxu1 %vm251_vm4, %v991_v57 }
 0x34c   :  { %8094 = vmatpush3.bf16.msra.mxu1 %v8903_v22  ;;  %7646 = vmatprep.mubr.msk.f32.mxu1 %vm8798_vm1, %v8799_v28 }
 0x34d   :  { %8098 = vmatprep.subr.bf16.mxu1 %v8797_v21 }
 0x3a9   :  { %v741_v59 = vpop.f32.mrb[6].mxu0 }
 0x3aa   :  { %v745_v60 = vadd.f32 %v741_v59, %v670_v58  ;;  %v7613_v61 = vpop.f32.mrb[7].mxu0 }
 0x3ac   :  { %8313 = vtanh.f32 %v745_v60  ;;  %v7167_v4 = vmul.f32 -1.442695, %v745_v60 }
 0x3ad   :  { %v846_v63 = vpop.f32.mrb[6].mxu1 }
 0x3ae   :  { %v850_v0 = vadd.f32 %v846_v63, %v775_v62  ;;  %v7620_v1 = vpop.f32.mrb[7].mxu1 }
 0x3b0   :  { %8315 = vtanh.f32 %v850_v0  ;;  %v7171_v5 = vmul.f32 -1.442695, %v850_v0 }
 0x3b1   :  { %8317 = vpow2.f32 %v7167_v4 }
 0x3b2   :  { %8319 = vpow2.f32 %v7171_v5 }
 0x3b6   :  { %v8314_v2 = vpop.eup %8313 }
 0x3b7   :  { %755 = vrot.lane.b32.xlu0 %v8314_v2, %s8801_s3 }
 0x3ba   :  { %v8316_v3 = vpop.eup %8315 }
 0x3bb   :  { %860 = vrot.lane.b32.xlu1 %v8316_v3, %s8801_s3  ;;  %v8318_v6 = vpop.eup %8317 }
 0x3bc   :  { %v749_v9 = vadd.f32 1.0, %v8318_v6  ;;  %v8320_v12 = vpop.eup %8319 }
 0x3bd   :  { %v854_v15 = vadd.f32 1.0, %v8320_v12  ;;  %v1094_v12 = vld [vmem:[#allocation2 + $0x4] sm:$0x3] }
 0x41a   :  { %v953_v8 = vpop.f32.mrb[8].mxu0 }
 0x41b   :  { %v957_v10 = vadd.f32 %v953_v8, %v880_v7  ;;  %v7627_v11 = vpop.f32.mrb[9].mxu0 }
 0x41d   :  { %8321 = vtanh.f32 %v957_v10  ;;  %v7175_v34 = vmul.f32 -1.442695, %v957_v10 }
 0x41e   :  { %v1060_v14 = vpop.f32.mrb[8].mxu1  ;;  %8323 = vrcp.f32 %v749_v9 }
 0x41f   :  { %v1064_v16 = vadd.f32 %v1060_v14, %v987_v13  ;;  %v7634_v17 = vpop.f32.mrb[9].mxu1 }
 0x421   :  { %8325 = vtanh.f32 %v1064_v16  ;;  %v7179_v35 = vmul.f32 -1.442695, %v1064_v16  ;;  %v1199_v16 = vld [vmem:[#allocation2 + $0x14] sm:$0x3] }
 0x422   :  { %8327 = vrcp.f32 %v854_v15 }
 0x423   :  { %8329 = vpow2.f32 %v7175_v34 }
 0x424   :  { %8331 = vpow2.f32 %v7179_v35 }
 0x427   :  { %v8322_v18 = vpop.eup %8321 }
 0x428   :  { %967 = vrot.lane.b32.xlu0 %v8322_v18, %s8801_s3  ;;  %v8324_v20 = vpop.eup %8323 }
 0x429   :  { %v756_v23 = vpop.permute.xlu0 %755  ;;  %v753_v47 = vmul.f32 %v8324_v20, %v8979_v30 }
 0x42a   :  { %v758_v24 = vmul.f32 %v8324_v20, %v756_v23 }
 0x42b   :  { %v8326_v25 = vpop.eup %8325 }
 0x42c   :  { %1074 = vrot.lane.b32.xlu1 %v8326_v25, %s8801_s3  ;;  %760 = vrot.lane.b32.xlu0 %v758_v24, %s8802_s25  ;;  %v8328_v26 = vpop.eup %8327 }
 0x42d   :  { %v861_v31 = vpop.permute.xlu1 %860  ;;  %v8330_v37 = vpop.eup %8329  ;;  %v858_v55 = vmul.f32 %v8328_v26, %v8983_v33 }
 0x42e   :  { %v863_v32 = vmul.f32 %v8328_v26, %v861_v31  ;;  %v961_v38 = vadd.f32 1.0, %v8330_v37  ;;  %v8332_v41 = vpop.eup %8331 }
 0x42f   :  { %v1068_v42 = vadd.f32 1.0, %v8332_v41 }
 0x430   :  { %865 = vrot.lane.b32.xlu1 %v863_v32, %s8802_s25  ;;  %8333 = vrcp.f32 %v961_v38  ;;  %v1304_v32 = vld [vmem:[#allocation2 + $0x2a] sm:$0x3] }
 0x431   :  { %8335 = vrcp.f32 %v1068_v42  ;;  %v1411_v42 = vld [vmem:[#allocation2 + $0x3a] sm:$0x3] }
 0x43a   :  { %v8334_v44 = vpop.eup %8333 }
 0x43b   :  { %v8336_v48 = vpop.eup %8335  ;;  %v965_v59 = vmul.f32 %v8334_v44, %v8988_v40 }
 0x43c   :  { %v1072_v33 = vmul.f32 %v8336_v48, %v8991_v43 }
 0x49a   :  { %v968_v45 = vpop.permute.xlu0 %967 }
 0x49b   :  { %v970_v46 = vmul.f32 %v8334_v44, %v968_v45 }
 0x49d   :  { %972 = vrot.lane.b32.xlu0 %v970_v46, %s8802_s25 }
 0x49e   :  { %v1075_v49 = vpop.permute.xlu1 %1074  ;;  %v761_v50 = vpop.permute.xlu0 %760 }
 0x49f   :  { %v1077_v52 = vmul.f32 %v8336_v48, %v1075_v49  ;;  %v9036_v53 = vadd.f32 %v761_v50, %v753_v47 }
 0x4a1   :  { %8337 = vtanh.f32 %v9036_v53  ;;  %1079 = vrot.lane.b32.xlu1 %v1077_v52, %s8802_s25 }
 0x4a2   :  { %v866_v56 = vpop.permute.xlu1 %865 }
 0x4a3   :  { %v9041_v57 = vadd.f32 %v866_v56, %v858_v55 }
 0x4a5   :  { %8339 = vtanh.f32 %v9041_v57 }
 0x4ab   :  { %v8338_v58 = vpop.eup %8337 }
 0x4ac   :  { %766 = vrot.lane.b32.xlu0 %v8338_v58, %s8802_s25 }
 0x4af   :  { %v8340_v30 = vpop.eup %8339 }
 0x4b0   :  { %871 = vrot.lane.b32.xlu1 %v8340_v30, %s8802_s25 }
 0x50f   :  { %v973_v60 = vpop.permute.xlu0 %972 }
 0x510   :  { %v9047_v61 = vadd.f32 %v973_v60, %v965_v59 }
 0x512   :  { %8341 = vtanh.f32 %v9047_v61 }
 0x513   :  { %v1080_v62 = vpop.permute.xlu1 %1079 }
 0x514   :  { %v9051_v63 = vadd.f32 %v1080_v62, %v1072_v33 }
 0x516   :  { %8343 = vtanh.f32 %v9051_v63 }
 0x51c   :  { %v8342_v0 = vpop.eup %8341 }
 0x51d   :  { %978 = vrot.lane.b32.xlu0 %v8342_v0, %s8802_s25 }
 0x51e   :  { %v767_v1 = vpop.permute.xlu0 %766 }
 0x51f   :  { %v769_v2 = vmul.f32 %v8324_v20, %v767_v1 }
 0x520   :  { %v8344_v3 = vpop.eup %8343 }
 0x521   :  { %1085 = vrot.lane.b32.xlu1 %v8344_v3, %s8802_s25  ;;  %771 = vrot.lane.b32.xlu0 %v769_v2, %s8803_s26 }
 0x522   :  { %v872_v40 = vpop.permute.xlu1 %871 }
 0x523   :  { %v874_v4 = vmul.f32 %v8328_v26, %v872_v40 }
 0x525   :  { %876 = vrot.lane.b32.xlu1 %v874_v4, %s8803_s26 }
 0x58f   :  { %v979_v43 = vpop.permute.xlu0 %978 }
 0x590   :  { %v9058_v5 = vmul.f32 %v8334_v44, %v979_v43 }
 0x592   :  { %1307 = vrot.lane.b32.xlu0 %v9058_v5, %s8803_s26 }
 0x593   :  { %v1086_v6 = vpop.permute.xlu1 %1085  ;;  %v772_v7 = vpop.permute.xlu0 %771 }
 0x594   :  { %v9062_v8 = vmul.f32 %v8336_v48, %v1086_v6  ;;  %774 = vst.msk [vmem:[#allocation3 + $0x2] sm:$0x3] %vm354_vm3, %v772_v7  ;;  %7640 = vmatmul.mubr.msk.f32.vlgmr.msra.gmra.mrb[10].mxu0 %vm251_vm4, %v772_v7 }
 0x595   :  { %8097 = vmatpush3.bf16.msra.mxu0 %v8921_v27  ;;  %7653 = vmatprep.mubr.msk.f32.mxu0 %vm8798_vm1, %v8799_v28 }
 0x596   :  { %1414 = vrot.lane.b32.xlu1 %v9062_v8, %s8803_s26  ;;  %8101 = vmatprep.subr.bf16.mxu0 %v8797_v21 }
 0x597   :  { %v877_v9 = vpop.permute.xlu1 %876 }
 0x598   :  { %879 = vst.msk [vmem:[#allocation3 + $0x12] sm:$0x3] %vm354_vm3, %v877_v9  ;;  %7647 = vmatmul.mubr.msk.f32.vlgmr.msra.gmra.mrb[10].mxu1 %vm251_vm4, %v877_v9 }
 0x599   :  { %8100 = vmatpush3.bf16.msra.mxu1 %v8926_v29  ;;  %7660 = vmatprep.mubr.msk.f32.mxu1 %vm8798_vm1, %v8799_v28 }
 0x59a   :  { %8104 = vmatprep.subr.bf16.mxu1 %v8797_v21 }
 0x604   :  { %v1308_v10 = vpop.permute.xlu0 %1307 }
 0x605   :  { %7654 = vmatmul.mubr.msk.f32.vlgmr.msra.gmra.mrb[12].mxu0 %vm251_vm4, %v1308_v10 }
 0x606   :  { %8103 = vmatpush3.bf16.msra.mxu0 %v8897_v19  ;;  %7667 = vmatprep.mubr.msk.f32.mxu0 %vm8798_vm1, %v8799_v28 }
 0x607   :  { %8107 = vmatprep.subr.bf16.mxu0 %v8797_v21 }
 0x608   :  { %v1415_v11 = vpop.permute.xlu1 %1414 }
 0x609   :  { %7661 = vmatmul.mubr.msk.f32.vlgmr.msra.gmra.mrb[12].mxu1 %vm251_vm4, %v1415_v11 }
 0x60a   :  { %8106 = vmatpush3.bf16.msra.mxu1 %v8903_v22  ;;  %7674 = vmatprep.mubr.msk.f32.mxu1 %vm8798_vm1, %v8799_v28 }
 0x60b   :  { %8110 = vmatprep.subr.bf16.mxu1 %v8797_v21 }
 0x667   :  { %v1165_v13 = vpop.f32.mrb[10].mxu0 }
 0x668   :  { %v1169_v14 = vadd.f32 %v1165_v13, %v1094_v12  ;;  %v7641_v15 = vpop.f32.mrb[11].mxu0 }
 0x66a   :  { %8345 = vtanh.f32 %v1169_v14  ;;  %v7181_v25 = vmul.f32 -1.442695, %v1169_v14 }
 0x66b   :  { %v1270_v17 = vpop.f32.mrb[10].mxu1 }
 0x66c   :  { %v1274_v18 = vadd.f32 %v1270_v17, %v1199_v16  ;;  %v7648_v20 = vpop.f32.mrb[11].mxu1 }
 0x66e   :  { %8347 = vtanh.f32 %v1274_v18  ;;  %v7185_v26 = vmul.f32 -1.442695, %v1274_v18 }
 0x66f   :  { %8349 = vpow2.f32 %v7181_v25 }
 0x670   :  { %8351 = vpow2.f32 %v7185_v26 }
 0x674   :  { %v8346_v23 = vpop.eup %8345 }
 0x675   :  { %1179 = vrot.lane.b32.xlu0 %v8346_v23, %s8801_s3 }
 0x678   :  { %v8348_v24 = vpop.eup %8347 }
 0x679   :  { %1284 = vrot.lane.b32.xlu1 %v8348_v24, %s8801_s3  ;;  %v8350_v31 = vpop.eup %8349 }
 0x67a   :  { %v1173_v35 = vadd.f32 1.0, %v8350_v31  ;;  %v8352_v41 = vpop.eup %8351 }
 0x67b   :  { %v1278_v45 = vadd.f32 1.0, %v8352_v41 }
 0x6d8   :  { %v1377_v34 = vpop.f32.mrb[12].mxu0 }
 0x6d9   :  { %v1381_v37 = vadd.f32 %v1377_v34, %v1304_v32  ;;  %v7655_v38 = vpop.f32.mrb[13].mxu0 }
 0x6db   :  { %8353 = vtanh.f32 %v1381_v37  ;;  %v7189_v59 = vmul.f32 -1.442695, %v1381_v37 }
 0x6dc   :  { %v1484_v44 = vpop.f32.mrb[12].mxu1  ;;  %8355 = vrcp.f32 %v1173_v35 }
 0x6dd   :  { %v1488_v46 = vadd.f32 %v1484_v44, %v1411_v42  ;;  %v7662_v47 = vpop.f32.mrb[13].mxu1  ;;  %v1518_v44 = vld [vmem:[#allocation2 + $0x6] sm:$0x3] }
 0x6df   :  { %8357 = vtanh.f32 %v1488_v46  ;;  %v7193_v60 = vmul.f32 -1.442695, %v1488_v46 }
 0x6e0   :  { %8359 = vrcp.f32 %v1278_v45 }
 0x6e1   :  { %8361 = vpow2.f32 %v7189_v59 }
 0x6e2   :  { %8363 = vpow2.f32 %v7193_v60 }
 0x6e5   :  { %v8354_v48 = vpop.eup %8353 }
 0x6e6   :  { %1391 = vrot.lane.b32.xlu0 %v8354_v48, %s8801_s3  ;;  %v8356_v49 = vpop.eup %8355 }
 0x6e7   :  { %v1180_v50 = vpop.permute.xlu0 %1179  ;;  %v1177_v4 = vmul.f32 %v8356_v49, %v9036_v53 }
 0x6e8   :  { %v1182_v52 = vmul.f32 %v8356_v49, %v1180_v50 }
 0x6e9   :  { %v8358_v55 = vpop.eup %8357 }
 0x6ea   :  { %1498 = vrot.lane.b32.xlu1 %v8358_v55, %s8801_s3  ;;  %1184 = vrot.lane.b32.xlu0 %v1182_v52, %s8802_s25  ;;  %v8360_v56 = vpop.eup %8359 }
 0x6eb   :  { %v1285_v58 = vpop.permute.xlu1 %1284  ;;  %v8362_v33 = vpop.eup %8361  ;;  %v1282_v11 = vmul.f32 %v8360_v56, %v9041_v57 }
 0x6ec   :  { %v1287_v30 = vmul.f32 %v8360_v56, %v1285_v58  ;;  %v1385_v62 = vadd.f32 1.0, %v8362_v33  ;;  %v8364_v0 = vpop.eup %8363 }
 0x6ed   :  { %v1492_v1 = vadd.f32 1.0, %v8364_v0 }
 0x6ee   :  { %1289 = vrot.lane.b32.xlu1 %v1287_v30, %s8802_s25  ;;  %8365 = vrcp.f32 %v1385_v62  ;;  %v1728_v30 = vld [vmem:[#allocation2 + $0x28] sm:$0x3] }
 0x6ef   :  { %8367 = vrcp.f32 %v1492_v1  ;;  %v1835_v1 = vld [vmem:[#allocation2 + $0x38] sm:$0x3] }
 0x6f8   :  { %v8366_v2 = vpop.eup %8365 }
 0x6f9   :  { %v8368_v43 = vpop.eup %8367  ;;  %v1389_v15 = vmul.f32 %v8366_v2, %v9047_v61 }
 0x6fa   :  { %v1496_v57 = vmul.f32 %v8368_v43, %v9051_v63 }
 0x758   :  { %v1392_v3 = vpop.permute.xlu0 %1391 }
 0x759   :  { %v1394_v40 = vmul.f32 %v8366_v2, %v1392_v3 }
 0x75b   :  { %1396 = vrot.lane.b32.xlu0 %v1394_v40, %s8802_s25 }
 0x75c   :  { %v1499_v6 = vpop.permute.xlu1 %1498  ;;  %v1185_v7 = vpop.permute.xlu0 %1184 }
 0x75d   :  { %v1501_v9 = vmul.f32 %v8368_v43, %v1499_v6  ;;  %v9096_v10 = vadd.f32 %v1185_v7, %v1177_v4 }
 0x75f   :  { %8369 = vtanh.f32 %v9096_v10  ;;  %1503 = vrot.lane.b32.xlu1 %v1501_v9, %s8802_s25 }
 0x760   :  { %v1290_v12 = vpop.permute.xlu1 %1289 }
 0x761   :  { %v9101_v13 = vadd.f32 %v1290_v12, %v1282_v11 }
 0x763   :  { %8371 = vtanh.f32 %v9101_v13 }
 0x769   :  { %v8370_v14 = vpop.eup %8369 }
 0x76a   :  { %1190 = vrot.lane.b32.xlu0 %v8370_v14, %s8802_s25 }
 0x76d   :  { %v8372_v53 = vpop.eup %8371 }
 0x76e   :  { %1295 = vrot.lane.b32.xlu1 %v8372_v53, %s8802_s25 }
 0x7cd   :  { %v1397_v16 = vpop.permute.xlu0 %1396 }
 0x7ce   :  { %v9107_v17 = vadd.f32 %v1397_v16, %v1389_v15 }
 0x7d0   :  { %8373 = vtanh.f32 %v9107_v17 }
 0x7d1   :  { %v1504_v18 = vpop.permute.xlu1 %1503 }
 0x7d2   :  { %v9111_v20 = vadd.f32 %v1504_v18, %v1496_v57 }
 0x7d4   :  { %8375 = vtanh.f32 %v9111_v20 }
 0x7da   :  { %v8374_v23 = vpop.eup %8373 }
 0x7db   :  { %1402 = vrot.lane.b32.xlu0 %v8374_v23, %s8802_s25 }
 0x7dc   :  { %v1191_v24 = vpop.permute.xlu0 %1190 }
 0x7dd   :  { %v1193_v25 = vmul.f32 %v8356_v49, %v1191_v24 }
 0x7de   :  { %v8376_v26 = vpop.eup %8375 }
 0x7df   :  { %1509 = vrot.lane.b32.xlu1 %v8376_v26, %s8802_s25  ;;  %1195 = vrot.lane.b32.xlu0 %v1193_v25, %s8803_s26 }
 0x7e0   :  { %v1296_v61 = vpop.permute.xlu1 %1295 }
 0x7e1   :  { %v1298_v31 = vmul.f32 %v8360_v56, %v1296_v61 }
 0x7e3   :  { %1300 = vrot.lane.b32.xlu1 %v1298_v31, %s8803_s26 }
 0x84d   :  { %v1403_v63 = vpop.permute.xlu0 %1402 }
 0x84e   :  { %v9118_v32 = vmul.f32 %v8366_v2, %v1403_v63 }
 0x850   :  { %1731 = vrot.lane.b32.xlu0 %v9118_v32, %s8803_s26 }
 0x851   :  { %v1510_v34 = vpop.permute.xlu1 %1509  ;;  %v1196_v35 = vpop.permute.xlu0 %1195 }
 0x852   :  { %v9122_v37 = vmul.f32 %v8368_v43, %v1510_v34  ;;  %1198 = vst.msk [vmem:[#allocation3 + $0x4] sm:$0x3] %vm354_vm3, %v1196_v35  ;;  %7668 = vmatmul.mubr.msk.f32.vlgmr.msra.gmra.mrb[14].mxu0 %vm251_vm4, %v1196_v35 }
 0x853   :  { %8109 = vmatpush3.bf16.msra.mxu0 %v8921_v27  ;;  %7681 = vmatprep.mubr.msk.f32.mxu0 %vm8798_vm1, %v8799_v28 }
 0x854   :  { %1838 = vrot.lane.b32.xlu1 %v9122_v37, %s8803_s26  ;;  %8113 = vmatprep.subr.bf16.mxu0 %v8797_v21 }
 0x855   :  { %v1301_v38 = vpop.permute.xlu1 %1300 }
 0x856   :  { %1303 = vst.msk [vmem:[#allocation3 + $0x14] sm:$0x3] %vm354_vm3, %v1301_v38  ;;  %7675 = vmatmul.mubr.msk.f32.vlgmr.msra.gmra.mrb[14].mxu1 %vm251_vm4, %v1301_v38 }
 0x857   :  { %8112 = vmatpush3.bf16.msra.mxu1 %v8926_v29  ;;  %7688 = vmatprep.mubr.msk.f32.mxu1 %vm8798_vm1, %v8799_v28 }
 0x858   :  { %8116 = vmatprep.subr.bf16.mxu1 %v8797_v21 }
 0x8c2   :  { %v1732_v41 = vpop.permute.xlu0 %1731 }
 0x8c3   :  { %7682 = vmatmul.mubr.msk.f32.vlgmr.msra.gmra.mrb[16].mxu0 %vm251_vm4, %v1732_v41 }
 0x8c4   :  { %8115 = vmatpush3.bf16.msra.mxu0 %v8897_v19  ;;  %7695 = vmatprep.mubr.msk.f32.mxu0 %vm8798_vm1, %v8799_v28  ;;  %v1623_v19 = vld [vmem:[#allocation2 + $0x16] sm:$0x3] }
 0x8c5   :  { %8119 = vmatprep.subr.bf16.mxu0 %v8797_v21 }
 0x8c6   :  { %v1839_v42 = vpop.permute.xlu1 %1838 }
 0x8c7   :  { %7689 = vmatmul.mubr.msk.f32.vlgmr.msra.gmra.mrb[16].mxu1 %vm251_vm4, %v1839_v42 }
 0x8c8   :  { %8118 = vmatpush3.bf16.msra.mxu1 %v8903_v22  ;;  %7702 = vmatprep.mubr.msk.f32.mxu1 %vm8798_vm1, %v8799_v28 }
 0x8c9   :  { %8122 = vmatprep.subr.bf16.mxu1 %v8797_v21 }
 0x925   :  { %v1589_v45 = vpop.f32.mrb[14].mxu0 }
 0x926   :  { %v1593_v46 = vadd.f32 %v1589_v45, %v1518_v44  ;;  %v7669_v47 = vpop.f32.mrb[15].mxu0 }
 0x928   :  { %8377 = vtanh.f32 %v1593_v46  ;;  %v7195_v22 = vmul.f32 -1.442695, %v1593_v46 }
 0x929   :  { %v1694_v48 = vpop.f32.mrb[14].mxu1 }
 0x92a   :  { %v1698_v49 = vadd.f32 %v1694_v48, %v1623_v19  ;;  %v7676_v50 = vpop.f32.mrb[15].mxu1 }
 0x92c   :  { %8379 = vtanh.f32 %v1698_v49  ;;  %v7199_v56 = vmul.f32 -1.442695, %v1698_v49 }
 0x92d   :  { %8381 = vpow2.f32 %v7195_v22 }
 0x92e   :  { %8383 = vpow2.f32 %v7199_v56 }
 0x932   :  { %v8378_v52 = vpop.eup %8377 }
 0x933   :  { %1603 = vrot.lane.b32.xlu0 %v8378_v52, %s8801_s3 }
 0x936   :  { %v8380_v55 = vpop.eup %8379 }
 0x937   :  { %1708 = vrot.lane.b32.xlu1 %v8380_v55, %s8801_s3  ;;  %v8382_v58 = vpop.eup %8381 }
 0x938   :  { %v1597_v60 = vadd.f32 1.0, %v8382_v58  ;;  %v8384_v0 = vpop.eup %8383 }
 0x939   :  { %v1702_v3 = vadd.f32 1.0, %v8384_v0 }
 0x996   :  { %v1801_v59 = vpop.f32.mrb[16].mxu0 }
 0x997   :  { %v1805_v33 = vadd.f32 %v1801_v59, %v1728_v30  ;;  %v7683_v62 = vpop.f32.mrb[17].mxu0 }
 0x999   :  { %8385 = vtanh.f32 %v1805_v33  ;;  %v7203_v15 = vmul.f32 -1.442695, %v1805_v33 }
 0x99a   :  { %v1908_v2 = vpop.f32.mrb[16].mxu1  ;;  %8387 = vrcp.f32 %v1597_v60 }
 0x99b   :  { %v1912_v40 = vadd.f32 %v1908_v2, %v1835_v1  ;;  %v7690_v4 = vpop.f32.mrb[17].mxu1 }
 0x99d   :  { %8389 = vtanh.f32 %v1912_v40  ;;  %v7207_v16 = vmul.f32 -1.442695, %v1912_v40  ;;  %v2047_v40 = vld [vmem:[#allocation2 + $0x18] sm:$0x3] }
 0x99e   :  { %8391 = vrcp.f32 %v1702_v3 }
 0x99f   :  { %8393 = vpow2.f32 %v7203_v15 }
 0x9a0   :  { %8395 = vpow2.f32 %v7207_v16 }
 0x9a3   :  { %v8386_v43 = vpop.eup %8385 }
 0x9a4   :  { %1815 = vrot.lane.b32.xlu0 %v8386_v43, %s8801_s3  ;;  %v8388_v6 = vpop.eup %8387 }
 0x9a5   :  { %v1604_v7 = vpop.permute.xlu0 %1603  ;;  %v1601_v31 = vmul.f32 %v8388_v6, %v9096_v10 }
 0x9a6   :  { %v1606_v9 = vmul.f32 %v8388_v6, %v1604_v7 }
 0x9a7   :  { %v8390_v11 = vpop.eup %8389 }
 0x9a8   :  { %1922 = vrot.lane.b32.xlu1 %v8390_v11, %s8801_s3  ;;  %1608 = vrot.lane.b32.xlu0 %v1606_v9, %s8802_s25  ;;  %v8392_v12 = vpop.eup %8391 }
 0x9a9   :  { %v1709_v14 = vpop.permute.xlu1 %1708  ;;  %v8394_v57 = vpop.eup %8393  ;;  %v1706_v42 = vmul.f32 %v8392_v12, %v9101_v13 }
 0x9aa   :  { %v1711_v53 = vmul.f32 %v8392_v12, %v1709_v14  ;;  %v1809_v18 = vadd.f32 1.0, %v8394_v57  ;;  %v8396_v23 = vpop.eup %8395 }
 0x9ab   :  { %v1916_v24 = vadd.f32 1.0, %v8396_v23 }
 0x9ac   :  { %1713 = vrot.lane.b32.xlu1 %v1711_v53, %s8802_s25  ;;  %8397 = vrcp.f32 %v1809_v18 }
 0x9ad   :  { %8399 = vrcp.f32 %v1916_v24 }
 0x9b6   :  { %v8398_v25 = vpop.eup %8397 }
 0x9b7   :  { %v8400_v63 = vpop.eup %8399  ;;  %v1813_v47 = vmul.f32 %v8398_v25, %v9107_v17 }
 0x9b8   :  { %v1920_v13 = vmul.f32 %v8400_v63, %v9111_v20 }
 0xa16   :  { %v1816_v26 = vpop.permute.xlu0 %1815 }
 0xa17   :  { %v1818_v61 = vmul.f32 %v8398_v25, %v1816_v26 }
 0xa19   :  { %1820 = vrot.lane.b32.xlu0 %v1818_v61, %s8802_s25 }
 0xa1a   :  { %v1923_v34 = vpop.permute.xlu1 %1922  ;;  %v1609_v35 = vpop.permute.xlu0 %1608 }
 0xa1b   :  { %v1925_v38 = vmul.f32 %v8400_v63, %v1923_v34  ;;  %v9156_v41 = vadd.f32 %v1609_v35, %v1601_v31 }
 0xa1d   :  { %8401 = vtanh.f32 %v9156_v41  ;;  %1927 = vrot.lane.b32.xlu1 %v1925_v38, %s8802_s25 }
 0xa1e   :  { %v1714_v44 = vpop.permute.xlu1 %1713 }
 0xa1f   :  { %v9161_v45 = vadd.f32 %v1714_v44, %v1706_v42 }
 0xa21   :  { %8403 = vtanh.f32 %v9161_v45 }
 0xa27   :  { %v8402_v46 = vpop.eup %8401 }
 0xa28   :  { %1614 = vrot.lane.b32.xlu0 %v8402_v46, %s8802_s25 }
 0xa2b   :  { %v8404_v10 = vpop.eup %8403 }
 0xa2c   :  { %1719 = vrot.lane.b32.xlu1 %v8404_v10, %s8802_s25 }
 0xa8b   :  { %v1821_v19 = vpop.permute.xlu0 %1820 }
 0xa8c   :  { %v9167_v48 = vadd.f32 %v1821_v19, %v1813_v47 }
 0xa8e   :  { %8405 = vtanh.f32 %v9167_v48 }
 0xa8f   :  { %v1928_v49 = vpop.permute.xlu1 %1927 }
 0xa90   :  { %v9171_v50 = vadd.f32 %v1928_v49, %v1920_v13 }
 0xa92   :  { %8407 = vtanh.f32 %v9171_v50 }
 0xa98   :  { %v8406_v52 = vpop.eup %8405 }
 0xa99   :  { %1826 = vrot.lane.b32.xlu0 %v8406_v52, %s8802_s25 }
 0xa9a   :  { %v1615_v55 = vpop.permute.xlu0 %1614 }
 0xa9b   :  { %v1617_v22 = vmul.f32 %v8388_v6, %v1615_v55 }
 0xa9c   :  { %v8408_v56 = vpop.eup %8407 }
 0xa9d   :  { %1933 = vrot.lane.b32.xlu1 %v8408_v56, %s8802_s25  ;;  %1619 = vrot.lane.b32.xlu0 %v1617_v22, %s8803_s26 }
 0xa9e   :  { %v1720_v17 = vpop.permute.xlu1 %1719 }
 0xa9f   :  { %v1722_v58 = vmul.f32 %v8392_v12, %v1720_v17 }
 0xaa1   :  { %1724 = vrot.lane.b32.xlu1 %v1722_v58, %s8803_s26 }
 0xb0b   :  { %v1827_v20 = vpop.permute.xlu0 %1826 }
 0xb0c   :  { %v9178_v30 = vmul.f32 %v8398_v25, %v1827_v20 }
 0xb0e   :  { %2155 = vrot.lane.b32.xlu0 %v9178_v30, %s8803_s26 }
 0xb0f   :  { %v1934_v59 = vpop.permute.xlu1 %1933  ;;  %v1620_v60 = vpop.permute.xlu0 %1619 }
 0xb10   :  { %v9182_v33 = vmul.f32 %v8400_v63, %v1934_v59  ;;  %1622 = vst.msk [vmem:[#allocation3 + $0x6] sm:$0x3] %vm354_vm3, %v1620_v60  ;;  %7696 = vmatmul.mubr.msk.f32.vlgmr.msra.gmra.mrb[18].mxu0 %vm251_vm4, %v1620_v60 }
 0xb11   :  { %8121 = vmatpush3.bf16.msra.mxu0 %v8921_v27  ;;  %7709 = vmatprep.mubr.msk.f32.mxu0 %vm8798_vm1, %v8799_v28 }
 0xb12   :  { %2262 = vrot.lane.b32.xlu1 %v9182_v33, %s8803_s26  ;;  %131 = vrot.lane.b32.xlu0 %v8958_v36, %s8800_s24 }
 0xb13   :  { %v1725_v62 = vpop.permute.xlu1 %1724  ;;  %8125 = vmatprep.subr.bf16.mxu0 %v8797_v21 }
 0xb14   :  { %1727 = vst.msk [vmem:[#allocation3 + $0x16] sm:$0x3] %vm354_vm3, %v1725_v62  ;;  %7703 = vmatmul.mubr.msk.f32.vlgmr.msra.gmra.mrb[18].mxu1 %vm251_vm4, %v1725_v62 }
 0xb15   :  { %8124 = vmatpush3.bf16.msra.mxu1 %v8926_v29  ;;  %7716 = vmatprep.mubr.msk.f32.mxu1 %vm8798_vm1, %v8799_v28 }
 0xb16   :  { %239 = vrot.lane.b32.xlu1 %v8962_v39, %s8800_s24  ;;  %8128 = vmatprep.subr.bf16.mxu1 %v8797_v21  ;;  %v1942_v39 = vld [vmem:[#allocation2 + $0x8] sm:$0x3] }
 0xb80   :  { %v2156_v27 = vpop.permute.xlu0 %2155 }
 0xb81   :  { %7710 = vmatmul.mubr.msk.f32.vlgmr.msra.gmra.mrb[20].mxu0 %vm251_vm4, %v2156_v27 }
 0xb82   :  { %7723 = vmatprep.mubr.msk.f32.mxu0 %vm8798_vm1, %v8799_v28 }
 0xb84   :  { %v2263_v36 = vpop.permute.xlu1 %2262  ;;  %v132_v0 = vpop.permute.xlu0 %131 }
 0xb85   :  { %138 = vst.msk [vmem:[#allocation2 + $0x20] sm:$0xff] %vm126_vm2, %v132_v0  ;;  %7717 = vmatmul.mubr.msk.f32.vlgmr.msra.gmra.mrb[20].mxu1 %vm251_vm4, %v2263_v36 }
 0xb86   :  { %7730 = vmatprep.mubr.msk.f32.mxu1 %vm8798_vm1, %v8799_v28 }
 0xb88   :  { %v240_v29 = vpop.permute.xlu1 %239 }
 0xb89   :  { %246 = vst.msk [vmem:[#allocation2 + $0x30] sm:$0xff] %vm126_vm2, %v240_v29 }
 0xb8c   :  { %v2152_v53 = vld [vmem:[#allocation2 + $0x26] sm:$0x3] }
 0xb90   :  { %v2259_v24 = vld [vmem:[#allocation2 + $0x36] sm:$0x3] }
 0xbe3   :  { %v2013_v1 = vpop.f32.mrb[18].mxu0 }
 0xbe4   :  { %v2017_v2 = vadd.f32 %v2013_v1, %v1942_v39  ;;  %v7697_v3 = vpop.f32.mrb[19].mxu0 }
 0xbe6   :  { %8409 = vtanh.f32 %v2017_v2  ;;  %v7209_v11 = vmul.f32 -1.442695, %v2017_v2 }
 0xbe7   :  { %v2118_v4 = vpop.f32.mrb[18].mxu1 }
 0xbe8   :  { %v2122_v43 = vadd.f32 %v2118_v4, %v2047_v40  ;;  %v7704_v6 = vpop.f32.mrb[19].mxu1  ;;  %v2368_v40 = vld [vmem:[%s10144_s4 + $0x8] sm:$0xff] }
 0xbea   :  { %8411 = vtanh.f32 %v2122_v43  ;;  %v7213_v12 = vmul.f32 -1.442695, %v2122_v43 }
 0xbeb   :  { %8413 = vpow2.f32 %v7209_v11 }
 0xbec   :  { %8415 = vpow2.f32 %v7213_v12 }
 0xbf0   :  { %v8410_v7 = vpop.eup %8409 }
 0xbf1   :  { %2027 = vrot.lane.b32.xlu0 %v8410_v7, %s8801_s3  ;;  %v7224_v7 = vld [vmem:[%s10144_s4 + $0x10] sm:$0xff] }
 0xbf4   :  { %v8412_v9 = vpop.eup %8411 }
 0xbf5   :  { %2132 = vrot.lane.b32.xlu1 %v8412_v9, %s8801_s3  ;;  %v8414_v14 = vpop.eup %8413  ;;  %v7225_v9 = vld [vmem:[%s10144_s4 + $0x18] sm:$0xff] }
 0xbf6   :  { %v2021_v16 = vadd.f32 1.0, %v8414_v14  ;;  %v8416_v23 = vpop.eup %8415  ;;  %v9251_v11 = vpack.c.bf16 %v7225_v9, %v7224_v7 }
 0xbf7   :  { %v2126_v26 = vadd.f32 1.0, %v8416_v23 }
 0xbf8   :  { %8130 = vmatpush3.bf16.msra.mxu1 %v9251_v11 }
 0xbf9   :  { %8134 = vmatprep.subr.bf16.mxu1 %v8797_v21 }
 0xc54   :  { %v2225_v15 = vpop.f32.mrb[20].mxu0 }
 0xc55   :  { %v2229_v57 = vadd.f32 %v2225_v15, %v2152_v53  ;;  %v7711_v18 = vpop.f32.mrb[21].mxu0 }
 0xc56   :  { %v7229_v18 = vld [vmem:[%s10144_s4 + $0x28] sm:$0xff] }
 0xc57   :  { %8417 = vtanh.f32 %v2229_v57  ;;  %v7217_v47 = vmul.f32 -1.442695, %v2229_v57  ;;  %v7228_v57 = vld [vmem:[%s10144_s4 + $0x20] sm:$0xff] }
 0xc58   :  { %v2332_v25 = vpop.f32.mrb[20].mxu1  ;;  %8419 = vrcp.f32 %v2021_v16 }
 0xc59   :  { %v2336_v61 = vadd.f32 %v2332_v25, %v2259_v24  ;;  %v7718_v31 = vpop.f32.mrb[21].mxu1  ;;  %v9268_v25 = vpack.c.bf16 %v7229_v18, %v7228_v57 }
 0xc5b   :  { %8421 = vtanh.f32 %v2336_v61  ;;  %v7221_v19 = vmul.f32 -1.442695, %v2336_v61  ;;  %v7233_v61 = vld [vmem:[%s10144_s4 + $0x38] sm:$0xff] }
 0xc5c   :  { %8423 = vrcp.f32 %v2126_v26  ;;  %v7232_v26 = vld [vmem:[%s10144_s4 + $0x30] sm:$0xff] }
 0xc5d   :  { %8425 = vpow2.f32 %v7217_v47 }
 0xc5e   :  { %8427 = vpow2.f32 %v7221_v19 }
 0xc61   :  { %v8418_v63 = vpop.eup %8417 }
 0xc62   :  { %2239 = vrot.lane.b32.xlu0 %v8418_v63, %s8801_s3  ;;  %v8420_v34 = vpop.eup %8419 }
 0xc63   :  { %v2028_v35 = vpop.permute.xlu0 %2027  ;;  %v2025_v58 = vmul.f32 %v8420_v34, %v9156_v41 }
 0xc64   :  { %v2030_v38 = vmul.f32 %v8420_v34, %v2028_v35  ;;  %v9287_v35 = vpack.c.bf16 %v7233_v61, %v7232_v26 }
 0xc65   :  { %v8422_v42 = vpop.eup %8421 }
 0xc66   :  { %2346 = vrot.lane.b32.xlu1 %v8422_v42, %s8801_s3  ;;  %2032 = vrot.lane.b32.xlu0 %v2030_v38, %s8802_s25  ;;  %v8424_v44 = vpop.eup %8423 }
 0xc67   :  { %v2133_v46 = vpop.permute.xlu1 %2132  ;;  %v8426_v13 = vpop.eup %8425  ;;  %v2130_v36 = vmul.f32 %v8424_v44, %v9161_v45  ;;  %v2367_v45 = vld [vmem:[%s10144_s4] sm:$0xff]  ;;  %s8804_s4 = smov 112  }
 0xc68   :  { %v2135_v10 = vmul.f32 %v8424_v44, %v2133_v46  ;;  %v2233_v49 = vadd.f32 1.0, %v8426_v13  ;;  %v8428_v52 = vpop.eup %8427  ;;  %v9237_v4 = vpack.c.bf16 %v2368_v40, %v2367_v45  ;;  %v2366_v46 = vld [vmem:[#allocation2 + $0xa] sm:$0x3]  ;;  %v2471_v13 = vld [vmem:[#allocation2 + $0x1a] sm:$0x3] }
 0xc69   :  { %v2340_v55 = vadd.f32 1.0, %v8428_v52 }
 0xc6a   :  { %2137 = vrot.lane.b32.xlu1 %v2135_v10, %s8802_s25  ;;  %8429 = vrcp.f32 %v2233_v49  ;;  %8127 = vmatpush3.bf16.msra.mxu0 %v9237_v4 }
 0xc6b   :  { %8431 = vrcp.f32 %v2340_v55  ;;  %8131 = vmatprep.subr.bf16.mxu0 %v8797_v21 }
 0xc74   :  { %v8430_v22 = vpop.eup %8429 }
 0xc75   :  { %v8432_v20 = vpop.eup %8431  ;;  %v2237_v1 = vmul.f32 %v8430_v22, %v9167_v48 }
 0xc76   :  { %v2344_v43 = vmul.f32 %v8432_v20, %v9171_v50 }
 0xcd4   :  { %v2240_v56 = vpop.permute.xlu0 %2239 }
 0xcd5   :  { %v2242_v17 = vmul.f32 %v8430_v22, %v2240_v56 }
 0xcd7   :  { %2244 = vrot.lane.b32.xlu0 %v2242_v17, %s8802_s25 }
 0xcd8   :  { %v2347_v59 = vpop.permute.xlu1 %2346  ;;  %v2033_v60 = vpop.permute.xlu0 %2032 }
 0xcd9   :  { %v2349_v62 = vmul.f32 %v8432_v20, %v2347_v59  ;;  %v9218_v27 = vadd.f32 %v2033_v60, %v2025_v58  ;;  %v2576_v59 = vld [vmem:[#allocation2 + $0x24] sm:$0x3] }
 0xcdb   :  { %8433 = vtanh.f32 %v9218_v27  ;;  %2351 = vrot.lane.b32.xlu1 %v2349_v62, %s8802_s25 }
 0xcdc   :  { %v2138_v0 = vpop.permute.xlu1 %2137 }
 0xcdd   :  { %v9223_v29 = vadd.f32 %v2138_v0, %v2130_v36 }
 0xcdf   :  { %8435 = vtanh.f32 %v9223_v29 }
 0xce5   :  { %v8434_v39 = vpop.eup %8433 }
 0xce6   :  { %2038 = vrot.lane.b32.xlu0 %v8434_v39, %s8802_s25 }
 0xce9   :  { %v8436_v41 = vpop.eup %8435 }
 0xcea   :  { %2143 = vrot.lane.b32.xlu1 %v8436_v41, %s8802_s25  ;;  %v2683_v41 = vld [vmem:[#allocation2 + $0x34] sm:$0x3] }
 0xd49   :  { %v2245_v2 = vpop.permute.xlu0 %2244 }
 0xd4a   :  { %v9229_v3 = vadd.f32 %v2245_v2, %v2237_v1 }
 0xd4c   :  { %8437 = vtanh.f32 %v9229_v3 }
 0xd4d   :  { %v2352_v6 = vpop.permute.xlu1 %2351 }
 0xd4e   :  { %v9242_v48 = vadd.f32 %v2352_v6, %v2344_v43 }
 0xd50   :  { %8439 = vtanh.f32 %v9242_v48 }
 0xd56   :  { %v8438_v50 = vpop.eup %8437 }
 0xd57   :  { %2250 = vrot.lane.b32.xlu0 %v8438_v50, %s8802_s25 }
 0xd58   :  { %v2039_v12 = vpop.permute.xlu0 %2038 }
 0xd59   :  { %v2041_v14 = vmul.f32 %v8420_v34, %v2039_v12 }
 0xd5a   :  { %v8440_v53 = vpop.eup %8439 }
 0xd5b   :  { %2357 = vrot.lane.b32.xlu1 %v8440_v53, %s8802_s25  ;;  %2043 = vrot.lane.b32.xlu0 %v2041_v14, %s8803_s26 }
 0xd5c   :  { %v2144_v15 = vpop.permute.xlu1 %2143 }
 0xd5d   :  { %v2146_v16 = vmul.f32 %v8424_v44, %v2144_v15 }
 0xd5f   :  { %2148 = vrot.lane.b32.xlu1 %v2146_v16, %s8803_s26 }
 0xdc9   :  { %v2251_v23 = vpop.permute.xlu0 %2250 }
 0xdca   :  { %v9266_v24 = vmul.f32 %v8430_v22, %v2251_v23 }
 0xdcc   :  { %2579 = vrot.lane.b32.xlu0 %v9266_v24, %s8803_s26 }
 0xdcd   :  { %v2358_v31 = vpop.permute.xlu1 %2357  ;;  %v9278_v63 = vpop.permute.xlu0 %2043 }
 0xdce   :  { %v9280_v34 = vmul.f32 %v8432_v20, %v2358_v31  ;;  %7724 = vmatmul.mubr.msk.f32.vlgmr.msra.gmra.mrb[22].mxu0 %vm251_vm4, %v9278_v63 }
 0xdcf   :  { %8133 = vmatpush3.bf16.msra.mxu0 %v9268_v25  ;;  %7737 = vmatprep.mubr.msk.f32.mxu0 %vm8798_vm1, %v8799_v28 }
 0xdd0   :  { %2686 = vrot.lane.b32.xlu1 %v9280_v34, %s8803_s26  ;;  %8137 = vmatprep.subr.bf16.mxu0 %v8797_v21 }
 0xdd1   :  { %v9292_v38 = vpop.permute.xlu1 %2148 }
 0xdd2   :  { %7731 = vmatmul.mubr.msk.f32.vlgmr.msra.gmra.mrb[22].mxu1 %vm251_vm4, %v9292_v38 }
 0xdd3   :  { %8136 = vmatpush3.bf16.msra.mxu1 %v9287_v35  ;;  %7744 = vmatprep.mubr.msk.f32.mxu1 %vm8798_vm1, %v8799_v28 }
 0xdd4   :  { %8140 = vmatprep.subr.bf16.mxu1 %v8797_v21 }
 0xe3e   :  { %v2580_v42 = vpop.permute.xlu0 %2579 }
 0xe3f   :  { %7738 = vmatmul.mubr.msk.f32.vlgmr.msra.gmra.mrb[24].mxu0 %vm251_vm4, %v2580_v42 }
 0xe40   :  { %8139 = vmatpush3.bf16.msra.mxu0 %v9237_v4  ;;  %7751 = vmatprep.mubr.msk.f32.mxu0 %vm8798_vm1, %v8799_v28 }
 0xe41   :  { %8143 = vmatprep.subr.bf16.mxu0 %v8797_v21 }
 0xe42   :  { %v2687_v44 = vpop.permute.xlu1 %2686 }
 0xe43   :  { %7745 = vmatmul.mubr.msk.f32.vlgmr.msra.gmra.mrb[24].mxu1 %vm251_vm4, %v2687_v44 }
 0xe44   :  { %8142 = vmatpush3.bf16.msra.mxu1 %v9251_v11  ;;  %7758 = vmatprep.mubr.msk.f32.mxu1 %vm8798_vm1, %v8799_v28 }
 0xe45   :  { %8146 = vmatprep.subr.bf16.mxu1 %v8797_v21 }
 0xea1   :  { %v2437_v10 = vpop.f32.mrb[22].mxu0 }
 0xea2   :  { %v2441_v47 = vadd.f32 %v2437_v10, %v2366_v46  ;;  %v7725_v19 = vpop.f32.mrb[23].mxu0 }
 0xea4   :  { %8441 = vtanh.f32 %v2441_v47  ;;  %v7223_v17 = vmul.f32 -1.442695, %v2441_v47 }
 0xea5   :  { %v2542_v49 = vpop.f32.mrb[22].mxu1 }
 0xea6   :  { %v2546_v52 = vadd.f32 %v2542_v49, %v2471_v13  ;;  %v7732_v55 = vpop.f32.mrb[23].mxu1 }
 0xea8   :  { %8443 = vtanh.f32 %v2546_v52  ;;  %v7227_v58 = vmul.f32 -1.442695, %v2546_v52 }
 0xea9   :  { %8445 = vpow2.f32 %v7223_v17 }
 0xeaa   :  { %8447 = vpow2.f32 %v7227_v58 }
 0xeae   :  { %v8442_v22 = vpop.eup %8441 }
 0xeaf   :  { %2451 = vrot.lane.b32.xlu0 %v8442_v22, %s8801_s3 }
 0xeb2   :  { %v8444_v56 = vpop.eup %8443 }
 0xeb3   :  { %2556 = vrot.lane.b32.xlu1 %v8444_v56, %s8801_s3  ;;  %v8446_v20 = vpop.eup %8445 }
 0xeb4   :  { %v2445_v62 = vadd.f32 1.0, %v8446_v20  ;;  %v8448_v39 = vpop.eup %8447 }
 0xeb5   :  { %v2550_v2 = vadd.f32 1.0, %v8448_v39 }
 0xf12   :  { %v2649_v60 = vpop.f32.mrb[24].mxu0 }
 0xf13   :  { %v2653_v36 = vadd.f32 %v2649_v60, %v2576_v59  ;;  %v7739_v0 = vpop.f32.mrb[25].mxu0 }
 0xf15   :  { %8449 = vtanh.f32 %v2653_v36  ;;  %v7231_v15 = vmul.f32 -1.442695, %v2653_v36 }
 0xf16   :  { %v2756_v1 = vpop.f32.mrb[24].mxu1  ;;  %8451 = vrcp.f32 %v2445_v62 }
 0xf17   :  { %v2760_v45 = vadd.f32 %v2756_v1, %v2683_v41  ;;  %v7746_v40 = vpop.f32.mrb[25].mxu1 }
 0xf19   :  { %8453 = vtanh.f32 %v2760_v45  ;;  %v7235_v16 = vmul.f32 -1.442695, %v2760_v45 }
 0xf1a   :  { %8455 = vrcp.f32 %v2550_v2 }
 0xf1b   :  { %8457 = vpow2.f32 %v7231_v15 }
 0xf1c   :  { %8459 = vpow2.f32 %v7235_v16 }
 0xf1f   :  { %v8450_v43 = vpop.eup %8449 }
 0xf20   :  { %2663 = vrot.lane.b32.xlu0 %v8450_v43, %s8801_s3  ;;  %v8452_v6 = vpop.eup %8451 }
 0xf21   :  { %v2452_v7 = vpop.permute.xlu0 %2451  ;;  %v2449_v44 = vmul.f32 %v8452_v6, %v9218_v27 }
 0xf22   :  { %v2454_v9 = vmul.f32 %v8452_v6, %v2452_v7  ;;  %v2790_v7 = vld [vmem:[#allocation2 + $0xc] sm:$0x3] }
 0xf23   :  { %v8454_v50 = vpop.eup %8453 }
 0xf24   :  { %2770 = vrot.lane.b32.xlu1 %v8454_v50, %s8801_s3  ;;  %2456 = vrot.lane.b32.xlu0 %v2454_v9, %s8802_s25  ;;  %v8456_v12 = vpop.eup %8455 }
 0xf25   :  { %v2557_v14 = vpop.permute.xlu1 %2556  ;;  %v8458_v57 = vpop.eup %8457  ;;  %v2554_v49 = vmul.f32 %v8456_v12, %v9223_v29 }
 0xf26   :  { %v2559_v53 = vmul.f32 %v8456_v12, %v2557_v14  ;;  %v2657_v18 = vadd.f32 1.0, %v8458_v57  ;;  %v8460_v23 = vpop.eup %8459 }
 0xf27   :  { %v2764_v26 = vadd.f32 1.0, %v8460_v23 }
 0xf28   :  { %2561 = vrot.lane.b32.xlu1 %v2559_v53, %s8802_s25  ;;  %8461 = vrcp.f32 %v2657_v18 }
 0xf29   :  { %8463 = vrcp.f32 %v2764_v26  ;;  %v3000_v26 = vld [vmem:[#allocation2 + $0x22] sm:$0x3] }
 0xf32   :  { %v8462_v61 = vpop.eup %8461 }
 0xf33   :  { %v8464_v46 = vpop.eup %8463  ;;  %v2661_v56 = vmul.f32 %v8462_v61, %v9229_v3 }
 0xf34   :  { %v2768_v29 = vmul.f32 %v8464_v46, %v9242_v48 }
 0xf92   :  { %v2664_v31 = vpop.permute.xlu0 %2663 }
 0xf93   :  { %v2666_v42 = vmul.f32 %v8462_v61, %v2664_v31 }
 0xf95   :  { %2668 = vrot.lane.b32.xlu0 %v2666_v42, %s8802_s25 }
 0xf96   :  { %v2771_v10 = vpop.permute.xlu1 %2770  ;;  %v2457_v47 = vpop.permute.xlu0 %2456 }
 0xf97   :  { %v2773_v19 = vmul.f32 %v8464_v46, %v2771_v10  ;;  %v9318_v13 = vadd.f32 %v2457_v47, %v2449_v44  ;;  %v3107_v10 = vld [vmem:[#allocation2 + $0x32] sm:$0x3] }
 0xf99   :  { %8465 = vtanh.f32 %v9318_v13  ;;  %2775 = vrot.lane.b32.xlu1 %v2773_v19, %s8802_s25 }
 0xf9a   :  { %v2562_v52 = vpop.permute.xlu1 %2561 }
 0xf9b   :  { %v9323_v55 = vadd.f32 %v2562_v52, %v2554_v49 }
 0xf9d   :  { %8467 = vtanh.f32 %v9323_v55 }
 0xfa3   :  { %v8466_v22 = vpop.eup %8465 }
 0xfa4   :  { %2462 = vrot.lane.b32.xlu0 %v8466_v22, %s8802_s25 }
 0xfa7   :  { %v8468_v27 = vpop.eup %8467 }
 0xfa8   :  { %2567 = vrot.lane.b32.xlu1 %v8468_v27, %s8802_s25 }
0x1007   :  { %v2669_v17 = vpop.permute.xlu0 %2668 }
0x1008   :  { %v9329_v58 = vadd.f32 %v2669_v17, %v2661_v56 }
0x100a   :  { %8469 = vtanh.f32 %v9329_v58 }
0x100b   :  { %v2776_v20 = vpop.permute.xlu1 %2775 }
0x100c   :  { %v9333_v59 = vadd.f32 %v2776_v20, %v2768_v29 }
0x100e   :  { %8471 = vtanh.f32 %v9333_v59 }
0x1014   :  { %v8470_v60 = vpop.eup %8469 }
0x1015   :  { %2674 = vrot.lane.b32.xlu0 %v8470_v60, %s8802_s25 }
0x1016   :  { %v2463_v62 = vpop.permute.xlu0 %2462 }
0x1017   :  { %v2465_v36 = vmul.f32 %v8452_v6, %v2463_v62 }
0x1018   :  { %v8472_v0 = vpop.eup %8471 }
0x1019   :  { %2781 = vrot.lane.b32.xlu1 %v8472_v0, %s8802_s25  ;;  %2467 = vrot.lane.b32.xlu0 %v2465_v36, %s8803_s26 }
0x101a   :  { %v2568_v3 = vpop.permute.xlu1 %2567 }
0x101b   :  { %v2570_v39 = vmul.f32 %v8456_v12, %v2568_v3 }
0x101d   :  { %2572 = vrot.lane.b32.xlu1 %v2570_v39, %s8803_s26 }
0x1087   :  { %v2675_v48 = vpop.permute.xlu0 %2674 }
0x1088   :  { %v9340_v41 = vmul.f32 %v8462_v61, %v2675_v48 }
0x108a   :  { %3003 = vrot.lane.b32.xlu0 %v9340_v41, %s8803_s26 }
0x108b   :  { %v2782_v1 = vpop.permute.xlu1 %2781  ;;  %v9344_v2 = vpop.permute.xlu0 %2467 }
0x108c   :  { %v9346_v45 = vmul.f32 %v8464_v46, %v2782_v1  ;;  %7752 = vmatmul.mubr.msk.f32.vlgmr.msra.gmra.mrb[26].mxu0 %vm251_vm4, %v9344_v2 }
0x108d   :  { %8145 = vmatpush3.bf16.msra.mxu0 %v9268_v25  ;;  %7765 = vmatprep.mubr.msk.f32.mxu0 %vm8798_vm1, %v8799_v28 }
0x108e   :  { %3110 = vrot.lane.b32.xlu1 %v9346_v45, %s8803_s26  ;;  %8149 = vmatprep.subr.bf16.mxu0 %v8797_v21 }
0x108f   :  { %v9356_v40 = vpop.permute.xlu1 %2572 }
0x1090   :  { %7759 = vmatmul.mubr.msk.f32.vlgmr.msra.gmra.mrb[26].mxu1 %vm251_vm4, %v9356_v40 }
0x1091   :  { %8148 = vmatpush3.bf16.msra.mxu1 %v9287_v35  ;;  %7772 = vmatprep.mubr.msk.f32.mxu1 %vm8798_vm1, %v8799_v28 }
0x1092   :  { %8152 = vmatprep.subr.bf16.mxu1 %v8797_v21 }
0x10fc   :  { %v3004_v43 = vpop.permute.xlu0 %3003 }
0x10fd   :  { %7766 = vmatmul.mubr.msk.f32.vlgmr.msra.gmra.mrb[28].mxu0 %vm251_vm4, %v3004_v43 }
0x10fe   :  { %8151 = vmatpush3.bf16.msra.mxu0 %v9237_v4  ;;  %7779 = vmatprep.mubr.msk.f32.mxu0 %vm8798_vm1, %v8799_v28  ;;  %v2895_v4 = vld [vmem:[#allocation2 + $0x1c] sm:$0x3] }
0x10ff   :  { %8155 = vmatprep.subr.bf16.mxu0 %v8797_v21 }
0x1100   :  { %v3111_v6 = vpop.permute.xlu1 %3110 }
0x1101   :  { %7773 = vmatmul.mubr.msk.f32.vlgmr.msra.gmra.mrb[28].mxu1 %vm251_vm4, %v3111_v6 }
0x1102   :  { %8154 = vmatpush3.bf16.msra.mxu1 %v9251_v11  ;;  %7786 = vmatprep.mubr.msk.f32.mxu1 %vm8798_vm1, %v8799_v28 }
0x1103   :  { %8158 = vmatprep.subr.bf16.mxu1 %v8797_v21 }
0x115f   :  { %v2861_v9 = vpop.f32.mrb[26].mxu0 }
0x1160   :  { %v2865_v50 = vadd.f32 %v2861_v9, %v2790_v7  ;;  %v7753_v12 = vpop.f32.mrb[27].mxu0 }
0x1162   :  { %8473 = vtanh.f32 %v2865_v50  ;;  %v7237_v11 = vmul.f32 -1.442695, %v2865_v50 }
0x1163   :  { %v2966_v14 = vpop.f32.mrb[26].mxu1 }
0x1164   :  { %v2970_v53 = vadd.f32 %v2966_v14, %v2895_v4  ;;  %v7760_v15 = vpop.f32.mrb[27].mxu1 }
0x1166   :  { %8475 = vtanh.f32 %v2970_v53  ;;  %v7241_v18 = vmul.f32 -1.442695, %v2970_v53 }
0x1167   :  { %8477 = vpow2.f32 %v7237_v11 }
0x1168   :  { %8479 = vpow2.f32 %v7241_v18 }
0x116c   :  { %v8474_v16 = vpop.eup %8473 }
0x116d   :  { %2875 = vrot.lane.b32.xlu0 %v8474_v16, %s8801_s3 }
0x1170   :  { %v8476_v57 = vpop.eup %8475 }
0x1171   :  { %2980 = vrot.lane.b32.xlu1 %v8476_v57, %s8801_s3  ;;  %v8478_v23 = vpop.eup %8477 }
0x1172   :  { %v2869_v31 = vadd.f32 1.0, %v8478_v23  ;;  %v8480_v46 = vpop.eup %8479 }
0x1173   :  { %v2974_v19 = vadd.f32 1.0, %v8480_v46 }
0x11d0   :  { %v3073_v61 = vpop.f32.mrb[28].mxu0 }
0x11d1   :  { %v3077_v42 = vadd.f32 %v3073_v61, %v3000_v26  ;;  %v7767_v44 = vpop.f32.mrb[29].mxu0 }
0x11d3   :  { %8481 = vtanh.f32 %v3077_v42  ;;  %v7245_v36 = vmul.f32 -1.442695, %v3077_v42 }
0x11d4   :  { %v3180_v47 = vpop.f32.mrb[28].mxu1  ;;  %8483 = vrcp.f32 %v2869_v31 }
0x11d5   :  { %v3184_v49 = vadd.f32 %v3180_v47, %v3107_v10  ;;  %v7774_v52 = vpop.f32.mrb[29].mxu1 }
0x11d7   :  { %8485 = vtanh.f32 %v3184_v49  ;;  %v7249_v0 = vmul.f32 -1.442695, %v3184_v49 }
0x11d8   :  { %8487 = vrcp.f32 %v2974_v19 }
0x11d9   :  { %8489 = vpow2.f32 %v7245_v36 }
0x11da   :  { %8491 = vpow2.f32 %v7249_v0 }
0x11dd   :  { %v8482_v22 = vpop.eup %8481 }
0x11de   :  { %3087 = vrot.lane.b32.xlu0 %v8482_v22, %s8801_s3  ;;  %v8484_v27 = vpop.eup %8483 }
0x11df   :  { %v2876_v56 = vpop.permute.xlu0 %2875  ;;  %v2873_v9 = vmul.f32 %v8484_v27, %v9318_v13 }
0x11e0   :  { %v2878_v17 = vmul.f32 %v8484_v27, %v2876_v56 }
0x11e1   :  { %v8486_v29 = vpop.eup %8485 }
0x11e2   :  { %3194 = vrot.lane.b32.xlu1 %v8486_v29, %s8801_s3  ;;  %2880 = vrot.lane.b32.xlu0 %v2878_v17, %s8802_s25  ;;  %v8488_v20 = vpop.eup %8487  ;;  %v3214_v17 = vld [vmem:[#allocation2 + $0xe] sm:$0x3] }
0x11e3   :  { %v2981_v60 = vpop.permute.xlu1 %2980  ;;  %v8490_v3 = vpop.eup %8489  ;;  %v2978_v15 = vmul.f32 %v8488_v20, %v9323_v55 }
0x11e4   :  { %v2983_v62 = vmul.f32 %v8488_v20, %v2981_v60  ;;  %v3081_v39 = vadd.f32 1.0, %v8490_v3  ;;  %v8492_v48 = vpop.eup %8491 }
0x11e5   :  { %v3188_v1 = vadd.f32 1.0, %v8492_v48 }
0x11e6   :  { %2985 = vrot.lane.b32.xlu1 %v2983_v62, %s8802_s25  ;;  %8493 = vrcp.f32 %v3081_v39  ;;  %v3319_v62 = vld [vmem:[#allocation2 + $0x1e] sm:$0x3] }
0x11e7   :  { %8495 = vrcp.f32 %v3188_v1 }
0x11f0   :  { %v8494_v43 = vpop.eup %8493 }
0x11f1   :  { %v8496_v50 = vpop.eup %8495  ;;  %v3085_v18 = vmul.f32 %v8494_v43, %v9329_v58 }
0x11f2   :  { %v3192_v55 = vmul.f32 %v8496_v50, %v9333_v59 }
0x1250   :  { %v3088_v6 = vpop.permute.xlu0 %3087 }
0x1251   :  { %v3090_v7 = vmul.f32 %v8494_v43, %v3088_v6  ;;  %v3424_v6 = vld [vmem:[#allocation2 + $0x20] sm:$0x3] }
0x1253   :  { %3092 = vrot.lane.b32.xlu0 %v3090_v7, %s8802_s25 }
0x1254   :  { %v3195_v12 = vpop.permute.xlu1 %3194  ;;  %v2881_v4 = vpop.permute.xlu0 %2880 }
0x1255   :  { %v3197_v14 = vmul.f32 %v8496_v50, %v3195_v12  ;;  %v9382_v53 = vadd.f32 %v2881_v4, %v2873_v9 }
0x1257   :  { %8497 = vtanh.f32 %v9382_v53  ;;  %3199 = vrot.lane.b32.xlu1 %v3197_v14, %s8802_s25  ;;  %v3531_v14 = vld [vmem:[#allocation2 + $0x30] sm:$0x3] }
0x1258   :  { %v2986_v16 = vpop.permute.xlu1 %2985 }
0x1259   :  { %v9387_v57 = vadd.f32 %v2986_v16, %v2978_v15 }
0x125b   :  { %8499 = vtanh.f32 %v9387_v57 }
0x1261   :  { %v8498_v11 = vpop.eup %8497 }
0x1262   :  { %2886 = vrot.lane.b32.xlu0 %v8498_v11, %s8802_s25 }
0x1265   :  { %v8500_v13 = vpop.eup %8499 }
0x1266   :  { %2991 = vrot.lane.b32.xlu1 %v8500_v13, %s8802_s25 }
0x12c5   :  { %v3093_v23 = vpop.permute.xlu0 %3092 }
0x12c6   :  { %v9393_v26 = vadd.f32 %v3093_v23, %v3085_v18 }
0x12c8   :  { %8501 = vtanh.f32 %v9393_v26 }
0x12c9   :  { %v3200_v61 = vpop.permute.xlu1 %3199 }
0x12ca   :  { %v9397_v31 = vadd.f32 %v3200_v61, %v3192_v55 }
0x12cc   :  { %8503 = vtanh.f32 %v9397_v31 }
0x12d2   :  { %v8502_v42 = vpop.eup %8501 }
0x12d3   :  { %3098 = vrot.lane.b32.xlu0 %v8502_v42, %s8802_s25 }
0x12d4   :  { %v2887_v44 = vpop.permute.xlu0 %2886 }
0x12d5   :  { %v2889_v46 = vmul.f32 %v8484_v27, %v2887_v44 }
0x12d6   :  { %v8504_v10 = vpop.eup %8503 }
0x12d7   :  { %3205 = vrot.lane.b32.xlu1 %v8504_v10, %s8802_s25  ;;  %2891 = vrot.lane.b32.xlu0 %v2889_v46, %s8803_s26 }
0x12d8   :  { %v2992_v58 = vpop.permute.xlu1 %2991 }
0x12d9   :  { %v2994_v47 = vmul.f32 %v8488_v20, %v2992_v58 }
0x12db   :  { %2996 = vrot.lane.b32.xlu1 %v2994_v47, %s8803_s26 }
0x1345   :  { %v3099_v59 = vpop.permute.xlu0 %3098 }
0x1346   :  { %v9404_v19 = vmul.f32 %v8494_v43, %v3099_v59 }
0x1348   :  { %3427 = vrot.lane.b32.xlu0 %v9404_v19, %s8803_s26 }
0x1349   :  { %v3206_v49 = vpop.permute.xlu1 %3205  ;;  %v9408_v52 = vpop.permute.xlu0 %2891 }
0x134a   :  { %v9410_v22 = vmul.f32 %v8496_v50, %v3206_v49  ;;  %7780 = vmatmul.mubr.msk.f32.vlgmr.msra.gmra.mrb[30].mxu0 %vm251_vm4, %v9408_v52 }
0x134b   :  { %8157 = vmatpush3.bf16.msra.mxu0 %v9268_v25  ;;  %7793 = vmatprep.mubr.msk.f32.mxu0 %vm8798_vm1, %v8799_v28 }
0x134c   :  { %3534 = vrot.lane.b32.xlu1 %v9410_v22, %s8803_s26 }
0x134d   :  { %v9419_v27 = vpop.permute.xlu1 %2996 }
0x134e   :  { %7787 = vmatmul.mubr.msk.f32.vlgmr.msra.gmra.mrb[30].mxu1 %vm251_vm4, %v9419_v27 }
0x134f   :  { %8160 = vmatpush3.bf16.msra.mxu1 %v9287_v35  ;;  %7800 = vmatprep.mubr.msk.f32.mxu1 %vm8798_vm1, %v8799_v28 }
0x13ba   :  { %v3428_v56 = vpop.permute.xlu0 %3427 }
0x13bb   :  { %7794 = vmatmul.mubr.msk.f32.vlgmr.msra.gmra.mrb[32].mxu0 %vm251_vm4, %v3428_v56 }
0x13be   :  { %v3535_v25 = vpop.permute.xlu1 %3534 }
0x13bf   :  { %7801 = vmatmul.mubr.msk.f32.vlgmr.msra.gmra.mrb[32].mxu1 %vm251_vm4, %v3535_v25 }
0x141d   :  { %v3285_v29 = vpop.f32.mrb[30].mxu0 }
0x141e   :  { %v3289_v20 = vadd.f32 %v3285_v29, %v3214_v17  ;;  %v7781_v60 = vpop.f32.mrb[31].mxu0 }
0x1420   :  { %8505 = vtanh.f32 %v3289_v20  ;;  %v7251_v48 = vmul.f32 -1.442695, %v3289_v20 }
0x1421   :  { %v3390_v36 = vpop.f32.mrb[30].mxu1 }
0x1422   :  { %v3394_v0 = vadd.f32 %v3390_v36, %v3319_v62  ;;  %v7788_v3 = vpop.f32.mrb[31].mxu1 }
0x1424   :  { %8507 = vtanh.f32 %v3394_v0  ;;  %v7255_v1 = vmul.f32 -1.442695, %v3394_v0 }
0x1425   :  { %8509 = vpow2.f32 %v7251_v48 }
0x1426   :  { %8511 = vpow2.f32 %v7255_v1 }
0x142a   :  { %v8506_v35 = vpop.eup %8505 }
0x142b   :  { %3299 = vrot.lane.b32.xlu1 %v8506_v35, %s8801_s3 }
0x142e   :  { %v8508_v39 = vpop.eup %8507 }
0x142f   :  { %3404 = vrot.lane.b32.xlu1 %v8508_v39, %s8801_s3  ;;  %v8510_v43 = vpop.eup %8509 }
0x1430   :  { %v3293_v9 = vadd.f32 1.0, %v8510_v43  ;;  %v8512_v4 = vpop.eup %8511 }
0x1431   :  { %v3398_v16 = vadd.f32 1.0, %v8512_v4  ;;  %v7268_v4 = vld [vmem:[%s10146_s5 + $0x28] sm:$0xff] }
0x148e   :  { %v3497_v7 = vpop.f32.mrb[32].mxu0 }
0x148f   :  { %v3501_v50 = vadd.f32 %v3497_v7, %v3424_v6  ;;  %v7795_v12 = vpop.f32.mrb[33].mxu0 }
0x1491   :  { %8513 = vtanh.f32 %v3501_v50  ;;  %v7259_v58 = vmul.f32 -1.442695, %v3501_v50  ;;  %v7267_v50 = vld [vmem:[%s10146_s5 + $0x20] sm:$0xff] }
0x1492   :  { %v3604_v15 = vpop.f32.mrb[32].mxu1  ;;  %8515 = vrcp.f32 %v3293_v9 }
0x1493   :  { %v3608_v11 = vadd.f32 %v3604_v15, %v3531_v14  ;;  %v7802_v13 = vpop.f32.mrb[33].mxu1  ;;  %v8169_v14 = vpack.c.bf16 %v7268_v4, %v7267_v50  ;;  %v7269_v15 = vld [vmem:[%s10146_s5 + $0x30] sm:$0xff] }
0x1495   :  { %8517 = vtanh.f32 %v3608_v11  ;;  %v7263_v47 = vmul.f32 -1.442695, %v3608_v11  ;;  %8170 = vmatprep.subr.bf16.mxu1 %v8169_v14 }
0x1496   :  { %8519 = vrcp.f32 %v3398_v16  ;;  %8172 = vmatpush3.bf16.msra.mxu1 %v8169_v14  ;;  %v7270_v16 = vld [vmem:[%s10146_s5 + $0x38] sm:$0xff] }
0x1497   :  { %8521 = vpow2.f32 %v7259_v58  ;;  %v8173_v13 = vpack.c.bf16 %v7270_v16, %v7269_v15 }
0x1498   :  { %8523 = vpow2.f32 %v7263_v47 }
0x1499   :  { %8174 = vmatprep.subr.bf16.mxu1 %v8173_v13 }
0x149a   :  { %8176 = vmatpush3.bf16.msra.mxu1 %v8173_v13 }
0x149b   :  { %v8514_v18 = vpop.eup %8513  ;;  %8180 = vmatprep.subr.bf16.mxu1 %v8797_v21 }
0x149c   :  { %3511 = vrot.lane.b32.xlu0 %v8514_v18, %s8801_s3  ;;  %v9431_v23 = vpop.eup %8515 }
0x149d   :  { %v3300_v55 = vpop.permute.xlu1 %3299  ;;  %v3297_v60 = vmul.f32 %v9431_v23, %v9382_v53 }
0x149e   :  { %v3302_v61 = vmul.f32 %v9431_v23, %v3300_v55 }
0x149f   :  { %v8518_v42 = vpop.eup %8517 }
0x14a0   :  { %3304 = vrot.lane.b32.xlu1 %v3302_v61, %s8802_s25  ;;  %3618 = vrot.lane.b32.xlu0 %v8518_v42, %s8801_s3  ;;  %v9436_v44 = vpop.eup %8519 }
0x14a1   :  { %v3405_v46 = vpop.permute.xlu1 %3404  ;;  %v8522_v59 = vpop.eup %8521  ;;  %v3402_v39 = vmul.f32 %v9436_v44, %v9387_v57 }
0x14a2   :  { %v3407_v10 = vmul.f32 %v9436_v44, %v3405_v46  ;;  %v3505_v49 = vadd.f32 1.0, %v8522_v59  ;;  %v8524_v56 = vpop.eup %8523 }
0x14a3   :  { %v3612_v25 = vadd.f32 1.0, %v8524_v56 }
0x14a4   :  { %3409 = vrot.lane.b32.xlu1 %v3407_v10, %s8802_s25  ;;  %8525 = vrcp.f32 %v3505_v49 }
0x14a5   :  { %8527 = vrcp.f32 %v3612_v25 }
0x14ae   :  { %v9440_v17 = vpop.eup %8525 }
0x14af   :  { %v9446_v62 = vpop.eup %8527 }
0x150e   :  { %v3512_v29 = vpop.permute.xlu0 %3511 }
0x150f   :  { %v3514_v20 = vmul.f32 %v9440_v17, %v3512_v29 }
0x1511   :  { %3516 = vrot.lane.b32.xlu0 %v3514_v20, %s8802_s25  ;;  %v7276_v20 = vld [vmem:[%s10147_s7 + $0x10] sm:$0xff] }
0x1512   :  { %v3305_v36 = vpop.permute.xlu1 %3304  ;;  %v3619_v0 = vpop.permute.xlu0 %3618 }
0x1513   :  { %v3307_v3 = vadd.f32 %v3305_v36, %v3297_v60  ;;  %v3621_v35 = vmul.f32 %v9446_v62, %v3619_v0  ;;  %v7277_v60 = vld [vmem:[%s10147_s7 + $0x18] sm:$0xff]  ;;  %v7279_v36 = vld [vmem:[%s10147_s7 + $0x20] sm:$0xff]  ;;  %v7280_v0 = vld [vmem:[%s10147_s7 + $0x28] sm:$0xff] }
0x1515   :  { %8529 = vtanh.f32 %v3307_v3  ;;  %3623 = vrot.lane.b32.xlu0 %v3621_v35, %s8802_s25  ;;  %v9577_v3 = vpack.c.bf16 %v7277_v60, %v7276_v20  ;;  %v7282_v35 = vld [vmem:[%s10147_s7 + $0x30] sm:$0xff] }
0x1516   :  { %v3410_v48 = vpop.permute.xlu1 %3409 }
0x1517   :  { %v3412_v1 = vadd.f32 %v3410_v48, %v3402_v39 }
0x1519   :  { %8531 = vtanh.f32 %v3412_v1  ;;  %v9583_v1 = vpack.c.bf16 %v7280_v0, %v7279_v36 }
0x151f   :  { %v8530_v43 = vpop.eup %8529 }
0x1520   :  { %3310 = vrot.lane.b32.xlu1 %v8530_v43, %s8802_s25  ;;  %v7283_v43 = vld [vmem:[%s10147_s7 + $0x38] sm:$0xff] }
0x1523   :  { %v8532_v53 = vpop.eup %8531 }
0x1524   :  { %3415 = vrot.lane.b32.xlu1 %v8532_v53, %s8802_s25  ;;  %v9594_v53 = vpack.c.bf16 %v7283_v43, %v7282_v35 }
0x1528   :  { %983 = vrot.lane.b32.xlu1 %v9058_v5, %s8804_s4  ;;  %v3509_v5 = vmul.f32 %v9440_v17, %v9393_v26 }
0x152c   :  { %1831 = vrot.lane.b32.xlu1 %v9178_v30, %s8804_s4 }
0x1530   :  { %2679 = vrot.lane.b32.xlu1 %v9340_v41, %s8804_s4  ;;  %v3616_v41 = vmul.f32 %v9446_v62, %v9397_v31 }
0x1534   :  { %666 = vrot.lane.b32.xlu1 %v9002_v54, %s8804_s4 }
0x1538   :  { %1514 = vrot.lane.b32.xlu1 %v9122_v37, %s8804_s4 }
0x153c   :  { %2362 = vrot.lane.b32.xlu1 %v9280_v34, %s8804_s4 }
0x1540   :  { %3210 = vrot.lane.b32.xlu1 %v9410_v22, %s8804_s4 }
0x1583   :  { %v3517_v57 = vpop.permute.xlu0 %3516 }
0x1584   :  { %v3519_v30 = vadd.f32 %v3517_v57, %v3509_v5  ;;  %v7264_v5 = vld [vmem:[%s10148_s6] ss:$0 sm:$0xff] }
0x1586   :  { %8533 = vtanh.f32 %v3519_v30 }
0x1587   :  { %v3624_v6 = vpop.permute.xlu0 %3623 }
0x1588   :  { %v3626_v54 = vadd.f32 %v3624_v6, %v3616_v41 }
0x158a   :  { %8535 = vtanh.f32 %v3626_v54  ;;  %v7272_v54 = vld [vmem:[%s10148_s6 + $0x1] ss:$0 sm:$0xff] }
0x1590   :  { %v8534_v7 = vpop.eup %8533 }
0x1591   :  { %3522 = vrot.lane.b32.xlu0 %v8534_v7, %s8802_s25 }
0x1592   :  { %v3311_v37 = vpop.permute.xlu1 %3310 }
0x1594   :  { %v8536_v34 = vpop.eup %8535 }
0x1595   :  { %3629 = vrot.lane.b32.xlu0 %v8536_v34, %s8802_s25 }
0x1596   :  { %v3416_v22 = vpop.permute.xlu1 %3415 }
0x1597   :  { %v3418_v55 = vmul.f32 %v9436_v44, %v3416_v22 }
0x1599   :  { %561 = vrot.lane.b32.xlu0 %v8998_v51, %s8804_s4 }
0x159a   :  { %v984_v26 = vpop.permute.xlu1 %983 }
0x159b   :  { %986 = vst.msk [vmem:[#allocation3 + $0xc] sm:$0x3] %vm564_vm5, %v984_v26 }
0x159c   :  { %2894 = vst.msk [vmem:[#allocation3 + $0xc] sm:$0x3] %vm354_vm3, %v9408_v52  ;;  %v3645_v52 = vld [vmem:[%s10146_s5 + $0x18] sm:$0xff] }
0x159d   :  { %1407 = vrot.lane.b32.xlu0 %v9118_v32, %s8804_s4 }
0x159e   :  { %v1832_v31 = vpop.permute.xlu1 %1831 }
0x159f   :  { %1834 = vst.msk [vmem:[#allocation3 + $0x8] sm:$0x3] %vm564_vm5, %v1832_v31 }
0x15a0   :  { %2046 = vst.msk [vmem:[#allocation3 + $0x8] sm:$0x3] %vm354_vm3, %v9278_v63 }
0x15a1   :  { %2255 = vrot.lane.b32.xlu0 %v9266_v24, %s8804_s4 }
0x15a2   :  { %v2680_v9 = vpop.permute.xlu1 %2679 }
0x15a3   :  { %2682 = vst.msk [vmem:[#allocation3 + $0x4] sm:$0x3] %vm564_vm5, %v2680_v9 }
0x15a5   :  { %3103 = vrot.lane.b32.xlu0 %v9404_v19, %s8804_s4  ;;  %v3313_v19 = vmul.f32 %v9431_v23, %v3311_v37 }
0x15a6   :  { %v667_v51 = vpop.permute.xlu1 %666 }
0x15a7   :  { %669 = vst.msk [vmem:[#allocation3 + $0x1e] sm:$0x3] %vm564_vm5, %v667_v51 }
0x15a9   :  { %1090 = vrot.lane.b32.xlu0 %v9062_v8, %s8804_s4  ;;  %v3642_v8 = vld [vmem:[%s10146_s5] sm:$0xff] }
0x15aa   :  { %v1515_v32 = vpop.permute.xlu1 %1514 }
0x15ab   :  { %1517 = vst.msk [vmem:[#allocation3 + $0x1a] sm:$0x3] %vm564_vm5, %v1515_v32 }
0x15ac   :  { %2575 = vst.msk [vmem:[#allocation3 + $0x1a] sm:$0x3] %vm354_vm3, %v9356_v40 }
0x15ad   :  { %1938 = vrot.lane.b32.xlu0 %v9182_v33, %s8804_s4  ;;  %v3643_v33 = vld [vmem:[%s10146_s5 + $0x8] sm:$0xff] }
0x15ae   :  { %v2363_v24 = vpop.permute.xlu1 %2362  ;;  %v8161_v40 = vpack.c.bf16 %v3643_v33, %v3642_v8 }
0x15af   :  { %2365 = vst.msk [vmem:[#allocation3 + $0x16] sm:$0x3] %vm564_vm5, %v2363_v24 }
0x15b0   :  { %8162 = vmatprep.subr.bf16.mxu0 %v8161_v40 }
0x15b1   :  { %2786 = vrot.lane.b32.xlu0 %v9346_v45, %s8804_s4  ;;  %v3644_v45 = vld [vmem:[%s10146_s5 + $0x10] sm:$0xff]  ;;  %8164 = vmatpush3.bf16.msra.mxu0 %v8161_v40 }
0x15b2   :  { %v3211_v63 = vpop.permute.xlu1 %3210  ;;  %v8165_v12 = vpack.c.bf16 %v3645_v52, %v3644_v45 }
0x15b3   :  { %3213 = vst.msk [vmem:[#allocation3 + $0x12] sm:$0x3] %vm564_vm5, %v3211_v63 }
0x15b4   :  { %8166 = vmatprep.subr.bf16.mxu0 %v8165_v12 }
0x15b5   :  { %3315 = vrot.lane.b32.xlu0 %v3313_v19, %s8803_s26  ;;  %8168 = vmatpush3.bf16.msra.mxu0 %v8165_v12 }
0x15b6   :  { %8177 = vmatprep.subr.bf16.mxu0 %v8797_v21 }
0x1603   :  { %v3523_v11 = vpop.permute.xlu0 %3522 }
0x1604   :  { %v3525_v18 = vmul.f32 %v9440_v17, %v3523_v11  ;;  %v3854_v17 = vld [vmem:[%s10147_s7 + $0x8] sm:$0xff] }
0x1606   :  { %3527 = vrot.lane.b32.xlu1 %v3525_v18, %s8804_s4 }
0x1607   :  { %v3630_v23 = vpop.permute.xlu0 %3629 }
0x1608   :  { %v3632_v61 = vmul.f32 %v9446_v62, %v3630_v23 }
0x160a   :  { %3420 = vrot.lane.b32.xlu1 %v3418_v55, %s8803_s26  ;;  %3634 = vrot.lane.b32.xlu0 %v3632_v61, %s8804_s4 }
0x160b   :  { %v562_v42 = vpop.permute.xlu0 %561 }
0x160c   :  { %565 = vst.msk [vmem:[#allocation3 + $0xe] sm:$0x3] %vm564_vm5, %v562_v42 }
0x160f   :  { %v1408_v46 = vpop.permute.xlu0 %1407 }
0x1610   :  { %1410 = vst.msk [vmem:[#allocation3 + $0xa] sm:$0x3] %vm564_vm5, %v1408_v46 }
0x1611   :  { %2470 = vst.msk [vmem:[#allocation3 + $0xa] sm:$0x3] %vm354_vm3, %v9344_v2 }
0x1613   :  { %v2256_v10 = vpop.permute.xlu0 %2255 }
0x1614   :  { %2258 = vst.msk [vmem:[#allocation3 + $0x6] sm:$0x3] %vm564_vm5, %v2256_v10 }
0x1617   :  { %v3104_v58 = vpop.permute.xlu0 %3103 }
0x1618   :  { %3106 = vst.msk [vmem:[#allocation3 + $0x2] sm:$0x3] %vm564_vm5, %v3104_v58 }
0x161b   :  { %v1091_v44 = vpop.permute.xlu0 %1090 }
0x161c   :  { %1093 = vst.msk [vmem:[#allocation3 + $0x1c] sm:$0x3] %vm564_vm5, %v1091_v44 }
0x161d   :  { %2999 = vst.msk [vmem:[#allocation3 + $0x1c] sm:$0x3] %vm354_vm3, %v9419_v27  ;;  %v3853_v27 = vld [vmem:[%s10147_s7] sm:$0xff] }
0x161f   :  { %v1939_v47 = vpop.permute.xlu0 %1938 }
0x1620   :  { %1941 = vst.msk [vmem:[#allocation3 + $0x18] sm:$0x3] %vm564_vm5, %v1939_v47 }
0x1621   :  { %2151 = vst.msk [vmem:[#allocation3 + $0x18] sm:$0x3] %vm354_vm3, %v9292_v38  ;;  %v9558_v38 = vpack.c.bf16 %v3854_v17, %v3853_v27 }
0x1623   :  { %v2787_v59 = vpop.permute.xlu0 %2786 }
0x1624   :  { %2789 = vst.msk [vmem:[#allocation3 + $0x14] sm:$0x3] %vm564_vm5, %v2787_v59 }
0x1627   :  { %v3316_v2 = vpop.permute.xlu0 %3315 }
0x1628   :  { %3318 = vst.msk [vmem:[#allocation3 + $0xe] sm:$0x3] %vm354_vm3, %v3316_v2 }
0x162f   :  { %v3639_v62 = vld [vmem:[#allocation3 + $0x8] sm:$0xff] }
0x1678   :  { %v3528_v49 = vpop.permute.xlu1 %3527 }
0x1679   :  { %3530 = vst.msk [vmem:[#allocation3] sm:$0x3] %vm564_vm5, %v3528_v49 }
0x167c   :  { %v3421_v56 = vpop.permute.xlu1 %3420  ;;  %v3635_v25 = vpop.permute.xlu0 %3634 }
0x167d   :  { %3423 = vst.msk [vmem:[#allocation3 + $0x1e] sm:$0x3] %vm354_vm3, %v3421_v56 }
0x167e   :  { %3637 = vst.msk [vmem:[#allocation3 + $0x10] sm:$0x3] %vm564_vm5, %v3635_v25 }
0x1680   :  { %v3638_v29 = vld [vmem:[#allocation3] sm:$0xff] }
0x1681   :  { %7811 = vmatprep.mubr.msk.f32.mxu0 %vm44_vm0, %v3638_v29 }
0x1682   :  { %7812 = vmatmul.mubr.msk.f32.vlgmr.msra.gmra.mrb[34].mxu0 %vm44_vm0, %v3639_v62 }
0x1683   :  { %8179 = vmatpush3.bf16.msra.mxu0 %v9558_v38  ;;  %7829 = vmatprep.mubr.msk.f32.mxu0 %vm8798_vm1, %v8799_v28 }
0x1684   :  { %v3641_v48 = vld [vmem:[#allocation3 + $0x18] sm:$0xff]  ;;  %8183 = vmatprep.subr.bf16.mxu0 %v8797_v21 }
0x1685   :  { %v3640_v39 = vld [vmem:[#allocation3 + $0x10] sm:$0xff] }
0x1686   :  { %7822 = vmatprep.mubr.msk.f32.mxu1 %vm44_vm0, %v3640_v39  ;;  %7830 = vmatmul.mubr.f32.vlgmr.msra.gmra.mrb[36].mxu0 %v8799_v28 }
0x1687   :  { %7823 = vmatmul.mubr.msk.f32.vlgmr.msra.gmra.mrb[34].mxu1 %vm44_vm0, %v3641_v48  ;;  %8185 = vmatpush3.bf16.msra.mxu0 %v9583_v1 }
0x1688   :  { %8182 = vmatpush3.bf16.msra.mxu1 %v9577_v3  ;;  %7836 = vmatprep.mubr.msk.f32.mxu1 %vm8798_vm1, %v8799_v28 }
0x1689   :  { %7843 = vmatprep.mubr.msk.f32.mxu0 %vm8798_vm1, %v8799_v28  ;;  %8186 = vmatprep.subr.bf16.mxu1 %v8797_v21 }
0x168a   :  { %8189 = vmatprep.subr.bf16.mxu0 %v8797_v21  ;;  %7844 = vmatmul.mubr.f32.vlgmr.msra.gmra.mrb[38].mxu0 %v8799_v28 }
0x168b   :  { %7837 = vmatmul.mubr.f32.vlgmr.msra.gmra.mrb[36].mxu1 %v8799_v28  ;;  %8191 = vmatpush3.bf16.msra.mxu0 %v9558_v38 }
0x168c   :  { %8188 = vmatpush3.bf16.msra.mxu1 %v9594_v53  ;;  %7850 = vmatprep.mubr.msk.f32.mxu1 %vm8798_vm1, %v8799_v28 }
0x168d   :  { %7857 = vmatprep.mubr.msk.f32.mxu0 %vm8798_vm1, %v8799_v28  ;;  %8192 = vmatprep.subr.bf16.mxu1 %v8797_v21 }
0x168e   :  { %8195 = vmatprep.subr.bf16.mxu0 %v8797_v21 }
0x168f   :  { %7851 = vmatmul.mubr.f32.vlgmr.msra.gmra.mrb[38].mxu1 %v8799_v28 }
0x1690   :  { %8194 = vmatpush3.bf16.msra.mxu1 %v9577_v3  ;;  %7864 = vmatprep.mubr.msk.f32.mxu1 %vm8798_vm1, %v8799_v28 }
0x1691   :  { %8198 = vmatprep.subr.bf16.mxu1 %v8797_v21 }
0x1755   :  { %v7813_v57 = vpop.f32.mrb[34].mxu0 }
0x1756   :  { %v3731_v30 = vadd.f32 %v7813_v57, %v7264_v5  ;;  %v3725_v41 = vpop.f32.mrb[35].mxu0 }
0x1757   :  { %v9619_v6 = vadd.f32 %v7264_v5, %v3725_v41 }
0x1758   :  { %3735 = vst.msk [vmem:[#allocation2 + $0x8] sm:$0xff] %vm126_vm2, %v3731_v30  ;;  %3740 = vrot.lane.b32.xlu0 %v3731_v30, %s8800_s24 }
0x1759   :  { %3734 = vst.msk [vmem:[#allocation2] sm:$0xff] %vm126_vm2, %v9619_v6  ;;  %v3921_v37 = vpop.f32.mrb[36].mxu0 }
0x175a   :  { %v7824_v7 = vpop.f32.mrb[34].mxu1  ;;  %v7831_v26 = vpop.f32.mrb[37].mxu0 }
0x175b   :  { %v3837_v34 = vadd.f32 %v7824_v7, %v7272_v54  ;;  %v3831_v22 = vpop.f32.mrb[35].mxu1 }
0x175c   :  { %v9628_v31 = vadd.f32 %v7272_v54, %v3831_v22 }
0x175d   :  { %3841 = vst.msk [vmem:[#allocation2 + $0x18] sm:$0xff] %vm126_vm2, %v3837_v34  ;;  %3846 = vrot.lane.b32.xlu1 %v3837_v34, %s8800_s24  ;;  %v4119_v51 = vpop.f32.mrb[38].mxu0 }
0x175e   :  { %3840 = vst.msk [vmem:[#allocation2 + $0x10] sm:$0xff] %vm126_vm2, %v9628_v31  ;;  %v4020_v9 = vpop.f32.mrb[36].mxu1  ;;  %v7845_v24 = vpop.f32.mrb[39].mxu0 }
0x175f   :  { %v7838_v32 = vpop.f32.mrb[37].mxu1 }
0x1760   :  { %v3852_v63 = vld [vmem:[#allocation2] sm:$0x3] }
0x1761   :  { %v3925_v19 = vadd.f32 %v3921_v37, %v3852_v63 }
0x1762   :  { %v4218_v8 = vpop.f32.mrb[38].mxu1 }
0x1763   :  { %v7852_v33 = vpop.f32.mrb[39].mxu1  ;;  %8537 = vtanh.f32 %v3925_v19  ;;  %v7275_v12 = vmul.f32 -1.442695, %v3925_v19 }
0x1765   :  { %v3950_v40 = vld [vmem:[#allocation2 + $0x10] sm:$0x3] }
0x1766   :  { %v4024_v45 = vadd.f32 %v4020_v9, %v3950_v40 }
0x1768   :  { %8539 = vtanh.f32 %v4024_v45  ;;  %v7278_v4 = vmul.f32 -1.442695, %v4024_v45 }
0x1769   :  { %8541 = vpow2.f32 %v7275_v12 }
0x176a   :  { %8543 = vpow2.f32 %v7278_v4 }
0x176d   :  { %v8538_v52 = vpop.eup %8537 }
0x176e   :  { %3935 = vrot.lane.b32.xlu0 %v8538_v52, %s8801_s3 }
0x1772   :  { %v8540_v50 = vpop.eup %8539 }
0x1773   :  { %4034 = vrot.lane.b32.xlu1 %v8540_v50, %s8801_s3  ;;  %v8542_v16 = vpop.eup %8541 }
0x1774   :  { %v3929_v11 = vadd.f32 1.0, %v8542_v16  ;;  %v8544_v18 = vpop.eup %8543  ;;  %v4247_v16 = vld [vmem:[#allocation2 + $0x2] sm:$0x3] }
0x1775   :  { %v4028_v55 = vadd.f32 1.0, %v8544_v18 }
0x17ca   :  { %v3741_v14 = vpop.permute.xlu0 %3740 }
0x17cb   :  { %3745 = vst.msk [vmem:[#allocation2 + $0x28] sm:$0xff] %vm126_vm2, %v3741_v14 }
0x17cf   :  { %v3847_v15 = vpop.permute.xlu1 %3846 }
0x17d0   :  { %3851 = vst.msk [vmem:[#allocation2 + $0x38] sm:$0xff] %vm126_vm2, %v3847_v15 }
0x17d2   :  { %v4049_v13 = vld [vmem:[#allocation2 + $0x2e] sm:$0x3] }
0x17d3   :  { %v4123_v23 = vadd.f32 %v4119_v51, %v4049_v13 }
0x17d5   :  { %8545 = vtanh.f32 %v4123_v23  ;;  %v7281_v56 = vmul.f32 -1.442695, %v4123_v23  ;;  %v4349_v23 = vld [vmem:[#allocation2 + $0x12] sm:$0x3] }
0x17d6   :  { %8547 = vrcp.f32 %v3929_v11 }
0x17d7   :  { %v4148_v61 = vld [vmem:[#allocation2 + $0x3e] sm:$0x3] }
0x17d8   :  { %v4222_v42 = vadd.f32 %v4218_v8, %v4148_v61 }
0x17da   :  { %8549 = vtanh.f32 %v4222_v42  ;;  %v7284_v25 = vmul.f32 -1.442695, %v4222_v42 }
0x17db   :  { %8551 = vrcp.f32 %v4028_v55 }
0x17dc   :  { %8553 = vpow2.f32 %v7281_v56 }
0x17dd   :  { %8555 = vpow2.f32 %v7284_v25 }
0x17df   :  { %v8546_v46 = vpop.eup %8545 }
0x17e0   :  { %v8548_v10 = vpop.eup %8547  ;;  %4133 = vrot.lane.b32.xlu0 %v8546_v46, %s8801_s3  ;;  %v3936_v58 = vpop.permute.xlu0 %3935 }
0x17e1   :  { %v3938_v44 = vmul.f32 %v8548_v10, %v3936_v58  ;;  %v3933_v0 = vmul.f32 0.0, %v8548_v10 }
0x17e4   :  { %v8550_v47 = vpop.eup %8549  ;;  %3940 = vrot.lane.b32.xlu0 %v3938_v44, %s8802_s25 }
0x17e5   :  { %v8552_v59 = vpop.eup %8551  ;;  %4232 = vrot.lane.b32.xlu1 %v8550_v47, %s8801_s3  ;;  %v4035_v2 = vpop.permute.xlu1 %4034 }
0x17e6   :  { %v4037_v49 = vmul.f32 %v8552_v59, %v4035_v2  ;;  %v8554_v27 = vpop.eup %8553  ;;  %v4032_v57 = vmul.f32 0.0, %v8552_v59 }
0x17e7   :  { %v4127_v17 = vadd.f32 1.0, %v8554_v27  ;;  %v8556_v29 = vpop.eup %8555 }
0x17e8   :  { %v4226_v20 = vadd.f32 1.0, %v8556_v29 }
0x17e9   :  { %4039 = vrot.lane.b32.xlu1 %v4037_v49, %s8802_s25  ;;  %8557 = vrcp.f32 %v4127_v17  ;;  %v4553_v17 = vld [vmem:[#allocation2 + $0x3c] sm:$0x3] }
0x17ea   :  { %8559 = vrcp.f32 %v4226_v20 }
0x17f3   :  { %v8558_v60 = vpop.eup %8557 }
0x17f4   :  { %v8560_v35 = vpop.eup %8559  ;;  %v4131_v37 = vmul.f32 0.0, %v8558_v60 }
0x17f5   :  { %v4230_v26 = vmul.f32 0.0, %v8560_v35 }
0x1852   :  { %v4134_v62 = vpop.permute.xlu0 %4133 }
0x1853   :  { %v4136_v36 = vmul.f32 %v8558_v60, %v4134_v62 }
0x1855   :  { %4138 = vrot.lane.b32.xlu0 %v4136_v36, %s8802_s25 }
0x1856   :  { %v3941_v48 = vpop.permute.xlu0 %3940 }
0x1857   :  { %v4233_v39 = vpop.permute.xlu1 %4232  ;;  %v9643_v5 = vadd.f32 %v3941_v48, %v3933_v0 }
0x1858   :  { %v4235_v43 = vmul.f32 %v8560_v35, %v4233_v39 }
0x1859   :  { %8561 = vtanh.f32 %v9643_v5 }
0x185a   :  { %4237 = vrot.lane.b32.xlu1 %v4235_v43, %s8802_s25 }
0x185b   :  { %v4040_v30 = vpop.permute.xlu1 %4039 }
0x185c   :  { %v9647_v41 = vadd.f32 %v4040_v30, %v4032_v57 }
0x185e   :  { %8563 = vtanh.f32 %v9647_v41 }
0x1863   :  { %v8562_v54 = vpop.eup %8561 }
0x1864   :  { %3946 = vrot.lane.b32.xlu0 %v8562_v54, %s8802_s25 }
0x1868   :  { %v8564_v7 = vpop.eup %8563 }
0x1869   :  { %4045 = vrot.lane.b32.xlu1 %v8564_v7, %s8802_s25 }
0x18c7   :  { %v4139_v34 = vpop.permute.xlu0 %4138 }
0x18c8   :  { %v9652_v22 = vadd.f32 %v4139_v34, %v4131_v37 }
0x18ca   :  { %8565 = vtanh.f32 %v9652_v22 }
0x18cc   :  { %v4238_v9 = vpop.permute.xlu1 %4237 }
0x18cd   :  { %v9655_v51 = vadd.f32 %v4238_v9, %v4230_v26 }
0x18cf   :  { %8567 = vtanh.f32 %v9655_v51 }
0x18d4   :  { %v8566_v32 = vpop.eup %8565 }
0x18d5   :  { %4144 = vrot.lane.b32.xlu0 %v8566_v32, %s8802_s25 }
0x18d6   :  { %v3947_v24 = vpop.permute.xlu0 %3946 }
0x18d7   :  { %v9659_v63 = vmul.f32 %v8548_v10, %v3947_v24 }
0x18d9   :  { %v8568_v19 = vpop.eup %8567  ;;  %4249 = vrot.lane.b32.xlu0 %v9659_v63, %s8803_s26 }
0x18da   :  { %4243 = vrot.lane.b32.xlu1 %v8568_v19, %s8802_s25 }
0x18db   :  { %v4046_v8 = vpop.permute.xlu1 %4045 }
0x18dc   :  { %v9664_v33 = vmul.f32 %v8552_v59, %v4046_v8  ;;  %v4451_v59 = vld [vmem:[#allocation2 + $0x2c] sm:$0x3] }
0x18de   :  { %4351 = vrot.lane.b32.xlu1 %v9664_v33, %s8803_s26 }
0x1947   :  { %v4145_v40 = vpop.permute.xlu0 %4144 }
0x1948   :  { %v9668_v45 = vmul.f32 %v8558_v60, %v4145_v40 }
0x194a   :  { %4453 = vrot.lane.b32.xlu0 %v9668_v45, %s8803_s26 }
0x194b   :  { %v4250_v50 = vpop.permute.xlu0 %4249 }
0x194c   :  { %v4244_v52 = vpop.permute.xlu1 %4243  ;;  %7858 = vmatmul.mubr.msk.f32.vlgmr.msra.gmra.mrb[40].mxu0 %vm251_vm4, %v4250_v50 }
0x194d   :  { %v9672_v12 = vmul.f32 %v8560_v35, %v4244_v52  ;;  %8197 = vmatpush3.bf16.msra.mxu0 %v9583_v1  ;;  %7871 = vmatprep.mubr.msk.f32.mxu0 %vm8798_vm1, %v8799_v28 }
0x194e   :  { %8201 = vmatprep.subr.bf16.mxu0 %v8797_v21 }
0x194f   :  { %4555 = vrot.lane.b32.xlu1 %v9672_v12, %s8803_s26 }
0x1950   :  { %v4352_v4 = vpop.permute.xlu1 %4351 }
0x1951   :  { %7865 = vmatmul.mubr.msk.f32.vlgmr.msra.gmra.mrb[40].mxu1 %vm251_vm4, %v4352_v4 }
0x1952   :  { %8200 = vmatpush3.bf16.msra.mxu1 %v9594_v53  ;;  %7878 = vmatprep.mubr.msk.f32.mxu1 %vm8798_vm1, %v8799_v28 }
0x1953   :  { %8204 = vmatprep.subr.bf16.mxu1 %v8797_v21 }
0x19bc   :  { %v4454_v14 = vpop.permute.xlu0 %4453 }
0x19bd   :  { %7872 = vmatmul.mubr.msk.f32.vlgmr.msra.gmra.mrb[42].mxu0 %vm251_vm4, %v4454_v14 }
0x19be   :  { %8203 = vmatpush3.bf16.msra.mxu0 %v9558_v38  ;;  %7885 = vmatprep.mubr.msk.f32.mxu0 %vm8798_vm1, %v8799_v28 }
0x19bf   :  { %8207 = vmatprep.subr.bf16.mxu0 %v8797_v21 }
0x19c1   :  { %v4556_v15 = vpop.permute.xlu1 %4555 }
0x19c2   :  { %7879 = vmatmul.mubr.msk.f32.vlgmr.msra.gmra.mrb[42].mxu1 %vm251_vm4, %v4556_v15 }
0x19c3   :  { %8206 = vmatpush3.bf16.msra.mxu1 %v9577_v3  ;;  %7892 = vmatprep.mubr.msk.f32.mxu1 %vm8798_vm1, %v8799_v28 }
0x19c4   :  { %8210 = vmatprep.subr.bf16.mxu1 %v8797_v21 }
0x1a1f   :  { %v4319_v11 = vpop.f32.mrb[40].mxu0 }
0x1a20   :  { %v4323_v13 = vadd.f32 %v4319_v11, %v4247_v16  ;;  %v7859_v18 = vpop.f32.mrb[41].mxu0 }
0x1a22   :  { %8569 = vtanh.f32 %v4323_v13  ;;  %v7286_v58 = vmul.f32 -1.442695, %v4323_v13 }
0x1a24   :  { %v4421_v55 = vpop.f32.mrb[40].mxu1 }
0x1a25   :  { %v4425_v61 = vadd.f32 %v4421_v55, %v4349_v23  ;;  %v7866_v42 = vpop.f32.mrb[41].mxu1 }
0x1a27   :  { %8571 = vtanh.f32 %v4425_v61  ;;  %v7288_v44 = vmul.f32 -1.442695, %v4425_v61 }
0x1a28   :  { %8573 = vpow2.f32 %v7286_v58 }
0x1a29   :  { %8575 = vpow2.f32 %v7288_v44 }
0x1a2c   :  { %v8570_v46 = vpop.eup %8569 }
0x1a2d   :  { %4333 = vrot.lane.b32.xlu0 %v8570_v46, %s8801_s3 }
0x1a31   :  { %v8572_v10 = vpop.eup %8571 }
0x1a32   :  { %4435 = vrot.lane.b32.xlu1 %v8572_v10, %s8801_s3  ;;  %v8574_v47 = vpop.eup %8573 }
0x1a33   :  { %v4327_v49 = vadd.f32 1.0, %v8574_v47  ;;  %v8576_v27 = vpop.eup %8575 }
0x1a34   :  { %v4429_v20 = vadd.f32 1.0, %v8576_v27 }
0x1a90   :  { %v4523_v2 = vpop.f32.mrb[42].mxu0 }
0x1a91   :  { %v4527_v56 = vadd.f32 %v4523_v2, %v4451_v59  ;;  %v7873_v25 = vpop.f32.mrb[43].mxu0 }
0x1a93   :  { %8577 = vtanh.f32 %v4527_v56  ;;  %v7290_v54 = vmul.f32 -1.442695, %v4527_v56 }
0x1a94   :  { %8579 = vrcp.f32 %v4327_v49 }
0x1a95   :  { %v4625_v29 = vpop.f32.mrb[42].mxu1 }
0x1a96   :  { %v4629_v60 = vadd.f32 %v4625_v29, %v4553_v17  ;;  %v7880_v62 = vpop.f32.mrb[43].mxu1  ;;  %v4655_v29 = vld [vmem:[#allocation2 + $0x4] sm:$0x3] }
0x1a98   :  { %8581 = vtanh.f32 %v4629_v60  ;;  %v7292_v7 = vmul.f32 -1.442695, %v4629_v60 }
0x1a99   :  { %8583 = vrcp.f32 %v4429_v20 }
0x1a9a   :  { %8585 = vpow2.f32 %v7290_v54 }
0x1a9b   :  { %8587 = vpow2.f32 %v7292_v7  ;;  %v4859_v7 = vld [vmem:[#allocation2 + $0x2a] sm:$0x3] }
0x1a9d   :  { %v8578_v36 = vpop.eup %8577 }
0x1a9e   :  { %4537 = vrot.lane.b32.xlu0 %v8578_v36, %s8801_s3  ;;  %v8580_v0 = vpop.eup %8579  ;;  %v4757_v36 = vld [vmem:[#allocation2 + $0x14] sm:$0x3] }
0x1a9f   :  { %v4334_v35 = vpop.permute.xlu0 %4333  ;;  %v4331_v8 = vmul.f32 %v8580_v0, %v9643_v5 }
0x1aa0   :  { %v4336_v39 = vmul.f32 %v8580_v0, %v4334_v35 }
0x1aa2   :  { %v8582_v48 = vpop.eup %8581  ;;  %4338 = vrot.lane.b32.xlu0 %v4336_v39, %s8802_s25 }
0x1aa3   :  { %4639 = vrot.lane.b32.xlu1 %v8582_v48, %s8801_s3  ;;  %v8584_v43 = vpop.eup %8583 }
0x1aa4   :  { %v4436_v57 = vpop.permute.xlu1 %4435  ;;  %v8586_v37 = vpop.eup %8585  ;;  %v4433_v15 = vmul.f32 %v8584_v43, %v9647_v41 }
0x1aa5   :  { %v4438_v30 = vmul.f32 %v8584_v43, %v4436_v57  ;;  %v4531_v34 = vadd.f32 1.0, %v8586_v37  ;;  %v8588_v26 = vpop.eup %8587 }
0x1aa6   :  { %v4633_v9 = vadd.f32 1.0, %v8588_v26 }
0x1aa7   :  { %4440 = vrot.lane.b32.xlu1 %v4438_v30, %s8802_s25  ;;  %8589 = vrcp.f32 %v4531_v34 }
0x1aa8   :  { %8591 = vrcp.f32 %v4633_v9 }
0x1ab1   :  { %v8590_v32 = vpop.eup %8589 }
0x1ab2   :  { %v8592_v40 = vpop.eup %8591  ;;  %v4535_v18 = vmul.f32 %v8590_v32, %v9652_v22 }
0x1ab3   :  { %v4637_v41 = vmul.f32 %v8592_v40, %v9655_v51 }
0x1b10   :  { %v4538_v24 = vpop.permute.xlu0 %4537 }
0x1b11   :  { %v4540_v19 = vmul.f32 %v8590_v32, %v4538_v24  ;;  %v4961_v24 = vld [vmem:[#allocation2 + $0x3a] sm:$0x3] }
0x1b13   :  { %4542 = vrot.lane.b32.xlu0 %v4540_v19, %s8802_s25 }
0x1b14   :  { %v4339_v50 = vpop.permute.xlu0 %4338 }
0x1b15   :  { %v4640_v52 = vpop.permute.xlu1 %4639  ;;  %v9704_v14 = vadd.f32 %v4339_v50, %v4331_v8 }
0x1b16   :  { %v4642_v4 = vmul.f32 %v8592_v40, %v4640_v52 }
0x1b17   :  { %8593 = vtanh.f32 %v9704_v14 }
0x1b18   :  { %4644 = vrot.lane.b32.xlu1 %v4642_v4, %s8802_s25 }
0x1b19   :  { %v4441_v16 = vpop.permute.xlu1 %4440 }
0x1b1a   :  { %v9709_v11 = vadd.f32 %v4441_v16, %v4433_v15 }
0x1b1c   :  { %8595 = vtanh.f32 %v9709_v11 }
0x1b21   :  { %v8594_v13 = vpop.eup %8593 }
0x1b22   :  { %4344 = vrot.lane.b32.xlu0 %v8594_v13, %s8802_s25 }
0x1b26   :  { %v8596_v5 = vpop.eup %8595 }
0x1b27   :  { %4446 = vrot.lane.b32.xlu1 %v8596_v5, %s8802_s25 }
0x1b85   :  { %v4543_v23 = vpop.permute.xlu0 %4542 }
0x1b86   :  { %v9715_v55 = vadd.f32 %v4543_v23, %v4535_v18 }
0x1b88   :  { %8597 = vtanh.f32 %v9715_v55 }
0x1b8a   :  { %v4645_v61 = vpop.permute.xlu1 %4644 }
0x1b8b   :  { %v9719_v42 = vadd.f32 %v4645_v61, %v4637_v41 }
0x1b8d   :  { %8599 = vtanh.f32 %v9719_v42 }
0x1b92   :  { %v8598_v46 = vpop.eup %8597 }
0x1b93   :  { %4548 = vrot.lane.b32.xlu0 %v8598_v46, %s8802_s25 }
0x1b94   :  { %v4345_v10 = vpop.permute.xlu0 %4344 }
0x1b95   :  { %v9723_v58 = vmul.f32 %v8580_v0, %v4345_v10 }
0x1b97   :  { %v8600_v44 = vpop.eup %8599  ;;  %4657 = vrot.lane.b32.xlu0 %v9723_v58, %s8803_s26 }
0x1b98   :  { %4650 = vrot.lane.b32.xlu1 %v8600_v44, %s8802_s25 }
0x1b99   :  { %v4447_v22 = vpop.permute.xlu1 %4446 }
0x1b9a   :  { %v9728_v47 = vmul.f32 %v8584_v43, %v4447_v22 }
0x1b9c   :  { %4759 = vrot.lane.b32.xlu1 %v9728_v47, %s8803_s26 }
0x1c05   :  { %v4549_v51 = vpop.permute.xlu0 %4548 }
0x1c06   :  { %v9732_v59 = vmul.f32 %v8590_v32, %v4549_v51 }
0x1c08   :  { %4861 = vrot.lane.b32.xlu0 %v9732_v59, %s8803_s26 }
0x1c09   :  { %v4658_v49 = vpop.permute.xlu0 %4657 }
0x1c0a   :  { %v4651_v2 = vpop.permute.xlu1 %4650  ;;  %7886 = vmatmul.mubr.msk.f32.vlgmr.msra.gmra.mrb[44].mxu0 %vm251_vm4, %v4658_v49 }
0x1c0b   :  { %v9736_v56 = vmul.f32 %v8592_v40, %v4651_v2  ;;  %8209 = vmatpush3.bf16.msra.mxu0 %v9583_v1  ;;  %7899 = vmatprep.mubr.msk.f32.mxu0 %vm8798_vm1, %v8799_v28 }
0x1c0c   :  { %8213 = vmatprep.subr.bf16.mxu0 %v8797_v21 }
0x1c0d   :  { %4963 = vrot.lane.b32.xlu1 %v9736_v56, %s8803_s26 }
0x1c0e   :  { %v4760_v25 = vpop.permute.xlu1 %4759 }
0x1c0f   :  { %7893 = vmatmul.mubr.msk.f32.vlgmr.msra.gmra.mrb[44].mxu1 %vm251_vm4, %v4760_v25 }
0x1c10   :  { %8212 = vmatpush3.bf16.msra.mxu1 %v9594_v53  ;;  %7906 = vmatprep.mubr.msk.f32.mxu1 %vm8798_vm1, %v8799_v28 }
0x1c11   :  { %8216 = vmatprep.subr.bf16.mxu1 %v8797_v21 }
0x1c7a   :  { %v4862_v27 = vpop.permute.xlu0 %4861 }
0x1c7b   :  { %7900 = vmatmul.mubr.msk.f32.vlgmr.msra.gmra.mrb[46].mxu0 %vm251_vm4, %v4862_v27 }
0x1c7c   :  { %8215 = vmatpush3.bf16.msra.mxu0 %v9558_v38  ;;  %7913 = vmatprep.mubr.msk.f32.mxu0 %vm8798_vm1, %v8799_v28 }
0x1c7d   :  { %8219 = vmatprep.subr.bf16.mxu0 %v8797_v21 }
0x1c7f   :  { %v4964_v17 = vpop.permute.xlu1 %4963 }
0x1c80   :  { %7907 = vmatmul.mubr.msk.f32.vlgmr.msra.gmra.mrb[46].mxu1 %vm251_vm4, %v4964_v17 }
0x1c81   :  { %8218 = vmatpush3.bf16.msra.mxu1 %v9577_v3  ;;  %7920 = vmatprep.mubr.msk.f32.mxu1 %vm8798_vm1, %v8799_v28 }
0x1c82   :  { %8222 = vmatprep.subr.bf16.mxu1 %v8797_v21 }
0x1cdd   :  { %v4727_v20 = vpop.f32.mrb[44].mxu0 }
0x1cde   :  { %v4731_v60 = vadd.f32 %v4727_v20, %v4655_v29  ;;  %v7887_v62 = vpop.f32.mrb[45].mxu0 }
0x1ce0   :  { %8601 = vtanh.f32 %v4731_v60  ;;  %v7294_v57 = vmul.f32 -1.442695, %v4731_v60 }
0x1ce2   :  { %v4829_v0 = vpop.f32.mrb[44].mxu1 }
0x1ce3   :  { %v4833_v35 = vadd.f32 %v4829_v0, %v4757_v36  ;;  %v7894_v39 = vpop.f32.mrb[45].mxu1 }
0x1ce5   :  { %8603 = vtanh.f32 %v4833_v35  ;;  %v7296_v30 = vmul.f32 -1.442695, %v4833_v35 }
0x1ce6   :  { %8605 = vpow2.f32 %v7294_v57 }
0x1ce7   :  { %8607 = vpow2.f32 %v7296_v30 }
0x1cea   :  { %v8602_v48 = vpop.eup %8601 }
0x1ceb   :  { %4741 = vrot.lane.b32.xlu0 %v8602_v48, %s8801_s3 }
0x1cef   :  { %v8604_v43 = vpop.eup %8603 }
0x1cf0   :  { %4843 = vrot.lane.b32.xlu1 %v8604_v43, %s8801_s3  ;;  %v8606_v54 = vpop.eup %8605 }
0x1cf1   :  { %v4735_v34 = vadd.f32 1.0, %v8606_v54  ;;  %v8608_v32 = vpop.eup %8607 }
0x1cf2   :  { %v4837_v8 = vadd.f32 1.0, %v8608_v32 }
0x1d4e   :  { %v4931_v37 = vpop.f32.mrb[46].mxu0 }
0x1d4f   :  { %v4935_v26 = vadd.f32 %v4931_v37, %v4859_v7  ;;  %v7901_v9 = vpop.f32.mrb[47].mxu0  ;;  %v4348_v37 = vmax.f32 %v9659_v63, %v9723_v58  ;;  %v4552_v63 = vmax.f32 %v9668_v45, %v9732_v59 }
0x1d50   :  { %v4450_v9 = vmax.f32 %v9664_v33, %v9728_v47 }
0x1d51   :  { %8609 = vtanh.f32 %v4935_v26  ;;  %v7298_v41 = vmul.f32 -1.442695, %v4935_v26 }
0x1d52   :  { %8611 = vrcp.f32 %v4735_v34 }
0x1d53   :  { %v5033_v19 = vpop.f32.mrb[46].mxu1 }
0x1d54   :  { %v5037_v40 = vadd.f32 %v5033_v19, %v4961_v24  ;;  %v7908_v52 = vpop.f32.mrb[47].mxu1 }
0x1d56   :  { %8613 = vtanh.f32 %v5037_v40  ;;  %v7300_v61 = vmul.f32 -1.442695, %v5037_v40 }
0x1d57   :  { %8615 = vrcp.f32 %v4837_v8 }
0x1d58   :  { %8617 = vpow2.f32 %v7298_v41 }
0x1d59   :  { %8619 = vpow2.f32 %v7300_v61 }
0x1d5b   :  { %v8610_v50 = vpop.eup %8609 }
0x1d5c   :  { %4945 = vrot.lane.b32.xlu0 %v8610_v50, %s8801_s3  ;;  %v8612_v4 = vpop.eup %8611  ;;  %v4654_v50 = vmax.f32 %v9672_v12, %v9736_v56  ;;  %v5063_v56 = vld [vmem:[#allocation2 + $0x6] sm:$0x3] }
0x1d5d   :  { %v4742_v15 = vpop.permute.xlu0 %4741  ;;  %v4739_v25 = vmul.f32 %v8612_v4, %v9704_v14 }
0x1d5e   :  { %v4744_v16 = vmul.f32 %v8612_v4, %v4742_v15 }
0x1d60   :  { %v8614_v13 = vpop.eup %8613  ;;  %4746 = vrot.lane.b32.xlu0 %v4744_v16, %s8802_s25 }
0x1d61   :  { %5047 = vrot.lane.b32.xlu1 %v8614_v13, %s8801_s3  ;;  %v8616_v5 = vpop.eup %8615  ;;  %v5165_v13 = vld [vmem:[#allocation2 + $0x16] sm:$0x3] }
0x1d62   :  { %v4844_v18 = vpop.permute.xlu1 %4843  ;;  %v8618_v46 = vpop.eup %8617  ;;  %v4841_v62 = vmul.f32 %v8616_v5, %v9709_v11 }
0x1d63   :  { %v4846_v23 = vmul.f32 %v8616_v5, %v4844_v18  ;;  %v4939_v10 = vadd.f32 1.0, %v8618_v46  ;;  %v8620_v44 = vpop.eup %8619 }
0x1d64   :  { %v5041_v22 = vadd.f32 1.0, %v8620_v44 }
0x1d65   :  { %4848 = vrot.lane.b32.xlu1 %v4846_v23, %s8802_s25  ;;  %8621 = vrcp.f32 %v4939_v10 }
0x1d66   :  { %8623 = vrcp.f32 %v5041_v22  ;;  %v5267_v22 = vld [vmem:[#allocation2 + $0x28] sm:$0x3] }
0x1d6f   :  { %v8622_v51 = vpop.eup %8621 }
0x1d70   :  { %v8624_v27 = vpop.eup %8623  ;;  %v4943_v39 = vmul.f32 %v8622_v51, %v9715_v55 }
0x1d71   :  { %v5045_v11 = vmul.f32 %v8624_v27, %v9719_v42 }
0x1dce   :  { %v4946_v2 = vpop.permute.xlu0 %4945 }
0x1dcf   :  { %v4948_v49 = vmul.f32 %v8622_v51, %v4946_v2 }
0x1dd1   :  { %4950 = vrot.lane.b32.xlu0 %v4948_v49, %s8802_s25 }
0x1dd2   :  { %v4747_v29 = vpop.permute.xlu0 %4746 }
0x1dd3   :  { %v5048_v17 = vpop.permute.xlu1 %5047  ;;  %v9768_v60 = vadd.f32 %v4747_v29, %v4739_v25 }
0x1dd4   :  { %v5050_v20 = vmul.f32 %v8624_v27, %v5048_v17  ;;  %v5369_v17 = vld [vmem:[#allocation2 + $0x38] sm:$0x3] }
0x1dd5   :  { %8625 = vtanh.f32 %v9768_v60 }
0x1dd6   :  { %5052 = vrot.lane.b32.xlu1 %v5050_v20, %s8802_s25 }
0x1dd7   :  { %v4849_v36 = vpop.permute.xlu1 %4848 }
0x1dd8   :  { %v9773_v0 = vadd.f32 %v4849_v36, %v4841_v62 }
0x1dda   :  { %8627 = vtanh.f32 %v9773_v0 }
0x1ddf   :  { %v8626_v35 = vpop.eup %8625 }
0x1de0   :  { %4752 = vrot.lane.b32.xlu0 %v8626_v35, %s8802_s25 }
0x1de4   :  { %v8628_v14 = vpop.eup %8627 }
0x1de5   :  { %4854 = vrot.lane.b32.xlu1 %v8628_v14, %s8802_s25 }
0x1e43   :  { %v4951_v48 = vpop.permute.xlu0 %4950 }
0x1e44   :  { %v9779_v43 = vadd.f32 %v4951_v48, %v4943_v39 }
0x1e46   :  { %8629 = vtanh.f32 %v9779_v43 }
0x1e48   :  { %v5053_v57 = vpop.permute.xlu1 %5052 }
0x1e49   :  { %v9783_v30 = vadd.f32 %v5053_v57, %v5045_v11 }
0x1e4b   :  { %8631 = vtanh.f32 %v9783_v30 }
0x1e50   :  { %v8630_v54 = vpop.eup %8629 }
0x1e51   :  { %4956 = vrot.lane.b32.xlu0 %v8630_v54, %s8802_s25 }
0x1e52   :  { %v4753_v7 = vpop.permute.xlu0 %4752 }
0x1e53   :  { %v4755_v55 = vmul.f32 %v8612_v4, %v4753_v7 }
0x1e55   :  { %v8632_v34 = vpop.eup %8631  ;;  %v9789_v26 = vmax.f32 %v4348_v37, %v4755_v55  ;;  %5065 = vrot.lane.b32.xlu0 %v4755_v55, %s8803_s26 }
0x1e56   :  { %5058 = vrot.lane.b32.xlu1 %v8632_v34, %s8802_s25 }
0x1e57   :  { %v4855_v42 = vpop.permute.xlu1 %4854 }
0x1e58   :  { %v4857_v32 = vmul.f32 %v8616_v5, %v4855_v42 }
0x1e5a   :  { %v9795_v24 = vmax.f32 %v4450_v9, %v4857_v32  ;;  %5167 = vrot.lane.b32.xlu1 %v4857_v32, %s8803_s26 }
0x1ec3   :  { %v4957_v19 = vpop.permute.xlu0 %4956 }
0x1ec4   :  { %v4959_v58 = vmul.f32 %v8622_v51, %v4957_v19 }
0x1ec6   :  { %v9800_v8 = vmax.f32 %v4552_v63, %v4959_v58  ;;  %5269 = vrot.lane.b32.xlu0 %v4959_v58, %s8803_s26 }
0x1ec7   :  { %v5066_v52 = vpop.permute.xlu0 %5065 }
0x1ec8   :  { %v5059_v40 = vpop.permute.xlu1 %5058  ;;  %7914 = vmatmul.mubr.msk.f32.vlgmr.msra.gmra.mrb[48].mxu0 %vm251_vm4, %v5066_v52 }
0x1ec9   :  { %v5061_v33 = vmul.f32 %v8624_v27, %v5059_v40  ;;  %8221 = vmatpush3.bf16.msra.mxu0 %v9583_v1  ;;  %7927 = vmatprep.mubr.msk.f32.mxu0 %vm8798_vm1, %v8799_v28 }
0x1eca   :  { %8225 = vmatprep.subr.bf16.mxu0 %v8797_v21 }
0x1ecb   :  { %v9809_v47 = vmax.f32 %v4654_v50, %v5061_v33  ;;  %5371 = vrot.lane.b32.xlu1 %v5061_v33, %s8803_s26 }
0x1ecc   :  { %v5168_v45 = vpop.permute.xlu1 %5167 }
0x1ecd   :  { %7921 = vmatmul.mubr.msk.f32.vlgmr.msra.gmra.mrb[48].mxu1 %vm251_vm4, %v5168_v45 }
0x1ece   :  { %8224 = vmatpush3.bf16.msra.mxu1 %v9594_v53  ;;  %7934 = vmatprep.mubr.msk.f32.mxu1 %vm8798_vm1, %v8799_v28 }
0x1ecf   :  { %8228 = vmatprep.subr.bf16.mxu1 %v8797_v21 }
0x1f38   :  { %v5270_v12 = vpop.permute.xlu0 %5269 }
0x1f39   :  { %7928 = vmatmul.mubr.msk.f32.vlgmr.msra.gmra.mrb[50].mxu0 %vm251_vm4, %v5270_v12 }
0x1f3a   :  { %8227 = vmatpush3.bf16.msra.mxu0 %v9558_v38  ;;  %7941 = vmatprep.mubr.msk.f32.mxu0 %vm8798_vm1, %v8799_v28 }
0x1f3b   :  { %8231 = vmatprep.subr.bf16.mxu0 %v8797_v21 }
0x1f3d   :  { %v5372_v59 = vpop.permute.xlu1 %5371 }
0x1f3e   :  { %7935 = vmatmul.mubr.msk.f32.vlgmr.msra.gmra.mrb[50].mxu1 %vm251_vm4, %v5372_v59 }
0x1f3f   :  { %8230 = vmatpush3.bf16.msra.mxu1 %v9577_v3  ;;  %7948 = vmatprep.mubr.msk.f32.mxu1 %vm8798_vm1, %v8799_v28 }
0x1f40   :  { %8234 = vmatprep.subr.bf16.mxu1 %v8797_v21 }
0x1f9b   :  { %v5135_v4 = vpop.f32.mrb[48].mxu0 }
0x1f9c   :  { %v5139_v15 = vadd.f32 %v5135_v4, %v5063_v56  ;;  %v7915_v16 = vpop.f32.mrb[49].mxu0 }
0x1f9e   :  { %8633 = vtanh.f32 %v5139_v15  ;;  %v7302_v46 = vmul.f32 -1.442695, %v5139_v15 }
0x1fa0   :  { %v5237_v5 = vpop.f32.mrb[48].mxu1 }
0x1fa1   :  { %v5241_v18 = vadd.f32 %v5237_v5, %v5165_v13  ;;  %v7922_v23 = vpop.f32.mrb[49].mxu1 }
0x1fa3   :  { %8635 = vtanh.f32 %v5241_v18  ;;  %v7304_v10 = vmul.f32 -1.442695, %v5241_v18 }
0x1fa4   :  { %8637 = vpow2.f32 %v7302_v46 }
0x1fa5   :  { %8639 = vpow2.f32 %v7304_v10 }
0x1fa8   :  { %v8634_v41 = vpop.eup %8633 }
0x1fa9   :  { %5149 = vrot.lane.b32.xlu0 %v8634_v41, %s8801_s3 }
0x1fad   :  { %v8636_v61 = vpop.eup %8635 }
0x1fae   :  { %5251 = vrot.lane.b32.xlu1 %v8636_v61, %s8801_s3  ;;  %v8638_v44 = vpop.eup %8637 }
0x1faf   :  { %v5143_v2 = vadd.f32 1.0, %v8638_v44  ;;  %v8640_v27 = vpop.eup %8639 }
0x1fb0   :  { %v5245_v20 = vadd.f32 1.0, %v8640_v27 }
0x200c   :  { %v5339_v51 = vpop.f32.mrb[50].mxu0 }
0x200d   :  { %v5343_v49 = vadd.f32 %v5339_v51, %v5267_v22  ;;  %v7929_v25 = vpop.f32.mrb[51].mxu0 }
0x200f   :  { %8641 = vtanh.f32 %v5343_v49  ;;  %v7306_v37 = vmul.f32 -1.442695, %v5343_v49 }
0x2010   :  { %8643 = vrcp.f32 %v5143_v2 }
0x2011   :  { %v5441_v29 = vpop.f32.mrb[50].mxu1 }
0x2012   :  { %v5445_v62 = vadd.f32 %v5441_v29, %v5369_v17  ;;  %v7936_v36 = vpop.f32.mrb[51].mxu1 }
0x2014   :  { %8645 = vtanh.f32 %v5445_v62  ;;  %v7308_v55 = vmul.f32 -1.442695, %v5445_v62 }
0x2015   :  { %8647 = vrcp.f32 %v5245_v20 }
0x2016   :  { %8649 = vpow2.f32 %v7306_v37 }
0x2017   :  { %8651 = vpow2.f32 %v7308_v55 }
0x2019   :  { %v8642_v35 = vpop.eup %8641 }
0x201a   :  { %5353 = vrot.lane.b32.xlu0 %v8642_v35, %s8801_s3  ;;  %v8644_v14 = vpop.eup %8643  ;;  %v5471_v35 = vld [vmem:[#allocation2 + $0x8] sm:$0x3] }
0x201b   :  { %v5150_v39 = vpop.permute.xlu0 %5149  ;;  %v5147_v40 = vmul.f32 %v8644_v14, %v9768_v60 }
0x201c   :  { %v5152_v48 = vmul.f32 %v8644_v14, %v5150_v39 }
0x201e   :  { %v8646_v11 = vpop.eup %8645  ;;  %5154 = vrot.lane.b32.xlu0 %v5152_v48, %s8802_s25 }
0x201f   :  { %5455 = vrot.lane.b32.xlu1 %v8646_v11, %s8801_s3  ;;  %v8648_v57 = vpop.eup %8647  ;;  %v5573_v11 = vld [vmem:[#allocation2 + $0x18] sm:$0x3] }
0x2020   :  { %v5252_v54 = vpop.permute.xlu1 %5251  ;;  %v8650_v34 = vpop.eup %8649  ;;  %v5249_v59 = vmul.f32 %v8648_v57, %v9773_v0 }
0x2021   :  { %v5254_v7 = vmul.f32 %v8648_v57, %v5252_v54  ;;  %v5347_v42 = vadd.f32 1.0, %v8650_v34  ;;  %v8652_v9 = vpop.eup %8651 }
0x2022   :  { %v5449_v32 = vadd.f32 1.0, %v8652_v9 }
0x2023   :  { %5256 = vrot.lane.b32.xlu1 %v5254_v7, %s8802_s25  ;;  %8653 = vrcp.f32 %v5347_v42 }
0x2024   :  { %8655 = vrcp.f32 %v5449_v32 }
0x202d   :  { %v8654_v19 = vpop.eup %8653 }
0x202e   :  { %v8656_v52 = vpop.eup %8655  ;;  %v5351_v16 = vmul.f32 %v8654_v19, %v9779_v43 }
0x202f   :  { %v5453_v0 = vmul.f32 %v8656_v52, %v9783_v30 }
0x208c   :  { %v5354_v63 = vpop.permute.xlu0 %5353 }
0x208d   :  { %v5356_v58 = vmul.f32 %v8654_v19, %v5354_v63 }
0x208f   :  { %5358 = vrot.lane.b32.xlu0 %v5356_v58, %s8802_s25 }
0x2090   :  { %v5155_v33 = vpop.permute.xlu0 %5154 }
0x2091   :  { %v5456_v50 = vpop.permute.xlu1 %5455  ;;  %v9836_v12 = vadd.f32 %v5155_v33, %v5147_v40 }
0x2092   :  { %v5458_v45 = vmul.f32 %v8656_v52, %v5456_v50 }
0x2093   :  { %8657 = vtanh.f32 %v9836_v12 }
0x2094   :  { %5460 = vrot.lane.b32.xlu1 %v5458_v45, %s8802_s25 }
0x2095   :  { %v5257_v56 = vpop.permute.xlu1 %5256 }
0x2096   :  { %v9841_v4 = vadd.f32 %v5257_v56, %v5249_v59 }
0x2098   :  { %8659 = vtanh.f32 %v9841_v4 }
0x209d   :  { %v8658_v15 = vpop.eup %8657 }
0x209e   :  { %5160 = vrot.lane.b32.xlu0 %v8658_v15, %s8802_s25 }
0x20a2   :  { %v8660_v60 = vpop.eup %8659 }
0x20a3   :  { %5262 = vrot.lane.b32.xlu1 %v8660_v60, %s8802_s25 }
0x2101   :  { %v5359_v13 = vpop.permute.xlu0 %5358 }
0x2102   :  { %v9847_v5 = vadd.f32 %v5359_v13, %v5351_v16 }
0x2104   :  { %8661 = vtanh.f32 %v9847_v5 }
0x2106   :  { %v5461_v18 = vpop.permute.xlu1 %5460 }
0x2107   :  { %v9851_v23 = vadd.f32 %v5461_v18, %v5453_v0 }
0x2109   :  { %8663 = vtanh.f32 %v9851_v23 }
0x210e   :  { %v8662_v41 = vpop.eup %8661 }
0x210f   :  { %5364 = vrot.lane.b32.xlu0 %v8662_v41, %s8802_s25 }
0x2110   :  { %v5161_v61 = vpop.permute.xlu0 %5160 }
0x2111   :  { %v9855_v46 = vmul.f32 %v8644_v14, %v5161_v61 }
0x2113   :  { %v8664_v10 = vpop.eup %8663  ;;  %v5164_v43 = vmax.f32 %v9789_v26, %v9855_v46  ;;  %5473 = vrot.lane.b32.xlu0 %v9855_v46, %s8803_s26 }
0x2114   :  { %5466 = vrot.lane.b32.xlu1 %v8664_v10, %s8802_s25 }
0x2115   :  { %v5263_v30 = vpop.permute.xlu1 %5262 }
0x2116   :  { %v9862_v44 = vmul.f32 %v8648_v57, %v5263_v30 }
0x2118   :  { %v5266_v22 = vmax.f32 %v9795_v24, %v9862_v44  ;;  %5575 = vrot.lane.b32.xlu1 %v9862_v44, %s8803_s26 }
0x2181   :  { %v5365_v51 = vpop.permute.xlu0 %5364 }
0x2182   :  { %v9868_v2 = vmul.f32 %v8654_v19, %v5365_v51 }
0x2184   :  { %v5368_v49 = vmax.f32 %v9800_v8, %v9868_v2  ;;  %5677 = vrot.lane.b32.xlu0 %v9868_v2, %s8803_s26 }
0x2185   :  { %v5474_v27 = vpop.permute.xlu0 %5473 }
0x2186   :  { %v5467_v25 = vpop.permute.xlu1 %5466  ;;  %7942 = vmatmul.mubr.msk.f32.vlgmr.msra.gmra.mrb[52].mxu0 %vm251_vm4, %v5474_v27 }
0x2187   :  { %v9874_v17 = vmul.f32 %v8656_v52, %v5467_v25  ;;  %8233 = vmatpush3.bf16.msra.mxu0 %v9583_v1  ;;  %7955 = vmatprep.mubr.msk.f32.mxu0 %vm8798_vm1, %v8799_v28 }
0x2188   :  { %3738 = vrot.lane.b32.xlu0 %v9619_v6, %s8800_s24  ;;  %8237 = vmatprep.subr.bf16.mxu0 %v8797_v21 }
0x2189   :  { %v5470_v29 = vmax.f32 %v9809_v47, %v9874_v17  ;;  %5779 = vrot.lane.b32.xlu1 %v9874_v17, %s8803_s26 }
0x218a   :  { %v5576_v20 = vpop.permute.xlu1 %5575 }
0x218b   :  { %7949 = vmatmul.mubr.msk.f32.vlgmr.msra.gmra.mrb[52].mxu1 %vm251_vm4, %v5576_v20 }
0x218c   :  { %8236 = vmatpush3.bf16.msra.mxu1 %v9594_v53  ;;  %7962 = vmatprep.mubr.msk.f32.mxu1 %vm8798_vm1, %v8799_v28 }
0x218d   :  { %3844 = vrot.lane.b32.xlu1 %v9628_v31, %s8800_s24  ;;  %8240 = vmatprep.subr.bf16.mxu1 %v8797_v21 }
0x21f6   :  { %v5678_v62 = vpop.permute.xlu0 %5677 }
0x21f7   :  { %7956 = vmatmul.mubr.msk.f32.vlgmr.msra.gmra.mrb[54].mxu0 %vm251_vm4, %v5678_v62 }
0x21f8   :  { %8239 = vmatpush3.bf16.msra.mxu0 %v9558_v38  ;;  %7969 = vmatprep.mubr.msk.f32.mxu0 %vm8798_vm1, %v8799_v28 }
0x21f9   :  { %8243 = vmatprep.subr.bf16.mxu0 %v8797_v21 }
0x21fa   :  { %v3739_v36 = vpop.permute.xlu0 %3738 }
0x21fb   :  { %v5780_v6 = vpop.permute.xlu1 %5779  ;;  %3744 = vst.msk [vmem:[#allocation2 + $0x20] sm:$0xff] %vm126_vm2, %v3739_v36 }
0x21fc   :  { %7963 = vmatmul.mubr.msk.f32.vlgmr.msra.gmra.mrb[54].mxu1 %vm251_vm4, %v5780_v6 }
0x21fd   :  { %8242 = vmatpush3.bf16.msra.mxu1 %v9577_v3  ;;  %7976 = vmatprep.mubr.msk.f32.mxu1 %vm8798_vm1, %v8799_v28 }
0x21fe   :  { %8246 = vmatprep.subr.bf16.mxu1 %v8797_v21 }
0x21ff   :  { %v3845_v31 = vpop.permute.xlu1 %3844 }
0x2200   :  { %3850 = vst.msk [vmem:[#allocation2 + $0x30] sm:$0xff] %vm126_vm2, %v3845_v31 }
0x2202   :  { %v5675_v32 = vld [vmem:[#allocation2 + $0x26] sm:$0x3] }
0x2207   :  { %v5777_v50 = vld [vmem:[#allocation2 + $0x36] sm:$0x3] }
0x2259   :  { %v5543_v14 = vpop.f32.mrb[52].mxu0 }
0x225a   :  { %v5547_v39 = vadd.f32 %v5543_v14, %v5471_v35  ;;  %v7943_v48 = vpop.f32.mrb[53].mxu0 }
0x225c   :  { %8665 = vtanh.f32 %v5547_v39  ;;  %v7310_v34 = vmul.f32 -1.442695, %v5547_v39 }
0x225e   :  { %v5645_v57 = vpop.f32.mrb[52].mxu1 }
0x225f   :  { %v5649_v54 = vadd.f32 %v5645_v57, %v5573_v11  ;;  %v7950_v7 = vpop.f32.mrb[53].mxu1 }
0x2261   :  { %8667 = vtanh.f32 %v5649_v54  ;;  %v7312_v42 = vmul.f32 -1.442695, %v5649_v54 }
0x2262   :  { %8669 = vpow2.f32 %v7310_v34 }
0x2263   :  { %8671 = vpow2.f32 %v7312_v42 }
0x2266   :  { %v8666_v37 = vpop.eup %8665 }
0x2267   :  { %5557 = vrot.lane.b32.xlu0 %v8666_v37, %s8801_s3 }
0x226b   :  { %v8668_v55 = vpop.eup %8667 }
0x226c   :  { %5659 = vrot.lane.b32.xlu1 %v8668_v55, %s8801_s3  ;;  %v8670_v9 = vpop.eup %8669 }
0x226d   :  { %v5551_v63 = vadd.f32 1.0, %v8670_v9  ;;  %v8672_v52 = vpop.eup %8671 }
0x226e   :  { %v5653_v45 = vadd.f32 1.0, %v8672_v52 }
0x22ca   :  { %v5747_v19 = vpop.f32.mrb[54].mxu0 }
0x22cb   :  { %v5751_v58 = vadd.f32 %v5747_v19, %v5675_v32  ;;  %v7957_v40 = vpop.f32.mrb[55].mxu0 }
0x22cd   :  { %8673 = vtanh.f32 %v5751_v58  ;;  %v7314_v10 = vmul.f32 -1.442695, %v5751_v58 }
0x22ce   :  { %8675 = vrcp.f32 %v5551_v63 }
0x22cf   :  { %v5849_v33 = vpop.f32.mrb[54].mxu1 }
0x22d0   :  { %v5853_v59 = vadd.f32 %v5849_v33, %v5777_v50  ;;  %v7964_v56 = vpop.f32.mrb[55].mxu1 }
0x22d2   :  { %8677 = vtanh.f32 %v5853_v59  ;;  %v7316_v30 = vmul.f32 -1.442695, %v5853_v59 }
0x22d3   :  { %8679 = vrcp.f32 %v5653_v45 }
0x22d4   :  { %8681 = vpow2.f32 %v7314_v10 }
0x22d5   :  { %8683 = vpow2.f32 %v7316_v30 }
0x22d7   :  { %v8674_v15 = vpop.eup %8673 }
0x22d8   :  { %5761 = vrot.lane.b32.xlu0 %v8674_v15, %s8801_s3  ;;  %v8676_v60 = vpop.eup %8675 }
0x22d9   :  { %v5558_v16 = vpop.permute.xlu0 %5557  ;;  %v5555_v31 = vmul.f32 %v8676_v60, %v9836_v12 }
0x22da   :  { %v5560_v13 = vmul.f32 %v8676_v60, %v5558_v16 }
0x22dc   :  { %v8678_v0 = vpop.eup %8677  ;;  %5562 = vrot.lane.b32.xlu0 %v5560_v13, %s8802_s25 }
0x22dd   :  { %5863 = vrot.lane.b32.xlu1 %v8678_v0, %s8801_s3  ;;  %v8680_v18 = vpop.eup %8679 }
0x22de   :  { %v5660_v41 = vpop.permute.xlu1 %5659  ;;  %v8682_v51 = vpop.eup %8681  ;;  %v5657_v57 = vmul.f32 %v8680_v18, %v9841_v4 }
0x22df   :  { %v5662_v61 = vmul.f32 %v8680_v18, %v5660_v41  ;;  %v5755_v25 = vadd.f32 1.0, %v8682_v51  ;;  %v8684_v27 = vpop.eup %8683 }
0x22e0   :  { %v5857_v20 = vadd.f32 1.0, %v8684_v27 }
0x22e1   :  { %5664 = vrot.lane.b32.xlu1 %v5662_v61, %s8802_s25  ;;  %8685 = vrcp.f32 %v5755_v25  ;;  %v6083_v61 = vld [vmem:[#allocation2 + $0x24] sm:$0x3] }
0x22e2   :  { %8687 = vrcp.f32 %v5857_v20  ;;  %v6185_v20 = vld [vmem:[#allocation2 + $0x34] sm:$0x3] }
0x22eb   :  { %v8686_v62 = vpop.eup %8685 }
0x22ec   :  { %v8688_v35 = vpop.eup %8687  ;;  %v5759_v55 = vmul.f32 %v8686_v62, %v9847_v5 }
0x22ed   :  { %v5861_v4 = vmul.f32 %v8688_v35, %v9851_v23 }
0x234a   :  { %v5762_v6 = vpop.permute.xlu0 %5761 }
0x234b   :  { %v5764_v36 = vmul.f32 %v8686_v62, %v5762_v6 }
0x234d   :  { %5766 = vrot.lane.b32.xlu0 %v5764_v36, %s8802_s25 }
0x234e   :  { %v5563_v39 = vpop.permute.xlu0 %5562 }
0x234f   :  { %v5864_v14 = vpop.permute.xlu1 %5863  ;;  %v9914_v11 = vadd.f32 %v5563_v39, %v5555_v31 }
0x2350   :  { %v5866_v48 = vmul.f32 %v8688_v35, %v5864_v14 }
0x2351   :  { %8689 = vtanh.f32 %v9914_v11 }
0x2352   :  { %5868 = vrot.lane.b32.xlu1 %v5866_v48, %s8802_s25 }
0x2353   :  { %v5665_v54 = vpop.permute.xlu1 %5664 }
0x2354   :  { %v9919_v7 = vadd.f32 %v5665_v54, %v5657_v57 }
0x2356   :  { %8691 = vtanh.f32 %v9919_v7 }
0x235b   :  { %v8690_v37 = vpop.eup %8689 }
0x235c   :  { %5568 = vrot.lane.b32.xlu0 %v8690_v37, %s8802_s25 }
0x2360   :  { %v8692_v12 = vpop.eup %8691 }
0x2361   :  { %5670 = vrot.lane.b32.xlu1 %v8692_v12, %s8802_s25 }
0x23bf   :  { %v5767_v34 = vpop.permute.xlu0 %5766 }
0x23c0   :  { %v9925_v42 = vadd.f32 %v5767_v34, %v5759_v55 }
0x23c2   :  { %8693 = vtanh.f32 %v9925_v42 }
0x23c4   :  { %v5869_v9 = vpop.permute.xlu1 %5868 }
0x23c5   :  { %v9929_v32 = vadd.f32 %v5869_v9, %v5861_v4 }
0x23c7   :  { %8695 = vtanh.f32 %v9929_v32 }
0x23cc   :  { %v8694_v19 = vpop.eup %8693 }
0x23cd   :  { %5772 = vrot.lane.b32.xlu0 %v8694_v19, %s8802_s25 }
0x23ce   :  { %v5569_v63 = vpop.permute.xlu0 %5568 }
0x23cf   :  { %v5571_v58 = vmul.f32 %v8676_v60, %v5569_v63 }
0x23d1   :  { %v8696_v40 = vpop.eup %8695  ;;  %v9936_v5 = vmax.f32 %v5164_v43, %v5571_v58  ;;  %5881 = vrot.lane.b32.xlu0 %v5571_v58, %s8803_s26 }
0x23d2   :  { %5874 = vrot.lane.b32.xlu1 %v8696_v40, %s8802_s25 }
0x23d3   :  { %v5671_v23 = vpop.permute.xlu1 %5670 }
0x23d4   :  { %v5673_v52 = vmul.f32 %v8680_v18, %v5671_v23 }
0x23d6   :  { %v9943_v50 = vmax.f32 %v5266_v22, %v5673_v52  ;;  %5983 = vrot.lane.b32.xlu1 %v5673_v52, %s8803_s26  ;;  %v5879_v22 = vld [vmem:[#allocation2 + $0xa] sm:$0x3] }
0x243f   :  { %v5773_v33 = vpop.permute.xlu0 %5772 }
0x2440   :  { %v5775_v45 = vmul.f32 %v8686_v62, %v5773_v33 }
0x2442   :  { %v9949_v26 = vmax.f32 %v5368_v49, %v5775_v45  ;;  %6085 = vrot.lane.b32.xlu0 %v5775_v45, %s8803_s26 }
0x2443   :  { %v5882_v43 = vpop.permute.xlu0 %5881 }
0x2444   :  { %v5875_v46 = vpop.permute.xlu1 %5874  ;;  %7970 = vmatmul.mubr.msk.f32.vlgmr.msra.gmra.mrb[56].mxu0 %vm251_vm4, %v5882_v43 }
0x2445   :  { %v5877_v59 = vmul.f32 %v8688_v35, %v5875_v46  ;;  %8245 = vmatpush3.bf16.msra.mxu0 %v9583_v1  ;;  %7983 = vmatprep.mubr.msk.f32.mxu0 %vm8798_vm1, %v8799_v28 }
0x2446   :  { %8249 = vmatprep.subr.bf16.mxu0 %v8797_v21 }
0x2447   :  { %v9959_v24 = vmax.f32 %v5470_v29, %v5877_v59  ;;  %6187 = vrot.lane.b32.xlu1 %v5877_v59, %s8803_s26  ;;  %v5981_v29 = vld [vmem:[#allocation2 + $0x1a] sm:$0x3] }
0x2448   :  { %v5984_v8 = vpop.permute.xlu1 %5983 }
0x2449   :  { %7977 = vmatmul.mubr.msk.f32.vlgmr.msra.gmra.mrb[56].mxu1 %vm251_vm4, %v5984_v8 }
0x244a   :  { %8248 = vmatpush3.bf16.msra.mxu1 %v9594_v53  ;;  %7990 = vmatprep.mubr.msk.f32.mxu1 %vm8798_vm1, %v8799_v28 }
0x244b   :  { %8252 = vmatprep.subr.bf16.mxu1 %v8797_v21 }
0x24b4   :  { %v6086_v44 = vpop.permute.xlu0 %6085 }
0x24b5   :  { %7984 = vmatmul.mubr.msk.f32.vlgmr.msra.gmra.mrb[58].mxu0 %vm251_vm4, %v6086_v44 }
0x24b6   :  { %8251 = vmatpush3.bf16.msra.mxu0 %v9558_v38  ;;  %7997 = vmatprep.mubr.msk.f32.mxu0 %vm8798_vm1, %v8799_v28 }
0x24b7   :  { %8255 = vmatprep.subr.bf16.mxu0 %v8797_v21 }
0x24b9   :  { %v6188_v47 = vpop.permute.xlu1 %6187 }
0x24ba   :  { %7991 = vmatmul.mubr.msk.f32.vlgmr.msra.gmra.mrb[58].mxu1 %vm251_vm4, %v6188_v47 }
0x24bb   :  { %8254 = vmatpush3.bf16.msra.mxu1 %v9577_v3  ;;  %8004 = vmatprep.mubr.msk.f32.mxu1 %vm8798_vm1, %v8799_v28 }
0x24bc   :  { %8258 = vmatprep.subr.bf16.mxu1 %v8797_v21 }
0x2517   :  { %v5951_v2 = vpop.f32.mrb[56].mxu0 }
0x2518   :  { %v5955_v49 = vadd.f32 %v5951_v2, %v5879_v22  ;;  %v7971_v17 = vpop.f32.mrb[57].mxu0 }
0x251a   :  { %8697 = vtanh.f32 %v5955_v49  ;;  %v7318_v0 = vmul.f32 -1.442695, %v5955_v49 }
0x251c   :  { %v6053_v56 = vpop.f32.mrb[56].mxu1 }
0x251d   :  { %v6057_v15 = vadd.f32 %v6053_v56, %v5981_v29  ;;  %v7978_v60 = vpop.f32.mrb[57].mxu1 }
0x251f   :  { %8699 = vtanh.f32 %v6057_v15  ;;  %v7320_v18 = vmul.f32 -1.442695, %v6057_v15 }
0x2520   :  { %8701 = vpow2.f32 %v7318_v0 }
0x2521   :  { %8703 = vpow2.f32 %v7320_v18 }
0x2524   :  { %v8698_v16 = vpop.eup %8697 }
0x2525   :  { %5965 = vrot.lane.b32.xlu0 %v8698_v16, %s8801_s3 }
0x2529   :  { %v8700_v13 = vpop.eup %8699 }
0x252a   :  { %6067 = vrot.lane.b32.xlu1 %v8700_v13, %s8801_s3  ;;  %v8702_v41 = vpop.eup %8701 }
0x252b   :  { %v5959_v30 = vadd.f32 1.0, %v8702_v41  ;;  %v8704_v27 = vpop.eup %8703 }
0x252c   :  { %v6061_v6 = vadd.f32 1.0, %v8704_v27 }
0x2588   :  { %v6155_v10 = vpop.f32.mrb[58].mxu0 }
0x2589   :  { %v6159_v51 = vadd.f32 %v6155_v10, %v6083_v61  ;;  %v7985_v25 = vpop.f32.mrb[59].mxu0 }
0x258b   :  { %8705 = vtanh.f32 %v6159_v51  ;;  %v7322_v55 = vmul.f32 -1.442695, %v6159_v51 }
0x258c   :  { %8707 = vrcp.f32 %v5959_v30 }
0x258d   :  { %v6257_v62 = vpop.f32.mrb[58].mxu1 }
0x258e   :  { %v6261_v36 = vadd.f32 %v6257_v62, %v6185_v20  ;;  %v7992_v31 = vpop.f32.mrb[59].mxu1 }
0x2590   :  { %8709 = vtanh.f32 %v6261_v36  ;;  %v7324_v34 = vmul.f32 -1.442695, %v6261_v36  ;;  %v6287_v36 = vld [vmem:[#allocation2 + $0xc] sm:$0x3] }
0x2591   :  { %8711 = vrcp.f32 %v6061_v6 }
0x2592   :  { %8713 = vpow2.f32 %v7322_v55  ;;  %v6491_v55 = vld [vmem:[#allocation2 + $0x22] sm:$0x3] }
0x2593   :  { %8715 = vpow2.f32 %v7324_v34 }
0x2595   :  { %v8706_v35 = vpop.eup %8705 }
0x2596   :  { %6169 = vrot.lane.b32.xlu0 %v8706_v35, %s8801_s3  ;;  %v8708_v14 = vpop.eup %8707 }
0x2597   :  { %v5966_v39 = vpop.permute.xlu0 %5965  ;;  %v5963_v52 = vmul.f32 %v8708_v14, %v9914_v11 }
0x2598   :  { %v5968_v48 = vmul.f32 %v8708_v14, %v5966_v39 }
0x259a   :  { %v8710_v57 = vpop.eup %8709  ;;  %5970 = vrot.lane.b32.xlu0 %v5968_v48, %s8802_s25 }
0x259b   :  { %6271 = vrot.lane.b32.xlu1 %v8710_v57, %s8801_s3  ;;  %v8712_v54 = vpop.eup %8711 }
0x259c   :  { %v6068_v37 = vpop.permute.xlu1 %6067  ;;  %v8714_v4 = vpop.eup %8713  ;;  %v6065_v8 = vmul.f32 %v8712_v54, %v9919_v7 }
0x259d   :  { %v6070_v12 = vmul.f32 %v8712_v54, %v6068_v37  ;;  %v6163_v9 = vadd.f32 1.0, %v8714_v4  ;;  %v8716_v19 = vpop.eup %8715 }
0x259e   :  { %v6265_v63 = vadd.f32 1.0, %v8716_v19 }
0x259f   :  { %6072 = vrot.lane.b32.xlu1 %v6070_v12, %s8802_s25  ;;  %8717 = vrcp.f32 %v6163_v9 }
0x25a0   :  { %8719 = vrcp.f32 %v6265_v63 }
0x25a9   :  { %v8718_v58 = vpop.eup %8717 }
0x25aa   :  { %v8720_v33 = vpop.eup %8719  ;;  %v6167_v2 = vmul.f32 %v8718_v58, %v9925_v42 }
0x25ab   :  { %v6269_v7 = vmul.f32 %v8720_v33, %v9929_v32 }
0x2608   :  { %v6170_v40 = vpop.permute.xlu0 %6169 }
0x2609   :  { %v6172_v23 = vmul.f32 %v8718_v58, %v6170_v40 }
0x260b   :  { %6174 = vrot.lane.b32.xlu0 %v6172_v23, %s8802_s25 }
0x260c   :  { %v5971_v46 = vpop.permute.xlu0 %5970 }
0x260d   :  { %v6272_v45 = vpop.permute.xlu1 %6271  ;;  %v9986_v59 = vadd.f32 %v5971_v46, %v5963_v52 }
0x260e   :  { %v6274_v43 = vmul.f32 %v8720_v33, %v6272_v45 }
0x260f   :  { %8721 = vtanh.f32 %v9986_v59 }
0x2610   :  { %6276 = vrot.lane.b32.xlu1 %v6274_v43, %s8802_s25 }
0x2611   :  { %v6073_v44 = vpop.permute.xlu1 %6072 }
0x2612   :  { %v9991_v47 = vadd.f32 %v6073_v44, %v6065_v8 }
0x2614   :  { %8723 = vtanh.f32 %v9991_v47 }
0x2619   :  { %v8722_v22 = vpop.eup %8721 }
0x261a   :  { %5976 = vrot.lane.b32.xlu0 %v8722_v22, %s8802_s25 }
0x261e   :  { %v8724_v11 = vpop.eup %8723 }
0x261f   :  { %6078 = vrot.lane.b32.xlu1 %v8724_v11, %s8802_s25 }
0x267d   :  { %v6175_v49 = vpop.permute.xlu0 %6174 }
0x267e   :  { %v9997_v17 = vadd.f32 %v6175_v49, %v6167_v2 }
0x2680   :  { %8725 = vtanh.f32 %v9997_v17 }
0x2682   :  { %v6277_v29 = vpop.permute.xlu1 %6276 }
0x2683   :  { %v10001_v56 = vadd.f32 %v6277_v29, %v6269_v7 }
0x2685   :  { %8727 = vtanh.f32 %v10001_v56 }
0x268a   :  { %v8726_v15 = vpop.eup %8725 }
0x268b   :  { %6180 = vrot.lane.b32.xlu0 %v8726_v15, %s8802_s25 }
0x268c   :  { %v5977_v60 = vpop.permute.xlu0 %5976 }
0x268d   :  { %v10005_v16 = vmul.f32 %v8708_v14, %v5977_v60 }
0x268f   :  { %v8728_v13 = vpop.eup %8727  ;;  %v5980_v42 = vmax.f32 %v9936_v5, %v10005_v16  ;;  %6289 = vrot.lane.b32.xlu0 %v10005_v16, %s8803_s26 }
0x2690   :  { %6282 = vrot.lane.b32.xlu1 %v8728_v13, %s8802_s25 }
0x2691   :  { %v6079_v32 = vpop.permute.xlu1 %6078 }
0x2692   :  { %v10012_v0 = vmul.f32 %v8712_v54, %v6079_v32 }
0x2694   :  { %v6082_v18 = vmax.f32 %v9943_v50, %v10012_v0  ;;  %6391 = vrot.lane.b32.xlu1 %v10012_v0, %s8803_s26 }
0x26fd   :  { %v6181_v41 = vpop.permute.xlu0 %6180 }
0x26fe   :  { %v10018_v61 = vmul.f32 %v8718_v58, %v6181_v41  ;;  %v6593_v58 = vld [vmem:[#allocation2 + $0x32] sm:$0x3] }
0x2700   :  { %v6184_v10 = vmax.f32 %v9949_v26, %v10018_v61  ;;  %6493 = vrot.lane.b32.xlu0 %v10018_v61, %s8803_s26 }
0x2701   :  { %v6290_v51 = vpop.permute.xlu0 %6289 }
0x2702   :  { %v6283_v30 = vpop.permute.xlu1 %6282  ;;  %7998 = vmatmul.mubr.msk.f32.vlgmr.msra.gmra.mrb[60].mxu0 %vm251_vm4, %v6290_v51 }
0x2703   :  { %v10024_v25 = vmul.f32 %v8720_v33, %v6283_v30  ;;  %8257 = vmatpush3.bf16.msra.mxu0 %v9583_v1  ;;  %8011 = vmatprep.mubr.msk.f32.mxu0 %vm8798_vm1, %v8799_v28 }
0x2704   :  { %8261 = vmatprep.subr.bf16.mxu0 %v8797_v21 }
0x2705   :  { %v6286_v27 = vmax.f32 %v9959_v24, %v10024_v25  ;;  %6595 = vrot.lane.b32.xlu1 %v10024_v25, %s8803_s26  ;;  %v6797_v25 = vld [vmem:[#allocation2 + $0x1e] sm:$0x3] }
0x2706   :  { %v6392_v20 = vpop.permute.xlu1 %6391 }
0x2707   :  { %8005 = vmatmul.mubr.msk.f32.vlgmr.msra.gmra.mrb[60].mxu1 %vm251_vm4, %v6392_v20 }
0x2708   :  { %8260 = vmatpush3.bf16.msra.mxu1 %v9594_v53  ;;  %8018 = vmatprep.mubr.msk.f32.mxu1 %vm8798_vm1, %v8799_v28 }
0x2709   :  { %8264 = vmatprep.subr.bf16.mxu1 %v8797_v21 }
0x2772   :  { %v6494_v62 = vpop.permute.xlu0 %6493 }
0x2773   :  { %8012 = vmatmul.mubr.msk.f32.vlgmr.msra.gmra.mrb[62].mxu0 %vm251_vm4, %v6494_v62 }
0x2774   :  { %8263 = vmatpush3.bf16.msra.mxu0 %v9558_v38  ;;  %8025 = vmatprep.mubr.msk.f32.mxu0 %vm8798_vm1, %v8799_v28  ;;  %v6389_v38 = vld [vmem:[#allocation2 + $0x1c] sm:$0x3] }
0x2775   :  { %8267 = vmatprep.subr.bf16.mxu0 %v8797_v21 }
0x2777   :  { %v6596_v6 = vpop.permute.xlu1 %6595 }
0x2778   :  { %8019 = vmatmul.mubr.msk.f32.vlgmr.msra.gmra.mrb[62].mxu1 %vm251_vm4, %v6596_v6 }
0x2779   :  { %8266 = vmatpush3.bf16.msra.mxu1 %v9577_v3  ;;  %8032 = vmatprep.mubr.msk.f32.mxu1 %vm8798_vm1, %v8799_v28 }
0x277a   :  { %8270 = vmatprep.subr.bf16.mxu1 %v8797_v21 }
0x27d5   :  { %v6359_v31 = vpop.f32.mrb[60].mxu0 }
0x27d6   :  { %v6363_v35 = vadd.f32 %v6359_v31, %v6287_v36  ;;  %v7999_v14 = vpop.f32.mrb[61].mxu0 }
0x27d8   :  { %8729 = vtanh.f32 %v6363_v35  ;;  %v7326_v3 = vmul.f32 -1.442695, %v6363_v35 }
0x27da   :  { %v6461_v39 = vpop.f32.mrb[60].mxu1 }
0x27db   :  { %v6465_v48 = vadd.f32 %v6461_v39, %v6389_v38  ;;  %v8006_v57 = vpop.f32.mrb[61].mxu1 }
0x27dd   :  { %8731 = vtanh.f32 %v6465_v48  ;;  %v7328_v12 = vmul.f32 -1.442695, %v6465_v48 }
0x27de   :  { %8733 = vpow2.f32 %v7326_v3 }
0x27df   :  { %8735 = vpow2.f32 %v7328_v12 }
0x27e2   :  { %v8730_v54 = vpop.eup %8729 }
0x27e3   :  { %6373 = vrot.lane.b32.xlu0 %v8730_v54, %s8801_s3 }
0x27e7   :  { %v8732_v37 = vpop.eup %8731 }
0x27e8   :  { %6475 = vrot.lane.b32.xlu1 %v8732_v37, %s8801_s3  ;;  %v8734_v21 = vpop.eup %8733 }
0x27e9   :  { %v6367_v4 = vadd.f32 1.0, %v8734_v21  ;;  %v8736_v63 = vpop.eup %8735 }
0x27ea   :  { %v6469_v23 = vadd.f32 1.0, %v8736_v63 }
0x2846   :  { %v6563_v34 = vpop.f32.mrb[62].mxu0 }
0x2847   :  { %v6567_v9 = vadd.f32 %v6563_v34, %v6491_v55  ;;  %v8013_v19 = vpop.f32.mrb[63].mxu0 }
0x2849   :  { %8737 = vtanh.f32 %v6567_v9  ;;  %v7330_v49 = vmul.f32 -1.442695, %v6567_v9 }
0x284a   :  { %8739 = vrcp.f32 %v6367_v4 }
0x284b   :  { %v6665_v40 = vpop.f32.mrb[62].mxu1 }
0x284c   :  { %v6669_v52 = vadd.f32 %v6665_v40, %v6593_v58  ;;  %v8020_v33 = vpop.f32.mrb[63].mxu1 }
0x284e   :  { %8741 = vtanh.f32 %v6669_v52  ;;  %v7332_v7 = vmul.f32 -1.442695, %v6669_v52 }
0x284f   :  { %8743 = vrcp.f32 %v6469_v23 }
0x2850   :  { %8745 = vpow2.f32 %v7330_v49 }
0x2851   :  { %8747 = vpow2.f32 %v7332_v7 }
0x2853   :  { %v8738_v45 = vpop.eup %8737 }
0x2854   :  { %6577 = vrot.lane.b32.xlu0 %v8738_v45, %s8801_s3  ;;  %v8740_v46 = vpop.eup %8739 }
0x2855   :  { %v6374_v43 = vpop.permute.xlu0 %6373  ;;  %v6371_v51 = vmul.f32 %v8740_v46, %v9986_v59 }
0x2856   :  { %v6376_v8 = vmul.f32 %v8740_v46, %v6374_v43 }
0x2858   :  { %v8742_v44 = vpop.eup %8741  ;;  %6378 = vrot.lane.b32.xlu0 %v6376_v8, %s8802_s25 }
0x2859   :  { %6679 = vrot.lane.b32.xlu1 %v8742_v44, %s8801_s3  ;;  %v8744_v22 = vpop.eup %8743 }
0x285a   :  { %v6476_v11 = vpop.permute.xlu1 %6475  ;;  %v8746_v29 = vpop.eup %8745  ;;  %v6473_v35 = vmul.f32 %v8744_v22, %v9991_v47 }
0x285b   :  { %v6478_v2 = vmul.f32 %v8744_v22, %v6476_v11  ;;  %v6571_v15 = vadd.f32 1.0, %v8746_v29  ;;  %v8748_v60 = vpop.eup %8747 }
0x285c   :  { %v6673_v13 = vadd.f32 1.0, %v8748_v60 }
0x285d   :  { %6480 = vrot.lane.b32.xlu1 %v6478_v2, %s8802_s25  ;;  %8749 = vrcp.f32 %v6571_v15  ;;  %v7001_v2 = vld [vmem:[#allocation2 + $0x30] sm:$0x3] }
0x285e   :  { %8751 = vrcp.f32 %v6673_v13 }
0x2867   :  { %v8750_v32 = vpop.eup %8749 }
0x2868   :  { %v8752_v20 = vpop.eup %8751  ;;  %v6575_v48 = vmul.f32 %v8750_v32, %v9997_v17 }
0x2869   :  { %v6677_v47 = vmul.f32 %v8752_v20, %v10001_v56 }
0x28c6   :  { %v6578_v41 = vpop.permute.xlu0 %6577 }
0x28c7   :  { %v6580_v30 = vmul.f32 %v8750_v32, %v6578_v41 }
0x28c9   :  { %6582 = vrot.lane.b32.xlu0 %v6580_v30, %s8802_s25 }
0x28ca   :  { %v6379_v6 = vpop.permute.xlu0 %6378 }
0x28cb   :  { %v6680_v62 = vpop.permute.xlu1 %6679  ;;  %v10058_v31 = vadd.f32 %v6379_v6, %v6371_v51 }
0x28cc   :  { %v6682_v36 = vmul.f32 %v8752_v20, %v6680_v62 }
0x28cd   :  { %8753 = vtanh.f32 %v10058_v31 }
0x28ce   :  { %6684 = vrot.lane.b32.xlu1 %v6682_v36, %s8802_s25 }
0x28cf   :  { %v6481_v14 = vpop.permute.xlu1 %6480 }
0x28d0   :  { %v10063_v38 = vadd.f32 %v6481_v14, %v6473_v35 }
0x28d2   :  { %8755 = vtanh.f32 %v10063_v38 }
0x28d7   :  { %v8754_v39 = vpop.eup %8753 }
0x28d8   :  { %6384 = vrot.lane.b32.xlu0 %v8754_v39, %s8802_s25 }
0x28dc   :  { %v8756_v59 = vpop.eup %8755 }
0x28dd   :  { %6486 = vrot.lane.b32.xlu1 %v8756_v59, %s8802_s25 }
0x293b   :  { %v6583_v57 = vpop.permute.xlu0 %6582 }
0x293c   :  { %v10069_v54 = vadd.f32 %v6583_v57, %v6575_v48 }
0x293e   :  { %8757 = vtanh.f32 %v10069_v54 }
0x2940   :  { %v6685_v37 = vpop.permute.xlu1 %6684 }
0x2941   :  { %v10073_v3 = vadd.f32 %v6685_v37, %v6677_v47 }
0x2943   :  { %8759 = vtanh.f32 %v10073_v3 }
0x2948   :  { %v8758_v12 = vpop.eup %8757 }
0x2949   :  { %6588 = vrot.lane.b32.xlu0 %v8758_v12, %s8802_s25 }
0x294a   :  { %v6385_v21 = vpop.permute.xlu0 %6384 }
0x294b   :  { %v6387_v55 = vmul.f32 %v8740_v46, %v6385_v21  ;;  %v6899_v46 = vld [vmem:[#allocation2 + $0x20] sm:$0x3] }
0x294d   :  { %v8760_v34 = vpop.eup %8759  ;;  %v10080_v17 = vmax.f32 %v5980_v42, %v6387_v55  ;;  %6697 = vrot.lane.b32.xlu0 %v6387_v55, %s8803_s26 }
0x294e   :  { %6690 = vrot.lane.b32.xlu1 %v8760_v34, %s8802_s25 }
0x294f   :  { %v6487_v56 = vpop.permute.xlu1 %6486 }
0x2950   :  { %v6489_v4 = vmul.f32 %v8744_v22, %v6487_v56 }
0x2952   :  { %v10087_v9 = vmax.f32 %v6082_v18, %v6489_v4  ;;  %6799 = vrot.lane.b32.xlu1 %v6489_v4, %s8803_s26  ;;  %v6695_v18 = vld [vmem:[#allocation2 + $0xe] sm:$0x3] }
0x29bb   :  { %v6589_v19 = vpop.permute.xlu0 %6588 }
0x29bc   :  { %v6591_v63 = vmul.f32 %v8750_v32, %v6589_v19 }
0x29be   :  { %v10093_v5 = vmax.f32 %v6184_v10, %v6591_v63  ;;  %6901 = vrot.lane.b32.xlu0 %v6591_v63, %s8803_s26 }
0x29bf   :  { %v6698_v42 = vpop.permute.xlu0 %6697 }
0x29c0   :  { %v6691_v16 = vpop.permute.xlu1 %6690  ;;  %8026 = vmatmul.mubr.msk.f32.vlgmr.msra.gmra.mrb[64].mxu0 %vm251_vm4, %v6698_v42 }
0x29c1   :  { %v6693_v58 = vmul.f32 %v8752_v20, %v6691_v16  ;;  %8269 = vmatpush3.bf16.msra.mxu0 %v9583_v1  ;;  %8039 = vmatprep.mubr.msk.f32.mxu0 %vm8798_vm1, %v8799_v28 }
0x29c3   :  { %v10103_v50 = vmax.f32 %v6286_v27, %v6693_v58  ;;  %7003 = vrot.lane.b32.xlu1 %v6693_v58, %s8803_s26 }
0x29c4   :  { %v6800_v26 = vpop.permute.xlu1 %6799 }
0x29c5   :  { %8033 = vmatmul.mubr.msk.f32.vlgmr.msra.gmra.mrb[64].mxu1 %vm251_vm4, %v6800_v26 }
0x29c6   :  { %8272 = vmatpush3.bf16.msra.mxu1 %v9594_v53  ;;  %8046 = vmatprep.mubr.msk.f32.mxu1 %vm8798_vm1, %v8799_v28 }
0x2a30   :  { %v6902_v0 = vpop.permute.xlu0 %6901 }
0x2a31   :  { %8040 = vmatmul.mubr.msk.f32.vlgmr.msra.gmra.mrb[66].mxu0 %vm251_vm4, %v6902_v0 }
0x2a35   :  { %v7004_v1 = vpop.permute.xlu1 %7003 }
0x2a36   :  { %8047 = vmatmul.mubr.msk.f32.vlgmr.msra.gmra.mrb[66].mxu1 %vm251_vm4, %v7004_v1 }
0x2a93   :  { %v6767_v24 = vpop.f32.mrb[64].mxu0 }
0x2a94   :  { %v6771_v61 = vadd.f32 %v6767_v24, %v6695_v18  ;;  %v8027_v10 = vpop.f32.mrb[65].mxu0 }
0x2a96   :  { %8761 = vtanh.f32 %v6771_v61  ;;  %v7334_v52 = vmul.f32 -1.442695, %v6771_v61 }
0x2a98   :  { %v6869_v27 = vpop.f32.mrb[64].mxu1 }
0x2a99   :  { %v6873_v40 = vadd.f32 %v6869_v27, %v6797_v25  ;;  %v8034_v23 = vpop.f32.mrb[65].mxu1 }
0x2a9b   :  { %8763 = vtanh.f32 %v6873_v40  ;;  %v7336_v33 = vmul.f32 -1.442695, %v6873_v40 }
0x2a9c   :  { %8765 = vpow2.f32 %v7334_v52 }
0x2a9d   :  { %8767 = vpow2.f32 %v7336_v33 }
0x2aa0   :  { %v8762_v53 = vpop.eup %8761 }
0x2aa1   :  { %6781 = vrot.lane.b32.xlu0 %v8762_v53, %s8801_s3 }
0x2aa5   :  { %v8764_v28 = vpop.eup %8763 }
0x2aa6   :  { %6883 = vrot.lane.b32.xlu0 %v8764_v28, %s8801_s3  ;;  %v8766_v45 = vpop.eup %8765 }
0x2aa7   :  { %v6775_v8 = vadd.f32 1.0, %v8766_v45  ;;  %v8768_v11 = vpop.eup %8767 }
0x2aa8   :  { %v6877_v7 = vadd.f32 1.0, %v8768_v11 }
0x2b04   :  { %v6971_v43 = vpop.f32.mrb[66].mxu0 }
0x2b05   :  { %v6975_v44 = vadd.f32 %v6971_v43, %v6899_v46  ;;  %v8041_v22 = vpop.f32.mrb[67].mxu0 }
0x2b07   :  { %8769 = vtanh.f32 %v6975_v44  ;;  %v7338_v6 = vmul.f32 -1.442695, %v6975_v44 }
0x2b08   :  { %8771 = vrcp.f32 %v6775_v8 }
0x2b09   :  { %v7073_v49 = vpop.f32.mrb[66].mxu1 }
0x2b0a   :  { %v7077_v29 = vadd.f32 %v7073_v49, %v7001_v2  ;;  %v8048_v15 = vpop.f32.mrb[67].mxu1 }
0x2b0c   :  { %8773 = vtanh.f32 %v7077_v29  ;;  %v7340_v36 = vmul.f32 -1.442695, %v7077_v29 }
0x2b0d   :  { %8775 = vrcp.f32 %v6877_v7 }
0x2b0e   :  { %8777 = vpow2.f32 %v7338_v6 }
0x2b0f   :  { %8779 = vpow2.f32 %v7340_v36 }
0x2b11   :  { %v8770_v60 = vpop.eup %8769 }
0x2b12   :  { %6985 = vrot.lane.b32.xlu1 %v8770_v60, %s8801_s3  ;;  %v8772_v13 = vpop.eup %8771 }
0x2b13   :  { %v6782_v32 = vpop.permute.xlu0 %6781  ;;  %v6779_v37 = vmul.f32 %v8772_v13, %v10058_v31 }
0x2b14   :  { %v6784_v41 = vmul.f32 %v8772_v13, %v6782_v32 }
0x2b16   :  { %v8774_v30 = vpop.eup %8773  ;;  %6786 = vrot.lane.b32.xlu0 %v6784_v41, %s8802_s25 }
0x2b17   :  { %7087 = vrot.lane.b32.xlu1 %v8774_v30, %s8801_s3  ;;  %v8776_v51 = vpop.eup %8775 }
0x2b18   :  { %v6884_v20 = vpop.permute.xlu0 %6883  ;;  %v8778_v35 = vpop.eup %8777  ;;  %v6881_v4 = vmul.f32 %v8776_v51, %v10063_v38 }
0x2b19   :  { %v6886_v62 = vmul.f32 %v8776_v51, %v6884_v20  ;;  %v6979_v14 = vadd.f32 1.0, %v8778_v35  ;;  %v8780_v39 = vpop.eup %8779 }
0x2b1a   :  { %v7081_v59 = vadd.f32 1.0, %v8780_v39 }
0x2b1b   :  { %6888 = vrot.lane.b32.xlu0 %v6886_v62, %s8802_s25  ;;  %8781 = vrcp.f32 %v6979_v14 }
0x2b1c   :  { %8783 = vrcp.f32 %v7081_v59 }
0x2b25   :  { %v8782_v48 = vpop.eup %8781 }
0x2b26   :  { %v8784_v12 = vpop.eup %8783  ;;  %v6983_v31 = vmul.f32 %v8782_v48, %v10069_v54 }
0x2b27   :  { %v7085_v0 = vmul.f32 %v8784_v12, %v10073_v3 }
0x2b84   :  { %v6986_v57 = vpop.permute.xlu1 %6985 }
0x2b85   :  { %v6988_v47 = vmul.f32 %v8782_v48, %v6986_v57 }
0x2b87   :  { %6990 = vrot.lane.b32.xlu1 %v6988_v47, %s8802_s25 }
0x2b88   :  { %v6787_v55 = vpop.permute.xlu0 %6786 }
0x2b89   :  { %v7088_v21 = vpop.permute.xlu1 %7087  ;;  %v6789_v56 = vadd.f32 %v6787_v55, %v6779_v37 }
0x2b8a   :  { %v7090_v34 = vmul.f32 %v8784_v12, %v7088_v21 }
0x2b8b   :  { %8785 = vtanh.f32 %v6789_v56 }
0x2b8c   :  { %7092 = vrot.lane.b32.xlu1 %v7090_v34, %s8802_s25 }
0x2b8d   :  { %v6889_v19 = vpop.permute.xlu0 %6888 }
0x2b8e   :  { %v6891_v63 = vadd.f32 %v6889_v19, %v6881_v4 }
0x2b90   :  { %8787 = vtanh.f32 %v6891_v63 }
0x2b95   :  { %v8786_v16 = vpop.eup %8785 }
0x2b96   :  { %6792 = vrot.lane.b32.xlu0 %v8786_v16, %s8802_s25 }
0x2b9a   :  { %v8788_v42 = vpop.eup %8787 }
0x2b9b   :  { %6894 = vrot.lane.b32.xlu0 %v8788_v42, %s8802_s25 }
0x2bf9   :  { %v6991_v58 = vpop.permute.xlu1 %6990 }
0x2bfa   :  { %v6993_v26 = vadd.f32 %v6991_v58, %v6983_v31 }
0x2bfc   :  { %8789 = vtanh.f32 %v6993_v26 }
0x2bfe   :  { %v7093_v1 = vpop.permute.xlu1 %7092 }
0x2bff   :  { %v7095_v18 = vadd.f32 %v7093_v1, %v7085_v0 }
0x2c01   :  { %8791 = vtanh.f32 %v7095_v18 }
0x2c06   :  { %v8790_v38 = vpop.eup %8789 }
0x2c07   :  { %6996 = vrot.lane.b32.xlu1 %v8790_v38, %s8802_s25 }
0x2c08   :  { %v6793_v24 = vpop.permute.xlu0 %6792 }
0x2c09   :  { %v6795_v10 = vmul.f32 %v8772_v13, %v6793_v24 }
0x2c0b   :  { %v8792_v61 = vpop.eup %8791  ;;  %v6796_v54 = vmax.f32 %v10080_v17, %v6795_v10 }
0x2c0c   :  { %7098 = vrot.lane.b32.xlu1 %v8792_v61, %s8802_s25 }
0x2c0d   :  { %v6895_v25 = vpop.permute.xlu0 %6894  ;;  %v7113_v33 = vmul.f32 %v6796_v54, %v6796_v54 }
0x2c0e   :  { %v6897_v27 = vmul.f32 %v8776_v51, %v6895_v25 }
0x2c10   :  { %v6898_v40 = vmax.f32 %v10087_v9, %v6897_v27 }
0x2c12   :  { %v7103_v23 = vmul.f32 %v6898_v40, %v6796_v54  ;;  %v7123_v44 = vmul.f32 %v6898_v40, %v6898_v40 }
0x2c79   :  { %v6997_v53 = vpop.permute.xlu1 %6996 }
0x2c7a   :  { %v6999_v3 = vmul.f32 %v8782_v48, %v6997_v53 }
0x2c7c   :  { %v7000_v28 = vmax.f32 %v10093_v5, %v6999_v3 }
0x2c7e   :  { %v7099_v52 = vpop.permute.xlu1 %7098  ;;  %v7114_v45 = vmul.f32 %v7000_v28, %v7000_v28 }
0x2c7f   :  { %v7101_v46 = vmul.f32 %v8784_v12, %v7099_v52 }
0x2c80   :  { %v7115_v43 = vadd.f32 %v7114_v45, %v7113_v33 }
0x2c81   :  { %v7102_v8 = vmax.f32 %v10103_v50, %v7101_v46 }
0x2c82   :  { %7117 = vrot.lane.b32.xlu0 %v7115_v43, %s8803_s26 }
0x2c83   :  { %v7104_v22 = vmul.f32 %v7102_v8, %v7000_v28  ;;  %v7124_v11 = vmul.f32 %v7102_v8, %v7102_v8 }
0x2c85   :  { %v7105_v17 = vadd.f32 %v7104_v22, %v7103_v23  ;;  %v7125_v2 = vadd.f32 %v7124_v11, %v7123_v44 }
0x2c87   :  { %7127 = vrot.lane.b32.xlu1 %v7125_v2, %s8803_s26  ;;  %7107 = vrot.lane.b32.xlu0 %v7105_v17, %s8803_s26 }
0x2cf4   :  { %v7118_v9 = vpop.permute.xlu0 %7117 }
0x2cf5   :  { %v7120_v5 = vsel %vm354_vm3, %v7118_v9, 0.0 }
0x2cf6   :  { %7121 = vadd.xlane.f32.xlu1 %v7120_v5 }
0x2cf9   :  { %v7128_v49 = vpop.permute.xlu1 %7127  ;;  %v7108_v29 = vpop.permute.xlu0 %7107 }
0x2cfa   :  { %v7130_v7 = vsel %vm354_vm3, %v7128_v49, 0.0  ;;  %v7110_v50 = vsel %vm354_vm3, %v7108_v29, 0.0 }
0x2cfb   :  { %7131 = vadd.xlane.f32.xlu0 %v7130_v7 }
0x2cff   :  { %7111 = vadd.xlane.f32.xlu0 %v7110_v50 }
0x2d83   :  { %v7122_v15 = vpop.xlane.xlu1 %7121 }
0x2d84   :  { %v7133_v60 = vmax.f32 %v7122_v15, 1e-16 }
0x2d86   :  { %8793 = vrsqrt.f32 %v7133_v60 }
0x2d88   :  { %v7132_v13 = vpop.xlane.xlu0 %7131 }
0x2d89   :  { %v7135_v32 = vmax.f32 %v7132_v13, 1e-16 }
0x2d8b   :  { %8795 = vrsqrt.f32 %v7135_v32 }
0x2d8c   :  { %v7112_v30 = vpop.xlane.xlu0 %7111 }
0x2d90   :  { %v8794_v41 = vpop.eup %8793 }
0x2d91   :  { %v7137_v51 = vmul.f32 %v8794_v41, %v7112_v30 }
0x2d95   :  { %v8796_v20 = vpop.eup %8795 }
0x2d96   :  { %v7138_v62 = vmul.f32 %v8796_v20, %v7137_v51 }
0x2d98   :  { %7140 = vst.msk [vmem:[%s10149_s8] sm:$0x3] %vm7139_vm6, %v7138_v62 }

</bundles_post_ra>
